<compile_context>
chip_gen: v7x
topology: tpu7x:2x2x1
jax: 0.10.0
libtpu: 0.0.40
codegen_flags: <defaults>
</compile_context>

<pallas_src>
import numpy as np

import jax
import jax.numpy as jnp
from jax import lax
from jax.experimental import pallas as pl
from jax.experimental.pallas import tpu as pltpu


# per-image geometry of the three deconv layers (input side)
#   layer l: input H=W=_H[l], padded width _WP[l]=H+2, padded size _P[l]=_WP**2,
#   GEMM lane width _L[l] = _P - 2*_WP - 2 (covers every valid output column).
_H = (4, 8, 16)
_WP = (6, 10, 18)
_P = (36, 100, 324)
_L = (22, 78, 286)
_L3, _P3 = _L[2], _P[2]


# --------------------------------------------------------------------------
# Fused decoder kernel (one grid step == one image)
# --------------------------------------------------------------------------
def _decoder_kernel(z_ref, fcwp_ref, fcb_ref,
                    w1_ref, b1_ref, s1_ref,
                    w2_ref, b2_ref, s2_ref,
                    w3_ref, b3_ref,
                    out_ref):
    f32 = jnp.float32
    b = pl.program_id(0)
    latent = fcwp_ref.shape[0]

    # ---- fc: Linear(latent, 128*4*4), produced directly in the padded
    #      (128, 6*6) channels-major layout of the first deconv input.
    #      (fcwp / fcb are zero on the padding ring.)  z[k] comes from SMEM
    #      as a scalar, so each term is a scalar-vector multiply-add.
    x = fcb_ref[...]                                     # (128, 36)
    for k in range(latent):
        x = x + fcwp_ref[k] * z_ref[b, k]

    # ---- ConvTranspose2d(4,2,1) as 4 sub-pixel phases.  The 4 taps of a
    #      phase become ONE GEMM: stack 4 lane-shifted views of the padded
    #      input along the reduction axis (K = 4*Cin) and multiply by the
    #      matching tap-concatenated weight (Cout, 4*Cin).  Output is the
    #      lane-dense (Cout, L) phase map.
    def deconv_phases(xpad, wcat_ref, b_ref, wp, ell, act):
        wprime = xpad.shape[1] - wp - 1                  # widest slice needed
        # piece order (dy,dx) = (0,0),(0,1),(1,0),(1,1)  <->  offsets below
        xcat = jnp.concatenate(
            [xpad[:, o:o + wprime] for o in (0, 1, wp, wp + 1)], axis=0)
        outs = []
        for ry in range(2):
            for rx in range(2):
                base = ry * wp + rx
                acc = jnp.dot(wcat_ref[ry * 2 + rx], xcat[:, base:base + ell],
                              preferred_element_type=f32)
                acc = acc + b_ref[...]                   # (Cout, 1) broadcast
                if act == "relu":
                    acc = jnp.maximum(acc, 0.0)
                else:                                    # sigmoid
                    acc = 1.0 / (1.0 + jnp.exp(-acc))
                outs.append(acc)
        return outs

    # layer 1: 128 -> 64, 4x4 -> 8x8 ; scatter phases into next padded buffer
    ph = deconv_phases(x, w1_ref, b1_ref, _WP[0], _L[0], "relu")
    x = None
    for i in range(4):
        t = jnp.dot(ph[i], s1_ref[i], preferred_element_type=f32)   # (64, 100)
        x = t if x is None else x + t

    # layer 2: 64 -> 32, 8x8 -> 16x16
    ph = deconv_phases(x, w2_ref, b2_ref, _WP[1], _L[1], "relu")
    x = None
    for i in range(4):
        t = jnp.dot(ph[i], s2_ref[i], preferred_element_type=f32)   # (32, 324)
        x = t if x is None else x + t

    # layer 3: 32 -> 3, 16x16 -> 32x32 (+ sigmoid).  Phase maps are stored
    # separately (lane width 286); the 2x2 interleave happens in the wrapper.
    ph = deconv_phases(x, w3_ref, b3_ref, _WP[2], _L[2], "sigmoid")
    for i in range(4):
        out_ref[0, i] = ph[i]


# --------------------------------------------------------------------------
# One-time parameter repacking (PyTorch layout -> kernel GEMM layout)
# --------------------------------------------------------------------------
def prepare_params(params):
    f32 = jnp.float32
    lat = params["fc_w"].shape[1]

    # fc weight -> (latent, 128, 36): channel-c value at *padded* 6x6 position
    # (y+1, x+1); padding ring stays zero.
    fcw = jnp.transpose(params["fc_w"].reshape(128, 4, 4, lat), (3, 0, 1, 2))
    fcwp = jnp.zeros((lat, 128, 6, 6), f32).at[:, :, 1:5, 1:5].set(fcw)
    fcwp = fcwp.reshape(lat, 128, 36)

    fcb = jnp.zeros((128, 6, 6), f32).at[:, 1:5, 1:5].set(
        params["fc_b"].reshape(128, 4, 4).astype(f32)).reshape(128, 36)

    def conv_taps_cat(w):   # (Cin, Cout, 4, 4) -> (4 phases, Cout, 4*Cin)
        phases = []
        for ry in range(2):
            for rx in range(2):
                taps = []
                for dy in range(2):        # order must match kernel's xcat:
                    for dx in range(2):    # (0,0),(0,1),(1,0),(1,1)
                        taps.append(jnp.transpose(
                            w[:, :, 3 - ry - 2 * dy, 3 - rx - 2 * dx]))
                phases.append(jnp.concatenate(taps, axis=1))
        return jnp.stack(phases, 0).astype(f32)

    def scatter_mats(h):              # sub-pixel scatter into next padded buffer
        wp = h + 2
        p = wp * wp
        ell = p - 2 * wp - 2
        wpn = 2 * h + 2
        pn = wpn * wpn
        s = np.zeros((4, ell, pn), np.float32)
        for ry in range(2):
            for rx in range(2):
                for q in range(h):
                    for pp in range(h):
                        s[ry * 2 + rx, q * wp + pp,
                          (2 * q + ry + 1) * wpn + (2 * pp + rx + 1)] = 1.0
        return jnp.asarray(s)

    return {
        "fcwp": fcwp, "fcb": fcb,
        "w1c": conv_taps_cat(params["w1"]), "b1": params["b1"].reshape(64, 1).astype(f32),
        "s1": scatter_mats(4),
        "w2c": conv_taps_cat(params["w2"]), "b2": params["b2"].reshape(32, 1).astype(f32),
        "s2": scatter_mats(8),
        "w3c": conv_taps_cat(params["w3"]), "b3": params["b3"].reshape(3, 1).astype(f32),
    }


# --------------------------------------------------------------------------
# Forward pass
# --------------------------------------------------------------------------
def decoder_forward(z, prep):
    n, lat = z.shape
    z32 = z.astype(jnp.float32)                                  # (N, latent) -> SMEM

    raw = pl.pallas_call(
        _decoder_kernel,
        out_shape=jax.ShapeDtypeStruct((n, 4, 3, _L3), jnp.float32),
        grid=(n,),
        in_specs=[
            pl.BlockSpec(memory_space=pltpu.MemorySpace.SMEM),   # z (scalars)
            pl.BlockSpec((lat, 128, 36), lambda i: (0, 0, 0)),   # fc weight (padded layout)
            pl.BlockSpec((128, 36), lambda i: (0, 0)),           # fc bias   (padded layout)
            pl.BlockSpec((4, 64, 512), lambda i: (0, 0, 0)),     # deconv1 taps (phase-merged)
            pl.BlockSpec((64, 1), lambda i: (0, 0)),             # b1
            pl.BlockSpec((4, 22, 100), lambda i: (0, 0, 0)),     # scatter 1
            pl.BlockSpec((4, 32, 256), lambda i: (0, 0, 0)),     # deconv2 taps (phase-merged)
            pl.BlockSpec((32, 1), lambda i: (0, 0)),             # b2
            pl.BlockSpec((4, 78, 324), lambda i: (0, 0, 0)),     # scatter 2
            pl.BlockSpec((4, 3, 128), lambda i: (0, 0, 0)),      # deconv3 taps (phase-merged)
            pl.BlockSpec((3, 1), lambda i: (0, 0)),              # b3
        ],
        out_specs=pl.BlockSpec((1, 4, 3, _L3), lambda i: (i, 0, 0, 0)),
        compiler_params=pltpu.CompilerParams(
            dimension_semantics=("parallel",)),
    )(z32, prep["fcwp"], prep["fcb"],
      prep["w1c"], prep["b1"], prep["s1"],
      prep["w2c"], prep["b2"], prep["s2"],
      prep["w3c"], prep["b3"])

    # tiny epilogue: 2x2 sub-pixel interleave of the 4 phase maps + NCHW layout
    x = jnp.pad(raw, ((0, 0), (0, 0), (0, 0), (0, _P3 - _L3)))
    x = x.reshape(n, 2, 2, 3, 18, 18)[:, :, :, :, :16, :16]      # (n, ry, rx, c, q, p)
    x = jnp.transpose(x, (0, 3, 4, 1, 5, 2)).reshape(n, 3, 32, 32)
    return x


# --------------------------------------------------------------------------
# Pure-JAX reference (lax conv) to validate the Pallas path
# --------------------------------------------------------------------------
def _ref_conv_transpose2d(x, w, b, activation):
    w_t = jnp.flip(w, (2, 3)).transpose(1, 0, 2, 3)              # (Cout, Cin, 4, 4)
    out = lax.conv_general_dilated(
        x, w_t, window_strides=(1, 1), padding=[(2, 2), (2, 2)],
        lhs_dilation=(2, 2), rhs_dilation=(1, 1),
        dimension_numbers=("NCHW", "OIHW", "NCHW"))
    out = out + b[None, :, None, None]
    if activation == "relu":
        out = jnp.maximum(out, 0.0)
    elif activation == "sigmoid":
        out = jax.nn.sigmoid(out)
    return out


def _ref_forward(z, params):
    n = z.shape[0]
    x = z @ params["fc_w"].T + params["fc_b"]
    x = x.reshape(n, 128, 4, 4)
    x = _ref_conv_transpose2d(x, params["w1"], params["b1"], "relu")
    x = _ref_conv_transpose2d(x, params["w2"], params["b2"], "relu")
    x = _ref_conv_transpose2d(x, params["w3"], params["b3"], "sigmoid")
    return x


# --------------------------------------------------------------------------
def init_params(latent_dim, key):
    ks = jax.random.split(key, 8)
    s = 0.05
    return {
        # nn.Linear(latent_dim, 128*4*4): weight (out, in), bias (out,)
        "fc_w": s * jax.random.normal(ks[0], (128 * 4 * 4, latent_dim), jnp.float32),
        "fc_b": s * jax.random.normal(ks[1], (128 * 4 * 4,), jnp.float32),
        # nn.ConvTranspose2d weights: (in_channels, out_channels, kH, kW)
        "w1": s * jax.random.normal(ks[2], (128, 64, 4, 4), jnp.float32),
        "b1": s * jax.random.normal(ks[3], (64,), jnp.float32),
        "w2": s * jax.random.normal(ks[4], (64, 32, 4, 4), jnp.float32),
        "b2": s * jax.random.normal(ks[5], (32,), jnp.float32),
        "w3": s * jax.random.normal(ks[6], (32, 3, 4, 4), jnp.float32),
        "b3": s * jax.random.normal(ks[7], (3,), jnp.float32),
    }


if __name__ == "__main__":
    latent_dim = 32
    batch = 2
    key = jax.random.PRNGKey(0)
    k_z, k_p = jax.random.split(key)
    params = init_params(latent_dim, k_p)
    prep = prepare_params(params)          # one-time GEMM-friendly weight repack
    z = jax.random.normal(k_z, (batch, latent_dim), jnp.float32)

    fwd = jax.jit(decoder_forward)
    out = jax.block_until_ready(fwd(z, prep))
    assert out.shape == (batch, 3, 32, 32), out.shape

    ref = jax.block_until_ready(_ref_forward(z, params))
    max_err = float(jnp.max(jnp.abs(out - ref)))
    assert jnp.allclose(out, ref, rtol=1e-4, atol=1e-4), max_err

    print("KERNEL_OK")
</pallas_src>

<mosaic_0001>
module attributes {stable_mosaic.version = 11 : i64} {
  func.func @_decoder_kernel(%arg0: i32, %arg1: memref<2x32xf32, #tpu.memory_space<smem>>, %arg2: memref<32x128x36xf32, #tpu.memory_space<vmem>>, %arg3: memref<128x36xf32, #tpu.memory_space<vmem>>, %arg4: memref<4x64x512xf32, #tpu.memory_space<vmem>>, %arg5: memref<64x1xf32, #tpu.memory_space<vmem>>, %arg6: memref<4x22x100xf32, #tpu.memory_space<vmem>>, %arg7: memref<4x32x256xf32, #tpu.memory_space<vmem>>, %arg8: memref<32x1xf32, #tpu.memory_space<vmem>>, %arg9: memref<4x78x324xf32, #tpu.memory_space<vmem>>, %arg10: memref<4x3x128xf32, #tpu.memory_space<vmem>>, %arg11: memref<3x1xf32, #tpu.memory_space<vmem>>, %arg12: memref<1x4x3x286xf32, #tpu.memory_space<vmem>>) attributes {dimension_semantics = [#tpu.dimension_semantics<parallel>], iteration_bounds = array<i64: 2>, scalar_prefetch = 0 : i64, scratch_operands = 0 : i64, tpu.core_type = #tpu.core_type<tc>, window_params = [{transform_indices = @transform_0, window_bounds = array<i64: 2, 32>}, {pipeline_mode = #tpu.pipeline_mode<synchronous>, transform_indices = @transform_1, window_bounds = array<i64: 32, 128, 36>}, {pipeline_mode = #tpu.pipeline_mode<synchronous>, transform_indices = @transform_2, window_bounds = array<i64: 128, 36>}, {pipeline_mode = #tpu.pipeline_mode<synchronous>, transform_indices = @transform_3, window_bounds = array<i64: 4, 64, 512>}, {pipeline_mode = #tpu.pipeline_mode<synchronous>, transform_indices = @transform_4, window_bounds = array<i64: 64, 1>}, {pipeline_mode = #tpu.pipeline_mode<synchronous>, transform_indices = @transform_5, window_bounds = array<i64: 4, 22, 100>}, {pipeline_mode = #tpu.pipeline_mode<synchronous>, transform_indices = @transform_6, window_bounds = array<i64: 4, 32, 256>}, {pipeline_mode = #tpu.pipeline_mode<synchronous>, transform_indices = @transform_7, window_bounds = array<i64: 32, 1>}, {pipeline_mode = #tpu.pipeline_mode<synchronous>, transform_indices = @transform_8, window_bounds = array<i64: 4, 78, 324>}, {pipeline_mode = #tpu.pipeline_mode<synchronous>, transform_indices = @transform_9, window_bounds = array<i64: 4, 3, 128>}, {pipeline_mode = #tpu.pipeline_mode<synchronous>, transform_indices = @transform_10, window_bounds = array<i64: 3, 1>}, {transform_indices = @transform_11, window_bounds = array<i64: 1, 4, 3, 286>}]} {
    %c0 = arith.constant 0 : index
    %c0_0 = arith.constant 0 : index
    %0 = vector.load %arg3[%c0, %c0_0] : memref<128x36xf32, #tpu.memory_space<vmem>>, vector<128x36xf32>
    %c0_1 = arith.constant 0 : index
    %c0_2 = arith.constant 0 : index
    %c0_3 = arith.constant 0 : index
    %1 = vector.load %arg2[%c0_1, %c0_2, %c0_3] : memref<32x128x36xf32, #tpu.memory_space<vmem>>, vector<1x128x36xf32>
    %2 = vector.shape_cast %1 : vector<1x128x36xf32> to vector<128x36xf32>
    %3 = arith.index_cast %arg0 : i32 to index
    %c0_4 = arith.constant 0 : index
    %4 = memref.load %arg1[%3, %c0_4] : memref<2x32xf32, #tpu.memory_space<smem>>
    %5 = vector.broadcast %4 : f32 to vector<128x36xf32>
    %6 = arith.mulf %2, %5 : vector<128x36xf32>
    %7 = arith.addf %0, %6 : vector<128x36xf32>
    %c1 = arith.constant 1 : index
    %c0_5 = arith.constant 0 : index
    %c0_6 = arith.constant 0 : index
    %8 = vector.load %arg2[%c1, %c0_5, %c0_6] : memref<32x128x36xf32, #tpu.memory_space<vmem>>, vector<1x128x36xf32>
    %9 = vector.shape_cast %8 : vector<1x128x36xf32> to vector<128x36xf32>
    %10 = arith.index_cast %arg0 : i32 to index
    %c1_7 = arith.constant 1 : index
    %11 = memref.load %arg1[%10, %c1_7] : memref<2x32xf32, #tpu.memory_space<smem>>
    %12 = vector.broadcast %11 : f32 to vector<128x36xf32>
    %13 = arith.mulf %9, %12 : vector<128x36xf32>
    %14 = arith.addf %7, %13 : vector<128x36xf32>
    %c2 = arith.constant 2 : index
    %c0_8 = arith.constant 0 : index
    %c0_9 = arith.constant 0 : index
    %15 = vector.load %arg2[%c2, %c0_8, %c0_9] : memref<32x128x36xf32, #tpu.memory_space<vmem>>, vector<1x128x36xf32>
    %16 = vector.shape_cast %15 : vector<1x128x36xf32> to vector<128x36xf32>
    %17 = arith.index_cast %arg0 : i32 to index
    %c2_10 = arith.constant 2 : index
    %18 = memref.load %arg1[%17, %c2_10] : memref<2x32xf32, #tpu.memory_space<smem>>
    %19 = vector.broadcast %18 : f32 to vector<128x36xf32>
    %20 = arith.mulf %16, %19 : vector<128x36xf32>
    %21 = arith.addf %14, %20 : vector<128x36xf32>
    %c3 = arith.constant 3 : index
    %c0_11 = arith.constant 0 : index
    %c0_12 = arith.constant 0 : index
    %22 = vector.load %arg2[%c3, %c0_11, %c0_12] : memref<32x128x36xf32, #tpu.memory_space<vmem>>, vector<1x128x36xf32>
    %23 = vector.shape_cast %22 : vector<1x128x36xf32> to vector<128x36xf32>
    %24 = arith.index_cast %arg0 : i32 to index
    %c3_13 = arith.constant 3 : index
    %25 = memref.load %arg1[%24, %c3_13] : memref<2x32xf32, #tpu.memory_space<smem>>
    %26 = vector.broadcast %25 : f32 to vector<128x36xf32>
    %27 = arith.mulf %23, %26 : vector<128x36xf32>
    %28 = arith.addf %21, %27 : vector<128x36xf32>
    %c4 = arith.constant 4 : index
    %c0_14 = arith.constant 0 : index
    %c0_15 = arith.constant 0 : index
    %29 = vector.load %arg2[%c4, %c0_14, %c0_15] : memref<32x128x36xf32, #tpu.memory_space<vmem>>, vector<1x128x36xf32>
    %30 = vector.shape_cast %29 : vector<1x128x36xf32> to vector<128x36xf32>
    %31 = arith.index_cast %arg0 : i32 to index
    %c4_16 = arith.constant 4 : index
    %32 = memref.load %arg1[%31, %c4_16] : memref<2x32xf32, #tpu.memory_space<smem>>
    %33 = vector.broadcast %32 : f32 to vector<128x36xf32>
    %34 = arith.mulf %30, %33 : vector<128x36xf32>
    %35 = arith.addf %28, %34 : vector<128x36xf32>
    %c5 = arith.constant 5 : index
    %c0_17 = arith.constant 0 : index
    %c0_18 = arith.constant 0 : index
    %36 = vector.load %arg2[%c5, %c0_17, %c0_18] : memref<32x128x36xf32, #tpu.memory_space<vmem>>, vector<1x128x36xf32>
    %37 = vector.shape_cast %36 : vector<1x128x36xf32> to vector<128x36xf32>
    %38 = arith.index_cast %arg0 : i32 to index
    %c5_19 = arith.constant 5 : index
    %39 = memref.load %arg1[%38, %c5_19] : memref<2x32xf32, #tpu.memory_space<smem>>
    %40 = vector.broadcast %39 : f32 to vector<128x36xf32>
    %41 = arith.mulf %37, %40 : vector<128x36xf32>
    %42 = arith.addf %35, %41 : vector<128x36xf32>
    %c6 = arith.constant 6 : index
    %c0_20 = arith.constant 0 : index
    %c0_21 = arith.constant 0 : index
    %43 = vector.load %arg2[%c6, %c0_20, %c0_21] : memref<32x128x36xf32, #tpu.memory_space<vmem>>, vector<1x128x36xf32>
    %44 = vector.shape_cast %43 : vector<1x128x36xf32> to vector<128x36xf32>
    %45 = arith.index_cast %arg0 : i32 to index
    %c6_22 = arith.constant 6 : index
    %46 = memref.load %arg1[%45, %c6_22] : memref<2x32xf32, #tpu.memory_space<smem>>
    %47 = vector.broadcast %46 : f32 to vector<128x36xf32>
    %48 = arith.mulf %44, %47 : vector<128x36xf32>
    %49 = arith.addf %42, %48 : vector<128x36xf32>
    %c7 = arith.constant 7 : index
    %c0_23 = arith.constant 0 : index
    %c0_24 = arith.constant 0 : index
    %50 = vector.load %arg2[%c7, %c0_23, %c0_24] : memref<32x128x36xf32, #tpu.memory_space<vmem>>, vector<1x128x36xf32>
    %51 = vector.shape_cast %50 : vector<1x128x36xf32> to vector<128x36xf32>
    %52 = arith.index_cast %arg0 : i32 to index
    %c7_25 = arith.constant 7 : index
    %53 = memref.load %arg1[%52, %c7_25] : memref<2x32xf32, #tpu.memory_space<smem>>
    %54 = vector.broadcast %53 : f32 to vector<128x36xf32>
    %55 = arith.mulf %51, %54 : vector<128x36xf32>
    %56 = arith.addf %49, %55 : vector<128x36xf32>
    %c8 = arith.constant 8 : index
    %c0_26 = arith.constant 0 : index
    %c0_27 = arith.constant 0 : index
    %57 = vector.load %arg2[%c8, %c0_26, %c0_27] : memref<32x128x36xf32, #tpu.memory_space<vmem>>, vector<1x128x36xf32>
    %58 = vector.shape_cast %57 : vector<1x128x36xf32> to vector<128x36xf32>
    %59 = arith.index_cast %arg0 : i32 to index
    %c8_28 = arith.constant 8 : index
    %60 = memref.load %arg1[%59, %c8_28] : memref<2x32xf32, #tpu.memory_space<smem>>
    %61 = vector.broadcast %60 : f32 to vector<128x36xf32>
    %62 = arith.mulf %58, %61 : vector<128x36xf32>
    %63 = arith.addf %56, %62 : vector<128x36xf32>
    %c9 = arith.constant 9 : index
    %c0_29 = arith.constant 0 : index
    %c0_30 = arith.constant 0 : index
    %64 = vector.load %arg2[%c9, %c0_29, %c0_30] : memref<32x128x36xf32, #tpu.memory_space<vmem>>, vector<1x128x36xf32>
    %65 = vector.shape_cast %64 : vector<1x128x36xf32> to vector<128x36xf32>
    %66 = arith.index_cast %arg0 : i32 to index
    %c9_31 = arith.constant 9 : index
    %67 = memref.load %arg1[%66, %c9_31] : memref<2x32xf32, #tpu.memory_space<smem>>
    %68 = vector.broadcast %67 : f32 to vector<128x36xf32>
    %69 = arith.mulf %65, %68 : vector<128x36xf32>
    %70 = arith.addf %63, %69 : vector<128x36xf32>
    %c10 = arith.constant 10 : index
    %c0_32 = arith.constant 0 : index
    %c0_33 = arith.constant 0 : index
    %71 = vector.load %arg2[%c10, %c0_32, %c0_33] : memref<32x128x36xf32, #tpu.memory_space<vmem>>, vector<1x128x36xf32>
    %72 = vector.shape_cast %71 : vector<1x128x36xf32> to vector<128x36xf32>
    %73 = arith.index_cast %arg0 : i32 to index
    %c10_34 = arith.constant 10 : index
    %74 = memref.load %arg1[%73, %c10_34] : memref<2x32xf32, #tpu.memory_space<smem>>
    %75 = vector.broadcast %74 : f32 to vector<128x36xf32>
    %76 = arith.mulf %72, %75 : vector<128x36xf32>
    %77 = arith.addf %70, %76 : vector<128x36xf32>
    %c11 = arith.constant 11 : index
    %c0_35 = arith.constant 0 : index
    %c0_36 = arith.constant 0 : index
    %78 = vector.load %arg2[%c11, %c0_35, %c0_36] : memref<32x128x36xf32, #tpu.memory_space<vmem>>, vector<1x128x36xf32>
    %79 = vector.shape_cast %78 : vector<1x128x36xf32> to vector<128x36xf32>
    %80 = arith.index_cast %arg0 : i32 to index
    %c11_37 = arith.constant 11 : index
    %81 = memref.load %arg1[%80, %c11_37] : memref<2x32xf32, #tpu.memory_space<smem>>
    %82 = vector.broadcast %81 : f32 to vector<128x36xf32>
    %83 = arith.mulf %79, %82 : vector<128x36xf32>
    %84 = arith.addf %77, %83 : vector<128x36xf32>
    %c12 = arith.constant 12 : index
    %c0_38 = arith.constant 0 : index
    %c0_39 = arith.constant 0 : index
    %85 = vector.load %arg2[%c12, %c0_38, %c0_39] : memref<32x128x36xf32, #tpu.memory_space<vmem>>, vector<1x128x36xf32>
    %86 = vector.shape_cast %85 : vector<1x128x36xf32> to vector<128x36xf32>
    %87 = arith.index_cast %arg0 : i32 to index
    %c12_40 = arith.constant 12 : index
    %88 = memref.load %arg1[%87, %c12_40] : memref<2x32xf32, #tpu.memory_space<smem>>
    %89 = vector.broadcast %88 : f32 to vector<128x36xf32>
    %90 = arith.mulf %86, %89 : vector<128x36xf32>
    %91 = arith.addf %84, %90 : vector<128x36xf32>
    %c13 = arith.constant 13 : index
    %c0_41 = arith.constant 0 : index
    %c0_42 = arith.constant 0 : index
    %92 = vector.load %arg2[%c13, %c0_41, %c0_42] : memref<32x128x36xf32, #tpu.memory_space<vmem>>, vector<1x128x36xf32>
    %93 = vector.shape_cast %92 : vector<1x128x36xf32> to vector<128x36xf32>
    %94 = arith.index_cast %arg0 : i32 to index
    %c13_43 = arith.constant 13 : index
    %95 = memref.load %arg1[%94, %c13_43] : memref<2x32xf32, #tpu.memory_space<smem>>
    %96 = vector.broadcast %95 : f32 to vector<128x36xf32>
    %97 = arith.mulf %93, %96 : vector<128x36xf32>
    %98 = arith.addf %91, %97 : vector<128x36xf32>
    %c14 = arith.constant 14 : index
    %c0_44 = arith.constant 0 : index
    %c0_45 = arith.constant 0 : index
    %99 = vector.load %arg2[%c14, %c0_44, %c0_45] : memref<32x128x36xf32, #tpu.memory_space<vmem>>, vector<1x128x36xf32>
    %100 = vector.shape_cast %99 : vector<1x128x36xf32> to vector<128x36xf32>
    %101 = arith.index_cast %arg0 : i32 to index
    %c14_46 = arith.constant 14 : index
    %102 = memref.load %arg1[%101, %c14_46] : memref<2x32xf32, #tpu.memory_space<smem>>
    %103 = vector.broadcast %102 : f32 to vector<128x36xf32>
    %104 = arith.mulf %100, %103 : vector<128x36xf32>
    %105 = arith.addf %98, %104 : vector<128x36xf32>
    %c15 = arith.constant 15 : index
    %c0_47 = arith.constant 0 : index
    %c0_48 = arith.constant 0 : index
    %106 = vector.load %arg2[%c15, %c0_47, %c0_48] : memref<32x128x36xf32, #tpu.memory_space<vmem>>, vector<1x128x36xf32>
    %107 = vector.shape_cast %106 : vector<1x128x36xf32> to vector<128x36xf32>
    %108 = arith.index_cast %arg0 : i32 to index
    %c15_49 = arith.constant 15 : index
    %109 = memref.load %arg1[%108, %c15_49] : memref<2x32xf32, #tpu.memory_space<smem>>
    %110 = vector.broadcast %109 : f32 to vector<128x36xf32>
    %111 = arith.mulf %107, %110 : vector<128x36xf32>
    %112 = arith.addf %105, %111 : vector<128x36xf32>
    %c16 = arith.constant 16 : index
    %c0_50 = arith.constant 0 : index
    %c0_51 = arith.constant 0 : index
    %113 = vector.load %arg2[%c16, %c0_50, %c0_51] : memref<32x128x36xf32, #tpu.memory_space<vmem>>, vector<1x128x36xf32>
    %114 = vector.shape_cast %113 : vector<1x128x36xf32> to vector<128x36xf32>
    %115 = arith.index_cast %arg0 : i32 to index
    %c16_52 = arith.constant 16 : index
    %116 = memref.load %arg1[%115, %c16_52] : memref<2x32xf32, #tpu.memory_space<smem>>
    %117 = vector.broadcast %116 : f32 to vector<128x36xf32>
    %118 = arith.mulf %114, %117 : vector<128x36xf32>
    %119 = arith.addf %112, %118 : vector<128x36xf32>
    %c17 = arith.constant 17 : index
    %c0_53 = arith.constant 0 : index
    %c0_54 = arith.constant 0 : index
    %120 = vector.load %arg2[%c17, %c0_53, %c0_54] : memref<32x128x36xf32, #tpu.memory_space<vmem>>, vector<1x128x36xf32>
    %121 = vector.shape_cast %120 : vector<1x128x36xf32> to vector<128x36xf32>
    %122 = arith.index_cast %arg0 : i32 to index
    %c17_55 = arith.constant 17 : index
    %123 = memref.load %arg1[%122, %c17_55] : memref<2x32xf32, #tpu.memory_space<smem>>
    %124 = vector.broadcast %123 : f32 to vector<128x36xf32>
    %125 = arith.mulf %121, %124 : vector<128x36xf32>
    %126 = arith.addf %119, %125 : vector<128x36xf32>
    %c18 = arith.constant 18 : index
    %c0_56 = arith.constant 0 : index
    %c0_57 = arith.constant 0 : index
    %127 = vector.load %arg2[%c18, %c0_56, %c0_57] : memref<32x128x36xf32, #tpu.memory_space<vmem>>, vector<1x128x36xf32>
    %128 = vector.shape_cast %127 : vector<1x128x36xf32> to vector<128x36xf32>
    %129 = arith.index_cast %arg0 : i32 to index
    %c18_58 = arith.constant 18 : index
    %130 = memref.load %arg1[%129, %c18_58] : memref<2x32xf32, #tpu.memory_space<smem>>
    %131 = vector.broadcast %130 : f32 to vector<128x36xf32>
    %132 = arith.mulf %128, %131 : vector<128x36xf32>
    %133 = arith.addf %126, %132 : vector<128x36xf32>
    %c19 = arith.constant 19 : index
    %c0_59 = arith.constant 0 : index
    %c0_60 = arith.constant 0 : index
    %134 = vector.load %arg2[%c19, %c0_59, %c0_60] : memref<32x128x36xf32, #tpu.memory_space<vmem>>, vector<1x128x36xf32>
    %135 = vector.shape_cast %134 : vector<1x128x36xf32> to vector<128x36xf32>
    %136 = arith.index_cast %arg0 : i32 to index
    %c19_61 = arith.constant 19 : index
    %137 = memref.load %arg1[%136, %c19_61] : memref<2x32xf32, #tpu.memory_space<smem>>
    %138 = vector.broadcast %137 : f32 to vector<128x36xf32>
    %139 = arith.mulf %135, %138 : vector<128x36xf32>
    %140 = arith.addf %133, %139 : vector<128x36xf32>
    %c20 = arith.constant 20 : index
    %c0_62 = arith.constant 0 : index
    %c0_63 = arith.constant 0 : index
    %141 = vector.load %arg2[%c20, %c0_62, %c0_63] : memref<32x128x36xf32, #tpu.memory_space<vmem>>, vector<1x128x36xf32>
    %142 = vector.shape_cast %141 : vector<1x128x36xf32> to vector<128x36xf32>
    %143 = arith.index_cast %arg0 : i32 to index
    %c20_64 = arith.constant 20 : index
    %144 = memref.load %arg1[%143, %c20_64] : memref<2x32xf32, #tpu.memory_space<smem>>
    %145 = vector.broadcast %144 : f32 to vector<128x36xf32>
    %146 = arith.mulf %142, %145 : vector<128x36xf32>
    %147 = arith.addf %140, %146 : vector<128x36xf32>
    %c21 = arith.constant 21 : index
    %c0_65 = arith.constant 0 : index
    %c0_66 = arith.constant 0 : index
    %148 = vector.load %arg2[%c21, %c0_65, %c0_66] : memref<32x128x36xf32, #tpu.memory_space<vmem>>, vector<1x128x36xf32>
    %149 = vector.shape_cast %148 : vector<1x128x36xf32> to vector<128x36xf32>
    %150 = arith.index_cast %arg0 : i32 to index
    %c21_67 = arith.constant 21 : index
    %151 = memref.load %arg1[%150, %c21_67] : memref<2x32xf32, #tpu.memory_space<smem>>
    %152 = vector.broadcast %151 : f32 to vector<128x36xf32>
    %153 = arith.mulf %149, %152 : vector<128x36xf32>
    %154 = arith.addf %147, %153 : vector<128x36xf32>
    %c22 = arith.constant 22 : index
    %c0_68 = arith.constant 0 : index
    %c0_69 = arith.constant 0 : index
    %155 = vector.load %arg2[%c22, %c0_68, %c0_69] : memref<32x128x36xf32, #tpu.memory_space<vmem>>, vector<1x128x36xf32>
    %156 = vector.shape_cast %155 : vector<1x128x36xf32> to vector<128x36xf32>
    %157 = arith.index_cast %arg0 : i32 to index
    %c22_70 = arith.constant 22 : index
    %158 = memref.load %arg1[%157, %c22_70] : memref<2x32xf32, #tpu.memory_space<smem>>
    %159 = vector.broadcast %158 : f32 to vector<128x36xf32>
    %160 = arith.mulf %156, %159 : vector<128x36xf32>
    %161 = arith.addf %154, %160 : vector<128x36xf32>
    %c23 = arith.constant 23 : index
    %c0_71 = arith.constant 0 : index
    %c0_72 = arith.constant 0 : index
    %162 = vector.load %arg2[%c23, %c0_71, %c0_72] : memref<32x128x36xf32, #tpu.memory_space<vmem>>, vector<1x128x36xf32>
    %163 = vector.shape_cast %162 : vector<1x128x36xf32> to vector<128x36xf32>
    %164 = arith.index_cast %arg0 : i32 to index
    %c23_73 = arith.constant 23 : index
    %165 = memref.load %arg1[%164, %c23_73] : memref<2x32xf32, #tpu.memory_space<smem>>
    %166 = vector.broadcast %165 : f32 to vector<128x36xf32>
    %167 = arith.mulf %163, %166 : vector<128x36xf32>
    %168 = arith.addf %161, %167 : vector<128x36xf32>
    %c24 = arith.constant 24 : index
    %c0_74 = arith.constant 0 : index
    %c0_75 = arith.constant 0 : index
    %169 = vector.load %arg2[%c24, %c0_74, %c0_75] : memref<32x128x36xf32, #tpu.memory_space<vmem>>, vector<1x128x36xf32>
    %170 = vector.shape_cast %169 : vector<1x128x36xf32> to vector<128x36xf32>
    %171 = arith.index_cast %arg0 : i32 to index
    %c24_76 = arith.constant 24 : index
    %172 = memref.load %arg1[%171, %c24_76] : memref<2x32xf32, #tpu.memory_space<smem>>
    %173 = vector.broadcast %172 : f32 to vector<128x36xf32>
    %174 = arith.mulf %170, %173 : vector<128x36xf32>
    %175 = arith.addf %168, %174 : vector<128x36xf32>
    %c25 = arith.constant 25 : index
    %c0_77 = arith.constant 0 : index
    %c0_78 = arith.constant 0 : index
    %176 = vector.load %arg2[%c25, %c0_77, %c0_78] : memref<32x128x36xf32, #tpu.memory_space<vmem>>, vector<1x128x36xf32>
    %177 = vector.shape_cast %176 : vector<1x128x36xf32> to vector<128x36xf32>
    %178 = arith.index_cast %arg0 : i32 to index
    %c25_79 = arith.constant 25 : index
    %179 = memref.load %arg1[%178, %c25_79] : memref<2x32xf32, #tpu.memory_space<smem>>
    %180 = vector.broadcast %179 : f32 to vector<128x36xf32>
    %181 = arith.mulf %177, %180 : vector<128x36xf32>
    %182 = arith.addf %175, %181 : vector<128x36xf32>
    %c26 = arith.constant 26 : index
    %c0_80 = arith.constant 0 : index
    %c0_81 = arith.constant 0 : index
    %183 = vector.load %arg2[%c26, %c0_80, %c0_81] : memref<32x128x36xf32, #tpu.memory_space<vmem>>, vector<1x128x36xf32>
    %184 = vector.shape_cast %183 : vector<1x128x36xf32> to vector<128x36xf32>
    %185 = arith.index_cast %arg0 : i32 to index
    %c26_82 = arith.constant 26 : index
    %186 = memref.load %arg1[%185, %c26_82] : memref<2x32xf32, #tpu.memory_space<smem>>
    %187 = vector.broadcast %186 : f32 to vector<128x36xf32>
    %188 = arith.mulf %184, %187 : vector<128x36xf32>
    %189 = arith.addf %182, %188 : vector<128x36xf32>
    %c27 = arith.constant 27 : index
    %c0_83 = arith.constant 0 : index
    %c0_84 = arith.constant 0 : index
    %190 = vector.load %arg2[%c27, %c0_83, %c0_84] : memref<32x128x36xf32, #tpu.memory_space<vmem>>, vector<1x128x36xf32>
    %191 = vector.shape_cast %190 : vector<1x128x36xf32> to vector<128x36xf32>
    %192 = arith.index_cast %arg0 : i32 to index
    %c27_85 = arith.constant 27 : index
    %193 = memref.load %arg1[%192, %c27_85] : memref<2x32xf32, #tpu.memory_space<smem>>
    %194 = vector.broadcast %193 : f32 to vector<128x36xf32>
    %195 = arith.mulf %191, %194 : vector<128x36xf32>
    %196 = arith.addf %189, %195 : vector<128x36xf32>
    %c28 = arith.constant 28 : index
    %c0_86 = arith.constant 0 : index
    %c0_87 = arith.constant 0 : index
    %197 = vector.load %arg2[%c28, %c0_86, %c0_87] : memref<32x128x36xf32, #tpu.memory_space<vmem>>, vector<1x128x36xf32>
    %198 = vector.shape_cast %197 : vector<1x128x36xf32> to vector<128x36xf32>
    %199 = arith.index_cast %arg0 : i32 to index
    %c28_88 = arith.constant 28 : index
    %200 = memref.load %arg1[%199, %c28_88] : memref<2x32xf32, #tpu.memory_space<smem>>
    %201 = vector.broadcast %200 : f32 to vector<128x36xf32>
    %202 = arith.mulf %198, %201 : vector<128x36xf32>
    %203 = arith.addf %196, %202 : vector<128x36xf32>
    %c29 = arith.constant 29 : index
    %c0_89 = arith.constant 0 : index
    %c0_90 = arith.constant 0 : index
    %204 = vector.load %arg2[%c29, %c0_89, %c0_90] : memref<32x128x36xf32, #tpu.memory_space<vmem>>, vector<1x128x36xf32>
    %205 = vector.shape_cast %204 : vector<1x128x36xf32> to vector<128x36xf32>
    %206 = arith.index_cast %arg0 : i32 to index
    %c29_91 = arith.constant 29 : index
    %207 = memref.load %arg1[%206, %c29_91] : memref<2x32xf32, #tpu.memory_space<smem>>
    %208 = vector.broadcast %207 : f32 to vector<128x36xf32>
    %209 = arith.mulf %205, %208 : vector<128x36xf32>
    %210 = arith.addf %203, %209 : vector<128x36xf32>
    %c30 = arith.constant 30 : index
    %c0_92 = arith.constant 0 : index
    %c0_93 = arith.constant 0 : index
    %211 = vector.load %arg2[%c30, %c0_92, %c0_93] : memref<32x128x36xf32, #tpu.memory_space<vmem>>, vector<1x128x36xf32>
    %212 = vector.shape_cast %211 : vector<1x128x36xf32> to vector<128x36xf32>
    %213 = arith.index_cast %arg0 : i32 to index
    %c30_94 = arith.constant 30 : index
    %214 = memref.load %arg1[%213, %c30_94] : memref<2x32xf32, #tpu.memory_space<smem>>
    %215 = vector.broadcast %214 : f32 to vector<128x36xf32>
    %216 = arith.mulf %212, %215 : vector<128x36xf32>
    %217 = arith.addf %210, %216 : vector<128x36xf32>
    %c31 = arith.constant 31 : index
    %c0_95 = arith.constant 0 : index
    %c0_96 = arith.constant 0 : index
    %218 = vector.load %arg2[%c31, %c0_95, %c0_96] : memref<32x128x36xf32, #tpu.memory_space<vmem>>, vector<1x128x36xf32>
    %219 = vector.shape_cast %218 : vector<1x128x36xf32> to vector<128x36xf32>
    %220 = arith.index_cast %arg0 : i32 to index
    %c31_97 = arith.constant 31 : index
    %221 = memref.load %arg1[%220, %c31_97] : memref<2x32xf32, #tpu.memory_space<smem>>
    %222 = vector.broadcast %221 : f32 to vector<128x36xf32>
    %223 = arith.mulf %219, %222 : vector<128x36xf32>
    %224 = arith.addf %217, %223 : vector<128x36xf32>
    %225 = vector.extract_strided_slice %224 {offsets = [0, 0], sizes = [128, 29], strides = [1, 1]} : vector<128x36xf32> to vector<128x29xf32>
    %226 = vector.extract_strided_slice %224 {offsets = [0, 1], sizes = [128, 29], strides = [1, 1]} : vector<128x36xf32> to vector<128x29xf32>
    %227 = vector.extract_strided_slice %224 {offsets = [0, 6], sizes = [128, 29], strides = [1, 1]} : vector<128x36xf32> to vector<128x29xf32>
    %228 = vector.extract_strided_slice %224 {offsets = [0, 7], sizes = [128, 29], strides = [1, 1]} : vector<128x36xf32> to vector<128x29xf32>
    %229 = tpu.concatenate %225, %226, %227, %228 in 0 : vector<128x29xf32>, vector<128x29xf32>, vector<128x29xf32>, vector<128x29xf32> -> vector<512x29xf32>
    %c0_98 = arith.constant 0 : index
    %c0_99 = arith.constant 0 : index
    %c0_100 = arith.constant 0 : index
    %230 = vector.load %arg4[%c0_98, %c0_99, %c0_100] : memref<4x64x512xf32, #tpu.memory_space<vmem>>, vector<1x64x512xf32>
    %231 = vector.shape_cast %230 : vector<1x64x512xf32> to vector<64x512xf32>
    %232 = vector.extract_strided_slice %229 {offsets = [0, 0], sizes = [512, 22], strides = [1, 1]} : vector<512x29xf32> to vector<512x22xf32>
    %cst = arith.constant dense<0.000000e+00> : vector<64x22xf32>
    %233 = tpu.matmul %231, %232, %cst {dimension_numbers = #tpu.dot_dimension_numbers<[1], [0], [0], [1], [0, 0, 1, 1], [], []>} : vector<64x512xf32>, vector<512x22xf32>, vector<64x22xf32> -> vector<64x22xf32>
    %c0_101 = arith.constant 0 : index
    %c0_102 = arith.constant 0 : index
    %234 = vector.load %arg5[%c0_101, %c0_102] : memref<64x1xf32, #tpu.memory_space<vmem>>, vector<64x1xf32>
    %235 = vector.broadcast %234 : vector<64x1xf32> to vector<64x22xf32>
    %236 = arith.addf %233, %235 : vector<64x22xf32>
    %cst_103 = arith.constant 0.000000e+00 : f32
    %237 = vector.broadcast %cst_103 : f32 to vector<64x22xf32>
    %238 = arith.maximumf %236, %237 : vector<64x22xf32>
    %c1_104 = arith.constant 1 : index
    %c0_105 = arith.constant 0 : index
    %c0_106 = arith.constant 0 : index
    %239 = vector.load %arg4[%c1_104, %c0_105, %c0_106] : memref<4x64x512xf32, #tpu.memory_space<vmem>>, vector<1x64x512xf32>
    %240 = vector.shape_cast %239 : vector<1x64x512xf32> to vector<64x512xf32>
    %241 = vector.extract_strided_slice %229 {offsets = [0, 1], sizes = [512, 22], strides = [1, 1]} : vector<512x29xf32> to vector<512x22xf32>
    %cst_107 = arith.constant dense<0.000000e+00> : vector<64x22xf32>
    %242 = tpu.matmul %240, %241, %cst_107 {dimension_numbers = #tpu.dot_dimension_numbers<[1], [0], [0], [1], [0, 0, 1, 1], [], []>} : vector<64x512xf32>, vector<512x22xf32>, vector<64x22xf32> -> vector<64x22xf32>
    %c0_108 = arith.constant 0 : index
    %c0_109 = arith.constant 0 : index
    %243 = vector.load %arg5[%c0_108, %c0_109] : memref<64x1xf32, #tpu.memory_space<vmem>>, vector<64x1xf32>
    %244 = vector.broadcast %243 : vector<64x1xf32> to vector<64x22xf32>
    %245 = arith.addf %242, %244 : vector<64x22xf32>
    %cst_110 = arith.constant 0.000000e+00 : f32
    %246 = vector.broadcast %cst_110 : f32 to vector<64x22xf32>
    %247 = arith.maximumf %245, %246 : vector<64x22xf32>
    %c2_111 = arith.constant 2 : index
    %c0_112 = arith.constant 0 : index
    %c0_113 = arith.constant 0 : index
    %248 = vector.load %arg4[%c2_111, %c0_112, %c0_113] : memref<4x64x512xf32, #tpu.memory_space<vmem>>, vector<1x64x512xf32>
    %249 = vector.shape_cast %248 : vector<1x64x512xf32> to vector<64x512xf32>
    %250 = vector.extract_strided_slice %229 {offsets = [0, 6], sizes = [512, 22], strides = [1, 1]} : vector<512x29xf32> to vector<512x22xf32>
    %cst_114 = arith.constant dense<0.000000e+00> : vector<64x22xf32>
    %251 = tpu.matmul %249, %250, %cst_114 {dimension_numbers = #tpu.dot_dimension_numbers<[1], [0], [0], [1], [0, 0, 1, 1], [], []>} : vector<64x512xf32>, vector<512x22xf32>, vector<64x22xf32> -> vector<64x22xf32>
    %c0_115 = arith.constant 0 : index
    %c0_116 = arith.constant 0 : index
    %252 = vector.load %arg5[%c0_115, %c0_116] : memref<64x1xf32, #tpu.memory_space<vmem>>, vector<64x1xf32>
    %253 = vector.broadcast %252 : vector<64x1xf32> to vector<64x22xf32>
    %254 = arith.addf %251, %253 : vector<64x22xf32>
    %cst_117 = arith.constant 0.000000e+00 : f32
    %255 = vector.broadcast %cst_117 : f32 to vector<64x22xf32>
    %256 = arith.maximumf %254, %255 : vector<64x22xf32>
    %c3_118 = arith.constant 3 : index
    %c0_119 = arith.constant 0 : index
    %c0_120 = arith.constant 0 : index
    %257 = vector.load %arg4[%c3_118, %c0_119, %c0_120] : memref<4x64x512xf32, #tpu.memory_space<vmem>>, vector<1x64x512xf32>
    %258 = vector.shape_cast %257 : vector<1x64x512xf32> to vector<64x512xf32>
    %259 = vector.extract_strided_slice %229 {offsets = [0, 7], sizes = [512, 22], strides = [1, 1]} : vector<512x29xf32> to vector<512x22xf32>
    %cst_121 = arith.constant dense<0.000000e+00> : vector<64x22xf32>
    %260 = tpu.matmul %258, %259, %cst_121 {dimension_numbers = #tpu.dot_dimension_numbers<[1], [0], [0], [1], [0, 0, 1, 1], [], []>} : vector<64x512xf32>, vector<512x22xf32>, vector<64x22xf32> -> vector<64x22xf32>
    %c0_122 = arith.constant 0 : index
    %c0_123 = arith.constant 0 : index
    %261 = vector.load %arg5[%c0_122, %c0_123] : memref<64x1xf32, #tpu.memory_space<vmem>>, vector<64x1xf32>
    %262 = vector.broadcast %261 : vector<64x1xf32> to vector<64x22xf32>
    %263 = arith.addf %260, %262 : vector<64x22xf32>
    %cst_124 = arith.constant 0.000000e+00 : f32
    %264 = vector.broadcast %cst_124 : f32 to vector<64x22xf32>
    %265 = arith.maximumf %263, %264 : vector<64x22xf32>
    %c0_125 = arith.constant 0 : index
    %c0_126 = arith.constant 0 : index
    %c0_127 = arith.constant 0 : index
    %266 = vector.load %arg6[%c0_125, %c0_126, %c0_127] : memref<4x22x100xf32, #tpu.memory_space<vmem>>, vector<1x22x100xf32>
    %267 = vector.shape_cast %266 : vector<1x22x100xf32> to vector<22x100xf32>
    %cst_128 = arith.constant dense<0.000000e+00> : vector<64x100xf32>
    %268 = tpu.matmul %238, %267, %cst_128 {dimension_numbers = #tpu.dot_dimension_numbers<[1], [0], [0], [1], [0, 0, 1, 1], [], []>} : vector<64x22xf32>, vector<22x100xf32>, vector<64x100xf32> -> vector<64x100xf32>
    %c1_129 = arith.constant 1 : index
    %c0_130 = arith.constant 0 : index
    %c0_131 = arith.constant 0 : index
    %269 = vector.load %arg6[%c1_129, %c0_130, %c0_131] : memref<4x22x100xf32, #tpu.memory_space<vmem>>, vector<1x22x100xf32>
    %270 = vector.shape_cast %269 : vector<1x22x100xf32> to vector<22x100xf32>
    %cst_132 = arith.constant dense<0.000000e+00> : vector<64x100xf32>
    %271 = tpu.matmul %247, %270, %cst_132 {dimension_numbers = #tpu.dot_dimension_numbers<[1], [0], [0], [1], [0, 0, 1, 1], [], []>} : vector<64x22xf32>, vector<22x100xf32>, vector<64x100xf32> -> vector<64x100xf32>
    %272 = arith.addf %268, %271 : vector<64x100xf32>
    %c2_133 = arith.constant 2 : index
    %c0_134 = arith.constant 0 : index
    %c0_135 = arith.constant 0 : index
    %273 = vector.load %arg6[%c2_133, %c0_134, %c0_135] : memref<4x22x100xf32, #tpu.memory_space<vmem>>, vector<1x22x100xf32>
    %274 = vector.shape_cast %273 : vector<1x22x100xf32> to vector<22x100xf32>
    %cst_136 = arith.constant dense<0.000000e+00> : vector<64x100xf32>
    %275 = tpu.matmul %256, %274, %cst_136 {dimension_numbers = #tpu.dot_dimension_numbers<[1], [0], [0], [1], [0, 0, 1, 1], [], []>} : vector<64x22xf32>, vector<22x100xf32>, vector<64x100xf32> -> vector<64x100xf32>
    %276 = arith.addf %272, %275 : vector<64x100xf32>
    %c3_137 = arith.constant 3 : index
    %c0_138 = arith.constant 0 : index
    %c0_139 = arith.constant 0 : index
    %277 = vector.load %arg6[%c3_137, %c0_138, %c0_139] : memref<4x22x100xf32, #tpu.memory_space<vmem>>, vector<1x22x100xf32>
    %278 = vector.shape_cast %277 : vector<1x22x100xf32> to vector<22x100xf32>
    %cst_140 = arith.constant dense<0.000000e+00> : vector<64x100xf32>
    %279 = tpu.matmul %265, %278, %cst_140 {dimension_numbers = #tpu.dot_dimension_numbers<[1], [0], [0], [1], [0, 0, 1, 1], [], []>} : vector<64x22xf32>, vector<22x100xf32>, vector<64x100xf32> -> vector<64x100xf32>
    %280 = arith.addf %276, %279 : vector<64x100xf32>
    %281 = vector.extract_strided_slice %280 {offsets = [0, 0], sizes = [64, 89], strides = [1, 1]} : vector<64x100xf32> to vector<64x89xf32>
    %282 = vector.extract_strided_slice %280 {offsets = [0, 1], sizes = [64, 89], strides = [1, 1]} : vector<64x100xf32> to vector<64x89xf32>
    %283 = vector.extract_strided_slice %280 {offsets = [0, 10], sizes = [64, 89], strides = [1, 1]} : vector<64x100xf32> to vector<64x89xf32>
    %284 = vector.extract_strided_slice %280 {offsets = [0, 11], sizes = [64, 89], strides = [1, 1]} : vector<64x100xf32> to vector<64x89xf32>
    %285 = tpu.concatenate %281, %282, %283, %284 in 0 : vector<64x89xf32>, vector<64x89xf32>, vector<64x89xf32>, vector<64x89xf32> -> vector<256x89xf32>
    %c0_141 = arith.constant 0 : index
    %c0_142 = arith.constant 0 : index
    %c0_143 = arith.constant 0 : index
    %286 = vector.load %arg7[%c0_141, %c0_142, %c0_143] : memref<4x32x256xf32, #tpu.memory_space<vmem>>, vector<1x32x256xf32>
    %287 = vector.shape_cast %286 : vector<1x32x256xf32> to vector<32x256xf32>
    %288 = vector.extract_strided_slice %285 {offsets = [0, 0], sizes = [256, 78], strides = [1, 1]} : vector<256x89xf32> to vector<256x78xf32>
    %cst_144 = arith.constant dense<0.000000e+00> : vector<32x78xf32>
    %289 = tpu.matmul %287, %288, %cst_144 {dimension_numbers = #tpu.dot_dimension_numbers<[1], [0], [0], [1], [0, 0, 1, 1], [], []>} : vector<32x256xf32>, vector<256x78xf32>, vector<32x78xf32> -> vector<32x78xf32>
    %c0_145 = arith.constant 0 : index
    %c0_146 = arith.constant 0 : index
    %290 = vector.load %arg8[%c0_145, %c0_146] : memref<32x1xf32, #tpu.memory_space<vmem>>, vector<32x1xf32>
    %291 = vector.broadcast %290 : vector<32x1xf32> to vector<32x78xf32>
    %292 = arith.addf %289, %291 : vector<32x78xf32>
    %cst_147 = arith.constant 0.000000e+00 : f32
    %293 = vector.broadcast %cst_147 : f32 to vector<32x78xf32>
    %294 = arith.maximumf %292, %293 : vector<32x78xf32>
    %c1_148 = arith.constant 1 : index
    %c0_149 = arith.constant 0 : index
    %c0_150 = arith.constant 0 : index
    %295 = vector.load %arg7[%c1_148, %c0_149, %c0_150] : memref<4x32x256xf32, #tpu.memory_space<vmem>>, vector<1x32x256xf32>
    %296 = vector.shape_cast %295 : vector<1x32x256xf32> to vector<32x256xf32>
    %297 = vector.extract_strided_slice %285 {offsets = [0, 1], sizes = [256, 78], strides = [1, 1]} : vector<256x89xf32> to vector<256x78xf32>
    %cst_151 = arith.constant dense<0.000000e+00> : vector<32x78xf32>
    %298 = tpu.matmul %296, %297, %cst_151 {dimension_numbers = #tpu.dot_dimension_numbers<[1], [0], [0], [1], [0, 0, 1, 1], [], []>} : vector<32x256xf32>, vector<256x78xf32>, vector<32x78xf32> -> vector<32x78xf32>
    %c0_152 = arith.constant 0 : index
    %c0_153 = arith.constant 0 : index
    %299 = vector.load %arg8[%c0_152, %c0_153] : memref<32x1xf32, #tpu.memory_space<vmem>>, vector<32x1xf32>
    %300 = vector.broadcast %299 : vector<32x1xf32> to vector<32x78xf32>
    %301 = arith.addf %298, %300 : vector<32x78xf32>
    %cst_154 = arith.constant 0.000000e+00 : f32
    %302 = vector.broadcast %cst_154 : f32 to vector<32x78xf32>
    %303 = arith.maximumf %301, %302 : vector<32x78xf32>
    %c2_155 = arith.constant 2 : index
    %c0_156 = arith.constant 0 : index
    %c0_157 = arith.constant 0 : index
    %304 = vector.load %arg7[%c2_155, %c0_156, %c0_157] : memref<4x32x256xf32, #tpu.memory_space<vmem>>, vector<1x32x256xf32>
    %305 = vector.shape_cast %304 : vector<1x32x256xf32> to vector<32x256xf32>
    %306 = vector.extract_strided_slice %285 {offsets = [0, 10], sizes = [256, 78], strides = [1, 1]} : vector<256x89xf32> to vector<256x78xf32>
    %cst_158 = arith.constant dense<0.000000e+00> : vector<32x78xf32>
    %307 = tpu.matmul %305, %306, %cst_158 {dimension_numbers = #tpu.dot_dimension_numbers<[1], [0], [0], [1], [0, 0, 1, 1], [], []>} : vector<32x256xf32>, vector<256x78xf32>, vector<32x78xf32> -> vector<32x78xf32>
    %c0_159 = arith.constant 0 : index
    %c0_160 = arith.constant 0 : index
    %308 = vector.load %arg8[%c0_159, %c0_160] : memref<32x1xf32, #tpu.memory_space<vmem>>, vector<32x1xf32>
    %309 = vector.broadcast %308 : vector<32x1xf32> to vector<32x78xf32>
    %310 = arith.addf %307, %309 : vector<32x78xf32>
    %cst_161 = arith.constant 0.000000e+00 : f32
    %311 = vector.broadcast %cst_161 : f32 to vector<32x78xf32>
    %312 = arith.maximumf %310, %311 : vector<32x78xf32>
    %c3_162 = arith.constant 3 : index
    %c0_163 = arith.constant 0 : index
    %c0_164 = arith.constant 0 : index
    %313 = vector.load %arg7[%c3_162, %c0_163, %c0_164] : memref<4x32x256xf32, #tpu.memory_space<vmem>>, vector<1x32x256xf32>
    %314 = vector.shape_cast %313 : vector<1x32x256xf32> to vector<32x256xf32>
    %315 = vector.extract_strided_slice %285 {offsets = [0, 11], sizes = [256, 78], strides = [1, 1]} : vector<256x89xf32> to vector<256x78xf32>
    %cst_165 = arith.constant dense<0.000000e+00> : vector<32x78xf32>
    %316 = tpu.matmul %314, %315, %cst_165 {dimension_numbers = #tpu.dot_dimension_numbers<[1], [0], [0], [1], [0, 0, 1, 1], [], []>} : vector<32x256xf32>, vector<256x78xf32>, vector<32x78xf32> -> vector<32x78xf32>
    %c0_166 = arith.constant 0 : index
    %c0_167 = arith.constant 0 : index
    %317 = vector.load %arg8[%c0_166, %c0_167] : memref<32x1xf32, #tpu.memory_space<vmem>>, vector<32x1xf32>
    %318 = vector.broadcast %317 : vector<32x1xf32> to vector<32x78xf32>
    %319 = arith.addf %316, %318 : vector<32x78xf32>
    %cst_168 = arith.constant 0.000000e+00 : f32
    %320 = vector.broadcast %cst_168 : f32 to vector<32x78xf32>
    %321 = arith.maximumf %319, %320 : vector<32x78xf32>
    %c0_169 = arith.constant 0 : index
    %c0_170 = arith.constant 0 : index
    %c0_171 = arith.constant 0 : index
    %322 = vector.load %arg9[%c0_169, %c0_170, %c0_171] : memref<4x78x324xf32, #tpu.memory_space<vmem>>, vector<1x78x324xf32>
    %323 = vector.shape_cast %322 : vector<1x78x324xf32> to vector<78x324xf32>
    %cst_172 = arith.constant dense<0.000000e+00> : vector<32x324xf32>
    %324 = tpu.matmul %294, %323, %cst_172 {dimension_numbers = #tpu.dot_dimension_numbers<[1], [0], [0], [1], [0, 0, 1, 1], [], []>} : vector<32x78xf32>, vector<78x324xf32>, vector<32x324xf32> -> vector<32x324xf32>
    %c1_173 = arith.constant 1 : index
    %c0_174 = arith.constant 0 : index
    %c0_175 = arith.constant 0 : index
    %325 = vector.load %arg9[%c1_173, %c0_174, %c0_175] : memref<4x78x324xf32, #tpu.memory_space<vmem>>, vector<1x78x324xf32>
    %326 = vector.shape_cast %325 : vector<1x78x324xf32> to vector<78x324xf32>
    %cst_176 = arith.constant dense<0.000000e+00> : vector<32x324xf32>
    %327 = tpu.matmul %303, %326, %cst_176 {dimension_numbers = #tpu.dot_dimension_numbers<[1], [0], [0], [1], [0, 0, 1, 1], [], []>} : vector<32x78xf32>, vector<78x324xf32>, vector<32x324xf32> -> vector<32x324xf32>
    %328 = arith.addf %324, %327 : vector<32x324xf32>
    %c2_177 = arith.constant 2 : index
    %c0_178 = arith.constant 0 : index
    %c0_179 = arith.constant 0 : index
    %329 = vector.load %arg9[%c2_177, %c0_178, %c0_179] : memref<4x78x324xf32, #tpu.memory_space<vmem>>, vector<1x78x324xf32>
    %330 = vector.shape_cast %329 : vector<1x78x324xf32> to vector<78x324xf32>
    %cst_180 = arith.constant dense<0.000000e+00> : vector<32x324xf32>
    %331 = tpu.matmul %312, %330, %cst_180 {dimension_numbers = #tpu.dot_dimension_numbers<[1], [0], [0], [1], [0, 0, 1, 1], [], []>} : vector<32x78xf32>, vector<78x324xf32>, vector<32x324xf32> -> vector<32x324xf32>
    %332 = arith.addf %328, %331 : vector<32x324xf32>
    %c3_181 = arith.constant 3 : index
    %c0_182 = arith.constant 0 : index
    %c0_183 = arith.constant 0 : index
    %333 = vector.load %arg9[%c3_181, %c0_182, %c0_183] : memref<4x78x324xf32, #tpu.memory_space<vmem>>, vector<1x78x324xf32>
    %334 = vector.shape_cast %333 : vector<1x78x324xf32> to vector<78x324xf32>
    %cst_184 = arith.constant dense<0.000000e+00> : vector<32x324xf32>
    %335 = tpu.matmul %321, %334, %cst_184 {dimension_numbers = #tpu.dot_dimension_numbers<[1], [0], [0], [1], [0, 0, 1, 1], [], []>} : vector<32x78xf32>, vector<78x324xf32>, vector<32x324xf32> -> vector<32x324xf32>
    %336 = arith.addf %332, %335 : vector<32x324xf32>
    %337 = vector.extract_strided_slice %336 {offsets = [0, 0], sizes = [32, 305], strides = [1, 1]} : vector<32x324xf32> to vector<32x305xf32>
    %338 = vector.extract_strided_slice %336 {offsets = [0, 1], sizes = [32, 305], strides = [1, 1]} : vector<32x324xf32> to vector<32x305xf32>
    %339 = vector.extract_strided_slice %336 {offsets = [0, 18], sizes = [32, 305], strides = [1, 1]} : vector<32x324xf32> to vector<32x305xf32>
    %340 = vector.extract_strided_slice %336 {offsets = [0, 19], sizes = [32, 305], strides = [1, 1]} : vector<32x324xf32> to vector<32x305xf32>
    %341 = tpu.concatenate %337, %338, %339, %340 in 0 : vector<32x305xf32>, vector<32x305xf32>, vector<32x305xf32>, vector<32x305xf32> -> vector<128x305xf32>
    %c0_185 = arith.constant 0 : index
    %c0_186 = arith.constant 0 : index
    %c0_187 = arith.constant 0 : index
    %342 = vector.load %arg10[%c0_185, %c0_186, %c0_187] : memref<4x3x128xf32, #tpu.memory_space<vmem>>, vector<1x3x128xf32>
    %343 = vector.shape_cast %342 : vector<1x3x128xf32> to vector<3x128xf32>
    %344 = vector.extract_strided_slice %341 {offsets = [0, 0], sizes = [128, 286], strides = [1, 1]} : vector<128x305xf32> to vector<128x286xf32>
    %cst_188 = arith.constant dense<0.000000e+00> : vector<3x286xf32>
    %345 = tpu.matmul %343, %344, %cst_188 {dimension_numbers = #tpu.dot_dimension_numbers<[1], [0], [0], [1], [0, 0, 1, 1], [], []>} : vector<3x128xf32>, vector<128x286xf32>, vector<3x286xf32> -> vector<3x286xf32>
    %c0_189 = arith.constant 0 : index
    %c0_190 = arith.constant 0 : index
    %346 = vector.load %arg11[%c0_189, %c0_190] : memref<3x1xf32, #tpu.memory_space<vmem>>, vector<3x1xf32>
    %347 = vector.broadcast %346 : vector<3x1xf32> to vector<3x286xf32>
    %348 = arith.addf %345, %347 : vector<3x286xf32>
    %cst_191 = arith.constant 0.000000e+00 : f32
    %349 = vector.broadcast %cst_191 : f32 to vector<3x286xf32>
    %350 = arith.subf %349, %348 : vector<3x286xf32>
    %351 = math.exp %350 : vector<3x286xf32>
    %cst_192 = arith.constant 1.000000e+00 : f32
    %352 = vector.broadcast %cst_192 : f32 to vector<3x286xf32>
    %353 = arith.addf %352, %351 : vector<3x286xf32>
    %cst_193 = arith.constant 1.000000e+00 : f32
    %354 = vector.broadcast %cst_193 : f32 to vector<3x286xf32>
    %355 = arith.divf %354, %353 : vector<3x286xf32>
    %c1_194 = arith.constant 1 : index
    %c0_195 = arith.constant 0 : index
    %c0_196 = arith.constant 0 : index
    %356 = vector.load %arg10[%c1_194, %c0_195, %c0_196] : memref<4x3x128xf32, #tpu.memory_space<vmem>>, vector<1x3x128xf32>
    %357 = vector.shape_cast %356 : vector<1x3x128xf32> to vector<3x128xf32>
    %358 = vector.extract_strided_slice %341 {offsets = [0, 1], sizes = [128, 286], strides = [1, 1]} : vector<128x305xf32> to vector<128x286xf32>
    %cst_197 = arith.constant dense<0.000000e+00> : vector<3x286xf32>
    %359 = tpu.matmul %357, %358, %cst_197 {dimension_numbers = #tpu.dot_dimension_numbers<[1], [0], [0], [1], [0, 0, 1, 1], [], []>} : vector<3x128xf32>, vector<128x286xf32>, vector<3x286xf32> -> vector<3x286xf32>
    %c0_198 = arith.constant 0 : index
    %c0_199 = arith.constant 0 : index
    %360 = vector.load %arg11[%c0_198, %c0_199] : memref<3x1xf32, #tpu.memory_space<vmem>>, vector<3x1xf32>
    %361 = vector.broadcast %360 : vector<3x1xf32> to vector<3x286xf32>
    %362 = arith.addf %359, %361 : vector<3x286xf32>
    %cst_200 = arith.constant 0.000000e+00 : f32
    %363 = vector.broadcast %cst_200 : f32 to vector<3x286xf32>
    %364 = arith.subf %363, %362 : vector<3x286xf32>
    %365 = math.exp %364 : vector<3x286xf32>
    %cst_201 = arith.constant 1.000000e+00 : f32
    %366 = vector.broadcast %cst_201 : f32 to vector<3x286xf32>
    %367 = arith.addf %366, %365 : vector<3x286xf32>
    %cst_202 = arith.constant 1.000000e+00 : f32
    %368 = vector.broadcast %cst_202 : f32 to vector<3x286xf32>
    %369 = arith.divf %368, %367 : vector<3x286xf32>
    %c2_203 = arith.constant 2 : index
    %c0_204 = arith.constant 0 : index
    %c0_205 = arith.constant 0 : index
    %370 = vector.load %arg10[%c2_203, %c0_204, %c0_205] : memref<4x3x128xf32, #tpu.memory_space<vmem>>, vector<1x3x128xf32>
    %371 = vector.shape_cast %370 : vector<1x3x128xf32> to vector<3x128xf32>
    %372 = vector.extract_strided_slice %341 {offsets = [0, 18], sizes = [128, 286], strides = [1, 1]} : vector<128x305xf32> to vector<128x286xf32>
    %cst_206 = arith.constant dense<0.000000e+00> : vector<3x286xf32>
    %373 = tpu.matmul %371, %372, %cst_206 {dimension_numbers = #tpu.dot_dimension_numbers<[1], [0], [0], [1], [0, 0, 1, 1], [], []>} : vector<3x128xf32>, vector<128x286xf32>, vector<3x286xf32> -> vector<3x286xf32>
    %c0_207 = arith.constant 0 : index
    %c0_208 = arith.constant 0 : index
    %374 = vector.load %arg11[%c0_207, %c0_208] : memref<3x1xf32, #tpu.memory_space<vmem>>, vector<3x1xf32>
    %375 = vector.broadcast %374 : vector<3x1xf32> to vector<3x286xf32>
    %376 = arith.addf %373, %375 : vector<3x286xf32>
    %cst_209 = arith.constant 0.000000e+00 : f32
    %377 = vector.broadcast %cst_209 : f32 to vector<3x286xf32>
    %378 = arith.subf %377, %376 : vector<3x286xf32>
    %379 = math.exp %378 : vector<3x286xf32>
    %cst_210 = arith.constant 1.000000e+00 : f32
    %380 = vector.broadcast %cst_210 : f32 to vector<3x286xf32>
    %381 = arith.addf %380, %379 : vector<3x286xf32>
    %cst_211 = arith.constant 1.000000e+00 : f32
    %382 = vector.broadcast %cst_211 : f32 to vector<3x286xf32>
    %383 = arith.divf %382, %381 : vector<3x286xf32>
    %c3_212 = arith.constant 3 : index
    %c0_213 = arith.constant 0 : index
    %c0_214 = arith.constant 0 : index
    %384 = vector.load %arg10[%c3_212, %c0_213, %c0_214] : memref<4x3x128xf32, #tpu.memory_space<vmem>>, vector<1x3x128xf32>
    %385 = vector.shape_cast %384 : vector<1x3x128xf32> to vector<3x128xf32>
    %386 = vector.extract_strided_slice %341 {offsets = [0, 19], sizes = [128, 286], strides = [1, 1]} : vector<128x305xf32> to vector<128x286xf32>
    %cst_215 = arith.constant dense<0.000000e+00> : vector<3x286xf32>
    %387 = tpu.matmul %385, %386, %cst_215 {dimension_numbers = #tpu.dot_dimension_numbers<[1], [0], [0], [1], [0, 0, 1, 1], [], []>} : vector<3x128xf32>, vector<128x286xf32>, vector<3x286xf32> -> vector<3x286xf32>
    %c0_216 = arith.constant 0 : index
    %c0_217 = arith.constant 0 : index
    %388 = vector.load %arg11[%c0_216, %c0_217] : memref<3x1xf32, #tpu.memory_space<vmem>>, vector<3x1xf32>
    %389 = vector.broadcast %388 : vector<3x1xf32> to vector<3x286xf32>
    %390 = arith.addf %387, %389 : vector<3x286xf32>
    %cst_218 = arith.constant 0.000000e+00 : f32
    %391 = vector.broadcast %cst_218 : f32 to vector<3x286xf32>
    %392 = arith.subf %391, %390 : vector<3x286xf32>
    %393 = math.exp %392 : vector<3x286xf32>
    %cst_219 = arith.constant 1.000000e+00 : f32
    %394 = vector.broadcast %cst_219 : f32 to vector<3x286xf32>
    %395 = arith.addf %394, %393 : vector<3x286xf32>
    %cst_220 = arith.constant 1.000000e+00 : f32
    %396 = vector.broadcast %cst_220 : f32 to vector<3x286xf32>
    %397 = arith.divf %396, %395 : vector<3x286xf32>
    %c0_221 = arith.constant 0 : index
    %c0_222 = arith.constant 0 : index
    %c0_223 = arith.constant 0 : index
    %c0_224 = arith.constant 0 : index
    %398 = vector.load %arg12[%c0_221, %c0_222, %c0_223, %c0_224] : memref<1x4x3x286xf32, #tpu.memory_space<vmem>>, vector<1x1x3x286xf32>
    %399 = vector.shape_cast %398 : vector<1x1x3x286xf32> to vector<3x286xf32>
    %400 = vector.shape_cast %355 : vector<3x286xf32> to vector<1x1x3x286xf32>
    tpu.vector_store %arg12[%c0_221, %c0_222, %c0_223, %c0_224], %400 {strides = array<i32>} : memref<1x4x3x286xf32, #tpu.memory_space<vmem>>, vector<1x1x3x286xf32>,
    %c0_225 = arith.constant 0 : index
    %c1_226 = arith.constant 1 : index
    %c0_227 = arith.constant 0 : index
    %c0_228 = arith.constant 0 : index
    %401 = vector.load %arg12[%c0_225, %c1_226, %c0_227, %c0_228] : memref<1x4x3x286xf32, #tpu.memory_space<vmem>>, vector<1x1x3x286xf32>
    %402 = vector.shape_cast %401 : vector<1x1x3x286xf32> to vector<3x286xf32>
    %403 = vector.shape_cast %369 : vector<3x286xf32> to vector<1x1x3x286xf32>
    tpu.vector_store %arg12[%c0_225, %c1_226, %c0_227, %c0_228], %403 {strides = array<i32>} : memref<1x4x3x286xf32, #tpu.memory_space<vmem>>, vector<1x1x3x286xf32>,
    %c0_229 = arith.constant 0 : index
    %c2_230 = arith.constant 2 : index
    %c0_231 = arith.constant 0 : index
    %c0_232 = arith.constant 0 : index
    %404 = vector.load %arg12[%c0_229, %c2_230, %c0_231, %c0_232] : memref<1x4x3x286xf32, #tpu.memory_space<vmem>>, vector<1x1x3x286xf32>
    %405 = vector.shape_cast %404 : vector<1x1x3x286xf32> to vector<3x286xf32>
    %406 = vector.shape_cast %383 : vector<3x286xf32> to vector<1x1x3x286xf32>
    tpu.vector_store %arg12[%c0_229, %c2_230, %c0_231, %c0_232], %406 {strides = array<i32>} : memref<1x4x3x286xf32, #tpu.memory_space<vmem>>, vector<1x1x3x286xf32>,
    %c0_233 = arith.constant 0 : index
    %c3_234 = arith.constant 3 : index
    %c0_235 = arith.constant 0 : index
    %c0_236 = arith.constant 0 : index
    %407 = vector.load %arg12[%c0_233, %c3_234, %c0_235, %c0_236] : memref<1x4x3x286xf32, #tpu.memory_space<vmem>>, vector<1x1x3x286xf32>
    %408 = vector.shape_cast %407 : vector<1x1x3x286xf32> to vector<3x286xf32>
    %409 = vector.shape_cast %397 : vector<3x286xf32> to vector<1x1x3x286xf32>
    tpu.vector_store %arg12[%c0_233, %c3_234, %c0_235, %c0_236], %409 {strides = array<i32>} : memref<1x4x3x286xf32, #tpu.memory_space<vmem>>, vector<1x1x3x286xf32>,
    return
  }
  func.func @transform_0(%arg0: i32) -> (i32, i32) {
    %c0_i32 = arith.constant 0 : i32
    %c0_i32_0 = arith.constant 0 : i32
    %c0_i32_1 = arith.constant 0 : i32
    return %c0_i32, %c0_i32_0 : i32, i32
  }
  func.func @transform_1(%arg0: i32) -> (i32, i32, i32) {
    %c0_i32 = arith.constant 0 : i32
    %c0_i32_0 = arith.constant 0 : i32
    %c0_i32_1 = arith.constant 0 : i32
    %c0_i32_2 = arith.constant 0 : i32
    return %c0_i32, %c0_i32_0, %c0_i32_1 : i32, i32, i32
  }
  func.func @transform_2(%arg0: i32) -> (i32, i32) {
    %c0_i32 = arith.constant 0 : i32
    %c0_i32_0 = arith.constant 0 : i32
    %c0_i32_1 = arith.constant 0 : i32
    return %c0_i32, %c0_i32_0 : i32, i32
  }
  func.func @transform_3(%arg0: i32) -> (i32, i32, i32) {
    %c0_i32 = arith.constant 0 : i32
    %c0_i32_0 = arith.constant 0 : i32
    %c0_i32_1 = arith.constant 0 : i32
    %c0_i32_2 = arith.constant 0 : i32
    return %c0_i32, %c0_i32_0, %c0_i32_1 : i32, i32, i32
  }
  func.func @transform_4(%arg0: i32) -> (i32, i32) {
    %c0_i32 = arith.constant 0 : i32
    %c0_i32_0 = arith.constant 0 : i32
    %c0_i32_1 = arith.constant 0 : i32
    return %c0_i32, %c0_i32_0 : i32, i32
  }
  func.func @transform_5(%arg0: i32) -> (i32, i32, i32) {
    %c0_i32 = arith.constant 0 : i32
    %c0_i32_0 = arith.constant 0 : i32
    %c0_i32_1 = arith.constant 0 : i32
    %c0_i32_2 = arith.constant 0 : i32
    return %c0_i32, %c0_i32_0, %c0_i32_1 : i32, i32, i32
  }
  func.func @transform_6(%arg0: i32) -> (i32, i32, i32) {
    %c0_i32 = arith.constant 0 : i32
    %c0_i32_0 = arith.constant 0 : i32
    %c0_i32_1 = arith.constant 0 : i32
    %c0_i32_2 = arith.constant 0 : i32
    return %c0_i32, %c0_i32_0, %c0_i32_1 : i32, i32, i32
  }
  func.func @transform_7(%arg0: i32) -> (i32, i32) {
    %c0_i32 = arith.constant 0 : i32
    %c0_i32_0 = arith.constant 0 : i32
    %c0_i32_1 = arith.constant 0 : i32
    return %c0_i32, %c0_i32_0 : i32, i32
  }
  func.func @transform_8(%arg0: i32) -> (i32, i32, i32) {
    %c0_i32 = arith.constant 0 : i32
    %c0_i32_0 = arith.constant 0 : i32
    %c0_i32_1 = arith.constant 0 : i32
    %c0_i32_2 = arith.constant 0 : i32
    return %c0_i32, %c0_i32_0, %c0_i32_1 : i32, i32, i32
  }
  func.func @transform_9(%arg0: i32) -> (i32, i32, i32) {
    %c0_i32 = arith.constant 0 : i32
    %c0_i32_0 = arith.constant 0 : i32
    %c0_i32_1 = arith.constant 0 : i32
    %c0_i32_2 = arith.constant 0 : i32
    return %c0_i32, %c0_i32_0, %c0_i32_1 : i32, i32, i32
  }
  func.func @transform_10(%arg0: i32) -> (i32, i32) {
    %c0_i32 = arith.constant 0 : i32
    %c0_i32_0 = arith.constant 0 : i32
    %c0_i32_1 = arith.constant 0 : i32
    return %c0_i32, %c0_i32_0 : i32, i32
  }
  func.func @transform_11(%arg0: i32) -> (i32, i32, i32, i32) {
    %c0_i32 = arith.constant 0 : i32
    %c0_i32_0 = arith.constant 0 : i32
    %c0_i32_1 = arith.constant 0 : i32
    %c0_i32_2 = arith.constant 0 : i32
    return %arg0, %c0_i32, %c0_i32_0, %c0_i32_1 : i32, i32, i32, i32
  }
}

</mosaic_0001>

<bundles_post_ra>
// kernel: decoder_forward.1
= control target key start
LH: loop header
LB: loop body
LE: loop exit
PB: predicated region body
PF: predicated region fallthrough
CT: control target
= control target key end

     0   :  { %s16499_s0 = inlined_call_operand.vmem [shape: f32[2,32], index: 0, kind: input, shape index: {}]   ;;  %s16500_s1 = inlined_call_operand.vmem [shape: f32[32,128,36], index: 1, kind: input, shape index: {}]   ;;  %s16501_s2 = inlined_call_operand.vmem [shape: f32[128,36], index: 2, kind: input, shape index: {}]   ;;  %s16502_s3 = inlined_call_operand.vmem [shape: f32[4,64,512], index: 3, kind: input, shape index: {}]   ;;  %s16503_s4 = inlined_call_operand.vmem [shape: f32[64,1], index: 4, kind: input, shape index: {}]   ;;  %s16504_s5 = inlined_call_operand.vmem [shape: f32[4,22,100], index: 5, kind: input, shape index: {}]   ;;  %s16505_s6 = inlined_call_operand.vmem [shape: f32[4,32,256], index: 6, kind: input, shape index: {}]   ;;  %s16506_s7 = inlined_call_operand.vmem [shape: f32[32,1], index: 7, kind: input, shape index: {}]   ;;  %s16507_s8 = inlined_call_operand.vmem [shape: f32[4,78,324], index: 8, kind: input, shape index: {}]   ;;  %s16508_s9 = inlined_call_operand.vmem [shape: f32[4,3,128], index: 9, kind: input, shape index: {}]   ;;  %s16509_s10 = inlined_call_operand.vmem [shape: f32[3,1], index: 10, kind: input, shape index: {}]   ;;  %s16510_s11 = inlined_call_operand.vmem [shape: f32[2,4,3,286], index: 11, kind: output, shape index: {}]  }
   0x1   :  { %16595 = sst [smem:[#allocation29_spill]] %s16499_s0 }
   0x2   :  { %16596 = sst [smem:[#allocation30_spill]] %s16510_s11 }
   0x3   :  { %16 = vsyncpa [#allocation3], 0  ;;  %s11222_s17 = smov 0  }
   0x4 LB: > { %16597 = sst [smem:[#allocation5_spill]] %s11147_s17  ;;  %s11228_s18 = sadd.s32 4294967295, %s11147_s17   ;;  %s11147_s17 = sphi %s11222_s17, %s22_s17  }
   0x5   : > { %16598 = sst [smem:[#allocation6_spill]] %s11228_s18  ;;  %p7180_p0 = scmp.ge.s32.totalorder %s11147_s17, 1 }
   0x6   : > { %p284_p1 = scmp.lt.s32.totalorder %s11147_s17, 3  ;;  %s16599_s0 = sld [smem:[#allocation29_spill]] }
   0x7   : > { %p9969_p3 = scmp.eq.s32.totalorder %s11228_s18, 0 }
   0x8   : > { %p11235_p2 = pnand %p7180_p0, %p284_p1 }
   0xa   : > { %p9965_p4 = pneg %p11235_p2 }
   0xc   : > { %s297_s21 = sshll.u32 %s16599_s0, 4  ;;  %p9966_p5 = pnand %p9969_p3, %p9965_p4  ;;  %s298_s21 = int_to_ptr.vmem [resolvable:$true] %s297_s21 }
   0xd   : > { %s11122_s23 = scalar_lea.vmem %s298_s21, 32  ;;  %p11130_p10 = scmp.lt.s32.totalorder %s298_s21, %s298_s21 }
   0xe   : > { %p11123_p6 = scmp.ne.s32.totalorder %s298_s21, %s11122_s23  ;;  %p11124_p7 = pneg %p9966_p5 }
   0xf   : > { %p11131_p11 = scmp.lt.s32.totalorder %s11122_s23, %s11122_s23 }
  0x10   : > { %p11125_p8 = pnand %p11124_p7, %p11123_p6 }
  0x11   : > { %p11132_p12 = por %p11131_p11, %p11130_p10 }
  0x12   : > { %p11126_p9 = pneg %p11125_p8 }
  0x14   : > { %p11133_p13 = pnand %p11132_p12, %p11126_p9 }
  0x16   : > { %11136 = shalt.err (!%p11133_p13)
}
  0x17   : > { %s11149_s24 = smov [#allocation2]   ;;  %340 = sbr.rel (%p11235_p2) target bundleno = 2505 (0x9c9), region = 64 }
  0x18   : > { %9968 = dma.vmem_to_smem (!%p9966_p5), %s298_s21, 32, %s11149_s24, [#allocation3]  }
  0x1e   : > { %11142 = dma.done.wait (%p9969_p3), [#allocation3], 32  }
  0x1f   : > { %11144 = vsyncadd (%p9969_p3), [#allocation3], 4294967264 }
  0x20   : > { %346 = sfence }
  0x21   : > { %s11251_s25 = sshll.u32 %s11228_s18, 7  ;;  %v397_v0 = vld [vmem:[%s16500_s1] sm:$0xff]  ;;  %v398_v1 = vld [vmem:[%s16500_s1 + $0x8] sm:$0xff]  ;;  %vm3735_vm0 = vcmask 1045504   ;;  %vm3710_vm1 = vcmask 179200   ;;  %vm11156_vm2 = vmmov 1  }
  0x22   : > { %s414_s26 = sld [smem:[#allocation2 + %s11251_s25]]  ;;  %s465_s27 = sadd.s32 1, %s11251_s25  ;;  %v381_v2 = vld [vmem:[%s16501_s2] sm:$0xff]  ;;  %v7187_v4 = vld [vmem:[%s16500_s1 + $0x88] sm:$0xff]  ;;  %vm15587_vm3 = vmpackc.low %vm3735_vm0, %vm11156_vm2  ;;  %vm5036_vm4 = vcmask 637952   ;;  %vm11161_vm5 = vmmov 0  }
  0x23   : > { %s466_s28 = sld [smem:[#allocation2 + %s465_s27]]  ;;  %s517_s29 = sadd.s32 2, %s11251_s25  ;;  %v7186_v3 = vld [vmem:[%s16500_s1 + $0x80] sm:$0xff]  ;;  %v382_v5 = vld [vmem:[%s16501_s2 + $0x8] sm:$0xff]  ;;  %vm5939_vm6 = vcmask 1039360   ;;  %vm5984_vm7 = vcmask 900096  }
  0x24   : > { %s518_s30 = sld [smem:[#allocation2 + %s517_s29]]  ;;  %s569_s12 = sadd.s32 3, %s11251_s25  ;;  %v7202_v7 = vld [vmem:[%s16500_s1 + $0x100] sm:$0xff]  ;;  %v7203_v8 = vld [vmem:[%s16500_s1 + $0x108] sm:$0xff]  ;;  %vm6029_vm8 = vcmask 891904   ;;  %vm7100_vm9 = vcmask 239616  }
  0x25   : > { %s11257_s13 = sld [smem:[#allocation2 + %s569_s12]]  ;;  %s621_s14 = sadd.s32 4, %s11251_s25  ;;  %v7218_v15 = vld [vmem:[%s16500_s1 + $0x180] sm:$0xff]  ;;  %v7219_v16 = vld [vmem:[%s16500_s1 + $0x188] sm:$0xff] }
  0x26   : > { %s11266_s21 = sld [smem:[#allocation2 + %s621_s14]]  ;;  %s673_s22 = sadd.s32 5, %s11251_s25  ;;  %v7234_v21 = vld [vmem:[%s16500_s1 + $0x200] sm:$0xff]  ;;  %v7235_v23 = vld [vmem:[%s16500_s1 + $0x208] sm:$0xff] }
  0x27   : > { %s11278_s15 = sld [smem:[#allocation2 + %s673_s22]]  ;;  %s725_s16 = sadd.s32 6, %s11251_s25  ;;  %v7250_v29 = vld [vmem:[%s16500_s1 + $0x280] sm:$0xff]  ;;  %v7251_v31 = vld [vmem:[%s16500_s1 + $0x288] sm:$0xff] }
  0x28   : > { %v11284_v6 = vstv %s414_s26  ;;  %s11292_s0 = sld [smem:[#allocation2 + %s725_s16]]  ;;  %s777_s22 = sadd.s32 7, %s11251_s25  ;;  %v7266_v36 = vld [vmem:[%s16500_s1 + $0x300] sm:$0xff]  ;;  %v7267_v39 = vld [vmem:[%s16500_s1 + $0x308] sm:$0xff] }
  0x29   : > { %16601 = vst [vmem:[#allocation7_spill] sm:$0xff] %v11284_v6  ;;  %v416_v9 = vmul.f32 %v11284_v6, %v397_v0  ;;  %v417_v10 = vmul.f32 %v11284_v6, %v398_v1  ;;  %v11297_v11 = vstv %s466_s28  ;;  %s11299_s26 = sld [smem:[#allocation2 + %s777_s22]]  ;;  %s829_s29 = sadd.s32 8, %s11251_s25  ;;  %v7282_v43 = vld [vmem:[%s16500_s1 + $0x380] sm:$0xff]  ;;  %v7283_v44 = vld [vmem:[%s16500_s1 + $0x388] sm:$0xff] }
  0x2a   : > { %16602 = vst [vmem:[#allocation8_spill] sm:$0xff] %v11297_v11  ;;  %v468_v12 = vmul.f32 %v7186_v3, %v11297_v11  ;;  %v469_v13 = vmul.f32 %v7187_v4, %v11297_v11  ;;  %v11304_v14 = vstv %s518_s30  ;;  %s881_s28 = sadd.s32 9, %s11251_s25  ;;  %s11318_s30 = sld [smem:[#allocation2 + %s829_s29]]  ;;  %v7298_v50 = vld [vmem:[%s16500_s1 + $0x400] sm:$0xff]  ;;  %v7299_v51 = vld [vmem:[%s16500_s1 + $0x408] sm:$0xff] }
  0x2b   : > { %v432_v17 = vadd.f32 %v416_v9, %v381_v2  ;;  %v433_v18 = vadd.f32 %v417_v10, %v382_v5  ;;  %v520_v19 = vmul.f32 %v7202_v7, %v11304_v14  ;;  %v521_v20 = vmul.f32 %v7203_v8, %v11304_v14  ;;  %s933_s24 = sadd.s32 10, %s11251_s25  ;;  %s11330_s12 = sld [smem:[#allocation2 + %s881_s28]]  ;;  %v7314_v55 = vld [vmem:[%s16500_s1 + $0x480] sm:$0xff]  ;;  %v7315_v58 = vld [vmem:[%s16500_s1 + $0x488] sm:$0xff] }
  0x2c   : > { %v11322_v22 = vstv %s11257_s13  ;;  %v11328_v24 = vstv %s11266_s21  ;;  %s985_s16 = sadd.s32 11, %s11251_s25  ;;  %s11338_s19 = sld [smem:[#allocation2 + %s933_s24]]  ;;  %v7330_v60 = vld [vmem:[%s16500_s1 + $0x500] sm:$0xff]  ;;  %v7331_v0 = vld [vmem:[%s16500_s1 + $0x508] sm:$0xff] }
  0x2d   : > { %v484_v25 = vadd.f32 %v468_v12, %v432_v17  ;;  %v485_v26 = vadd.f32 %v469_v13, %v433_v18  ;;  %v572_v27 = vmul.f32 %v7218_v15, %v11322_v22  ;;  %v573_v28 = vmul.f32 %v7219_v16, %v11322_v22  ;;  %s1037_s14 = sadd.s32 12, %s11251_s25  ;;  %s11348_s20 = sld [smem:[#allocation2 + %s985_s16]]  ;;  %v7346_v1 = vld [vmem:[%s16500_s1 + $0x580] sm:$0xff]  ;;  %v7347_v4 = vld [vmem:[%s16500_s1 + $0x588] sm:$0xff] }
  0x2e   : > { %v624_v30 = vmul.f32 %v7234_v21, %v11328_v24  ;;  %v11346_v32 = vstv %s11278_s15  ;;  %s1089_s23 = sadd.s32 13, %s11251_s25  ;;  %v625_v35 = vmul.f32 %v7235_v23, %v11328_v24  ;;  %v11356_v37 = vstv %s11292_s0  ;;  %s11358_s22 = sld [smem:[#allocation2 + %s1037_s14]]  ;;  %v7362_v7 = vld [vmem:[%s16500_s1 + $0x600] sm:$0xff]  ;;  %v7363_v13 = vld [vmem:[%s16500_s1 + $0x608] sm:$0xff] }
  0x2f   : > { %v536_v33 = vadd.f32 %v520_v19, %v484_v25  ;;  %v537_v34 = vadd.f32 %v521_v20, %v485_v26  ;;  %s1141_s15 = sadd.s32 14, %s11251_s25  ;;  %v676_v38 = vmul.f32 %v7250_v29, %v11346_v32  ;;  %s11365_s29 = sld [smem:[#allocation2 + %s1089_s23]]  ;;  %v677_v42 = vmul.f32 %v7251_v31, %v11346_v32  ;;  %v7378_v15 = vld [vmem:[%s16500_s1 + $0x680] sm:$0xff]  ;;  %v7379_v18 = vld [vmem:[%s16500_s1 + $0x688] sm:$0xff] }
  0x30   : > { %s1193_s21 = sadd.s32 15, %s11251_s25  ;;  %v11376_v45 = vstv %s11299_s26  ;;  %s11378_s27 = sld [smem:[#allocation2 + %s1141_s15]]  ;;  %v728_v46 = vmul.f32 %v7266_v36, %v11356_v37  ;;  %v729_v49 = vmul.f32 %v7267_v39, %v11356_v37  ;;  %v11393_v52 = vstv %s11318_s30  ;;  %v7394_v20 = vld [vmem:[%s16500_s1 + $0x700] sm:$0xff] }
  0x31   : > { %v588_v40 = vadd.f32 %v572_v27, %v536_v33  ;;  %v589_v41 = vadd.f32 %v573_v28, %v537_v34  ;;  %16603 = vst [vmem:[#allocation9_spill] sm:$0xff] %v11376_v45  ;;  %s1245_s23 = sadd.s32 16, %s11251_s25  ;;  %s11382_s16 = sld [smem:[#allocation2 + %s1193_s21]]  ;;  %v780_v53 = vmul.f32 %v7282_v43, %v11376_v45  ;;  %v781_v54 = vmul.f32 %v7283_v44, %v11376_v45  ;;  %v7395_v28 = vld [vmem:[%s16500_s1 + $0x708] sm:$0xff]  ;;  %v7410_v29 = vld [vmem:[%s16500_s1 + $0x780] sm:$0xff] }
  0x32   : > { %s1297_s13 = sadd.s32 17, %s11251_s25  ;;  %s11395_s21 = sld [smem:[#allocation2 + %s1245_s23]]  ;;  %v11410_v59 = vstv %s11330_s12  ;;  %v11416_v61 = vstv %s11338_s19  ;;  %v832_v62 = vmul.f32 %v7298_v50, %v11393_v52  ;;  %v833_v63 = vmul.f32 %v7299_v51, %v11393_v52  ;;  %v7411_v33 = vld [vmem:[%s16500_s1 + $0x788] sm:$0xff]  ;;  %v7442_v43 = vld [vmem:[%s16500_s1 + $0x880] sm:$0xff] }
  0x33   : > { %v640_v47 = vadd.f32 %v624_v30, %v588_v40  ;;  %v641_v48 = vadd.f32 %v625_v35, %v589_v41  ;;  %s1349_s14 = sadd.s32 18, %s11251_s25  ;;  %s11403_s0 = sld [smem:[#allocation2 + %s1297_s13]]  ;;  %v11436_v5 = vstv %s11348_s20  ;;  %v884_v9 = vmul.f32 %v7314_v55, %v11410_v59  ;;  %v7426_v35 = vld [vmem:[%s16500_s1 + $0x800] sm:$0xff] }
  0x34   : > { %s1401_s28 = sadd.s32 19, %s11251_s25  ;;  %s11418_s17 = sld [smem:[#allocation2 + %s1349_s14]]  ;;  %v11442_v8 = vstv %s11358_s22  ;;  %v885_v10 = vmul.f32 %v7315_v58, %v11410_v59  ;;  %v936_v12 = vmul.f32 %v7330_v60, %v11416_v61  ;;  %v937_v23 = vmul.f32 %v7331_v0, %v11416_v61  ;;  %v7490_v0 = vld [vmem:[%s16500_s1 + $0xa00] sm:$0xff] }
  0x35   : > { %v692_v56 = vadd.f32 %v676_v38, %v640_v47  ;;  %v693_v57 = vadd.f32 %v677_v42, %v641_v48  ;;  %s1453_s13 = sadd.s32 20, %s11251_s25  ;;  %s11429_s23 = sld [smem:[#allocation2 + %s1401_s28]]  ;;  %v11463_v19 = vstv %s11365_s29  ;;  %v988_v25 = vmul.f32 %v7346_v1, %v11436_v5  ;;  %v7427_v42 = vld [vmem:[%s16500_s1 + $0x808] sm:$0xff] }
  0x36   : > { %s1505_s19 = sadd.s32 21, %s11251_s25  ;;  %s11444_s28 = sld [smem:[#allocation2 + %s1453_s13]]  ;;  %v11469_v21 = vstv %s11378_s27  ;;  %v989_v26 = vmul.f32 %v7347_v4, %v11436_v5  ;;  %v1040_v27 = vmul.f32 %v7362_v7, %v11442_v8  ;;  %v1041_v38 = vmul.f32 %v7363_v13, %v11442_v8  ;;  %v7443_v47 = vld [vmem:[%s16500_s1 + $0x888] sm:$0xff] }
  0x37   : > { %v744_v2 = vadd.f32 %v728_v46, %v692_v56  ;;  %v745_v3 = vadd.f32 %v729_v49, %v693_v57  ;;  %s1557_s26 = sadd.s32 22, %s11251_s25  ;;  %s11456_s22 = sld [smem:[#allocation2 + %s1505_s19]]  ;;  %16604 = vst [vmem:[#allocation10_spill] sm:$0xff] %v11469_v21  ;;  %v11491_v34 = vstv %s11382_s16  ;;  %v1092_v39 = vmul.f32 %v7378_v15, %v11463_v19  ;;  %v7458_v49 = vld [vmem:[%s16500_s1 + $0x900] sm:$0xff]  ;;  %v7459_v56 = vld [vmem:[%s16500_s1 + $0x908] sm:$0xff] }
  0x38   : > { %s1609_s13 = sadd.s32 23, %s11251_s25  ;;  %s11471_s19 = sld [smem:[#allocation2 + %s1557_s26]]  ;;  %16605 = vst [vmem:[#allocation11_spill] sm:$0xff] %v11491_v34  ;;  %v11497_v36 = vstv %s11395_s21  ;;  %v1093_v40 = vmul.f32 %v7379_v18, %v11463_v19  ;;  %v11506_v41 = vmul.f32 %v7394_v20, %v11469_v21  ;;  %v1145_v51 = vmul.f32 %v7395_v28, %v11469_v21  ;;  %v7474_v57 = vld [vmem:[%s16500_s1 + $0x980] sm:$0xff]  ;;  %v7491_v13 = vld [vmem:[%s16500_s1 + $0xa08] sm:$0xff] }
  0x39   : > { %v796_v16 = vadd.f32 %v780_v53, %v744_v2  ;;  %v797_v17 = vadd.f32 %v781_v54, %v745_v3  ;;  %s1661_s12 = sadd.s32 24, %s11251_s25  ;;  %s11484_s26 = sld [smem:[#allocation2 + %s1609_s13]]  ;;  %16606 = vst [vmem:[#allocation12_spill] sm:$0xff] %v11497_v36  ;;  %v11520_v48 = vstv %s11403_s0  ;;  %v11533_v53 = vmul.f32 %v7410_v29, %v11491_v34  ;;  %v7506_v15 = vld [vmem:[%s16500_s1 + $0xa80] sm:$0xff] }
  0x3a   : > { %s1713_s30 = sadd.s32 25, %s11251_s25  ;;  %s11499_s29 = sld [smem:[#allocation2 + %s1661_s12]]  ;;  %16607 = vst [vmem:[#allocation13_spill] sm:$0xff] %v11520_v48  ;;  %v11526_v50 = vstv %s11418_s17  ;;  %v11536_v54 = vmul.f32 %v7411_v33, %v11491_v34  ;;  %v11539_v55 = vmul.f32 %v7426_v35, %v11497_v36  ;;  %v11561_v2 = vmul.f32 %v7427_v42, %v11497_v36  ;;  %v7538_v29 = vld [vmem:[%s16500_s1 + $0xb80] sm:$0xff]  ;;  %v7539_v33 = vld [vmem:[%s16500_s1 + $0xb88] sm:$0xff] }
  0x3b   : > { %v848_v30 = vadd.f32 %v832_v62, %v796_v16  ;;  %v849_v31 = vadd.f32 %v833_v63, %v797_v17  ;;  %s1765_s13 = sadd.s32 26, %s11251_s25  ;;  %s11514_s12 = sld [smem:[#allocation2 + %s1713_s30]]  ;;  %16608 = vst [vmem:[#allocation14_spill] sm:$0xff] %v11526_v50  ;;  %v7475_v62 = vld [vmem:[%s16500_s1 + $0x988] sm:$0xff]  ;;  %v11552_v63 = vstv %s11429_s23  ;;  %v11564_v3 = vmul.f32 %v7442_v43, %v11520_v48  ;;  %v7554_v42 = vld [vmem:[%s16500_s1 + $0xc00] sm:$0xff] }
  0x3c   : > { %s11528_s24 = sld [smem:[#allocation2 + %s1765_s13]]  ;;  %s1817_s30 = sadd.s32 27, %s11251_s25  ;;  %16609 = vst [vmem:[#allocation15_spill] sm:$0xff] %v11552_v63  ;;  %v11558_v1 = vstv %s11444_s28  ;;  %v11567_v4 = vmul.f32 %v7443_v47, %v11520_v48  ;;  %v11570_v7 = vmul.f32 %v7458_v49, %v11526_v50  ;;  %v7507_v16 = vld [vmem:[%s16500_s1 + $0xa88] sm:$0xff]  ;;  %v11592_v18 = vmul.f32 %v7474_v57, %v11552_v63  ;;  %v7570_v47 = vld [vmem:[%s16500_s1 + $0xc80] sm:$0xff] }
  0x3d   : > { %v900_v44 = vadd.f32 %v884_v9, %v848_v30  ;;  %v901_v46 = vadd.f32 %v885_v10, %v849_v31  ;;  %s1869_s13 = sadd.s32 28, %s11251_s25  ;;  %16610 = vst [vmem:[#allocation16_spill] sm:$0xff] %v11558_v1  ;;  %s11572_s23 = sld [smem:[#allocation2 + %s1817_s30]]  ;;  %v11587_v17 = vstv %s11456_s22  ;;  %v11595_v20 = vmul.f32 %v7475_v62, %v11552_v63  ;;  %v7586_v62 = vld [vmem:[%s16500_s1 + $0xd00] sm:$0xff] }
  0x3e   : > { %16611 = vst [vmem:[#allocation17_spill] sm:$0xff] %v11587_v17  ;;  %s11589_s30 = sld [smem:[#allocation2 + %s1869_s13]]  ;;  %v11607_v28 = vstv %s11471_s19  ;;  %s1921_s11 = sadd.s32 29, %s11251_s25 }
  0x3f   : > { %v952_v58 = vadd.f32 %v936_v12, %v900_v44  ;;  %v953_v60 = vadd.f32 %v937_v23, %v901_v46  ;;  %v11575_v12 = vmul.f32 %v7459_v56, %v11526_v50  ;;  %v11598_v23 = vmul.f32 %v7490_v0, %v11558_v1  ;;  %16612 = vst [vmem:[#allocation18_spill] sm:$0xff] %v11607_v28  ;;  %s11655_s27 = sld [smem:[#allocation2 + %s1921_s11]]  ;;  %s1973_s11 = sadd.s32 30, %s11251_s25 }
  0x40   : > { %v11617_v35 = vstv %s11484_s26  ;;  %v11623_v43 = vstv %s11499_s29  ;;  %v11626_v44 = vmul.f32 %v7491_v13, %v11558_v1  ;;  %v11629_v46 = vmul.f32 %v7506_v15, %v11587_v17  ;;  %v7587_v15 = vld [vmem:[%s16500_s1 + $0xd08] sm:$0xff]  ;;  %s2025_s18 = sadd.s32 31, %s11251_s25  ;;  %s11150_s20 = smov 127  }
  0x41   : > { %v1004_v9 = vadd.f32 %v988_v25, %v952_v58  ;;  %v1005_v10 = vadd.f32 %v989_v26, %v953_v60  ;;  %v7522_v25 = vld [vmem:[%s16500_s1 + $0xb00] sm:$0xff]  ;;  %v7523_v26 = vld [vmem:[%s16500_s1 + $0xb08] sm:$0xff]  ;;  %16613 = vst [vmem:[#allocation19_spill] sm:$0xff] %v11617_v35  ;;  %16614 = vst [vmem:[#allocation20_spill] sm:$0xff] %v11623_v43  ;;  %v11641_v49 = vstv %s11514_s12  ;;  %v11670_v13 = vmul.f32 %v7554_v42, %v11623_v43  ;;  %s11720_s12 = sld [smem:[#allocation2 + %s1973_s11]]  ;;  %s11151_s21 = smov 122  }
  0x42   : > { %16615 = vst [vmem:[#allocation21_spill] sm:$0xff] %v11641_v49  ;;  %v11644_v58 = vmul.f32 %v7522_v25, %v11607_v28  ;;  %v7571_v60 = vld [vmem:[%s16500_s1 + $0xc88] sm:$0xff]  ;;  %v11653_v0 = vstv %s11528_s24  ;;  %s11152_s26 = smov 121   ;;  %s11155_s24 = smov 117  }
  0x43   : > { %v1056_v30 = vadd.f32 %v1040_v27, %v1004_v9  ;;  %v1057_v31 = vadd.f32 %v1041_v38, %v1005_v10  ;;  %v11632_v27 = vmul.f32 %v7507_v16, %v11587_v17  ;;  %v7555_v38 = vld [vmem:[%s16500_s1 + $0xc08] sm:$0xff]  ;;  %16616 = vst [vmem:[#allocation22_spill] sm:$0xff] %v11653_v0  ;;  %v11664_v9 = vmul.f32 %v7538_v29, %v11617_v35  ;;  %v383_v16 = vld [vmem:[%s16501_s2 + $0x10] sm:$0xff]  ;;  %s11159_s16 = smov 110   ;;  %s11160_s17 = smov 109  }
  0x44   : > { %v11667_v10 = vmul.f32 %v7539_v33, %v11617_v35  ;;  %v11681_v29 = vmul.f32 %v7555_v38, %v11623_v43  ;;  %v7188_v33 = vld [vmem:[%s16500_s1 + $0x90] sm:$0xff]  ;;  %v11699_v42 = vmul.f32 %v7586_v62, %v11653_v0  ;;  %v7602_v38 = vld [vmem:[%s16500_s1 + $0xd80] sm:$0xff]  ;;  %v11715_v62 = vmul.f32 %v7587_v15, %v11653_v0  ;;  %v384_v35 = vld [vmem:[%s16501_s2 + $0x18] sm:$0xff]  ;;  %s16696_s28 = sld [smem:[#allocation6_spill]]  ;;  %s16697_s0 = sld [smem:[#allocation30_spill]] }
  0x45   : > { %v1108_v56 = vadd.f32 %v1092_v39, %v1056_v30  ;;  %v1109_v57 = vadd.f32 %v1093_v40, %v1057_v31  ;;  %v399_v39 = vld [vmem:[%s16500_s1 + $0x10] sm:$0xff]  ;;  %v11661_v40 = vmul.f32 %v7523_v26, %v11607_v28  ;;  %v11684_v30 = vmul.f32 %v7570_v47, %v11641_v49  ;;  %v400_v31 = vld [vmem:[%s16500_s1 + $0x18] sm:$0xff] }
  0x46   : > { %v11705_v47 = vstv %s11572_s23  ;;  %v419_v15 = vmul.f32 %v11284_v6, %v400_v31  ;;  %v7236_v31 = vld [vmem:[%s16500_s1 + $0x210] sm:$0xff]  ;;  %s11154_s23 = smov 118  }
  0x47   : > { %v1160_v25 = vadd.f32 %v11506_v41, %v1108_v56  ;;  %v1161_v26 = vadd.f32 %v1145_v51, %v1109_v57  ;;  %v7189_v41 = vld [vmem:[%s16500_s1 + $0x98] sm:$0xff]  ;;  %v11696_v51 = vmul.f32 %v7571_v60, %v11641_v49  ;;  %v418_v56 = vmul.f32 %v11284_v6, %v399_v39  ;;  %v7204_v57 = vld [vmem:[%s16500_s1 + $0x110] sm:$0xff] }
  0x48   : > { %v11718_v49 = vstv %s11589_s30  ;;  %v7205_v39 = vld [vmem:[%s16500_s1 + $0x118] sm:$0xff]  ;;  %v471_v0 = vmul.f32 %v7189_v41, %v11297_v11  ;;  %v11740_v1 = vmul.f32 %v7602_v38, %v11705_v47  ;;  %s11742_s30 = sld [smem:[#allocation2 + %s2025_s18]]  ;;  %v522_v63 = vmul.f32 %v7204_v57, %v11304_v14 }
  0x49   : > { %v1212_v43 = vadd.f32 %v11533_v53, %v1160_v25  ;;  %v1213_v60 = vadd.f32 %v11536_v54, %v1161_v26  ;;  %v7220_v53 = vld [vmem:[%s16500_s1 + $0x190] sm:$0xff]  ;;  %v7603_v54 = vld [vmem:[%s16500_s1 + $0xd88] sm:$0xff]  ;;  %v434_v25 = vadd.f32 %v418_v56, %v383_v16  ;;  %v470_v26 = vmul.f32 %v7188_v33, %v11297_v11  ;;  %v7221_v16 = vld [vmem:[%s16500_s1 + $0x198] sm:$0xff] }
  0x4a   : > { %v523_v41 = vmul.f32 %v7205_v39, %v11304_v14  ;;  %v574_v38 = vmul.f32 %v7220_v53, %v11322_v22  ;;  %v11765_v11 = vstv %s11655_s27  ;;  %v7237_v6 = vld [vmem:[%s16500_s1 + $0x218] sm:$0xff]  ;;  %v7634_v39 = vld [vmem:[%s16500_s1 + $0xe80] sm:$0xff]  ;;  %p376_p0 = scmp.lt.s32.totalorder %s16696_s28, 1 }
  0x4b   : > { %v1264_v28 = vadd.f32 %v11539_v55, %v1212_v43  ;;  %v1265_v17 = vadd.f32 %v11561_v2, %v1213_v60  ;;  %v7618_v55 = vld [vmem:[%s16500_s1 + $0xe00] sm:$0xff]  ;;  %v7619_v2 = vld [vmem:[%s16500_s1 + $0xe08] sm:$0xff]  ;;  %v435_v43 = vadd.f32 %v419_v15, %v384_v35  ;;  %v486_v33 = vadd.f32 %v470_v26, %v434_v25  ;;  %16617 = vst [vmem:[#allocation23_spill] sm:$0xff] %v11765_v11  ;;  %v7252_v35 = vld [vmem:[%s16500_s1 + $0x290] sm:$0xff] }
  0x4c   : > { %v11762_v60 = vmul.f32 %v7603_v54, %v11705_v47  ;;  %v11781_v15 = vmul.f32 %v7618_v55, %v11718_v49  ;;  %v11784_v25 = vmul.f32 %v7619_v2, %v11718_v49  ;;  %s16700_s28 = smov (!%p376_p0, %s16696_s28), 1 }
  0x4d   : > { %v1316_v56 = vadd.f32 %v11564_v3, %v1264_v28  ;;  %v1317_v57 = vadd.f32 %v11567_v4, %v1265_v17  ;;  %v487_v3 = vadd.f32 %v471_v0, %v435_v43  ;;  %v538_v28 = vadd.f32 %v522_v63, %v486_v33  ;;  %v7253_v0 = vld [vmem:[%s16500_s1 + $0x298] sm:$0xff]  ;;  %v7268_v63 = vld [vmem:[%s16500_s1 + $0x310] sm:$0xff] }
  0x4e   : > { %v575_v4 = vmul.f32 %v7221_v16, %v11322_v22  ;;  %v626_v17 = vmul.f32 %v7236_v31, %v11328_v24  ;;  %v627_v16 = vmul.f32 %v7237_v6, %v11328_v24  ;;  %v678_v31 = vmul.f32 %v7252_v35, %v11346_v32  ;;  %v7284_v6 = vld [vmem:[%s16500_s1 + $0x390] sm:$0xff] }
  0x4f   : > { %v1368_v53 = vadd.f32 %v11570_v7, %v1316_v56  ;;  %v1369_v54 = vadd.f32 %v11575_v12, %v1317_v57  ;;  %v7635_v7 = vld [vmem:[%s16500_s1 + $0xe88] sm:$0xff]  ;;  %v539_v26 = vadd.f32 %v523_v41, %v487_v3  ;;  %v590_v12 = vadd.f32 %v574_v38, %v538_v28  ;;  %v7269_v56 = vld [vmem:[%s16500_s1 + $0x318] sm:$0xff]  ;;  %v7650_v41 = vld [vmem:[%s16500_s1 + $0xf00] sm:$0xff] }
  0x50   : > { %v11800_v43 = vmul.f32 %v7634_v39, %v11765_v11  ;;  %v11803_v33 = vstv %s11720_s12  ;;  %v679_v57 = vmul.f32 %v7253_v0, %v11346_v32  ;;  %v730_v35 = vmul.f32 %v7268_v63, %v11356_v37 }
  0x51   : > { %v1420_v55 = vadd.f32 %v11592_v18, %v1368_v53  ;;  %v1421_v2 = vadd.f32 %v11595_v20, %v1369_v54  ;;  %v7651_v18 = vld [vmem:[%s16500_s1 + $0xf08] sm:$0xff]  ;;  %v591_v20 = vadd.f32 %v575_v4, %v539_v26  ;;  %v642_v38 = vadd.f32 %v626_v17, %v590_v12  ;;  %v7285_v54 = vld [vmem:[%s16500_s1 + $0x398] sm:$0xff]  ;;  %v7300_v4 = vld [vmem:[%s16500_s1 + $0x410] sm:$0xff] }
  0x52   : > { %v11822_v28 = vmul.f32 %v7635_v7, %v11765_v11  ;;  %v11825_v53 = vstv %s11742_s30  ;;  %v7666_v17 = vld [vmem:[%s16500_s1 + $0xf80] sm:$0xff]  ;;  %v731_v63 = vmul.f32 %v7269_v56, %v11356_v37  ;;  %v782_v7 = vmul.f32 %v7284_v6, %v11376_v45  ;;  %v7301_v11 = vld [vmem:[%s16500_s1 + $0x418] sm:$0xff]  ;;  %s9960_s30 = smul.u32 48, %s16700_s28 }
  0x53   : > { %v1472_v39 = vadd.f32 %v11598_v23, %v1420_v55  ;;  %v1473_v3 = vadd.f32 %v11626_v44, %v1421_v2  ;;  %v7667_v23 = vld [vmem:[%s16500_s1 + $0xf88] sm:$0xff]  ;;  %v643_v44 = vadd.f32 %v627_v16, %v591_v20  ;;  %v694_v0 = vadd.f32 %v678_v31, %v642_v38  ;;  %v7316_v16 = vld [vmem:[%s16500_s1 + $0x490] sm:$0xff]  ;;  %v7317_v6 = vld [vmem:[%s16500_s1 + $0x498] sm:$0xff] }
  0x54   : > { %v11844_v55 = vmul.f32 %v7650_v41, %v11803_v33  ;;  %v11847_v2 = vmul.f32 %v7651_v18, %v11803_v33  ;;  %v7332_v41 = vld [vmem:[%s16500_s1 + $0x510] sm:$0xff]  ;;  %v11866_v38 = vmul.f32 %v7666_v17, %v11825_v53 }
  0x55   : > { %v1524_v26 = vadd.f32 %v11629_v46, %v1472_v39  ;;  %v1525_v12 = vadd.f32 %v11632_v27, %v1473_v3  ;;  %v695_v31 = vadd.f32 %v679_v57, %v643_v44  ;;  %v746_v56 = vadd.f32 %v730_v35, %v694_v0  ;;  %v7333_v35 = vld [vmem:[%s16500_s1 + $0x518] sm:$0xff]  ;;  %v7348_v39 = vld [vmem:[%s16500_s1 + $0x590] sm:$0xff] }
  0x56   : > { %v783_v46 = vmul.f32 %v7285_v54, %v11376_v45  ;;  %v834_v27 = vmul.f32 %v7300_v4, %v11393_v52  ;;  %v11869_v57 = vmul.f32 %v7667_v23, %v11825_v53  ;;  %v7349_v4 = vld [vmem:[%s16500_s1 + $0x598] sm:$0xff]  ;;  %v7364_v17 = vld [vmem:[%s16500_s1 + $0x610] sm:$0xff]  ;;  %v887_v0 = vmul.f32 %v7317_v6, %v11410_v59 }
  0x57   : > { %v1576_v18 = vadd.f32 %v11644_v58, %v1524_v26  ;;  %v1577_v20 = vadd.f32 %v11661_v40, %v1525_v12  ;;  %v747_v3 = vadd.f32 %v731_v63, %v695_v31  ;;  %v798_v54 = vadd.f32 %v782_v7, %v746_v56  ;;  %v7380_v7 = vld [vmem:[%s16500_s1 + $0x690] sm:$0xff] }
  0x58   : > { %v835_v58 = vmul.f32 %v7301_v11, %v11393_v52  ;;  %v886_v40 = vmul.f32 %v7316_v16, %v11410_v59  ;;  %v938_v63 = vmul.f32 %v7332_v41, %v11416_v61  ;;  %v7365_v11 = vld [vmem:[%s16500_s1 + $0x618] sm:$0xff]  ;;  %v939_v16 = vmul.f32 %v7333_v35, %v11416_v61  ;;  %v7396_v31 = vld [vmem:[%s16500_s1 + $0x710] sm:$0xff] }
  0x59   : > { %v1628_v23 = vadd.f32 %v11664_v9, %v1576_v18  ;;  %v1629_v44 = vadd.f32 %v11667_v10, %v1577_v20  ;;  %v799_v26 = vadd.f32 %v783_v46, %v747_v3  ;;  %v850_v12 = vadd.f32 %v834_v27, %v798_v54  ;;  %v7381_v10 = vld [vmem:[%s16500_s1 + $0x698] sm:$0xff]  ;;  %v7412_v18 = vld [vmem:[%s16500_s1 + $0x790] sm:$0xff] }
  0x5a   : > { %v990_v9 = vmul.f32 %v7348_v39, %v11436_v5  ;;  %v991_v41 = vmul.f32 %v7349_v4, %v11436_v5  ;;  %v1042_v46 = vmul.f32 %v7364_v17, %v11442_v8  ;;  %v7397_v27 = vld [vmem:[%s16500_s1 + $0x718] sm:$0xff]  ;;  %v1043_v39 = vmul.f32 %v7365_v11, %v11442_v8  ;;  %v7428_v3 = vld [vmem:[%s16500_s1 + $0x810] sm:$0xff] }
  0x5b   : > { %v1680_v56 = vadd.f32 %v11670_v13, %v1628_v23  ;;  %v1681_v6 = vadd.f32 %v11681_v29, %v1629_v44  ;;  %v851_v20 = vadd.f32 %v835_v58, %v799_v26  ;;  %v902_v35 = vadd.f32 %v886_v40, %v850_v12  ;;  %v7413_v29 = vld [vmem:[%s16500_s1 + $0x798] sm:$0xff]  ;;  %v7444_v23 = vld [vmem:[%s16500_s1 + $0x890] sm:$0xff] }
  0x5c   : > { %v1094_v13 = vmul.f32 %v7380_v7, %v11463_v19  ;;  %v1095_v17 = vmul.f32 %v7381_v10, %v11463_v19  ;;  %v1146_v58 = vmul.f32 %v7396_v31, %v11469_v21  ;;  %v7429_v40 = vld [vmem:[%s16500_s1 + $0x818] sm:$0xff]  ;;  %v1147_v7 = vmul.f32 %v7397_v27, %v11469_v21  ;;  %v7460_v26 = vld [vmem:[%s16500_s1 + $0x910] sm:$0xff] }
  0x5d   : > { %v1732_v54 = vadd.f32 %v11684_v30, %v1680_v56  ;;  %v1733_v4 = vadd.f32 %v11696_v51, %v1681_v6  ;;  %v903_v44 = vadd.f32 %v887_v0, %v851_v20  ;;  %v954_v11 = vadd.f32 %v938_v63, %v902_v35  ;;  %v7445_v51 = vld [vmem:[%s16500_s1 + $0x898] sm:$0xff]  ;;  %v7476_v56 = vld [vmem:[%s16500_s1 + $0x990] sm:$0xff] }
  0x5e   : > { %v1198_v30 = vmul.f32 %v7412_v18, %v11491_v34  ;;  %v11942_v31 = vmul.f32 %v7413_v29, %v11491_v34  ;;  %v11945_v0 = vmul.f32 %v7428_v3, %v11497_v36  ;;  %v7461_v63 = vld [vmem:[%s16500_s1 + $0x918] sm:$0xff]  ;;  %v7492_v20 = vld [vmem:[%s16500_s1 + $0xa10] sm:$0xff] }
  0x5f   : > { %v1784_v12 = vadd.f32 %v11699_v42, %v1732_v54  ;;  %v1785_v10 = vadd.f32 %v11715_v62, %v1733_v4  ;;  %v955_v6 = vadd.f32 %v939_v16, %v903_v44  ;;  %v1006_v27 = vadd.f32 %v990_v9, %v954_v11  ;;  %v7477_v18 = vld [vmem:[%s16500_s1 + $0x998] sm:$0xff]  ;;  %v7508_v54 = vld [vmem:[%s16500_s1 + $0xa90] sm:$0xff] }
  0x60   : > { %v11954_v42 = vmul.f32 %v7429_v40, %v11497_v36  ;;  %v11957_v62 = vmul.f32 %v7444_v23, %v11520_v48  ;;  %v11968_v16 = vmul.f32 %v7445_v51, %v11520_v48  ;;  %v11971_v9 = vmul.f32 %v7460_v26, %v11526_v50  ;;  %v7493_v3 = vld [vmem:[%s16500_s1 + $0xa18] sm:$0xff]  ;;  %v7524_v11 = vld [vmem:[%s16500_s1 + $0xb10] sm:$0xff] }
  0x61   : > { %v1836_v35 = vadd.f32 %v11740_v1, %v1784_v12  ;;  %v1837_v29 = vadd.f32 %v11762_v60, %v1785_v10  ;;  %v1007_v4 = vadd.f32 %v991_v41, %v955_v6  ;;  %v1058_v40 = vadd.f32 %v1042_v46, %v1006_v27  ;;  %v16618_v60 = vld [vmem:[#allocation15_spill] sm:$0xff]  ;;  %v7509_v44 = vld [vmem:[%s16500_s1 + $0xa98] sm:$0xff]  ;;  %v16619_v46 = vld [vmem:[#allocation16_spill] sm:$0xff] }
  0x62   : > { %v11980_v1 = vmul.f32 %v7461_v63, %v11526_v50  ;;  %v11983_v23 = vmul.f32 %v7476_v56, %v16618_v60  ;;  %v11994_v41 = vmul.f32 %v7477_v18, %v16618_v60  ;;  %v11997_v12 = vmul.f32 %v7492_v20, %v16619_v46  ;;  %v7525_v10 = vld [vmem:[%s16500_s1 + $0xb18] sm:$0xff]  ;;  %v7540_v63 = vld [vmem:[%s16500_s1 + $0xb90] sm:$0xff] }
  0x63   : > { %v1888_v51 = vadd.f32 %v11781_v15, %v1836_v35  ;;  %v1889_v26 = vadd.f32 %v11784_v25, %v1837_v29  ;;  %v1059_v56 = vadd.f32 %v1043_v39, %v1007_v4  ;;  %v1110_v6 = vadd.f32 %v1094_v13, %v1058_v40  ;;  %v16620_v25 = vld [vmem:[#allocation17_spill] sm:$0xff]  ;;  %v7541_v18 = vld [vmem:[%s16500_s1 + $0xb98] sm:$0xff] }
  0x64   : > { %v12006_v15 = vmul.f32 %v7493_v3, %v16619_v46  ;;  %v12009_v27 = vmul.f32 %v7508_v54, %v16620_v25  ;;  %v7556_v20 = vld [vmem:[%s16500_s1 + $0xc10] sm:$0xff]  ;;  %v12020_v39 = vmul.f32 %v7509_v44, %v16620_v25  ;;  %v16621_v13 = vld [vmem:[#allocation18_spill] sm:$0xff]  ;;  %v401_v44 = vld [vmem:[%s16500_s1 + $0x20] sm:$0xff] }
  0x65   : > { %v1940_v35 = vadd.f32 %v11800_v43, %v1888_v51  ;;  %v1941_v29 = vadd.f32 %v11822_v28, %v1889_v26  ;;  %v12023_v3 = vmul.f32 %v7524_v11, %v16621_v13  ;;  %v7557_v54 = vld [vmem:[%s16500_s1 + $0xc18] sm:$0xff]  ;;  %v7572_v4 = vld [vmem:[%s16500_s1 + $0xc90] sm:$0xff]  ;;  %v1111_v40 = vadd.f32 %v1095_v17, %v1059_v56  ;;  %v16622_v28 = vld [vmem:[#allocation19_spill] sm:$0xff] }
  0x66   : > { %v1162_v46 = vadd.f32 %v1146_v58, %v1110_v6  ;;  %v12032_v43 = vmul.f32 %v7525_v10, %v16621_v13  ;;  %v12035_v51 = vmul.f32 %v7540_v63, %v16622_v28  ;;  %v402_v11 = vld [vmem:[%s16500_s1 + $0x28] sm:$0xff]  ;;  %v12046_v17 = vmul.f32 %v7541_v18, %v16622_v28  ;;  %v7190_v63 = vld [vmem:[%s16500_s1 + $0xa0] sm:$0xff] }
  0x67   : > { %v1992_v26 = vadd.f32 %v11844_v55, %v1940_v35  ;;  %v1993_v25 = vadd.f32 %v11847_v2, %v1941_v29  ;;  %v16623_v58 = vld [vmem:[#allocation20_spill] sm:$0xff]  ;;  %v1163_v6 = vadd.f32 %v1147_v7, %v1111_v40  ;;  %v16624_v2 = vld [vmem:[#allocation21_spill] sm:$0xff]  ;;  %v385_v18 = vld [vmem:[%s16501_s2 + $0x20] sm:$0xff] }
  0x68   : > { %v12049_v10 = vmul.f32 %v7556_v20, %v16623_v58  ;;  %v7191_v56 = vld [vmem:[%s16500_s1 + $0xa8] sm:$0xff]  ;;  %v1214_v13 = vadd.f32 %v1198_v30, %v1162_v46  ;;  %v12058_v55 = vmul.f32 %v7557_v54, %v16623_v58  ;;  %v12061_v35 = vmul.f32 %v7572_v4, %v16624_v2  ;;  %v16627_v30 = vld [vmem:[#allocation7_spill] sm:$0xff] }
  0x69   : > { %v12067_v20 = vadd.f32 %v11866_v38, %v1992_v26  ;;  %v12070_v29 = vadd.f32 %v11869_v57, %v1993_v25  ;;  %v386_v7 = vld [vmem:[%s16501_s2 + $0x28] sm:$0xff]  ;;  %v420_v46 = vmul.f32 %v16627_v30, %v401_v44  ;;  %v421_v54 = vmul.f32 %v16627_v30, %v402_v11  ;;  %v7206_v4 = vld [vmem:[%s16500_s1 + $0x120] sm:$0xff] }
  0x6a   : > { %v1215_v40 = vadd.f32 %v11942_v31, %v1163_v6  ;;  %v1266_v38 = vadd.f32 %v11945_v0, %v1214_v13  ;;  %v16628_v26 = vld [vmem:[#allocation8_spill] sm:$0xff]  ;;  %v7222_v44 = vld [vmem:[%s16500_s1 + $0x1a0] sm:$0xff] }
  0x6b   : > { %16625 = vst [vmem:[#allocation21_spill] sm:$0xff] %v12067_v20  ;;  %16626 = vst [vmem:[#allocation24_spill] sm:$0xff] %v12070_v29  ;;  %v472_v58 = vmul.f32 %v7190_v63, %v16628_v26  ;;  %v473_v57 = vmul.f32 %v7191_v56, %v16628_v26  ;;  %v7207_v25 = vld [vmem:[%s16500_s1 + $0x128] sm:$0xff]  ;;  %v9992_v11 = vpack.i.bf16 %v12070_v29, %v12067_v20  ;;  %v7573_v63 = vld [vmem:[%s16500_s1 + $0xc98] sm:$0xff] }
  0x6c   : > { %v436_v30 = vadd.f32 %v420_v46, %v385_v18  ;;  %v7223_v31 = vld [vmem:[%s16500_s1 + $0x1a8] sm:$0xff]  ;;  %v1267_v0 = vadd.f32 %v11954_v42, %v1215_v40  ;;  %v1318_v13 = vadd.f32 %v11957_v62, %v1266_v38  ;;  %v7588_v56 = vld [vmem:[%s16500_s1 + $0xd10] sm:$0xff]  ;;  %v437_v6 = vadd.f32 %v421_v54, %v386_v7  ;;  %v7238_v18 = vld [vmem:[%s16500_s1 + $0x220] sm:$0xff] }
  0x6d   : > { %v524_v29 = vmul.f32 %v7206_v4, %v11304_v14  ;;  %9993 = vrot.lane.b32.xlu0 %v9992_v11, %s11150_s20  ;;  %10003 = vrot.lane.b32.xlu1 %v9992_v11, %s11151_s21  ;;  %v525_v62 = vmul.f32 %v7207_v25, %v11304_v14  ;;  %v576_v46 = vmul.f32 %v7222_v44, %v11322_v22  ;;  %v7239_v7 = vld [vmem:[%s16500_s1 + $0x228] sm:$0xff]  ;;  %v7589_v40 = vld [vmem:[%s16500_s1 + $0xd18] sm:$0xff] }
  0x6e   : > { %v488_v42 = vadd.f32 %v472_v58, %v436_v30  ;;  %v1319_v54 = vadd.f32 %v11968_v16, %v1267_v0  ;;  %v1370_v4 = vadd.f32 %v11971_v9, %v1318_v13  ;;  %v7604_v58 = vld [vmem:[%s16500_s1 + $0xd90] sm:$0xff]  ;;  %v489_v30 = vadd.f32 %v473_v57, %v437_v6  ;;  %v7254_v25 = vld [vmem:[%s16500_s1 + $0x2a0] sm:$0xff]  ;;  %v16629_v16 = vld [vmem:[#allocation22_spill] sm:$0xff] }
  0x6f   : > { %v577_v38 = vmul.f32 %v7223_v31, %v11322_v22  ;;  %v12127_v44 = vmul.f32 %v7573_v63, %v16624_v2  ;;  %v12130_v9 = vmul.f32 %v7588_v56, %v16629_v16  ;;  %v628_v13 = vmul.f32 %v7238_v18, %v11328_v24  ;;  %v7255_v20 = vld [vmem:[%s16500_s1 + $0x2a8] sm:$0xff]  ;;  %v7605_v6 = vld [vmem:[%s16500_s1 + $0xd98] sm:$0xff]  ;;  %v7620_v63 = vld [vmem:[%s16500_s1 + $0xe10] sm:$0xff] }
  0x70   : > { %v540_v0 = vadd.f32 %v524_v29, %v488_v42  ;;  %v1371_v57 = vadd.f32 %v11980_v1, %v1319_v54  ;;  %v1422_v31 = vadd.f32 %v11983_v23, %v1370_v4  ;;  %v541_v56 = vadd.f32 %v525_v62, %v489_v30  ;;  %v7270_v18 = vld [vmem:[%s16500_s1 + $0x320] sm:$0xff]  ;;  %v7271_v62 = vld [vmem:[%s16500_s1 + $0x328] sm:$0xff] }
  0x71   : > { %v629_v29 = vmul.f32 %v7239_v7, %v11328_v24  ;;  %9998 = vrot.lane.b32.xlu0 %v9992_v11, %s11152_s26  ;;  %v12150_v1 = vmul.f32 %v7589_v40, %v16629_v16  ;;  %v12153_v23 = vmul.f32 %v7604_v58, %v11705_v47  ;;  %v680_v54 = vmul.f32 %v7254_v25, %v11346_v32  ;;  %v7621_v11 = vld [vmem:[%s16500_s1 + $0xe18] sm:$0xff]  ;;  %v7636_v40 = vld [vmem:[%s16500_s1 + $0xe90] sm:$0xff]  ;;  %v7286_v30 = vld [vmem:[%s16500_s1 + $0x3a0] sm:$0xff] }
  0x72   : > { %v592_v42 = vadd.f32 %v576_v46, %v540_v0  ;;  %v1423_v7 = vadd.f32 %v11994_v41, %v1371_v57  ;;  %v1474_v4 = vadd.f32 %v11997_v12, %v1422_v31  ;;  %v593_v58 = vadd.f32 %v577_v38, %v541_v56  ;;  %v7287_v57 = vld [vmem:[%s16500_s1 + $0x3a8] sm:$0xff]  ;;  %v7637_v31 = vld [vmem:[%s16500_s1 + $0xe98] sm:$0xff]  ;;  %v7302_v56 = vld [vmem:[%s16500_s1 + $0x420] sm:$0xff] }
  0x73   : > { %v681_v46 = vmul.f32 %v7255_v20, %v11346_v32  ;;  %v12172_v25 = vmul.f32 %v7605_v6, %v11705_v47  ;;  %v12175_v41 = vmul.f32 %v7620_v63, %v11718_v49  ;;  %v732_v0 = vmul.f32 %v7270_v18, %v11356_v37  ;;  %v7652_v6 = vld [vmem:[%s16500_s1 + $0xf10] sm:$0xff] }
  0x74   : > { %v644_v12 = vadd.f32 %v628_v13, %v592_v42  ;;  %v1475_v38 = vadd.f32 %v12006_v15, %v1423_v7  ;;  %v1526_v20 = vadd.f32 %v12009_v27, %v1474_v4  ;;  %v645_v63 = vadd.f32 %v629_v29, %v593_v58  ;;  %v16630_v15 = vld [vmem:[#allocation23_spill] sm:$0xff]  ;;  %v7303_v4 = vld [vmem:[%s16500_s1 + $0x428] sm:$0xff]  ;;  %v7653_v58 = vld [vmem:[%s16500_s1 + $0xf18] sm:$0xff] }
  0x75   : > { %v733_v13 = vmul.f32 %v7271_v62, %v11356_v37  ;;  %v12194_v18 = vmul.f32 %v7621_v11, %v11718_v49  ;;  %v12197_v27 = vmul.f32 %v7636_v40, %v16630_v15  ;;  %v784_v7 = vmul.f32 %v7286_v30, %v11376_v45  ;;  %v7668_v11 = vld [vmem:[%s16500_s1 + $0xf90] sm:$0xff]  ;;  %v7318_v30 = vld [vmem:[%s16500_s1 + $0x4a0] sm:$0xff] }
  0x76   : > { %v696_v42 = vadd.f32 %v680_v54, %v644_v12  ;;  %v1527_v29 = vadd.f32 %v12020_v39, %v1475_v38  ;;  %v1578_v62 = vadd.f32 %v12023_v3, %v1526_v20  ;;  %v697_v40 = vadd.f32 %v681_v46, %v645_v63  ;;  %v7319_v20 = vld [vmem:[%s16500_s1 + $0x4a8] sm:$0xff]  ;;  %v7669_v63 = vld [vmem:[%s16500_s1 + $0xf98] sm:$0xff] }
  0x77   : > { %v785_v54 = vmul.f32 %v7287_v57, %v11376_v45  ;;  %v12216_v12 = vmul.f32 %v7637_v31, %v16630_v15  ;;  %v12219_v39 = vmul.f32 %v7652_v6, %v11803_v33  ;;  %v836_v38 = vmul.f32 %v7302_v56, %v11393_v52  ;;  %v7335_v6 = vld [vmem:[%s16500_s1 + $0x528] sm:$0xff] }
  0x78   : > { %v748_v3 = vadd.f32 %v732_v0, %v696_v42  ;;  %v1579_v46 = vadd.f32 %v12032_v43, %v1527_v29  ;;  %v1630_v57 = vadd.f32 %v12035_v51, %v1578_v62  ;;  %v749_v31 = vadd.f32 %v733_v13, %v697_v40  ;;  %v7334_v0 = vld [vmem:[%s16500_s1 + $0x520] sm:$0xff] }
  0x79   : > { %v837_v45 = vmul.f32 %v7303_v4, %v11393_v52  ;;  %v12238_v56 = vmul.f32 %v7653_v58, %v11803_v33  ;;  %v12241_v43 = vmul.f32 %v7668_v11, %v11825_v53  ;;  %v888_v42 = vmul.f32 %v7318_v30, %v11410_v59  ;;  %v7350_v13 = vld [vmem:[%s16500_s1 + $0x5a0] sm:$0xff]  ;;  %v7351_v58 = vld [vmem:[%s16500_s1 + $0x5a8] sm:$0xff] }
  0x7a   : > { %v800_v51 = vadd.f32 %v784_v7, %v748_v3  ;;  %v1631_v4 = vadd.f32 %v12046_v17, %v1579_v46  ;;  %v1682_v29 = vadd.f32 %v12049_v10, %v1630_v57  ;;  %v801_v62 = vadd.f32 %v785_v54, %v749_v31  ;;  %v7366_v7 = vld [vmem:[%s16500_s1 + $0x620] sm:$0xff]  ;;  %v7367_v11 = vld [vmem:[%s16500_s1 + $0x628] sm:$0xff] }
  0x7b   : > { %v889_v40 = vmul.f32 %v7319_v20, %v11410_v59  ;;  %v12260_v30 = vmul.f32 %v7669_v63, %v11825_v53  ;;  %v940_v10 = vmul.f32 %v7334_v0, %v11416_v61  ;;  %v941_v54 = vmul.f32 %v7335_v6, %v11416_v61  ;;  %v7382_v3 = vld [vmem:[%s16500_s1 + $0x6a0] sm:$0xff]  ;;  %v7383_v63 = vld [vmem:[%s16500_s1 + $0x6a8] sm:$0xff] }
  0x7c   : > { %v852_v17 = vadd.f32 %v836_v38, %v800_v51  ;;  %v1683_v20 = vadd.f32 %v12058_v55, %v1631_v4  ;;  %v1734_v46 = vadd.f32 %v12061_v35, %v1682_v29  ;;  %v853_v57 = vadd.f32 %v837_v45, %v801_v62  ;;  %v7398_v38 = vld [vmem:[%s16500_s1 + $0x720] sm:$0xff]  ;;  %v7399_v0 = vld [vmem:[%s16500_s1 + $0x728] sm:$0xff] }
  0x7d   : > { %v992_v31 = vmul.f32 %v7350_v13, %v11436_v5  ;;  %v993_v55 = vmul.f32 %v7351_v58, %v11436_v5  ;;  %v1044_v35 = vmul.f32 %v7366_v7, %v11442_v8  ;;  %v1045_v45 = vmul.f32 %v7367_v11, %v11442_v8  ;;  %v7414_v51 = vld [vmem:[%s16500_s1 + $0x7a0] sm:$0xff]  ;;  %v7431_v7 = vld [vmem:[%s16500_s1 + $0x828] sm:$0xff] }
  0x7e   : > { %v904_v6 = vadd.f32 %v888_v42, %v852_v17  ;;  %v1735_v13 = vadd.f32 %v12127_v44, %v1683_v20  ;;  %v1786_v4 = vadd.f32 %v12130_v9, %v1734_v46  ;;  %v905_v29 = vadd.f32 %v889_v40, %v853_v57  ;;  %v7415_v42 = vld [vmem:[%s16500_s1 + $0x7a8] sm:$0xff]  ;;  %v7430_v58 = vld [vmem:[%s16500_s1 + $0x820] sm:$0xff] }
  0x7f   : > { %v1096_v62 = vmul.f32 %v7382_v3, %v11463_v19  ;;  %v1097_v44 = vmul.f32 %v7383_v63, %v11463_v19  ;;  %v1148_v9 = vmul.f32 %v7398_v38, %v11469_v21  ;;  %v1149_v40 = vmul.f32 %v7399_v0, %v11469_v21  ;;  %v7446_v17 = vld [vmem:[%s16500_s1 + $0x8a0] sm:$0xff]  ;;  %v7463_v38 = vld [vmem:[%s16500_s1 + $0x928] sm:$0xff] }
  0x80   : > { %v956_v11 = vadd.f32 %v940_v10, %v904_v6  ;;  %v1787_v3 = vadd.f32 %v12150_v1, %v1735_v13  ;;  %v1838_v20 = vadd.f32 %v12153_v23, %v1786_v4  ;;  %v957_v46 = vadd.f32 %v941_v54, %v905_v29  ;;  %v7447_v10 = vld [vmem:[%s16500_s1 + $0x8a8] sm:$0xff]  ;;  %v7462_v63 = vld [vmem:[%s16500_s1 + $0x920] sm:$0xff] }
  0x81   : > { %v1200_v57 = vmul.f32 %v7414_v51, %v11491_v34  ;;  %v1201_v1 = vmul.f32 %v7415_v42, %v11491_v34  ;;  %v1252_v23 = vmul.f32 %v7430_v58, %v11497_v36  ;;  %v12318_v54 = vmul.f32 %v7431_v7, %v11497_v36  ;;  %v7478_v6 = vld [vmem:[%s16500_s1 + $0x9a0] sm:$0xff]  ;;  %v7495_v58 = vld [vmem:[%s16500_s1 + $0xa28] sm:$0xff] }
  0x82   : > { %v1008_v0 = vadd.f32 %v992_v31, %v956_v11  ;;  %v1839_v51 = vadd.f32 %v12172_v25, %v1787_v3  ;;  %v1890_v13 = vadd.f32 %v12175_v41, %v1838_v20  ;;  %v1009_v4 = vadd.f32 %v993_v55, %v957_v46  ;;  %v7479_v31 = vld [vmem:[%s16500_s1 + $0x9a8] sm:$0xff]  ;;  %v7494_v42 = vld [vmem:[%s16500_s1 + $0xa20] sm:$0xff] }
  0x83   : > { %v1304_v29 = vmul.f32 %v7446_v17, %v11520_v48  ;;  %v12336_v25 = vmul.f32 %v7447_v10, %v11520_v48  ;;  %v12339_v41 = vmul.f32 %v7462_v63, %v11526_v50  ;;  %v12342_v55 = vmul.f32 %v7463_v38, %v11526_v50  ;;  %v7510_v11 = vld [vmem:[%s16500_s1 + $0xaa0] sm:$0xff]  ;;  %v7511_v46 = vld [vmem:[%s16500_s1 + $0xaa8] sm:$0xff]  ;;  %v16632_v50 = vld [vmem:[#allocation17_spill] sm:$0xff] }
  0x84   : > { %v1060_v7 = vadd.f32 %v1044_v35, %v1008_v0  ;;  %v1891_v17 = vadd.f32 %v12194_v18, %v1839_v51  ;;  %v1942_v3 = vadd.f32 %v12197_v27, %v1890_v13  ;;  %v1061_v20 = vadd.f32 %v1045_v45, %v1009_v4  ;;  %v7526_v10 = vld [vmem:[%s16500_s1 + $0xb20] sm:$0xff]  ;;  %v7527_v63 = vld [vmem:[%s16500_s1 + $0xb28] sm:$0xff] }
  0x85   : > { %v12350_v35 = vmul.f32 %v7478_v6, %v16618_v60  ;;  %v12362_v18 = vmul.f32 %v7479_v31, %v16618_v60  ;;  %v16631_v27 = vld [vmem:[#allocation16_spill] sm:$0xff]  ;;  %v7542_v6 = vld [vmem:[%s16500_s1 + $0xba0] sm:$0xff] }
  0x86   : > { %v1112_v38 = vadd.f32 %v1096_v62, %v1060_v7  ;;  %v12365_v45 = vmul.f32 %v7494_v42, %v16631_v27  ;;  %v12368_v0 = vmul.f32 %v7495_v58, %v16631_v27  ;;  %v1943_v51 = vadd.f32 %v12216_v12, %v1891_v17  ;;  %v7543_v31 = vld [vmem:[%s16500_s1 + $0xba8] sm:$0xff]  ;;  %v7558_v42 = vld [vmem:[%s16500_s1 + $0xc20] sm:$0xff] }
  0x87   : > { %v1994_v13 = vadd.f32 %v12219_v39, %v1942_v3  ;;  %v1113_v4 = vadd.f32 %v1097_v44, %v1061_v20  ;;  %v12376_v62 = vmul.f32 %v7510_v11, %v16632_v50  ;;  %v7559_v58 = vld [vmem:[%s16500_s1 + $0xc28] sm:$0xff]  ;;  %v12388_v12 = vmul.f32 %v7511_v46, %v16632_v50  ;;  %v16633_v39 = vld [vmem:[#allocation18_spill] sm:$0xff]  ;;  %v7574_v17 = vld [vmem:[%s16500_s1 + $0xca0] sm:$0xff] }
  0x88   : > { %v1164_v7 = vadd.f32 %v1148_v9, %v1112_v38  ;;  %v12391_v44 = vmul.f32 %v7526_v10, %v16633_v39  ;;  %v12394_v11 = vmul.f32 %v7527_v63, %v16633_v39  ;;  %v403_v3 = vld [vmem:[%s16500_s1 + $0x30] sm:$0xff]  ;;  %v1995_v20 = vadd.f32 %v12238_v56, %v1943_v51  ;;  %v404_v63 = vld [vmem:[%s16500_s1 + $0x38] sm:$0xff] }
  0x89   : > { %v12404_v9 = vadd.f32 %v12241_v43, %v1994_v13  ;;  %v1165_v46 = vadd.f32 %v1149_v40, %v1113_v4  ;;  %v12407_v10 = vmul.f32 %v7542_v6, %v16622_v28  ;;  %v7192_v38 = vld [vmem:[%s16500_s1 + $0xb0] sm:$0xff]  ;;  %v7193_v39 = vld [vmem:[%s16500_s1 + $0xb8] sm:$0xff]  ;;  %v12419_v43 = vmul.f32 %v7543_v31, %v16622_v28  ;;  %v16635_v40 = vld [vmem:[#allocation20_spill] sm:$0xff] }
  0x8a   : > { %v1216_v56 = vadd.f32 %v1200_v57, %v1164_v7  ;;  %v12422_v51 = vmul.f32 %v7558_v42, %v16635_v40  ;;  %v12425_v6 = vmul.f32 %v7559_v58, %v16635_v40  ;;  %v12428_v13 = vadd.f32 %v12260_v30, %v1995_v20  ;;  %v387_v57 = vld [vmem:[%s16501_s2 + $0x30] sm:$0xff]  ;;  %v388_v31 = vld [vmem:[%s16501_s2 + $0x38] sm:$0xff]  ;;  %v16637_v42 = vld [vmem:[#allocation7_spill] sm:$0xff] }
  0x8b   : > { %16634 = vst [vmem:[#allocation22_spill] sm:$0xff] %v12404_v9  ;;  %v1217_v4 = vadd.f32 %v1201_v1, %v1165_v46  ;;  %v12431_v50 = vmul.f32 %v7574_v17, %v16624_v2  ;;  %v422_v7 = vmul.f32 %v16637_v42, %v403_v3  ;;  %v7208_v58 = vld [vmem:[%s16500_s1 + $0x130] sm:$0xff]  ;;  %v423_v1 = vmul.f32 %v16637_v42, %v404_v63  ;;  %v7209_v46 = vld [vmem:[%s16500_s1 + $0x138] sm:$0xff] }
  0x8c   : > { %16636 = vst [vmem:[#allocation23_spill] sm:$0xff] %v12428_v13  ;;  %v1268_v30 = vadd.f32 %v1252_v23, %v1216_v56  ;;  %v474_v17 = vmul.f32 %v7192_v38, %v16628_v26  ;;  %v475_v20 = vmul.f32 %v7193_v39, %v16628_v26  ;;  %v7224_v40 = vld [vmem:[%s16500_s1 + $0x1b0] sm:$0xff]  ;;  %v10007_v3 = vpack.i.bf16 %v12428_v13, %v12404_v9  ;;  %v7225_v23 = vld [vmem:[%s16500_s1 + $0x1b8] sm:$0xff]  ;;  %v7575_v39 = vld [vmem:[%s16500_s1 + $0xca8] sm:$0xff] }
  0x8d   : > { %v1269_v28 = vadd.f32 %v12318_v54, %v1217_v4  ;;  %v7590_v38 = vld [vmem:[%s16500_s1 + $0xd20] sm:$0xff]  ;;  %v438_v56 = vadd.f32 %v422_v7, %v387_v57  ;;  %v439_v26 = vadd.f32 %v423_v1, %v388_v31  ;;  %v526_v42 = vmul.f32 %v7208_v58, %v11304_v14  ;;  %v7240_v54 = vld [vmem:[%s16500_s1 + $0x230] sm:$0xff]  ;;  %v7241_v57 = vld [vmem:[%s16500_s1 + $0x238] sm:$0xff] }
  0x8e   : > { %v1320_v63 = vadd.f32 %v1304_v29, %v1268_v30  ;;  %10008 = vrot.lane.b32.xlu1 %v10007_v3, %s11150_s20  ;;  %10013 = vrot.lane.b32.xlu0 %v10007_v3, %s11152_s26  ;;  %v527_v4 = vmul.f32 %v7209_v46, %v11304_v14  ;;  %v578_v30 = vmul.f32 %v7224_v40, %v11322_v22  ;;  %v7591_v7 = vld [vmem:[%s16500_s1 + $0xd28] sm:$0xff]  ;;  %v7606_v58 = vld [vmem:[%s16500_s1 + $0xda0] sm:$0xff] }
  0x8f   : > { %v1321_v29 = vadd.f32 %v12336_v25, %v1269_v28  ;;  %v490_v1 = vadd.f32 %v474_v17, %v438_v56  ;;  %v491_v28 = vadd.f32 %v475_v20, %v439_v26  ;;  %v579_v25 = vmul.f32 %v7225_v23, %v11322_v22  ;;  %v7256_v40 = vld [vmem:[%s16500_s1 + $0x2b0] sm:$0xff]  ;;  %v7257_v26 = vld [vmem:[%s16500_s1 + $0x2b8] sm:$0xff]  ;;  %v7607_v20 = vld [vmem:[%s16500_s1 + $0xda8] sm:$0xff] }
  0x90   : > { %v1372_v31 = vadd.f32 %v12339_v41, %v1320_v63  ;;  %v12489_v41 = vmul.f32 %v7575_v39, %v16624_v2  ;;  %v12492_v63 = vmul.f32 %v7590_v38, %v16629_v16  ;;  %v630_v13 = vmul.f32 %v7240_v54, %v11328_v24  ;;  %v7272_v56 = vld [vmem:[%s16500_s1 + $0x330] sm:$0xff] }
  0x91   : > { %v1373_v46 = vadd.f32 %v12342_v55, %v1321_v29  ;;  %v7622_v55 = vld [vmem:[%s16500_s1 + $0xe20] sm:$0xff]  ;;  %v542_v23 = vadd.f32 %v526_v42, %v490_v1  ;;  %v543_v39 = vadd.f32 %v527_v4, %v491_v28  ;;  %v631_v38 = vmul.f32 %v7241_v57, %v11328_v24  ;;  %v7273_v42 = vld [vmem:[%s16500_s1 + $0x338] sm:$0xff]  ;;  %v7288_v1 = vld [vmem:[%s16500_s1 + $0x3b0] sm:$0xff] }
  0x92   : > { %v1424_v17 = vadd.f32 %v12350_v35, %v1372_v31  ;;  %10018 = vrot.lane.b32.xlu1 %v10007_v3, %s11151_s21  ;;  %v12512_v54 = vmul.f32 %v7591_v7, %v16629_v16  ;;  %v12515_v29 = vmul.f32 %v7606_v58, %v11705_v47  ;;  %v682_v31 = vmul.f32 %v7256_v40, %v11346_v32  ;;  %v7623_v3 = vld [vmem:[%s16500_s1 + $0xe28] sm:$0xff] }
  0x93   : > { %v1425_v35 = vadd.f32 %v12362_v18, %v1373_v46  ;;  %v7638_v18 = vld [vmem:[%s16500_s1 + $0xea0] sm:$0xff]  ;;  %v594_v57 = vadd.f32 %v578_v30, %v542_v23  ;;  %v595_v7 = vadd.f32 %v579_v25, %v543_v39  ;;  %v683_v58 = vmul.f32 %v7257_v26, %v11346_v32  ;;  %v7289_v30 = vld [vmem:[%s16500_s1 + $0x3b8] sm:$0xff]  ;;  %v7639_v26 = vld [vmem:[%s16500_s1 + $0xea8] sm:$0xff] }
  0x94   : > { %v1476_v4 = vadd.f32 %v12365_v45, %v1424_v17  ;;  %v12534_v45 = vmul.f32 %v7607_v20, %v11705_v47  ;;  %v12537_v40 = vmul.f32 %v7622_v55, %v11718_v49  ;;  %v734_v46 = vmul.f32 %v7272_v56, %v11356_v37  ;;  %v7304_v23 = vld [vmem:[%s16500_s1 + $0x430] sm:$0xff] }
  0x95   : > { %v1477_v28 = vadd.f32 %v12368_v0, %v1425_v35  ;;  %v7654_v0 = vld [vmem:[%s16500_s1 + $0xf20] sm:$0xff]  ;;  %v646_v17 = vadd.f32 %v630_v13, %v594_v57  ;;  %v647_v20 = vadd.f32 %v631_v38, %v595_v7  ;;  %v735_v55 = vmul.f32 %v7273_v42, %v11356_v37  ;;  %v16638_v35 = vld [vmem:[#allocation9_spill] sm:$0xff]  ;;  %v7305_v13 = vld [vmem:[%s16500_s1 + $0x438] sm:$0xff] }
  0x96   : > { %v1528_v25 = vadd.f32 %v12376_v62, %v1476_v4  ;;  %v12556_v62 = vmul.f32 %v7623_v3, %v11718_v49  ;;  %v12559_v56 = vmul.f32 %v7638_v18, %v16630_v15  ;;  %v786_v4 = vmul.f32 %v7288_v1, %v16638_v35  ;;  %v7655_v42 = vld [vmem:[%s16500_s1 + $0xf28] sm:$0xff]  ;;  %v7320_v7 = vld [vmem:[%s16500_s1 + $0x4b0] sm:$0xff] }
  0x97   : > { %v1529_v39 = vadd.f32 %v12388_v12, %v1477_v28  ;;  %v7670_v12 = vld [vmem:[%s16500_s1 + $0xfa0] sm:$0xff]  ;;  %v698_v3 = vadd.f32 %v682_v31, %v646_v17  ;;  %v699_v57 = vadd.f32 %v683_v58, %v647_v20  ;;  %v787_v18 = vmul.f32 %v7289_v30, %v16638_v35  ;;  %v7321_v31 = vld [vmem:[%s16500_s1 + $0x4b8] sm:$0xff]  ;;  %v7671_v30 = vld [vmem:[%s16500_s1 + $0xfa8] sm:$0xff] }
  0x98   : > { %v1580_v38 = vadd.f32 %v12391_v44, %v1528_v25  ;;  %v12578_v44 = vmul.f32 %v7639_v26, %v16630_v15  ;;  %v12581_v28 = vmul.f32 %v7654_v0, %v11803_v33  ;;  %v838_v25 = vmul.f32 %v7304_v23, %v11393_v52  ;;  %v7336_v0 = vld [vmem:[%s16500_s1 + $0x530] sm:$0xff]  ;;  %v7337_v20 = vld [vmem:[%s16500_s1 + $0x538] sm:$0xff] }
  0x99   : > { %v1581_v1 = vadd.f32 %v12394_v11, %v1529_v39  ;;  %v750_v17 = vadd.f32 %v734_v46, %v698_v3  ;;  %v751_v11 = vadd.f32 %v735_v55, %v699_v57  ;;  %v839_v26 = vmul.f32 %v7305_v13, %v11393_v52  ;;  %v7352_v55 = vld [vmem:[%s16500_s1 + $0x5b0] sm:$0xff] }
  0x9a   : > { %v1632_v58 = vadd.f32 %v12407_v10, %v1580_v38  ;;  %v12600_v10 = vmul.f32 %v7655_v42, %v11803_v33  ;;  %v12603_v39 = vmul.f32 %v7670_v12, %v11825_v53  ;;  %v890_v46 = vmul.f32 %v7320_v7, %v11410_v59  ;;  %v7368_v42 = vld [vmem:[%s16500_s1 + $0x630] sm:$0xff]  ;;  %v7369_v12 = vld [vmem:[%s16500_s1 + $0x638] sm:$0xff] }
  0x9b   : > { %v1633_v23 = vadd.f32 %v12419_v43, %v1581_v1  ;;  %v802_v38 = vadd.f32 %v786_v4, %v750_v17  ;;  %v803_v3 = vadd.f32 %v787_v18, %v751_v11  ;;  %v891_v57 = vmul.f32 %v7321_v31, %v11410_v59  ;;  %v7353_v43 = vld [vmem:[%s16500_s1 + $0x5b8] sm:$0xff]  ;;  %v7384_v1 = vld [vmem:[%s16500_s1 + $0x6b0] sm:$0xff] }
  0x9c   : > { %v1684_v13 = vadd.f32 %v12422_v51, %v1632_v58  ;;  %v12622_v51 = vmul.f32 %v7671_v30, %v11825_v53  ;;  %v942_v4 = vmul.f32 %v7336_v0, %v11416_v61  ;;  %v943_v18 = vmul.f32 %v7337_v20, %v11416_v61  ;;  %v7400_v30 = vld [vmem:[%s16500_s1 + $0x730] sm:$0xff]  ;;  %v7401_v0 = vld [vmem:[%s16500_s1 + $0x738] sm:$0xff] }
  0x9d   : > { %v1685_v7 = vadd.f32 %v12425_v6, %v1633_v23  ;;  %v854_v58 = vadd.f32 %v838_v25, %v802_v38  ;;  %v855_v17 = vadd.f32 %v839_v26, %v803_v3  ;;  %v994_v11 = vmul.f32 %v7352_v55, %v11436_v5  ;;  %v7385_v6 = vld [vmem:[%s16500_s1 + $0x6b8] sm:$0xff]  ;;  %v7416_v23 = vld [vmem:[%s16500_s1 + $0x7b0] sm:$0xff] }
  0x9e   : > { %v1736_v31 = vadd.f32 %v12431_v50, %v1684_v13  ;;  %v995_v50 = vmul.f32 %v7353_v43, %v11436_v5  ;;  %v1046_v25 = vmul.f32 %v7368_v42, %v11442_v8  ;;  %v1047_v26 = vmul.f32 %v7369_v12, %v11442_v8  ;;  %v7432_v43 = vld [vmem:[%s16500_s1 + $0x830] sm:$0xff]  ;;  %v7433_v42 = vld [vmem:[%s16500_s1 + $0x838] sm:$0xff] }
  0x9f   : > { %v1737_v20 = vadd.f32 %v12489_v41, %v1685_v7  ;;  %v906_v13 = vadd.f32 %v890_v46, %v854_v58  ;;  %v907_v38 = vadd.f32 %v891_v57, %v855_v17  ;;  %v1098_v3 = vmul.f32 %v7384_v1, %v11463_v19  ;;  %v7417_v41 = vld [vmem:[%s16500_s1 + $0x7b8] sm:$0xff]  ;;  %v7448_v7 = vld [vmem:[%s16500_s1 + $0x8b0] sm:$0xff] }
  0xa0   : > { %v1788_v55 = vadd.f32 %v12492_v63, %v1736_v31  ;;  %v1099_v63 = vmul.f32 %v7385_v6, %v11463_v19  ;;  %v1150_v46 = vmul.f32 %v7400_v30, %v11469_v21  ;;  %v1151_v57 = vmul.f32 %v7401_v0, %v11469_v21  ;;  %v7464_v6 = vld [vmem:[%s16500_s1 + $0x930] sm:$0xff]  ;;  %v7465_v30 = vld [vmem:[%s16500_s1 + $0x938] sm:$0xff] }
  0xa1   : > { %v1789_v12 = vadd.f32 %v12512_v54, %v1737_v20  ;;  %v958_v31 = vadd.f32 %v942_v4, %v906_v13  ;;  %v959_v58 = vadd.f32 %v943_v18, %v907_v38  ;;  %v1202_v17 = vmul.f32 %v7416_v23, %v11491_v34  ;;  %v7449_v54 = vld [vmem:[%s16500_s1 + $0x8b8] sm:$0xff]  ;;  %v7480_v20 = vld [vmem:[%s16500_s1 + $0x9b0] sm:$0xff] }
  0xa2   : > { %v1840_v1 = vadd.f32 %v12515_v29, %v1788_v55  ;;  %v1203_v29 = vmul.f32 %v7417_v41, %v11491_v34  ;;  %v1254_v4 = vmul.f32 %v7432_v43, %v11497_v36  ;;  %v1255_v18 = vmul.f32 %v7433_v42, %v11497_v36  ;;  %v7496_v41 = vld [vmem:[%s16500_s1 + $0xa30] sm:$0xff]  ;;  %v7497_v43 = vld [vmem:[%s16500_s1 + $0xa38] sm:$0xff] }
  0xa3   : > { %v1841_v0 = vadd.f32 %v12534_v45, %v1789_v12  ;;  %v1010_v55 = vadd.f32 %v994_v11, %v958_v31  ;;  %v1011_v13 = vadd.f32 %v995_v50, %v959_v58  ;;  %v12685_v38 = vmul.f32 %v7448_v7, %v11520_v48  ;;  %v7481_v45 = vld [vmem:[%s16500_s1 + $0x9b8] sm:$0xff]  ;;  %v7512_v7 = vld [vmem:[%s16500_s1 + $0xab0] sm:$0xff] }
  0xa4   : > { %v1892_v23 = vadd.f32 %v12537_v40, %v1840_v1  ;;  %v12698_v40 = vmul.f32 %v7449_v54, %v11520_v48  ;;  %v16639_v11 = vld [vmem:[#allocation14_spill] sm:$0xff]  ;;  %v12711_v9 = vmul.f32 %v7480_v20, %v16618_v60  ;;  %v7528_v54 = vld [vmem:[%s16500_s1 + $0xb30] sm:$0xff] }
  0xa5   : > { %v1893_v42 = vadd.f32 %v12556_v62, %v1841_v0  ;;  %v12701_v50 = vmul.f32 %v7464_v6, %v16639_v11  ;;  %v12704_v12 = vmul.f32 %v7465_v30, %v16639_v11  ;;  %v1062_v31 = vadd.f32 %v1046_v25, %v1010_v55  ;;  %v7513_v62 = vld [vmem:[%s16500_s1 + $0xab8] sm:$0xff]  ;;  %v7544_v0 = vld [vmem:[%s16500_s1 + $0xbb0] sm:$0xff] }
  0xa6   : > { %v1944_v1 = vadd.f32 %v12559_v56, %v1892_v23  ;;  %v1063_v58 = vadd.f32 %v1047_v26, %v1011_v13  ;;  %v7529_v6 = vld [vmem:[%s16500_s1 + $0xb38] sm:$0xff]  ;;  %v12724_v56 = vmul.f32 %v7481_v45, %v16618_v60  ;;  %v12727_v25 = vmul.f32 %v7496_v41, %v16631_v27  ;;  %v16640_v13 = vld [vmem:[#allocation17_spill] sm:$0xff]  ;;  %v7226_v60 = vld [vmem:[%s16500_s1 + $0x1c0] sm:$0xff] }
  0xa7   : > { %v1945_v30 = vadd.f32 %v12578_v44, %v1893_v42  ;;  %v12730_v26 = vmul.f32 %v7497_v43, %v16631_v27  ;;  %v1114_v23 = vadd.f32 %v1098_v3, %v1062_v31  ;;  %v12737_v11 = vmul.f32 %v7512_v7, %v16640_v13  ;;  %v7545_v44 = vld [vmem:[%s16500_s1 + $0xbb8] sm:$0xff]  ;;  %v7560_v45 = vld [vmem:[%s16500_s1 + $0xc30] sm:$0xff] }
  0xa8   : > { %v1996_v20 = vadd.f32 %v12581_v28, %v1944_v1  ;;  %v1115_v55 = vadd.f32 %v1099_v63, %v1063_v58  ;;  %v7561_v41 = vld [vmem:[%s16500_s1 + $0xc38] sm:$0xff]  ;;  %v12750_v28 = vmul.f32 %v7513_v62, %v16640_v13  ;;  %v7576_v7 = vld [vmem:[%s16500_s1 + $0xcb0] sm:$0xff]  ;;  %v405_v1 = vld [vmem:[%s16500_s1 + $0x40] sm:$0xff] }
  0xa9   : > { %v1997_v43 = vadd.f32 %v12600_v10, %v1945_v30  ;;  %v16641_v3 = vld [vmem:[#allocation18_spill] sm:$0xff]  ;;  %v1166_v10 = vadd.f32 %v1150_v46, %v1114_v23  ;;  %v16643_v62 = vld [vmem:[#allocation19_spill] sm:$0xff]  ;;  %v16645_v13 = vld [vmem:[#allocation20_spill] sm:$0xff] }
  0xaa   : > { %v12753_v63 = vmul.f32 %v7528_v54, %v16641_v3  ;;  %v12756_v42 = vmul.f32 %v7529_v6, %v16641_v3  ;;  %v12765_v31 = vadd.f32 %v12603_v39, %v1996_v20  ;;  %v1167_v58 = vadd.f32 %v1151_v57, %v1115_v55  ;;  %v406_v54 = vld [vmem:[%s16500_s1 + $0x48] sm:$0xff]  ;;  %v389_v46 = vld [vmem:[%s16501_s2 + $0x40] sm:$0xff] }
  0xab   : > { %v12768_v30 = vmul.f32 %v7544_v0, %v16643_v62  ;;  %v12774_v6 = vadd.f32 %v12622_v51, %v1997_v43  ;;  %v12777_v3 = vmul.f32 %v7545_v44, %v16643_v62  ;;  %v12780_v27 = vmul.f32 %v7560_v45, %v16645_v13  ;;  %v7194_v57 = vld [vmem:[%s16500_s1 + $0xc0] sm:$0xff]  ;;  %v390_v23 = vld [vmem:[%s16501_s2 + $0x48] sm:$0xff] }
  0xac   : > { %16642 = vst [vmem:[#allocation9_spill] sm:$0xff] %v12765_v31  ;;  %v12783_v39 = vmul.f32 %v7561_v41, %v16645_v13  ;;  %v1218_v0 = vadd.f32 %v1202_v17, %v1166_v10  ;;  %v1219_v51 = vadd.f32 %v1203_v29, %v1167_v58  ;;  %v12792_v20 = vmul.f32 %v7576_v7, %v16624_v2  ;;  %v16646_v55 = vld [vmem:[#allocation7_spill] sm:$0xff]  ;;  %v7195_v45 = vld [vmem:[%s16500_s1 + $0xc8] sm:$0xff] }
  0xad   : > { %16644 = vst [vmem:[#allocation25_spill] sm:$0xff] %v12774_v6  ;;  %v424_v44 = vmul.f32 %v16646_v55, %v405_v1  ;;  %v7210_v41 = vld [vmem:[%s16500_s1 + $0x140] sm:$0xff]  ;;  %v10022_v17 = vpack.i.bf16 %v12774_v6, %v12765_v31  ;;  %v425_v29 = vmul.f32 %v16646_v55, %v406_v54  ;;  %v7211_v43 = vld [vmem:[%s16500_s1 + $0x148] sm:$0xff]  ;;  %v7577_v1 = vld [vmem:[%s16500_s1 + $0xcb8] sm:$0xff] }
  0xae   : > { %v1270_v7 = vadd.f32 %v1254_v4, %v1218_v0  ;;  %v1271_v10 = vadd.f32 %v1255_v18, %v1219_v51  ;;  %v16647_v13 = vld [vmem:[#allocation8_spill] sm:$0xff]  ;;  %v528_v0 = vmul.f32 %v7210_v41, %v11304_v14  ;;  %v12840_v6 = vmul.f32 %v7577_v1, %v16624_v2  ;;  %v7609_v1 = vld [vmem:[%s16500_s1 + $0xdb8] sm:$0xff] }
  0xaf   : > { %v440_v58 = vadd.f32 %v424_v44, %v389_v46  ;;  %v476_v62 = vmul.f32 %v7194_v57, %v16647_v13  ;;  %v7227_v54 = vld [vmem:[%s16500_s1 + $0x1c8] sm:$0xff]  ;;  %10023 = vrot.lane.b32.xlu0 %v10022_v17, %s11150_s20  ;;  %10028 = vrot.lane.b32.xlu1 %v10022_v17, %s11152_s26  ;;  %v441_v4 = vadd.f32 %v425_v29, %v390_v23  ;;  %v7242_v46 = vld [vmem:[%s16500_s1 + $0x240] sm:$0xff] }
  0xb0   : > { %v477_v18 = vmul.f32 %v7195_v45, %v16647_v13  ;;  %v1322_v57 = vadd.f32 %v12685_v38, %v1270_v7  ;;  %v1323_v51 = vadd.f32 %v12698_v40, %v1271_v10  ;;  %v7592_v44 = vld [vmem:[%s16500_s1 + $0xd30] sm:$0xff]  ;;  %v7593_v23 = vld [vmem:[%s16500_s1 + $0xd38] sm:$0xff]  ;;  %v529_v45 = vmul.f32 %v7211_v43, %v11304_v14  ;;  %v7243_v41 = vld [vmem:[%s16500_s1 + $0x248] sm:$0xff] }
  0xb1   : > { %v492_v29 = vadd.f32 %v476_v62, %v440_v58  ;;  %v580_v40 = vmul.f32 %v7226_v60, %v11322_v22  ;;  %v581_v7 = vmul.f32 %v7227_v54, %v11322_v22  ;;  %v7258_v10 = vld [vmem:[%s16500_s1 + $0x2c0] sm:$0xff]  ;;  %v7608_v58 = vld [vmem:[%s16500_s1 + $0xdb0] sm:$0xff]  ;;  %v632_v60 = vmul.f32 %v7242_v46, %v11328_v24  ;;  %v7259_v54 = vld [vmem:[%s16500_s1 + $0x2c8] sm:$0xff] }
  0xb2   : > { %v493_v38 = vadd.f32 %v477_v18, %v441_v4  ;;  %v1374_v62 = vadd.f32 %v12701_v50, %v1322_v57  ;;  %v1375_v43 = vadd.f32 %v12704_v12, %v1323_v51  ;;  %v12861_v50 = vmul.f32 %v7592_v44, %v16629_v16  ;;  %v7625_v44 = vld [vmem:[%s16500_s1 + $0xe38] sm:$0xff] }
  0xb3   : > { %v544_v4 = vadd.f32 %v528_v0, %v492_v29  ;;  %10033 = vrot.lane.b32.xlu0 %v10022_v17, %s11151_s21  ;;  %v12864_v12 = vmul.f32 %v7593_v23, %v16629_v16  ;;  %v633_v57 = vmul.f32 %v7243_v41, %v11328_v24  ;;  %v7274_v0 = vld [vmem:[%s16500_s1 + $0x340] sm:$0xff]  ;;  %v7624_v17 = vld [vmem:[%s16500_s1 + $0xe30] sm:$0xff]  ;;  %v684_v29 = vmul.f32 %v7258_v10, %v11346_v32 }
  0xb4   : > { %v545_v18 = vadd.f32 %v529_v45, %v493_v38  ;;  %v1426_v46 = vadd.f32 %v12711_v9, %v1374_v62  ;;  %v1427_v51 = vadd.f32 %v12724_v56, %v1375_v43  ;;  %v7275_v45 = vld [vmem:[%s16500_s1 + $0x348] sm:$0xff]  ;;  %v12883_v41 = vmul.f32 %v7608_v58, %v11705_v47  ;;  %v7290_v62 = vld [vmem:[%s16500_s1 + $0x3c0] sm:$0xff]  ;;  %v7640_v43 = vld [vmem:[%s16500_s1 + $0xeb0] sm:$0xff] }
  0xb5   : > { %v596_v23 = vadd.f32 %v580_v40, %v544_v4  ;;  %v12886_v9 = vmul.f32 %v7609_v1, %v11705_v47  ;;  %v685_v38 = vmul.f32 %v7259_v54, %v11346_v32  ;;  %v7641_v58 = vld [vmem:[%s16500_s1 + $0xeb8] sm:$0xff]  ;;  %v7291_v4 = vld [vmem:[%s16500_s1 + $0x3c8] sm:$0xff]  ;;  %v12905_v54 = vmul.f32 %v7624_v17, %v11718_v49 }
  0xb6   : > { %v597_v56 = vadd.f32 %v581_v7, %v545_v18  ;;  %v1478_v40 = vadd.f32 %v12727_v25, %v1426_v46  ;;  %v1479_v10 = vadd.f32 %v12730_v26, %v1427_v51  ;;  %v736_v7 = vmul.f32 %v7274_v0, %v11356_v37  ;;  %v7306_v46 = vld [vmem:[%s16500_s1 + $0x440] sm:$0xff]  ;;  %v7656_v51 = vld [vmem:[%s16500_s1 + $0xf30] sm:$0xff]  ;;  %v7657_v17 = vld [vmem:[%s16500_s1 + $0xf38] sm:$0xff] }
  0xb7   : > { %v648_v1 = vadd.f32 %v632_v60, %v596_v23  ;;  %v12908_v25 = vmul.f32 %v7625_v44, %v11718_v49  ;;  %v737_v18 = vmul.f32 %v7275_v45, %v11356_v37  ;;  %v7307_v23 = vld [vmem:[%s16500_s1 + $0x448] sm:$0xff]  ;;  %v12927_v45 = vmul.f32 %v7640_v43, %v16630_v15  ;;  %v7673_v43 = vld [vmem:[%s16500_s1 + $0xfb8] sm:$0xff] }
  0xb8   : > { %v649_v26 = vadd.f32 %v633_v57, %v597_v56  ;;  %v1530_v60 = vadd.f32 %v12737_v11, %v1478_v40  ;;  %v1531_v0 = vadd.f32 %v12750_v28, %v1479_v10  ;;  %v788_v57 = vmul.f32 %v7290_v62, %v16638_v35  ;;  %v7322_v40 = vld [vmem:[%s16500_s1 + $0x4c0] sm:$0xff]  ;;  %v7672_v10 = vld [vmem:[%s16500_s1 + $0xfb0] sm:$0xff] }
  0xb9   : > { %v700_v44 = vadd.f32 %v684_v29, %v648_v1  ;;  %v12930_v11 = vmul.f32 %v7641_v58, %v16630_v15  ;;  %v789_v56 = vmul.f32 %v7291_v4, %v16638_v35  ;;  %v7323_v1 = vld [vmem:[%s16500_s1 + $0x4c8] sm:$0xff]  ;;  %v12949_v4 = vmul.f32 %v7656_v51, %v11803_v33 }
  0xba   : > { %v701_v28 = vadd.f32 %v685_v38, %v649_v26  ;;  %v1582_v29 = vadd.f32 %v12753_v63, %v1530_v60  ;;  %v1583_v62 = vadd.f32 %v12756_v42, %v1531_v0  ;;  %v840_v38 = vmul.f32 %v7306_v46, %v11393_v52  ;;  %v7338_v60 = vld [vmem:[%s16500_s1 + $0x540] sm:$0xff]  ;;  %v7339_v51 = vld [vmem:[%s16500_s1 + $0x548] sm:$0xff] }
  0xbb   : > { %v752_v58 = vadd.f32 %v736_v7, %v700_v44  ;;  %v12952_v63 = vmul.f32 %v7657_v17, %v11803_v33  ;;  %v841_v26 = vmul.f32 %v7307_v23, %v11393_v52  ;;  %v892_v44 = vmul.f32 %v7322_v40, %v11410_v59  ;;  %v7355_v17 = vld [vmem:[%s16500_s1 + $0x5c8] sm:$0xff] }
  0xbc   : > { %v753_v42 = vadd.f32 %v737_v18, %v701_v28  ;;  %v1634_v7 = vadd.f32 %v12768_v30, %v1582_v29  ;;  %v1635_v46 = vadd.f32 %v12777_v3, %v1583_v62  ;;  %v7354_v18 = vld [vmem:[%s16500_s1 + $0x5c0] sm:$0xff]  ;;  %v12971_v23 = vmul.f32 %v7672_v10, %v11825_v53  ;;  %v7371_v10 = vld [vmem:[%s16500_s1 + $0x648] sm:$0xff] }
  0xbd   : > { %v804_v0 = vadd.f32 %v788_v57, %v752_v58  ;;  %v12974_v3 = vmul.f32 %v7673_v43, %v11825_v53  ;;  %v893_v57 = vmul.f32 %v7323_v1, %v11410_v59  ;;  %v7370_v28 = vld [vmem:[%s16500_s1 + $0x640] sm:$0xff]  ;;  %v944_v58 = vmul.f32 %v7338_v60, %v11416_v61  ;;  %v7387_v43 = vld [vmem:[%s16500_s1 + $0x6c8] sm:$0xff] }
  0xbe   : > { %v805_v30 = vadd.f32 %v789_v56, %v753_v42  ;;  %v1686_v40 = vadd.f32 %v12780_v27, %v1634_v7  ;;  %v1687_v29 = vadd.f32 %v12783_v39, %v1635_v46  ;;  %v7386_v56 = vld [vmem:[%s16500_s1 + $0x6c0] sm:$0xff]  ;;  %v945_v27 = vmul.f32 %v7339_v51, %v11416_v61 }
  0xbf   : > { %v856_v62 = vadd.f32 %v840_v38, %v804_v0  ;;  %v996_v39 = vmul.f32 %v7354_v18, %v11436_v5  ;;  %v997_v38 = vmul.f32 %v7355_v17, %v11436_v5  ;;  %v7402_v42 = vld [vmem:[%s16500_s1 + $0x740] sm:$0xff]  ;;  %v1048_v0 = vmul.f32 %v7370_v28, %v11442_v8  ;;  %v7419_v18 = vld [vmem:[%s16500_s1 + $0x7c8] sm:$0xff] }
  0xc0   : > { %v857_v1 = vadd.f32 %v841_v26, %v805_v30  ;;  %v1738_v60 = vadd.f32 %v12792_v20, %v1686_v40  ;;  %v1739_v7 = vadd.f32 %v12840_v6, %v1687_v29  ;;  %v7403_v26 = vld [vmem:[%s16500_s1 + $0x748] sm:$0xff]  ;;  %v7418_v51 = vld [vmem:[%s16500_s1 + $0x7c0] sm:$0xff]  ;;  %v1049_v20 = vmul.f32 %v7371_v10, %v11442_v8 }
  0xc1   : > { %v908_v46 = vadd.f32 %v892_v44, %v856_v62  ;;  %v1100_v6 = vmul.f32 %v7386_v56, %v11463_v19  ;;  %v1101_v44 = vmul.f32 %v7387_v43, %v11463_v19  ;;  %v7434_v30 = vld [vmem:[%s16500_s1 + $0x840] sm:$0xff]  ;;  %v1152_v62 = vmul.f32 %v7402_v42, %v11469_v21  ;;  %v7451_v56 = vld [vmem:[%s16500_s1 + $0x8c8] sm:$0xff] }
  0xc2   : > { %v909_v17 = vadd.f32 %v893_v57, %v857_v1  ;;  %v1790_v28 = vadd.f32 %v12861_v50, %v1738_v60  ;;  %v1791_v40 = vadd.f32 %v12864_v12, %v1739_v7  ;;  %v7435_v57 = vld [vmem:[%s16500_s1 + $0x848] sm:$0xff]  ;;  %v7450_v10 = vld [vmem:[%s16500_s1 + $0x8c0] sm:$0xff]  ;;  %v1153_v50 = vmul.f32 %v7403_v26, %v11469_v21 }
  0xc3   : > { %v960_v29 = vadd.f32 %v944_v58, %v908_v46  ;;  %v1204_v12 = vmul.f32 %v7418_v51, %v11491_v34  ;;  %v1205_v58 = vmul.f32 %v7419_v18, %v11491_v34  ;;  %v7466_v1 = vld [vmem:[%s16500_s1 + $0x940] sm:$0xff]  ;;  %v1256_v46 = vmul.f32 %v7434_v30, %v11497_v36  ;;  %v7483_v51 = vld [vmem:[%s16500_s1 + $0x9c8] sm:$0xff] }
  0xc4   : > { %v961_v43 = vadd.f32 %v945_v27, %v909_v17  ;;  %v1842_v42 = vadd.f32 %v12883_v41, %v1790_v28  ;;  %v1843_v60 = vadd.f32 %v12886_v9, %v1791_v40  ;;  %v7467_v27 = vld [vmem:[%s16500_s1 + $0x948] sm:$0xff]  ;;  %v7482_v26 = vld [vmem:[%s16500_s1 + $0x9c0] sm:$0xff]  ;;  %v1257_v41 = vmul.f32 %v7435_v57, %v11497_v36 }
  0xc5   : > { %v1012_v7 = vadd.f32 %v996_v39, %v960_v29  ;;  %v13048_v9 = vmul.f32 %v7450_v10, %v11520_v48  ;;  %v13051_v39 = vmul.f32 %v7451_v56, %v11520_v48  ;;  %v7498_v17 = vld [vmem:[%s16500_s1 + $0xa40] sm:$0xff]  ;;  %v16648_v29 = vld [vmem:[#allocation14_spill] sm:$0xff]  ;;  %v7515_v10 = vld [vmem:[%s16500_s1 + $0xac8] sm:$0xff] }
  0xc6   : > { %v1013_v18 = vadd.f32 %v997_v38, %v961_v43  ;;  %v1894_v30 = vadd.f32 %v12905_v54, %v1842_v42  ;;  %v1895_v28 = vadd.f32 %v12908_v25, %v1843_v60  ;;  %v13059_v31 = vmul.f32 %v7466_v1, %v16648_v29  ;;  %v7499_v38 = vld [vmem:[%s16500_s1 + $0xa48] sm:$0xff]  ;;  %v7514_v57 = vld [vmem:[%s16500_s1 + $0xac0] sm:$0xff] }
  0xc7   : > { %v1064_v40 = vadd.f32 %v1048_v0, %v1012_v7  ;;  %v13071_v54 = vmul.f32 %v7467_v27, %v16648_v29  ;;  %v16649_v25 = vld [vmem:[#allocation15_spill] sm:$0xff]  ;;  %v16650_v48 = vld [vmem:[#allocation16_spill] sm:$0xff]  ;;  %v16652_v29 = vld [vmem:[#allocation18_spill] sm:$0xff] }
  0xc8   : > { %v1065_v56 = vadd.f32 %v1049_v20, %v1013_v18  ;;  %v13074_v0 = vmul.f32 %v7482_v26, %v16649_v25  ;;  %v13077_v43 = vmul.f32 %v7483_v51, %v16649_v25  ;;  %v7530_v1 = vld [vmem:[%s16500_s1 + $0xb40] sm:$0xff]  ;;  %v1946_v42 = vadd.f32 %v12927_v45, %v1894_v30  ;;  %v7531_v27 = vld [vmem:[%s16500_s1 + $0xb48] sm:$0xff] }
  0xc9   : > { %v1947_v60 = vadd.f32 %v12930_v11, %v1895_v28  ;;  %v1116_v7 = vadd.f32 %v1100_v6, %v1064_v40  ;;  %v13085_v20 = vmul.f32 %v7498_v17, %v16650_v48  ;;  %v7546_v26 = vld [vmem:[%s16500_s1 + $0xbc0] sm:$0xff]  ;;  %v7547_v51 = vld [vmem:[%s16500_s1 + $0xbc8] sm:$0xff]  ;;  %v13097_v45 = vmul.f32 %v7499_v38, %v16650_v48  ;;  %v16651_v11 = vld [vmem:[#allocation17_spill] sm:$0xff] }
  0xca   : > { %v1117_v18 = vadd.f32 %v1101_v44, %v1065_v56  ;;  %v13100_v6 = vmul.f32 %v7514_v57, %v16651_v11  ;;  %v13103_v17 = vmul.f32 %v7515_v10, %v16651_v11  ;;  %v7562_v30 = vld [vmem:[%s16500_s1 + $0xc40] sm:$0xff]  ;;  %v1998_v28 = vadd.f32 %v12949_v4, %v1946_v42  ;;  %v7563_v38 = vld [vmem:[%s16500_s1 + $0xc48] sm:$0xff]  ;;  %v407_v10 = vld [vmem:[%s16500_s1 + $0x50] sm:$0xff] }
  0xcb   : > { %v1999_v40 = vadd.f32 %v12952_v63, %v1947_v60  ;;  %v1168_v25 = vadd.f32 %v1152_v62, %v1116_v7  ;;  %v13111_v44 = vmul.f32 %v7530_v1, %v16652_v29  ;;  %v7578_v57 = vld [vmem:[%s16500_s1 + $0xcc0] sm:$0xff]  ;;  %v13123_v4 = vmul.f32 %v7531_v27, %v16652_v29  ;;  %v16656_v11 = vld [vmem:[#allocation20_spill] sm:$0xff]  ;;  %v408_v27 = vld [vmem:[%s16500_s1 + $0x58] sm:$0xff] }
  0xcc   : > { %v1169_v56 = vadd.f32 %v1153_v50, %v1117_v18  ;;  %v16653_v63 = vld [vmem:[#allocation19_spill] sm:$0xff]  ;;  %v13132_v42 = vadd.f32 %v12971_v23, %v1998_v28  ;;  %v13138_v48 = vmul.f32 %v7562_v30, %v16656_v11  ;;  %v391_v50 = vld [vmem:[%s16501_s2 + $0x50] sm:$0xff]  ;;  %v392_v28 = vld [vmem:[%s16501_s2 + $0x58] sm:$0xff] }
  0xcd   : > { %v13126_v62 = vmul.f32 %v7546_v26, %v16653_v63  ;;  %v13129_v1 = vmul.f32 %v7547_v51, %v16653_v63  ;;  %v13135_v60 = vadd.f32 %v12974_v3, %v1999_v40  ;;  %v1220_v7 = vadd.f32 %v1204_v12, %v1168_v25  ;;  %v7196_v23 = vld [vmem:[%s16500_s1 + $0xd0] sm:$0xff]  ;;  %v7197_v51 = vld [vmem:[%s16500_s1 + $0xd8] sm:$0xff] }
  0xce   : > { %16654 = vst [vmem:[#allocation26_spill] sm:$0xff] %v13132_v42  ;;  %v1221_v26 = vadd.f32 %v1205_v58, %v1169_v56  ;;  %v13150_v3 = vmul.f32 %v7563_v38, %v16656_v11  ;;  %v13153_v12 = vmul.f32 %v7578_v57, %v16624_v2  ;;  %v426_v25 = vmul.f32 %v16646_v55, %v407_v10  ;;  %v7212_v18 = vld [vmem:[%s16500_s1 + $0x150] sm:$0xff]  ;;  %v7213_v40 = vld [vmem:[%s16500_s1 + $0x158] sm:$0xff]  ;;  %v7579_v57 = vld [vmem:[%s16500_s1 + $0xcc8] sm:$0xff] }
  0xcf   : > { %16655 = vst [vmem:[#allocation27_spill] sm:$0xff] %v13135_v60  ;;  %v10037_v30 = vpack.i.bf16 %v13135_v60, %v13132_v42  ;;  %v1272_v58 = vadd.f32 %v1256_v46, %v1220_v7  ;;  %v427_v10 = vmul.f32 %v16646_v55, %v408_v27  ;;  %v478_v11 = vmul.f32 %v7196_v23, %v16647_v13  ;;  %v7228_v46 = vld [vmem:[%s16500_s1 + $0x1d0] sm:$0xff]  ;;  %v7229_v7 = vld [vmem:[%s16500_s1 + $0x1d8] sm:$0xff]  ;;  %v7595_v60 = vld [vmem:[%s16500_s1 + $0xd48] sm:$0xff] }
  0xd0   : > { %v1273_v38 = vadd.f32 %v1257_v41, %v1221_v26  ;;  %v442_v56 = vadd.f32 %v426_v25, %v391_v50  ;;  %v479_v26 = vmul.f32 %v7197_v51, %v16647_v13  ;;  %v530_v50 = vmul.f32 %v7212_v18, %v11304_v14  ;;  %v7244_v27 = vld [vmem:[%s16500_s1 + $0x250] sm:$0xff]  ;;  %v7594_v25 = vld [vmem:[%s16500_s1 + $0xd40] sm:$0xff]  ;;  %v7245_v18 = vld [vmem:[%s16500_s1 + $0x258] sm:$0xff] }
  0xd1   : > { %10038 = vrot.lane.b32.xlu1 %v10037_v30, %s11150_s20  ;;  %10043 = vrot.lane.b32.xlu0 %v10037_v30, %s11152_s26  ;;  %v1324_v41 = vadd.f32 %v13048_v9, %v1272_v58  ;;  %v443_v42 = vadd.f32 %v427_v10, %v392_v28  ;;  %v531_v51 = vmul.f32 %v7213_v40, %v11304_v14  ;;  %v7260_v28 = vld [vmem:[%s16500_s1 + $0x2d0] sm:$0xff]  ;;  %v7610_v40 = vld [vmem:[%s16500_s1 + $0xdc0] sm:$0xff] }
  0xd2   : > { %v1325_v23 = vadd.f32 %v13051_v39, %v1273_v38  ;;  %v494_v9 = vadd.f32 %v478_v11, %v442_v56  ;;  %v13202_v39 = vmul.f32 %v7579_v57, %v16624_v2  ;;  %v582_v38 = vmul.f32 %v7228_v46, %v11322_v22  ;;  %v7261_v46 = vld [vmem:[%s16500_s1 + $0x2d8] sm:$0xff] }
  0xd3   : > { %v1376_v58 = vadd.f32 %v13059_v31, %v1324_v41  ;;  %v583_v13 = vmul.f32 %v7229_v7, %v11322_v22  ;;  %v7611_v31 = vld [vmem:[%s16500_s1 + $0xdc8] sm:$0xff]  ;;  %v495_v57 = vadd.f32 %v479_v26, %v443_v42  ;;  %v634_v56 = vmul.f32 %v7244_v27, %v11328_v24  ;;  %v7276_v42 = vld [vmem:[%s16500_s1 + $0x350] sm:$0xff] }
  0xd4   : > { %v1377_v11 = vadd.f32 %v13071_v54, %v1325_v23  ;;  %v546_v10 = vadd.f32 %v530_v50, %v494_v9  ;;  %v13223_v7 = vmul.f32 %v7594_v25, %v16629_v16  ;;  %v13226_v41 = vmul.f32 %v7595_v60, %v16629_v16  ;;  %v7277_v25 = vld [vmem:[%s16500_s1 + $0x358] sm:$0xff] }
  0xd5   : > { %10048 = vrot.lane.b32.xlu1 %v10037_v30, %s11151_s21  ;;  %v1428_v54 = vadd.f32 %v13074_v0, %v1376_v58  ;;  %v635_v23 = vmul.f32 %v7245_v18, %v11328_v24  ;;  %v7626_v30 = vld [vmem:[%s16500_s1 + $0xe40] sm:$0xff]  ;;  %v7627_v0 = vld [vmem:[%s16500_s1 + $0xe48] sm:$0xff]  ;;  %v547_v50 = vadd.f32 %v531_v51, %v495_v57  ;;  %v686_v60 = vmul.f32 %v7260_v28, %v11346_v32  ;;  %v7292_v51 = vld [vmem:[%s16500_s1 + $0x3d0] sm:$0xff] }
  0xd6   : > { %v1429_v26 = vadd.f32 %v13077_v43, %v1377_v11  ;;  %v598_v27 = vadd.f32 %v582_v38, %v546_v10  ;;  %v13245_v43 = vmul.f32 %v7610_v40, %v11705_v47  ;;  %v13248_v18 = vmul.f32 %v7611_v31, %v11705_v47  ;;  %v7642_v28 = vld [vmem:[%s16500_s1 + $0xec0] sm:$0xff]  ;;  %v7293_v57 = vld [vmem:[%s16500_s1 + $0x3d8] sm:$0xff] }
  0xd7   : > { %v1480_v9 = vadd.f32 %v13085_v20, %v1428_v54  ;;  %v687_v58 = vmul.f32 %v7261_v46, %v11346_v32  ;;  %v7643_v20 = vld [vmem:[%s16500_s1 + $0xec8] sm:$0xff]  ;;  %v599_v11 = vadd.f32 %v583_v13, %v547_v50  ;;  %v738_v31 = vmul.f32 %v7276_v42, %v11356_v37  ;;  %v7308_v13 = vld [vmem:[%s16500_s1 + $0x450] sm:$0xff]  ;;  %v7658_v42 = vld [vmem:[%s16500_s1 + $0xf40] sm:$0xff] }
  0xd8   : > { %v1481_v38 = vadd.f32 %v13097_v45, %v1429_v26  ;;  %v650_v40 = vadd.f32 %v634_v56, %v598_v27  ;;  %v13267_v45 = vmul.f32 %v7626_v30, %v11718_v49  ;;  %v13270_v46 = vmul.f32 %v7627_v0, %v11718_v49  ;;  %v7309_v50 = vld [vmem:[%s16500_s1 + $0x458] sm:$0xff] }
  0xd9   : > { %v1532_v10 = vadd.f32 %v13100_v6, %v1480_v9  ;;  %v739_v54 = vmul.f32 %v7277_v25, %v11356_v37  ;;  %v7659_v6 = vld [vmem:[%s16500_s1 + $0xf48] sm:$0xff]  ;;  %v651_v26 = vadd.f32 %v635_v23, %v599_v11  ;;  %v790_v0 = vmul.f32 %v7292_v51, %v16638_v35  ;;  %v7324_v23 = vld [vmem:[%s16500_s1 + $0x4d0] sm:$0xff]  ;;  %v7674_v51 = vld [vmem:[%s16500_s1 + $0xfc0] sm:$0xff] }
  0xda   : > { %v1533_v56 = vadd.f32 %v13103_v17, %v1481_v38  ;;  %v702_v30 = vadd.f32 %v686_v60, %v650_v40  ;;  %v13289_v17 = vmul.f32 %v7642_v28, %v16630_v15  ;;  %v13292_v25 = vmul.f32 %v7643_v20, %v16630_v15  ;;  %v7325_v11 = vld [vmem:[%s16500_s1 + $0x4d8] sm:$0xff] }
  0xdb   : > { %v1584_v27 = vadd.f32 %v13111_v44, %v1532_v10  ;;  %v791_v9 = vmul.f32 %v7293_v57, %v16638_v35  ;;  %v7675_v44 = vld [vmem:[%s16500_s1 + $0xfc8] sm:$0xff]  ;;  %v703_v38 = vadd.f32 %v687_v58, %v651_v26  ;;  %v842_v20 = vmul.f32 %v7308_v13, %v11393_v52  ;;  %v7340_v58 = vld [vmem:[%s16500_s1 + $0x550] sm:$0xff] }
  0xdc   : > { %v1585_v60 = vadd.f32 %v13123_v4, %v1533_v56  ;;  %v754_v28 = vadd.f32 %v738_v31, %v702_v30  ;;  %v13311_v4 = vmul.f32 %v7658_v42, %v11803_v33  ;;  %v13314_v57 = vmul.f32 %v7659_v6, %v11803_v33  ;;  %v7356_v42 = vld [vmem:[%s16500_s1 + $0x5d0] sm:$0xff]  ;;  %v7357_v6 = vld [vmem:[%s16500_s1 + $0x5d8] sm:$0xff] }
  0xdd   : > { %v1636_v40 = vadd.f32 %v13126_v62, %v1584_v27  ;;  %v843_v10 = vmul.f32 %v7309_v50, %v11393_v52  ;;  %v755_v13 = vadd.f32 %v739_v54, %v703_v38  ;;  %v894_v26 = vmul.f32 %v7324_v23, %v11410_v59  ;;  %v7341_v62 = vld [vmem:[%s16500_s1 + $0x558] sm:$0xff]  ;;  %v7372_v50 = vld [vmem:[%s16500_s1 + $0x650] sm:$0xff] }
  0xde   : > { %v1637_v31 = vadd.f32 %v13129_v1, %v1585_v60  ;;  %v806_v56 = vadd.f32 %v790_v0, %v754_v28  ;;  %v13333_v1 = vmul.f32 %v7674_v51, %v11825_v53  ;;  %v13336_v54 = vmul.f32 %v7675_v44, %v11825_v53  ;;  %v7388_v51 = vld [vmem:[%s16500_s1 + $0x6d0] sm:$0xff]  ;;  %v7389_v44 = vld [vmem:[%s16500_s1 + $0x6d8] sm:$0xff] }
  0xdf   : > { %v1688_v30 = vadd.f32 %v13138_v48, %v1636_v40  ;;  %v895_v0 = vmul.f32 %v7325_v11, %v11410_v59  ;;  %v807_v23 = vadd.f32 %v791_v9, %v755_v13  ;;  %v946_v38 = vmul.f32 %v7340_v58, %v11416_v61  ;;  %v7373_v48 = vld [vmem:[%s16500_s1 + $0x658] sm:$0xff]  ;;  %v7404_v11 = vld [vmem:[%s16500_s1 + $0x750] sm:$0xff] }
  0xe0   : > { %v1689_v27 = vadd.f32 %v13150_v3, %v1637_v31  ;;  %v858_v60 = vadd.f32 %v842_v20, %v806_v56  ;;  %v947_v3 = vmul.f32 %v7341_v62, %v11416_v61  ;;  %v998_v9 = vmul.f32 %v7356_v42, %v11436_v5  ;;  %v7420_v56 = vld [vmem:[%s16500_s1 + $0x7d0] sm:$0xff]  ;;  %v7421_v62 = vld [vmem:[%s16500_s1 + $0x7d8] sm:$0xff] }
  0xe1   : > { %v1740_v28 = vadd.f32 %v13153_v12, %v1688_v30  ;;  %v999_v20 = vmul.f32 %v7357_v6, %v11436_v5  ;;  %v859_v58 = vadd.f32 %v843_v10, %v807_v23  ;;  %v1050_v13 = vmul.f32 %v7372_v50, %v11442_v8  ;;  %v7405_v12 = vld [vmem:[%s16500_s1 + $0x758] sm:$0xff]  ;;  %v7436_v6 = vld [vmem:[%s16500_s1 + $0x850] sm:$0xff] }
  0xe2   : > { %v1741_v40 = vadd.f32 %v13202_v39, %v1689_v27  ;;  %v910_v31 = vadd.f32 %v894_v26, %v858_v60  ;;  %v1051_v39 = vmul.f32 %v7373_v48, %v11442_v8  ;;  %v1102_v10 = vmul.f32 %v7388_v51, %v11463_v19  ;;  %v7452_v60 = vld [vmem:[%s16500_s1 + $0x8d0] sm:$0xff]  ;;  %v7453_v48 = vld [vmem:[%s16500_s1 + $0x8d8] sm:$0xff] }
  0xe3   : > { %v1792_v42 = vadd.f32 %v13223_v7, %v1740_v28  ;;  %v1103_v26 = vmul.f32 %v7389_v44, %v11463_v19  ;;  %v911_v50 = vadd.f32 %v895_v0, %v859_v58  ;;  %v1154_v23 = vmul.f32 %v7404_v11, %v11469_v21  ;;  %v7437_v7 = vld [vmem:[%s16500_s1 + $0x858] sm:$0xff]  ;;  %v7468_v44 = vld [vmem:[%s16500_s1 + $0x950] sm:$0xff] }
  0xe4   : > { %v1793_v30 = vadd.f32 %v13226_v41, %v1741_v40  ;;  %v962_v27 = vadd.f32 %v946_v38, %v910_v31  ;;  %v1155_v41 = vmul.f32 %v7405_v12, %v11469_v21  ;;  %v1206_v0 = vmul.f32 %v7420_v56, %v11491_v34  ;;  %v7484_v31 = vld [vmem:[%s16500_s1 + $0x9d0] sm:$0xff]  ;;  %v7485_v12 = vld [vmem:[%s16500_s1 + $0x9d8] sm:$0xff] }
  0xe5   : > { %v1844_v51 = vadd.f32 %v13245_v43, %v1792_v42  ;;  %v13393_v38 = vmul.f32 %v7421_v62, %v11491_v34  ;;  %v963_v11 = vadd.f32 %v947_v3, %v911_v50  ;;  %v1258_v58 = vmul.f32 %v7436_v6, %v11497_v36  ;;  %v7469_v43 = vld [vmem:[%s16500_s1 + $0x958] sm:$0xff]  ;;  %v16657_v3 = vld [vmem:[#allocation13_spill] sm:$0xff] }
  0xe6   : > { %v1845_v28 = vadd.f32 %v13248_v18, %v1793_v30  ;;  %v1014_v40 = vadd.f32 %v998_v9, %v962_v27  ;;  %v13411_v18 = vmul.f32 %v7437_v7, %v11497_v36  ;;  %v13414_v9 = vmul.f32 %v7452_v60, %v16657_v3  ;;  %v7500_v42 = vld [vmem:[%s16500_s1 + $0xa50] sm:$0xff]  ;;  %v16658_v27 = vld [vmem:[#allocation14_spill] sm:$0xff] }
  0xe7   : > { %v1896_v56 = vadd.f32 %v13267_v45, %v1844_v51  ;;  %v13417_v62 = vmul.f32 %v7453_v48, %v16657_v3  ;;  %v1015_v30 = vadd.f32 %v999_v20, %v963_v11  ;;  %v13424_v34 = vmul.f32 %v7468_v44, %v16658_v27  ;;  %v7501_v45 = vld [vmem:[%s16500_s1 + $0xa58] sm:$0xff]  ;;  %v7516_v7 = vld [vmem:[%s16500_s1 + $0xad0] sm:$0xff]  ;;  %v16659_v20 = vld [vmem:[#allocation15_spill] sm:$0xff] }
  0xe8   : > { %v1897_v6 = vadd.f32 %v13270_v46, %v1845_v28  ;;  %v1066_v50 = vadd.f32 %v1050_v13, %v1014_v40  ;;  %v7517_v60 = vld [vmem:[%s16500_s1 + $0xad8] sm:$0xff]  ;;  %v13437_v46 = vmul.f32 %v7469_v43, %v16658_v27  ;;  %v13440_v13 = vmul.f32 %v7484_v31, %v16659_v20  ;;  %v7532_v44 = vld [vmem:[%s16500_s1 + $0xb50] sm:$0xff]  ;;  %v16660_v3 = vld [vmem:[#allocation16_spill] sm:$0xff] }
  0xe9   : > { %v1948_v48 = vadd.f32 %v13289_v17, %v1896_v56  ;;  %v13443_v51 = vmul.f32 %v7485_v12, %v16659_v20  ;;  %v1067_v11 = vadd.f32 %v1051_v39, %v1015_v30  ;;  %v13450_v36 = vmul.f32 %v7500_v42, %v16660_v3  ;;  %v7533_v17 = vld [vmem:[%s16500_s1 + $0xb58] sm:$0xff]  ;;  %v7548_v43 = vld [vmem:[%s16500_s1 + $0xbd0] sm:$0xff] }
  0xea   : > { %v1949_v28 = vadd.f32 %v13292_v25, %v1897_v6  ;;  %v1118_v40 = vadd.f32 %v1102_v10, %v1066_v50  ;;  %v7549_v31 = vld [vmem:[%s16500_s1 + $0xbd8] sm:$0xff]  ;;  %v13463_v25 = vmul.f32 %v7501_v45, %v16660_v3  ;;  %v16661_v39 = vld [vmem:[#allocation17_spill] sm:$0xff]  ;;  %v13479_v45 = vmul.f32 %v7532_v44, %v16652_v29 }
  0xeb   : > { %v2000_v12 = vadd.f32 %v13311_v4, %v1948_v48  ;;  %v13466_v10 = vmul.f32 %v7516_v7, %v16661_v39  ;;  %v13469_v56 = vmul.f32 %v7517_v60, %v16661_v39  ;;  %v7564_v42 = vld [vmem:[%s16500_s1 + $0xc50] sm:$0xff]  ;;  %v7565_v6 = vld [vmem:[%s16500_s1 + $0xc58] sm:$0xff]  ;;  %v1119_v4 = vadd.f32 %v1103_v26, %v1067_v11  ;;  %v409_v60 = vld [vmem:[%s16500_s1 + $0x60] sm:$0xff] }
  0xec   : > { %v2001_v30 = vadd.f32 %v13314_v57, %v1949_v28  ;;  %v1170_v50 = vadd.f32 %v1154_v23, %v1118_v40  ;;  %v7580_v7 = vld [vmem:[%s16500_s1 + $0xcd0] sm:$0xff]  ;;  %v410_v48 = vld [vmem:[%s16500_s1 + $0x68] sm:$0xff]  ;;  %v13494_v57 = vmul.f32 %v7533_v17, %v16652_v29  ;;  %v13497_v26 = vmul.f32 %v7548_v43, %v16653_v63  ;;  %v7198_v43 = vld [vmem:[%s16500_s1 + $0xe0] sm:$0xff] }
  0xed   : > { %v13491_v39 = vadd.f32 %v13333_v1, %v2000_v12  ;;  %v13500_v23 = vmul.f32 %v7549_v31, %v16653_v63  ;;  %v1171_v28 = vadd.f32 %v1155_v41, %v1119_v4  ;;  %v16664_v40 = vld [vmem:[#allocation20_spill] sm:$0xff]  ;;  %v393_v1 = vld [vmem:[%s16501_s2 + $0x60] sm:$0xff]  ;;  %v13521_v41 = vmul.f32 %v7580_v7, %v16624_v2 }
  0xee   : > { %v13503_v44 = vadd.f32 %v13336_v54, %v2001_v30  ;;  %v1222_v11 = vadd.f32 %v1206_v0, %v1170_v50  ;;  %v13506_v3 = vmul.f32 %v7564_v42, %v16664_v40  ;;  %v394_v17 = vld [vmem:[%s16501_s2 + $0x68] sm:$0xff]  ;;  %v13518_v54 = vmul.f32 %v7565_v6, %v16664_v40  ;;  %v7214_v42 = vld [vmem:[%s16500_s1 + $0x160] sm:$0xff] }
  0xef   : > { %16662 = vst [vmem:[#allocation14_spill] sm:$0xff] %v13491_v39  ;;  %v428_v0 = vmul.f32 %v16646_v55, %v409_v60  ;;  %v429_v31 = vmul.f32 %v16646_v55, %v410_v48  ;;  %v7199_v12 = vld [vmem:[%s16500_s1 + $0xe8] sm:$0xff]  ;;  %v1223_v6 = vadd.f32 %v13393_v38, %v1171_v28  ;;  %v7230_v50 = vld [vmem:[%s16500_s1 + $0x1e0] sm:$0xff]  ;;  %v7581_v60 = vld [vmem:[%s16500_s1 + $0xcd8] sm:$0xff] }
  0xf0   : > { %16663 = vst [vmem:[#allocation28_spill] sm:$0xff] %v13503_v44  ;;  %v10052_v30 = vpack.i.bf16 %v13503_v44, %v13491_v39  ;;  %v7215_v4 = vld [vmem:[%s16500_s1 + $0x168] sm:$0xff]  ;;  %v1274_v7 = vadd.f32 %v1258_v58, %v1222_v11  ;;  %v7596_v58 = vld [vmem:[%s16500_s1 + $0xd50] sm:$0xff]  ;;  %v13569_v44 = vmul.f32 %v7581_v60, %v16624_v2 }
  0xf1   : > { %v444_v48 = vadd.f32 %v428_v0, %v393_v1  ;;  %v445_v55 = vadd.f32 %v429_v31, %v394_v17  ;;  %v16665_v40 = vld [vmem:[#allocation8_spill] sm:$0xff]  ;;  %v1275_v28 = vadd.f32 %v13411_v18, %v1223_v6  ;;  %v532_v1 = vmul.f32 %v7214_v42, %v11304_v14  ;;  %v7246_v17 = vld [vmem:[%s16500_s1 + $0x260] sm:$0xff]  ;;  %v7597_v0 = vld [vmem:[%s16500_s1 + $0xd58] sm:$0xff] }
  0xf2   : > { %v480_v63 = vmul.f32 %v7198_v43, %v16665_v40  ;;  %v7231_v38 = vld [vmem:[%s16500_s1 + $0x1e8] sm:$0xff]  ;;  %10053 = vrot.lane.b32.xlu0 %v10052_v30, %s11150_s20  ;;  %10058 = vrot.lane.b32.xlu1 %v10052_v30, %s11152_s26  ;;  %v481_v11 = vmul.f32 %v7199_v12, %v16665_v40  ;;  %v1326_v43 = vadd.f32 %v13414_v9, %v1274_v7  ;;  %v7612_v9 = vld [vmem:[%s16500_s1 + $0xdd0] sm:$0xff] }
  0xf3   : > { %v533_v18 = vmul.f32 %v7215_v4, %v11304_v14  ;;  %v584_v6 = vmul.f32 %v7230_v50, %v11322_v22  ;;  %v7247_v12 = vld [vmem:[%s16500_s1 + $0x268] sm:$0xff]  ;;  %v1327_v42 = vadd.f32 %v13417_v62, %v1275_v28  ;;  %v7262_v4 = vld [vmem:[%s16500_s1 + $0x2e0] sm:$0xff]  ;;  %v7613_v62 = vld [vmem:[%s16500_s1 + $0xdd8] sm:$0xff]  ;;  %v636_v28 = vmul.f32 %v7246_v17, %v11328_v24 }
  0xf4   : > { %v496_v31 = vadd.f32 %v480_v63, %v444_v48  ;;  %v497_v7 = vadd.f32 %v481_v11, %v445_v55  ;;  %v585_v63 = vmul.f32 %v7231_v38, %v11322_v22  ;;  %v1378_v50 = vadd.f32 %v13424_v34, %v1326_v43  ;;  %v7263_v55 = vld [vmem:[%s16500_s1 + $0x2e8] sm:$0xff]  ;;  %v7278_v17 = vld [vmem:[%s16500_s1 + $0x360] sm:$0xff] }
  0xf5   : > { %v13580_v48 = vmul.f32 %v7596_v58, %v16629_v16  ;;  %v1379_v38 = vadd.f32 %v13437_v46, %v1327_v42  ;;  %v13592_v34 = vmul.f32 %v7597_v0, %v16629_v16  ;;  %v7628_v58 = vld [vmem:[%s16500_s1 + $0xe50] sm:$0xff]  ;;  %v7629_v46 = vld [vmem:[%s16500_s1 + $0xe58] sm:$0xff]  ;;  %v13614_v42 = vmul.f32 %v7613_v62, %v11705_v47 }
  0xf6   : > { %v548_v60 = vadd.f32 %v532_v1, %v496_v31  ;;  %10063 = vrot.lane.b32.xlu0 %v10052_v30, %s11151_s21  ;;  %v549_v11 = vadd.f32 %v533_v18, %v497_v7  ;;  %v637_v1 = vmul.f32 %v7247_v12, %v11328_v24  ;;  %v1430_v43 = vadd.f32 %v13440_v13, %v1378_v50  ;;  %v7279_v18 = vld [vmem:[%s16500_s1 + $0x368] sm:$0xff]  ;;  %v7644_v13 = vld [vmem:[%s16500_s1 + $0xed0] sm:$0xff] }
  0xf7   : > { %v13603_v30 = vmul.f32 %v7612_v9, %v11705_v47  ;;  %v688_v31 = vmul.f32 %v7262_v4, %v11346_v32  ;;  %v1431_v12 = vadd.f32 %v13443_v51, %v1379_v38  ;;  %v689_v7 = vmul.f32 %v7263_v55, %v11346_v32  ;;  %v7645_v51 = vld [vmem:[%s16500_s1 + $0xed8] sm:$0xff] }
  0xf8   : > { %v600_v0 = vadd.f32 %v584_v6, %v548_v60  ;;  %v601_v9 = vadd.f32 %v585_v63, %v549_v11  ;;  %v7294_v6 = vld [vmem:[%s16500_s1 + $0x3e0] sm:$0xff]  ;;  %v1482_v4 = vadd.f32 %v13450_v36, %v1430_v43  ;;  %v13625_v50 = vmul.f32 %v7628_v58, %v11718_v49  ;;  %v7295_v63 = vld [vmem:[%s16500_s1 + $0x3e8] sm:$0xff]  ;;  %v7660_v36 = vld [vmem:[%s16500_s1 + $0xf50] sm:$0xff] }
  0xf9   : > { %v740_v60 = vmul.f32 %v7278_v17, %v11356_v37  ;;  %v1483_v55 = vadd.f32 %v13463_v25, %v1431_v12  ;;  %v13636_v38 = vmul.f32 %v7629_v46, %v11718_v49  ;;  %v741_v11 = vmul.f32 %v7279_v18, %v11356_v37  ;;  %v7661_v25 = vld [vmem:[%s16500_s1 + $0xf58] sm:$0xff] }
  0xfa   : > { %v652_v62 = vadd.f32 %v636_v28, %v600_v0  ;;  %v653_v58 = vadd.f32 %v637_v1, %v601_v9  ;;  %v7310_v28 = vld [vmem:[%s16500_s1 + $0x460] sm:$0xff]  ;;  %v1534_v17 = vadd.f32 %v13466_v10, %v1482_v4  ;;  %v13647_v43 = vmul.f32 %v7644_v13, %v16630_v15  ;;  %v7311_v1 = vld [vmem:[%s16500_s1 + $0x468] sm:$0xff]  ;;  %v7676_v10 = vld [vmem:[%s16500_s1 + $0xfd0] sm:$0xff] }
  0xfb   : > { %v792_v0 = vmul.f32 %v7294_v6, %v16638_v35  ;;  %v1535_v18 = vadd.f32 %v13469_v56, %v1483_v55  ;;  %v13658_v12 = vmul.f32 %v7645_v51, %v16630_v15  ;;  %v793_v9 = vmul.f32 %v7295_v63, %v16638_v35  ;;  %v7677_v56 = vld [vmem:[%s16500_s1 + $0xfd8] sm:$0xff] }
  0xfc   : > { %v704_v46 = vadd.f32 %v688_v31, %v652_v62  ;;  %v705_v13 = vadd.f32 %v689_v7, %v653_v58  ;;  %v7326_v31 = vld [vmem:[%s16500_s1 + $0x4e0] sm:$0xff]  ;;  %v1586_v6 = vadd.f32 %v13479_v45, %v1534_v17  ;;  %v13669_v4 = vmul.f32 %v7660_v36, %v11803_v33  ;;  %v7327_v7 = vld [vmem:[%s16500_s1 + $0x4e8] sm:$0xff] }
  0xfd   : > { %v844_v62 = vmul.f32 %v7310_v28, %v11393_v52  ;;  %v1587_v63 = vadd.f32 %v13494_v57, %v1535_v18  ;;  %v13680_v55 = vmul.f32 %v7661_v25, %v11803_v33  ;;  %v845_v36 = vmul.f32 %v7311_v1, %v11393_v52  ;;  %v7342_v58 = vld [vmem:[%s16500_s1 + $0x560] sm:$0xff] }
  0xfe   : > { %v756_v51 = vadd.f32 %v740_v60, %v704_v46  ;;  %v757_v45 = vadd.f32 %v741_v11, %v705_v13  ;;  %v7343_v60 = vld [vmem:[%s16500_s1 + $0x568] sm:$0xff]  ;;  %v1638_v28 = vadd.f32 %v13497_v26, %v1586_v6  ;;  %v13691_v17 = vmul.f32 %v7676_v10, %v11825_v53  ;;  %v7358_v11 = vld [vmem:[%s16500_s1 + $0x5e0] sm:$0xff] }
  0xff   : > { %v896_v25 = vmul.f32 %v7326_v31, %v11410_v59  ;;  %v7359_v46 = vld [vmem:[%s16500_s1 + $0x5e8] sm:$0xff]  ;;  %v1639_v1 = vadd.f32 %v13500_v23, %v1587_v63  ;;  %v13702_v18 = vmul.f32 %v7677_v56, %v11825_v53  ;;  %v897_v10 = vmul.f32 %v7327_v7, %v11410_v59 }
 0x100   : > { %v808_v57 = vadd.f32 %v792_v0, %v756_v51  ;;  %v809_v26 = vadd.f32 %v793_v9, %v757_v45  ;;  %v7374_v0 = vld [vmem:[%s16500_s1 + $0x660] sm:$0xff]  ;;  %v7375_v13 = vld [vmem:[%s16500_s1 + $0x668] sm:$0xff]  ;;  %v1690_v31 = vadd.f32 %v13506_v3, %v1638_v28  ;;  %v948_v51 = vmul.f32 %v7342_v58, %v11416_v61 }
 0x101   : > { %v949_v23 = vmul.f32 %v7343_v60, %v11416_v61  ;;  %v7390_v9 = vld [vmem:[%s16500_s1 + $0x6e0] sm:$0xff]  ;;  %v7391_v56 = vld [vmem:[%s16500_s1 + $0x6e8] sm:$0xff]  ;;  %v1691_v7 = vadd.f32 %v13518_v54, %v1639_v1  ;;  %v1000_v45 = vmul.f32 %v7358_v11, %v11436_v5  ;;  %v1001_v3 = vmul.f32 %v7359_v46, %v11436_v5 }
 0x102   : > { %v860_v6 = vadd.f32 %v844_v62, %v808_v57  ;;  %v861_v63 = vadd.f32 %v845_v36, %v809_v26  ;;  %v7406_v62 = vld [vmem:[%s16500_s1 + $0x760] sm:$0xff]  ;;  %v7407_v58 = vld [vmem:[%s16500_s1 + $0x768] sm:$0xff]  ;;  %v1742_v60 = vadd.f32 %v13521_v41, %v1690_v31  ;;  %v1052_v57 = vmul.f32 %v7374_v0, %v11442_v8 }
 0x103   : > { %v1053_v54 = vmul.f32 %v7375_v13, %v11442_v8  ;;  %v7422_v36 = vld [vmem:[%s16500_s1 + $0x7e0] sm:$0xff]  ;;  %v7423_v11 = vld [vmem:[%s16500_s1 + $0x7e8] sm:$0xff]  ;;  %v1743_v46 = vadd.f32 %v13569_v44, %v1691_v7  ;;  %v1104_v26 = vmul.f32 %v7390_v9, %v11463_v19  ;;  %v1105_v41 = vmul.f32 %v7391_v56, %v11463_v19 }
 0x104   : > { %v912_v28 = vadd.f32 %v896_v25, %v860_v6  ;;  %v913_v1 = vadd.f32 %v897_v10, %v861_v63  ;;  %v7438_v25 = vld [vmem:[%s16500_s1 + $0x860] sm:$0xff]  ;;  %v7439_v0 = vld [vmem:[%s16500_s1 + $0x868] sm:$0xff]  ;;  %v1794_v13 = vadd.f32 %v13580_v48, %v1742_v60  ;;  %v1156_v6 = vmul.f32 %v7406_v62, %v11469_v21 }
 0x105   : > { %v1157_v44 = vmul.f32 %v7407_v58, %v11469_v21  ;;  %v7454_v10 = vld [vmem:[%s16500_s1 + $0x8e0] sm:$0xff]  ;;  %v7455_v9 = vld [vmem:[%s16500_s1 + $0x8e8] sm:$0xff]  ;;  %v1795_v56 = vadd.f32 %v13592_v34, %v1743_v46 }
 0x106   : > { %v964_v31 = vadd.f32 %v948_v51, %v912_v28  ;;  %v965_v7 = vadd.f32 %v949_v23, %v913_v1  ;;  %v16666_v63 = vld [vmem:[#allocation11_spill] sm:$0xff]  ;;  %v7471_v62 = vld [vmem:[%s16500_s1 + $0x968] sm:$0xff]  ;;  %v1846_v58 = vadd.f32 %v13603_v30, %v1794_v13  ;;  %v16668_v1 = vld [vmem:[#allocation13_spill] sm:$0xff] }
 0x107   : > { %v1208_v39 = vmul.f32 %v7422_v36, %v16666_v63  ;;  %v1209_v48 = vmul.f32 %v7423_v11, %v16666_v63  ;;  %v7470_v51 = vld [vmem:[%s16500_s1 + $0x960] sm:$0xff]  ;;  %v16667_v28 = vld [vmem:[#allocation12_spill] sm:$0xff]  ;;  %v1847_v11 = vadd.f32 %v13614_v42, %v1795_v56  ;;  %v1312_v63 = vmul.f32 %v7454_v10, %v16668_v1 }
 0x108   : > { %v1016_v60 = vadd.f32 %v1000_v45, %v964_v31  ;;  %v1260_v21 = vmul.f32 %v7438_v25, %v16667_v28  ;;  %v13768_v34 = vmul.f32 %v7439_v0, %v16667_v28  ;;  %v7486_v23 = vld [vmem:[%s16500_s1 + $0x9e0] sm:$0xff]  ;;  %v7487_v36 = vld [vmem:[%s16500_s1 + $0x9e8] sm:$0xff]  ;;  %v1017_v46 = vadd.f32 %v1001_v3, %v965_v7 }
 0x109   : > { %v13779_v30 = vmul.f32 %v7455_v9, %v16668_v1  ;;  %v7502_v45 = vld [vmem:[%s16500_s1 + $0xa60] sm:$0xff]  ;;  %v7503_v25 = vld [vmem:[%s16500_s1 + $0xa68] sm:$0xff]  ;;  %v1898_v0 = vadd.f32 %v13625_v50, %v1846_v58  ;;  %v13789_v31 = vmul.f32 %v7470_v51, %v16658_v27  ;;  %v13792_v42 = vmul.f32 %v7471_v62, %v16658_v27 }
 0x10a   : > { %v1068_v13 = vadd.f32 %v1052_v57, %v1016_v60  ;;  %v7518_v3 = vld [vmem:[%s16500_s1 + $0xae0] sm:$0xff]  ;;  %v7519_v10 = vld [vmem:[%s16500_s1 + $0xae8] sm:$0xff]  ;;  %v1899_v9 = vadd.f32 %v13636_v38, %v1847_v11  ;;  %v1069_v56 = vadd.f32 %v1053_v54, %v1017_v46  ;;  %v13802_v50 = vmul.f32 %v7486_v23, %v16659_v20 }
 0x10b   : > { %v13805_v57 = vmul.f32 %v7487_v36, %v16659_v20  ;;  %v7534_v7 = vld [vmem:[%s16500_s1 + $0xb60] sm:$0xff]  ;;  %v7535_v51 = vld [vmem:[%s16500_s1 + $0xb68] sm:$0xff]  ;;  %v1950_v62 = vadd.f32 %v13647_v43, %v1898_v0  ;;  %v16670_v20 = vld [vmem:[#allocation17_spill] sm:$0xff] }
 0x10c   : > { %v1120_v58 = vadd.f32 %v1104_v26, %v1068_v13  ;;  %v16669_v60 = vld [vmem:[#allocation16_spill] sm:$0xff]  ;;  %v7550_v23 = vld [vmem:[%s16500_s1 + $0xbe0] sm:$0xff]  ;;  %v1951_v11 = vadd.f32 %v13658_v12, %v1899_v9  ;;  %v1121_v46 = vadd.f32 %v1105_v41, %v1069_v56  ;;  %v13828_v43 = vmul.f32 %v7518_v3, %v16670_v20 }
 0x10d   : > { %v13815_v38 = vmul.f32 %v7502_v45, %v16669_v60  ;;  %v13818_v54 = vmul.f32 %v7503_v25, %v16669_v60  ;;  %v7551_v36 = vld [vmem:[%s16500_s1 + $0xbe8] sm:$0xff]  ;;  %v13831_v26 = vmul.f32 %v7519_v10, %v16670_v20  ;;  %v7566_v45 = vld [vmem:[%s16500_s1 + $0xc60] sm:$0xff]  ;;  %v2002_v0 = vadd.f32 %v13669_v4, %v1950_v62  ;;  %v411_v10 = vld [vmem:[%s16500_s1 + $0x70] sm:$0xff] }
 0x10e   : > { %v7567_v25 = vld [vmem:[%s16500_s1 + $0xc68] sm:$0xff]  ;;  %v1172_v13 = vadd.f32 %v1156_v6, %v1120_v58  ;;  %v13841_v12 = vmul.f32 %v7534_v7, %v16652_v29  ;;  %v13844_v41 = vmul.f32 %v7535_v51, %v16652_v29  ;;  %v7582_v3 = vld [vmem:[%s16500_s1 + $0xce0] sm:$0xff]  ;;  %v2003_v9 = vadd.f32 %v13680_v55, %v1951_v11  ;;  %v412_v7 = vld [vmem:[%s16500_s1 + $0x78] sm:$0xff] }
 0x10f   : > { %v1173_v56 = vadd.f32 %v1157_v44, %v1121_v46  ;;  %v16671_v20 = vld [vmem:[#allocation19_spill] sm:$0xff]  ;;  %v7200_v51 = vld [vmem:[%s16500_s1 + $0xf0] sm:$0xff]  ;;  %v7201_v62 = vld [vmem:[%s16500_s1 + $0xf8] sm:$0xff]  ;;  %v13869_v55 = vadd.f32 %v13691_v17, %v2002_v0 }
 0x110   : > { %v13854_v4 = vmul.f32 %v7550_v23, %v16671_v20  ;;  %v13857_v6 = vmul.f32 %v7551_v36, %v16671_v20  ;;  %v1224_v44 = vadd.f32 %v1208_v39, %v1172_v13  ;;  %v16672_v58 = vld [vmem:[#allocation20_spill] sm:$0xff]  ;;  %v13878_v11 = vadd.f32 %v13702_v18, %v2003_v9  ;;  %v395_v29 = vld [vmem:[%s16501_s2 + $0x70] sm:$0xff]  ;;  %v396_v39 = vld [vmem:[%s16501_s2 + $0x78] sm:$0xff] }
 0x111   : > { %v13872_v23 = vmul.f32 %v7566_v45, %v16672_v58  ;;  %v13875_v36 = vmul.f32 %v7567_v25, %v16672_v58  ;;  %v1225_v46 = vadd.f32 %v1209_v48, %v1173_v56  ;;  %v13881_v20 = vmul.f32 %v7582_v3, %v16624_v2  ;;  %v16673_v17 = vld [vmem:[#allocation7_spill] sm:$0xff]  ;;  %v7216_v25 = vld [vmem:[%s16500_s1 + $0x170] sm:$0xff]  ;;  %v7217_v3 = vld [vmem:[%s16500_s1 + $0x178] sm:$0xff] }
 0x112   : > { %v430_v45 = vmul.f32 %v16673_v17, %v411_v10  ;;  %v1276_v18 = vadd.f32 %v1260_v21, %v1224_v44  ;;  %v431_v48 = vmul.f32 %v16673_v17, %v412_v7  ;;  %v482_v0 = vmul.f32 %v7200_v51, %v16665_v40  ;;  %v7232_v9 = vld [vmem:[%s16500_s1 + $0x1f0] sm:$0xff]  ;;  %v13902_v10 = vpop.permute.xlu0 %9993  ;;  %v7233_v7 = vld [vmem:[%s16500_s1 + $0x1f8] sm:$0xff]  ;;  %v7583_v51 = vld [vmem:[%s16500_s1 + $0xce8] sm:$0xff] }
 0x113   : > { %v483_v13 = vmul.f32 %v7201_v62, %v16665_v40  ;;  %v10067_v56 = vpack.i.bf16 %v13878_v11, %v13869_v55  ;;  %v1277_v21 = vadd.f32 %v13768_v34, %v1225_v46  ;;  %v7598_v62 = vld [vmem:[%s16500_s1 + $0xd60] sm:$0xff]  ;;  %v534_v58 = vmul.f32 %v7216_v25, %v11304_v14  ;;  %v7248_v34 = vld [vmem:[%s16500_s1 + $0x270] sm:$0xff]  ;;  %v7599_v25 = vld [vmem:[%s16500_s1 + $0xd68] sm:$0xff] }
 0x114   : > { %v1328_v40 = vadd.f32 %v1312_v63, %v1276_v18  ;;  %v446_v44 = vadd.f32 %v430_v45, %v395_v29  ;;  %v447_v17 = vadd.f32 %v431_v48, %v396_v39  ;;  %v535_v46 = vmul.f32 %v7217_v3, %v11304_v14  ;;  %v7249_v29 = vld [vmem:[%s16500_s1 + $0x278] sm:$0xff] }
 0x115   : > { %10068 = vrot.lane.b32.xlu1 %v10067_v56, %s11150_s20  ;;  %10073 = vrot.lane.b32.xlu0 %v10067_v56, %s11152_s26  ;;  %v1329_v63 = vadd.f32 %v13779_v30, %v1277_v21  ;;  %v586_v18 = vmul.f32 %v7232_v9, %v11322_v22  ;;  %v7614_v30 = vld [vmem:[%s16500_s1 + $0xde0] sm:$0xff]  ;;  %v587_v3 = vmul.f32 %v7233_v7, %v11322_v22  ;;  %v7264_v9 = vld [vmem:[%s16500_s1 + $0x2f0] sm:$0xff] }
 0x116   : > { %v1380_v45 = vadd.f32 %v13789_v31, %v1328_v40  ;;  %v498_v48 = vadd.f32 %v482_v0, %v446_v44  ;;  %v499_v14 = vadd.f32 %v483_v13, %v447_v17  ;;  %v13942_v31 = vmul.f32 %v7583_v51, %v16624_v2  ;;  %v7265_v0 = vld [vmem:[%s16500_s1 + $0x2f8] sm:$0xff]  ;;  %v7615_v13 = vld [vmem:[%s16500_s1 + $0xde8] sm:$0xff]  ;;  %v7280_v44 = vld [vmem:[%s16500_s1 + $0x370] sm:$0xff] }
 0x117   : > { %v1381_v21 = vadd.f32 %v13792_v42, %v1329_v63  ;;  %v13945_v40 = vmul.f32 %v7598_v62, %v16629_v16  ;;  %v638_v39 = vmul.f32 %v7248_v34, %v11328_v24  ;;  %v7630_v42 = vld [vmem:[%s16500_s1 + $0xe60] sm:$0xff]  ;;  %v639_v62 = vmul.f32 %v7249_v29, %v11328_v24  ;;  %v7281_v24 = vld [vmem:[%s16500_s1 + $0x378] sm:$0xff] }
 0x118   : > { %v1432_v22 = vadd.f32 %v13802_v50, %v1380_v45  ;;  %v550_v7 = vadd.f32 %v534_v58, %v498_v48  ;;  %v551_v51 = vadd.f32 %v535_v46, %v499_v14  ;;  %v13965_v17 = vmul.f32 %v7599_v25, %v16629_v16  ;;  %v7296_v25 = vld [vmem:[%s16500_s1 + $0x3f0] sm:$0xff] }
 0x119   : > { %10078 = vrot.lane.b32.xlu1 %v10067_v56, %s11151_s21  ;;  %v1433_v50 = vadd.f32 %v13805_v57, %v1381_v21  ;;  %v13968_v34 = vmul.f32 %v7614_v30, %v11705_v47  ;;  %v690_v63 = vmul.f32 %v7264_v9, %v11346_v32  ;;  %v7631_v56 = vld [vmem:[%s16500_s1 + $0xe68] sm:$0xff]  ;;  %v7646_v57 = vld [vmem:[%s16500_s1 + $0xee0] sm:$0xff]  ;;  %v691_v45 = vmul.f32 %v7265_v0, %v11346_v32 }
 0x11a   : > { %v1484_v58 = vadd.f32 %v13815_v38, %v1432_v22  ;;  %v602_v46 = vadd.f32 %v586_v18, %v550_v7  ;;  %v603_v29 = vadd.f32 %v587_v3, %v551_v51  ;;  %v13987_v38 = vmul.f32 %v7615_v13, %v11705_v47  ;;  %v7297_v18 = vld [vmem:[%s16500_s1 + $0x3f8] sm:$0xff]  ;;  %v7647_v3 = vld [vmem:[%s16500_s1 + $0xee8] sm:$0xff]  ;;  %v7312_v22 = vld [vmem:[%s16500_s1 + $0x470] sm:$0xff] }
 0x11b   : > { %v1485_v30 = vadd.f32 %v13818_v54, %v1433_v50  ;;  %v13990_v48 = vmul.f32 %v7630_v42, %v11718_v49  ;;  %v742_v14 = vmul.f32 %v7280_v44, %v11356_v37  ;;  %v7662_v54 = vld [vmem:[%s16500_s1 + $0xf60] sm:$0xff]  ;;  %v743_v0 = vmul.f32 %v7281_v24, %v11356_v37  ;;  %v7663_v51 = vld [vmem:[%s16500_s1 + $0xf68] sm:$0xff]  ;;  %v7328_v24 = vld [vmem:[%s16500_s1 + $0x4f0] sm:$0xff] }
 0x11c   : > { %v1536_v32 = vadd.f32 %v13828_v43, %v1484_v58  ;;  %v654_v9 = vadd.f32 %v638_v39, %v602_v46  ;;  %v655_v21 = vadd.f32 %v639_v62, %v603_v29  ;;  %v14009_v43 = vmul.f32 %v7631_v56, %v11718_v49  ;;  %v7313_v39 = vld [vmem:[%s16500_s1 + $0x478] sm:$0xff]  ;;  %v7679_v46 = vld [vmem:[%s16500_s1 + $0xfe8] sm:$0xff] }
 0x11d   : > { %v1537_v13 = vadd.f32 %v13831_v26, %v1485_v30  ;;  %v14012_v42 = vmul.f32 %v7646_v57, %v16630_v15  ;;  %v794_v7 = vmul.f32 %v7296_v25, %v16638_v35  ;;  %v7678_v26 = vld [vmem:[%s16500_s1 + $0xfe0] sm:$0xff]  ;;  %v795_v50 = vmul.f32 %v7297_v18, %v16638_v35  ;;  %v7344_v25 = vld [vmem:[%s16500_s1 + $0x570] sm:$0xff] }
 0x11e   : > { %v1588_v37 = vadd.f32 %v13841_v12, %v1536_v32  ;;  %v706_v62 = vadd.f32 %v690_v63, %v654_v9  ;;  %v707_v44 = vadd.f32 %v691_v45, %v655_v21  ;;  %v14031_v12 = vmul.f32 %v7647_v3, %v16630_v15  ;;  %v7329_v63 = vld [vmem:[%s16500_s1 + $0x4f8] sm:$0xff] }
 0x11f   : > { %v1589_v58 = vadd.f32 %v13844_v41, %v1537_v13  ;;  %v14034_v56 = vmul.f32 %v7662_v54, %v11803_v33  ;;  %v846_v57 = vmul.f32 %v7312_v22, %v11393_v52  ;;  %v847_v45 = vmul.f32 %v7313_v39, %v11393_v52  ;;  %v7361_v21 = vld [vmem:[%s16500_s1 + $0x5f8] sm:$0xff] }
 0x120   : > { %v1640_v35 = vadd.f32 %v13854_v4, %v1588_v37  ;;  %v758_v29 = vadd.f32 %v742_v14, %v706_v62  ;;  %v759_v41 = vadd.f32 %v743_v0, %v707_v44  ;;  %v14050_v18 = vmul.f32 %v7663_v51, %v11803_v33  ;;  %v7345_v14 = vld [vmem:[%s16500_s1 + $0x578] sm:$0xff]  ;;  %v7376_v0 = vld [vmem:[%s16500_s1 + $0x670] sm:$0xff] }
 0x121   : > { %v1641_v30 = vadd.f32 %v13857_v6, %v1589_v58  ;;  %v14053_v32 = vmul.f32 %v7678_v26, %v11825_v53  ;;  %v898_v4 = vmul.f32 %v7328_v24, %v11410_v59  ;;  %v899_v9 = vmul.f32 %v7329_v63, %v11410_v59  ;;  %v7360_v6 = vld [vmem:[%s16500_s1 + $0x5f0] sm:$0xff]  ;;  %v7377_v59 = vld [vmem:[%s16500_s1 + $0x678] sm:$0xff] }
 0x122   : > { %v1692_v52 = vadd.f32 %v13872_v23, %v1640_v35  ;;  %v810_v3 = vadd.f32 %v794_v7, %v758_v29  ;;  %v811_v54 = vadd.f32 %v795_v50, %v759_v41  ;;  %v14072_v23 = vmul.f32 %v7679_v46, %v11825_v53  ;;  %v7393_v62 = vld [vmem:[%s16500_s1 + $0x6f8] sm:$0xff]  ;;  %v7408_v44 = vld [vmem:[%s16500_s1 + $0x770] sm:$0xff]  ;;  %v14108_v41 = vpop.permute.xlu1 %10003 }
 0x123   : > { %v1693_v22 = vadd.f32 %v13875_v36, %v1641_v30  ;;  %v950_v13 = vmul.f32 %v7344_v25, %v11416_v61  ;;  %v9995_v7 = vunpack.i.l.bf16 %v13902_v10  ;;  %v951_v26 = vmul.f32 %v7345_v14, %v11416_v61  ;;  %v7392_v36 = vld [vmem:[%s16500_s1 + $0x6f0] sm:$0xff]  ;;  %v7409_v58 = vld [vmem:[%s16500_s1 + $0x778] sm:$0xff] }
 0x124   : > { %v1744_v39 = vadd.f32 %v13881_v20, %v1692_v52  ;;  %v862_v37 = vadd.f32 %v846_v57, %v810_v3  ;;  %v863_v51 = vadd.f32 %v847_v45, %v811_v54  ;;  %v1002_v20 = vmul.f32 %v7360_v6, %v11436_v5  ;;  %v7440_v29 = vld [vmem:[%s16500_s1 + $0x870] sm:$0xff]  ;;  %v16674_v25 = vld [vmem:[#allocation10_spill] sm:$0xff]  ;;  %v14128_v6 = vpop.permute.xlu0 %9998 }
 0x125   : > { %v1745_v50 = vadd.f32 %v13942_v31, %v1693_v22  ;;  %v1003_v24 = vmul.f32 %v7361_v21, %v11436_v5  ;;  %v1054_v61 = vmul.f32 %v7376_v0, %v11442_v8  ;;  %v1055_v46 = vmul.f32 %v7377_v59, %v11442_v8  ;;  %v7424_v31 = vld [vmem:[%s16500_s1 + $0x7f0] sm:$0xff]  ;;  %v7425_v5 = vld [vmem:[%s16500_s1 + $0x7f8] sm:$0xff]  ;;  %v16675_v21 = vld [vmem:[#allocation11_spill] sm:$0xff] }
 0x126   : > { %v1796_v57 = vadd.f32 %v13945_v40, %v1744_v39  ;;  %v914_v63 = vadd.f32 %v898_v4, %v862_v37  ;;  %v915_v35 = vadd.f32 %v899_v9, %v863_v51  ;;  %v1106_v45 = vmul.f32 %v7392_v36, %v11463_v19  ;;  %v7441_v4 = vld [vmem:[%s16500_s1 + $0x878] sm:$0xff]  ;;  %v7472_v9 = vld [vmem:[%s16500_s1 + $0x970] sm:$0xff] }
 0x127   : > { %v1797_v40 = vadd.f32 %v13965_v17, %v1745_v50  ;;  %v1107_v8 = vmul.f32 %v7393_v62, %v11463_v19  ;;  %v1158_v30 = vmul.f32 %v7408_v44, %v16674_v25  ;;  %v1159_v54 = vmul.f32 %v7409_v58, %v16674_v25  ;;  %v7456_v17 = vld [vmem:[%s16500_s1 + $0x8f0] sm:$0xff]  ;;  %v7457_v19 = vld [vmem:[%s16500_s1 + $0x8f8] sm:$0xff] }
 0x128   : > { %v1848_v14 = vadd.f32 %v13968_v34, %v1796_v57  ;;  %v966_v52 = vadd.f32 %v950_v13, %v914_v63  ;;  %v967_v3 = vadd.f32 %v951_v26, %v915_v35  ;;  %v1210_v0 = vmul.f32 %v7424_v31, %v16675_v21  ;;  %v7473_v59 = vld [vmem:[%s16500_s1 + $0x978] sm:$0xff]  ;;  %v7504_v62 = vld [vmem:[%s16500_s1 + $0xa70] sm:$0xff]  ;;  %v14170_v31 = vpop.permute.xlu1 %10008 }
 0x129   : > { %v1849_v34 = vadd.f32 %v13987_v38, %v1797_v40  ;;  %v1211_v22 = vmul.f32 %v7425_v5, %v16675_v21  ;;  %v1262_v13 = vmul.f32 %v7440_v29, %v16667_v28  ;;  %v1263_v26 = vmul.f32 %v7441_v4, %v16667_v28  ;;  %v7488_v38 = vld [vmem:[%s16500_s1 + $0x9f0] sm:$0xff]  ;;  %v7489_v36 = vld [vmem:[%s16500_s1 + $0x9f8] sm:$0xff] }
 0x12a   : > { %v1900_v39 = vadd.f32 %v13990_v48, %v1848_v14  ;;  %v1018_v37 = vadd.f32 %v1002_v20, %v966_v52  ;;  %v1019_v51 = vadd.f32 %v1003_v24, %v967_v3  ;;  %v1314_v48 = vmul.f32 %v7456_v17, %v16668_v1  ;;  %v7505_v20 = vld [vmem:[%s16500_s1 + $0xa78] sm:$0xff]  ;;  %v7536_v35 = vld [vmem:[%s16500_s1 + $0xb70] sm:$0xff]  ;;  %v14198_v17 = vpop.permute.xlu0 %10013 }
 0x12b   : > { %v1901_v44 = vadd.f32 %v14009_v43, %v1849_v34  ;;  %v1315_v50 = vmul.f32 %v7457_v19, %v16668_v1  ;;  %v14152_v28 = vmul.f32 %v7472_v9, %v16658_v27  ;;  %v14159_v63 = vmul.f32 %v7473_v59, %v16658_v27  ;;  %v7520_v43 = vld [vmem:[%s16500_s1 + $0xaf0] sm:$0xff]  ;;  %v7521_v1 = vld [vmem:[%s16500_s1 + $0xaf8] sm:$0xff] }
 0x12c   : > { %v1952_v24 = vadd.f32 %v14012_v42, %v1900_v39  ;;  %v1070_v58 = vadd.f32 %v1054_v61, %v1018_v37  ;;  %v1071_v57 = vadd.f32 %v1055_v46, %v1019_v51  ;;  %v16676_v61 = vld [vmem:[#allocation15_spill] sm:$0xff]  ;;  %v14180_v5 = vmul.f32 %v7504_v62, %v16669_v60  ;;  %v7537_v29 = vld [vmem:[%s16500_s1 + $0xb78] sm:$0xff]  ;;  %v7568_v3 = vld [vmem:[%s16500_s1 + $0xc70] sm:$0xff] }
 0x12d   : > { %v1953_v42 = vadd.f32 %v14031_v12, %v1901_v44  ;;  %v14174_v46 = vmul.f32 %v7488_v38, %v16676_v61  ;;  %v14177_v27 = vmul.f32 %v7489_v36, %v16676_v61  ;;  %v14187_v14 = vmul.f32 %v7505_v20, %v16669_v60  ;;  %v7552_v12 = vld [vmem:[%s16500_s1 + $0xbf0] sm:$0xff]  ;;  %v7553_v52 = vld [vmem:[%s16500_s1 + $0xbf8] sm:$0xff]  ;;  %v16679_v38 = vld [vmem:[#allocation19_spill] sm:$0xff] }
 0x12e   : > { %v2004_v40 = vadd.f32 %v14034_v56, %v1952_v24  ;;  %v1122_v25 = vadd.f32 %v1106_v45, %v1070_v58  ;;  %v1123_v4 = vadd.f32 %v1107_v8, %v1071_v57  ;;  %v16677_v45 = vld [vmem:[#allocation17_spill] sm:$0xff]  ;;  %v16678_v19 = vld [vmem:[#allocation18_spill] sm:$0xff]  ;;  %v14226_v36 = vmul.f32 %v7552_v12, %v16679_v38  ;;  %v16680_v44 = vld [vmem:[#allocation20_spill] sm:$0xff]  ;;  %v14243_v58 = vpop.permute.xlu1 %10018 }
 0x12f   : > { %v2005_v56 = vadd.f32 %v14050_v18, %v1953_v42  ;;  %v14202_v8 = vmul.f32 %v7520_v43, %v16677_v45  ;;  %v14205_v60 = vmul.f32 %v7521_v1, %v16677_v45  ;;  %v14208_v9 = vmul.f32 %v7536_v35, %v16678_v19  ;;  %v7569_v34 = vld [vmem:[%s16500_s1 + $0xc78] sm:$0xff]  ;;  %v7584_v21 = vld [vmem:[%s16500_s1 + $0xcf0] sm:$0xff] }
 0x130   : > { %v14217_v59 = vadd.f32 %v14053_v32, %v2004_v40  ;;  %v1174_v18 = vadd.f32 %v1158_v30, %v1122_v25  ;;  %v1175_v39 = vadd.f32 %v1159_v54, %v1123_v4  ;;  %v14220_v37 = vmul.f32 %v7537_v29, %v16678_v19  ;;  %v7585_v54 = vld [vmem:[%s16500_s1 + $0xcf8] sm:$0xff]  ;;  %v7600_v35 = vld [vmem:[%s16500_s1 + $0xd70] sm:$0xff]  ;;  %v14257_v40 = vpop.permute.xlu0 %10023 }
 0x131   : > { %v14223_v51 = vadd.f32 %v14072_v23, %v2005_v56  ;;  %v14229_v62 = vmul.f32 %v7553_v52, %v16679_v38  ;;  %v14232_v20 = vmul.f32 %v7568_v3, %v16680_v44  ;;  %v14235_v30 = vmul.f32 %v7569_v34, %v16680_v44  ;;  %v7601_v42 = vld [vmem:[%s16500_s1 + $0xd78] sm:$0xff]  ;;  %v7616_v52 = vld [vmem:[%s16500_s1 + $0xdf0] sm:$0xff] }
 0x132   : > { %v1226_v24 = vadd.f32 %v1210_v0, %v1174_v18  ;;  %v1227_v32 = vadd.f32 %v1211_v22, %v1175_v39  ;;  %v14241_v23 = vmul.f32 %v7584_v21, %v16624_v2  ;;  %v10006_v43 = vunpack.i.h.bf16 %v14108_v41  ;;  %v7617_v3 = vld [vmem:[%s16500_s1 + $0xdf8] sm:$0xff]  ;;  %v14293_v39 = vpop.permute.xlu1 %10028 }
 0x133   : > { %v10082_v57 = vpack.i.bf16 %v14223_v51, %v14217_v59  ;;  %v10005_v0 = vunpack.i.l.bf16 %v14108_v41  ;;  %v10001_v61 = vunpack.i.h.bf16 %v14128_v6  ;;  %v10000_v29 = vunpack.i.l.bf16 %v14128_v6 }
 0x134   : > { %v1278_v22 = vadd.f32 %v1262_v13, %v1226_v24  ;;  %v1279_v1 = vadd.f32 %v1263_v26, %v1227_v32  ;;  %v14262_v13 = vmul.f32 %v7585_v54, %v16624_v2  ;;  %v16681_v26 = vunpack.i.h.bf16 %v13902_v10 }
 0x135   : > { %10083 = vrot.lane.b32.xlu0 %v10082_v57, %s11150_s20  ;;  %10088 = vrot.lane.b32.xlu1 %v10082_v57, %s11152_s26  ;;  %v10011_v56 = vunpack.i.h.bf16 %v14170_v31  ;;  %v10010_v2 = vunpack.i.l.bf16 %v14170_v31  ;;  %v14279_v45 = vmul.f32 %v7600_v35, %v16629_v16  ;;  %v10021_v21 = vunpack.i.h.bf16 %v14243_v58 }
 0x136   : > { %v14268_v25 = vpack.c.bf16 %v16681_v26, %v9995_v7  ;;  %v1330_v4 = vadd.f32 %v1314_v48, %v1278_v22  ;;  %v1331_v12 = vadd.f32 %v1315_v50, %v1279_v1  ;;  %v14282_v7 = vmul.f32 %v7601_v42, %v16629_v16 }
 0x137   : > { %v14285_v48 = vpack.c.bf16 %v10001_v61, %v10000_v29  ;;  %v14287_v50 = vpack.c.bf16 %v10006_v43, %v10005_v0  ;;  %v10020_v18 = vunpack.i.l.bf16 %v14243_v58  ;;  %v14297_v16 = vmul.f32 %v7616_v52, %v11705_v47  ;;  %v14312_v0 = vpop.permute.xlu0 %10033  ;;  %v7633_v61 = vld [vmem:[%s16500_s1 + $0xe78] sm:$0xff] }
 0x138   : > { %9101 = vmatprep.subr.bf16.mxu0 %v14268_v25  ;;  %v1382_v19 = vadd.f32 %v14152_v28, %v1330_v4  ;;  %v1383_v34 = vadd.f32 %v14159_v63, %v1331_v12  ;;  %v14300_v38 = vmul.f32 %v7617_v3, %v11705_v47  ;;  %v10016_v44 = vunpack.i.h.bf16 %v14198_v17  ;;  %v16682_v28 = vld [vmem:[#allocation21_spill] sm:$0xff]  ;;  %v16683_v63 = vld [vmem:[#allocation24_spill] sm:$0xff]  ;;  %v16684_v52 = vld [vmem:[#allocation22_spill] sm:$0xff] }
 0x139   : > { %10093 = vrot.lane.b32.xlu0 %v10082_v57, %s11151_s21  ;;  %9133 = vmatprep.subr.bf16.mxu1 %v14285_v48  ;;  %v9102_v24 = vpack.c.bf16 %v16683_v63, %v16682_v28  ;;  %v10015_v43 = vunpack.i.l.bf16 %v14198_v17  ;;  %v14310_v57 = vpack.c.bf16 %v10011_v56, %v10010_v2  ;;  %v7632_v47 = vld [vmem:[%s16500_s1 + $0xe70] sm:$0xff]  ;;  %v10026_v22 = vunpack.i.h.bf16 %v14257_v40 }
 0x13a   : > { %v1434_v32 = vadd.f32 %v14174_v46, %v1382_v19  ;;  %v1435_v54 = vadd.f32 %v14177_v27, %v1383_v34  ;;  %9135 = vmatpush3.bf16.msra.mxu1 %v14287_v50  ;;  %v10025_v1 = vunpack.i.l.bf16 %v14257_v40  ;;  %v10031_v46 = vunpack.i.h.bf16 %v14293_v39  ;;  %v7648_v4 = vld [vmem:[%s16500_s1 + $0xef0] sm:$0xff] }
 0x13b   : > { %9103 = vmatpush3.bf16.msra.mxu0 %v9102_v24  ;;  %v10030_v27 = vunpack.i.l.bf16 %v14293_v39  ;;  %v14327_v29 = vpack.c.bf16 %v10016_v44, %v10015_v43  ;;  %v14329_v26 = vpack.c.bf16 %v10021_v21, %v10020_v18  ;;  %v10036_v12 = vunpack.i.h.bf16 %v14312_v0  ;;  %v16686_v44 = vld [vmem:[#allocation9_spill] sm:$0xff] }
 0x13c   : > { %v1486_v35 = vadd.f32 %v14180_v5, %v1434_v32  ;;  %v1487_v42 = vadd.f32 %v14187_v14, %v1435_v54  ;;  %9105 = vmatprep.subr.bf16.mxu0 %v14310_v57  ;;  %v10035_v5 = vunpack.i.l.bf16 %v14312_v0  ;;  %v16685_v14 = vld [vmem:[#allocation23_spill] sm:$0xff]  ;;  %v14338_v56 = vpack.c.bf16 %v10026_v22, %v10025_v1  ;;  %v16687_v28 = vld [vmem:[#allocation25_spill] sm:$0xff]  ;;  %v16688_v54 = vld [vmem:[#allocation26_spill] sm:$0xff] }
 0x13d   : > { %v9106_v3 = vpack.c.bf16 %v16685_v14, %v16684_v52  ;;  %v1886_v34 = vmul.f32 %v7632_v47, %v11718_v49  ;;  %9137 = vmatprep.subr.bf16.mxu1 %v14327_v29  ;;  %v14344_v21 = vpack.c.bf16 %v10031_v46, %v10030_v27  ;;  %v1887_v18 = vmul.f32 %v7633_v61, %v11718_v49  ;;  %v16689_v49 = vld [vmem:[#allocation27_spill] sm:$0xff]  ;;  %v7649_v46 = vld [vmem:[%s16500_s1 + $0xef8] sm:$0xff]  ;;  %v7664_v27 = vld [vmem:[%s16500_s1 + $0xf70] sm:$0xff] }
 0x13e   : > { %v1538_v2 = vadd.f32 %v14202_v8, %v1486_v35  ;;  %v1539_v19 = vadd.f32 %v14205_v60, %v1487_v42  ;;  %9139 = vmatpush3.bf16.msra.mxu1 %v14329_v26  ;;  %v9110_v63 = vpack.c.bf16 %v16687_v28, %v16686_v44  ;;  %v14350_v24 = vpack.c.bf16 %v10036_v12, %v10035_v5 }
 0x13f   : > { %9107 = vmatpush3.bf16.msra.mxu0 %v9106_v3  ;;  %v1938_v32 = vmul.f32 %v7648_v4, %v16630_v15  ;;  %9141 = vmatprep.subr.bf16.mxu1 %v14344_v21  ;;  %v9114_v43 = vpack.c.bf16 %v16689_v49, %v16688_v54  ;;  %v9122_v47 = vpack.c.bf16 %v13878_v11, %v13869_v55 }
 0x140   : > { %v1590_v8 = vadd.f32 %v14208_v9, %v1538_v2  ;;  %v1591_v60 = vadd.f32 %v14220_v37, %v1539_v19  ;;  %9109 = vmatprep.subr.bf16.mxu0 %v14338_v56  ;;  %v1939_v12 = vmul.f32 %v7649_v46, %v16630_v15  ;;  %v1990_v5 = vmul.f32 %v7664_v27, %v11803_v33  ;;  %v7665_v19 = vld [vmem:[%s16500_s1 + $0xf78] sm:$0xff] }
 0x141   : > { %v1991_v28 = vmul.f32 %v7665_v19, %v11803_v33 }
 0x142   : > { %v1642_v22 = vadd.f32 %v14226_v36, %v1590_v8  ;;  %v1643_v1 = vadd.f32 %v14229_v62, %v1591_v60  ;;  %9143 = vmatpush3.bf16.msra.mxu1 %v14350_v24  ;;  %v7681_v8 = vld [vmem:[%s16500_s1 + $0xff8] sm:$0xff] }
 0x143   : > { %9111 = vmatpush3.bf16.msra.mxu0 %v9110_v63  ;;  %v14372_v35 = vpop.permute.xlu1 %10038  ;;  %v14374_v36 = vpop.permute.xlu0 %10043  ;;  %v7680_v63 = vld [vmem:[%s16500_s1 + $0xff0] sm:$0xff]  ;;  %v2043_v33 = vmul.f32 %v7681_v8, %v11825_v53 }
 0x144   : > { %v1694_v9 = vadd.f32 %v14232_v20, %v1642_v22  ;;  %v1695_v37 = vadd.f32 %v14235_v30, %v1643_v1  ;;  %v10041_v62 = vunpack.i.h.bf16 %v14372_v35  ;;  %v10040_v42 = vunpack.i.l.bf16 %v14372_v35 }
 0x145   : > { %v10046_v20 = vunpack.i.h.bf16 %v14374_v36  ;;  %v10045_v30 = vunpack.i.l.bf16 %v14374_v36 }
 0x146   : > { %v1746_v61 = vadd.f32 %v14241_v23, %v1694_v9  ;;  %v1747_v4 = vadd.f32 %v14262_v13, %v1695_v37  ;;  %v14384_v52 = vpack.c.bf16 %v10041_v62, %v10040_v42 }
 0x147   : > { %v14386_v14 = vpack.c.bf16 %v10046_v20, %v10045_v30  ;;  %v14393_v44 = vpop.permute.xlu1 %10048  ;;  %v16690_v30 = vld [vmem:[#allocation14_spill] sm:$0xff] }
 0x148   : > { %v1798_v3 = vadd.f32 %v14279_v45, %v1746_v61  ;;  %v1799_v2 = vadd.f32 %v14282_v7, %v1747_v4  ;;  %v10051_v23 = vunpack.i.h.bf16 %v14393_v44  ;;  %v10050_v15 = vunpack.i.l.bf16 %v14393_v44  ;;  %9113 = vmatprep.subr.bf16.mxu0 %v14384_v52  ;;  %v16691_v61 = vld [vmem:[#allocation28_spill] sm:$0xff] }
 0x149   : > { %9145 = vmatprep.subr.bf16.mxu1 %v14386_v14  ;;  %9115 = vmatpush3.bf16.msra.mxu0 %v9114_v43  ;;  %v9126_v7 = vpack.c.bf16 %v14223_v51, %v14217_v59  ;;  %v2042_v43 = vmul.f32 %v7680_v63, %v11825_v53  ;;  %v9118_v4 = vpack.c.bf16 %v16691_v61, %v16690_v30 }
 0x14a   : > { %v1850_v13 = vadd.f32 %v14297_v16, %v1798_v3  ;;  %v1851_v45 = vadd.f32 %v14300_v38, %v1799_v2  ;;  %v14410_v60 = vpack.c.bf16 %v10051_v23, %v10050_v15 }
 0x14c   : > { %v1902_v54 = vadd.f32 %v1886_v34, %v1850_v13  ;;  %v1903_v16 = vadd.f32 %v1887_v18, %v1851_v45  ;;  %9147 = vmatpush3.bf16.msra.mxu1 %v14410_v60 }
 0x14e   : > { %v1954_v38 = vadd.f32 %v1938_v32, %v1902_v54  ;;  %v1955_v49 = vadd.f32 %v1939_v12, %v1903_v16 }
 0x150   : > { %v2006_v22 = vadd.f32 %v1990_v5, %v1954_v38  ;;  %v2007_v1 = vadd.f32 %v1991_v28, %v1955_v49 }
 0x152   : > { %v14415_v9 = vadd.f32 %v2042_v43, %v2006_v22  ;;  %v14417_v37 = vadd.f32 %v2043_v33, %v2007_v1  ;;  %v2221_v33 = vld [vmem:[%s16502_s3 + $0x8] sm:$0xff]  ;;  %v2223_v22 = vld [vmem:[%s16502_s3 + $0x18] sm:$0xff] }
 0x153   : > { %2364 = vmatprep.mubr.f32.mxu0 %v2221_v33  ;;  %2469 = vmatprep.mubr.f32.mxu1 %v2223_v22 }
 0x154   : > { %v10097_v46 = vpack.i.bf16 %v14417_v37, %v14415_v9  ;;  %v9130_v43 = vpack.c.bf16 %v14417_v37, %v14415_v9 }
 0x156   : > { %10098 = vrot.lane.b32.xlu1 %v10097_v46, %s11150_s20  ;;  %10103 = vrot.lane.b32.xlu0 %v10097_v46, %s11152_s26 }
 0x15a   : > { %10108 = vrot.lane.b32.xlu1 %v10097_v46, %s11151_s21  ;;  %10113 = vrot.lane.b32.xlu0 %v13902_v10, %s11150_s20 }
 0x15e   : > { %10118 = vrot.lane.b32.xlu1 %v14128_v6, %s11150_s20  ;;  %10123 = vrot.lane.b32.xlu0 %v14108_v41, %s11150_s20 }
 0x162   : > { %10128 = vrot.lane.b32.xlu1 %v14170_v31, %s11150_s20  ;;  %10133 = vrot.lane.b32.xlu0 %v14198_v17, %s11150_s20 }
 0x164   : > { %v14434_v53 = vpop.permute.xlu0 %10053  ;;  %v14436_v34 = vpop.permute.xlu1 %10058 }
 0x165   : > { %v10056_v18 = vunpack.i.h.bf16 %v14434_v53  ;;  %v10055_v32 = vunpack.i.l.bf16 %v14434_v53  ;;  %v10061_v27 = vunpack.i.h.bf16 %v14436_v34  ;;  %v10060_v62 = vunpack.i.l.bf16 %v14436_v34 }
 0x166   : > { %10138 = vrot.lane.b32.xlu1 %v14243_v58, %s11150_s20  ;;  %10143 = vrot.lane.b32.xlu0 %v14257_v40, %s11150_s20 }
 0x167   : > { %v14446_v42 = vpack.c.bf16 %v10056_v18, %v10055_v32  ;;  %v14448_v20 = vpack.c.bf16 %v10061_v27, %v10060_v62 }
 0x168   : > { %v14452_v12 = vpop.permute.xlu0 %10063 }
 0x169   : > { %v10066_v5 = vunpack.i.h.bf16 %v14452_v12  ;;  %v10065_v3 = vunpack.i.l.bf16 %v14452_v12  ;;  %9117 = vmatprep.subr.bf16.mxu0 %v14446_v42  ;;  %9149 = vmatprep.subr.bf16.mxu1 %v14448_v20 }
 0x16a   : > { %10148 = vrot.lane.b32.xlu1 %v14293_v39, %s11150_s20  ;;  %10153 = vrot.lane.b32.xlu0 %v14312_v0, %s11150_s20 }
 0x16b   : > { %9119 = vmatpush3.bf16.msra.mxu0 %v9118_v4  ;;  %v14462_v2 = vpack.c.bf16 %v10066_v5, %v10065_v3 }
 0x16d   : > { %9151 = vmatpush3.bf16.msra.mxu1 %v14462_v2 }
 0x16e   : > { %10158 = vrot.lane.b32.xlu1 %v14372_v35, %s11150_s20  ;;  %10163 = vrot.lane.b32.xlu0 %v14374_v36, %s11150_s20 }
 0x172   : > { %10168 = vrot.lane.b32.xlu1 %v14393_v44, %s11150_s20  ;;  %10173 = vrot.lane.b32.xlu0 %v14434_v53, %s11150_s20 }
 0x176   : > { %10178 = vrot.lane.b32.xlu1 %v14436_v34, %s11150_s20  ;;  %10183 = vrot.lane.b32.xlu0 %v14452_v12, %s11150_s20 }
 0x187   : > { %v14477_v19 = vpop.permute.xlu1 %10068  ;;  %v14479_v23 = vpop.permute.xlu0 %10073 }
 0x188   : > { %v10071_v15 = vunpack.i.h.bf16 %v14477_v19  ;;  %v10070_v13 = vunpack.i.l.bf16 %v14477_v19  ;;  %v10076_v45 = vunpack.i.h.bf16 %v14479_v23  ;;  %v10075_v28 = vunpack.i.l.bf16 %v14479_v23  ;;  %10188 = vrot.lane.b32.xlu1 %v14477_v19, %s11150_s20  ;;  %10193 = vrot.lane.b32.xlu0 %v14479_v23, %s11150_s20 }
 0x18a   : > { %v14485_v63 = vpack.c.bf16 %v10071_v15, %v10070_v13  ;;  %v14487_v8 = vpack.c.bf16 %v10076_v45, %v10075_v28 }
 0x18b   : > { %v14489_v54 = vpop.permute.xlu1 %10078 }
 0x18c   : > { %v10081_v16 = vunpack.i.h.bf16 %v14489_v54  ;;  %v10080_v38 = vunpack.i.l.bf16 %v14489_v54  ;;  %9121 = vmatprep.subr.bf16.mxu0 %v14485_v63  ;;  %9153 = vmatprep.subr.bf16.mxu1 %v14487_v8 }
 0x18d   : > { %9123 = vmatpush3.bf16.msra.mxu0 %v9122_v47  ;;  %10198 = vrot.lane.b32.xlu1 %v14489_v54, %s11150_s20 }
 0x18e   : > { %v14499_v49 = vpack.c.bf16 %v10081_v16, %v10080_v38 }
 0x190   : > { %9155 = vmatpush3.bf16.msra.mxu1 %v14499_v49 }
 0x1a7   : > { %v14515_v55 = vpop.permute.xlu0 %10083  ;;  %v14517_v11 = vpop.permute.xlu1 %10088 }
 0x1a8   : > { %v10086_v47 = vunpack.i.h.bf16 %v14515_v55  ;;  %v10085_v1 = vunpack.i.l.bf16 %v14515_v55  ;;  %v10091_v9 = vunpack.i.h.bf16 %v14517_v11  ;;  %v10090_v37 = vunpack.i.l.bf16 %v14517_v11  ;;  %10203 = vrot.lane.b32.xlu0 %v14515_v55, %s11150_s20  ;;  %10208 = vrot.lane.b32.xlu1 %v14517_v11, %s11150_s20 }
 0x1aa   : > { %v14523_v46 = vpack.c.bf16 %v10086_v47, %v10085_v1  ;;  %v14525_v18 = vpack.c.bf16 %v10091_v9, %v10090_v37  ;;  %v2220_v37 = vld [vmem:[%s16502_s3] sm:$0xff] }
 0x1ab   : > { %v14527_v32 = vpop.permute.xlu0 %10093 }
 0x1ac   : > { %v10096_v27 = vunpack.i.h.bf16 %v14527_v32  ;;  %v10095_v62 = vunpack.i.l.bf16 %v14527_v32  ;;  %9125 = vmatprep.subr.bf16.mxu0 %v14523_v46  ;;  %9157 = vmatprep.subr.bf16.mxu1 %v14525_v18 }
 0x1ad   : > { %9127 = vmatpush3.bf16.msra.mxu0 %v9126_v7  ;;  %10213 = vrot.lane.b32.xlu0 %v14527_v32, %s11150_s20 }
 0x1ae   : > { %v14540_v30 = vpack.c.bf16 %v10096_v27, %v10095_v62 }
 0x1b0   : > { %9159 = vmatpush3.bf16.msra.mxu1 %v14540_v30 }
 0x1c8   : > { %v14545_v61 = vpop.permute.xlu1 %10098  ;;  %v14547_v4 = vpop.permute.xlu0 %10103 }
 0x1c9   : > { %v10101_v5 = vunpack.i.h.bf16 %v14545_v61  ;;  %v10100_v3 = vunpack.i.l.bf16 %v14545_v61  ;;  %v10106_v15 = vunpack.i.h.bf16 %v14547_v4  ;;  %v10105_v59 = vunpack.i.l.bf16 %v14547_v4  ;;  %10218 = vrot.lane.b32.xlu1 %v14545_v61, %s11150_s20  ;;  %10223 = vrot.lane.b32.xlu0 %v14547_v4, %s11150_s20 }
 0x1cb   : > { %v14553_v51 = vpack.c.bf16 %v10101_v5, %v10100_v3  ;;  %v14555_v7 = vpack.c.bf16 %v10106_v15, %v10105_v59 }
 0x1cc   : > { %v14557_v13 = vpop.permute.xlu1 %10108  ;;  %v10114_v45 = vpop.permute.xlu0 %10113 }
 0x1cd   : > { %16692 = vst [vmem:[#allocation8_spill] sm:$0xff] %v14555_v7  ;;  %v10111_v28 = vunpack.i.h.bf16 %v14557_v13  ;;  %v10110_v16 = vunpack.i.l.bf16 %v14557_v13  ;;  %v10116_v38 = vunpack.i.h.bf16 %v10114_v45  ;;  %v10115_v33 = vunpack.i.l.bf16 %v10114_v45  ;;  %9129 = vmatprep.subr.bf16.mxu0 %v14553_v51  ;;  %9161 = vmatprep.subr.bf16.mxu1 %v14555_v7 }
 0x1ce   : > { %9131 = vmatpush3.bf16.msra.mxu0 %v9130_v43  ;;  %10228 = vrot.lane.b32.xlu1 %v14557_v13, %s11150_s20  ;;  %v2222_v43 = vld [vmem:[%s16502_s3 + $0x10] sm:$0xff] }
 0x1cf   : > { %v14567_v22 = vpack.c.bf16 %v10111_v28, %v10110_v16  ;;  %v9164_v47 = vpack.c.bf16 %v10116_v38, %v10115_v33  ;;  %10233 = vrot.lane.b32.xlu0 %v13902_v10, %s11151_s21  ;;  %v2225_v16 = vld [vmem:[%s16502_s3 + $0x28] sm:$0xff]  ;;  %v2227_v38 = vld [vmem:[%s16502_s3 + $0x38] sm:$0xff] }
 0x1d0   : > { %v10119_v1 = vpop.permute.xlu1 %10118  ;;  %v10124_v9 = vpop.permute.xlu0 %10123 }
 0x1d1   : > { %9163 = vmatpush3.bf16.msra.mxu1 %v14567_v22  ;;  %v10121_v27 = vunpack.i.h.bf16 %v10119_v1  ;;  %v10120_v62 = vunpack.i.l.bf16 %v10119_v1  ;;  %v10126_v5 = vunpack.i.h.bf16 %v10124_v9  ;;  %v10125_v3 = vunpack.i.l.bf16 %v10124_v9  ;;  %9165 = vmatprep.subr.bf16.mxu0 %v9164_v47 }
 0x1d2   : > { %2365 = vmatmul.mubr.f32.vlgmr.msra.gmra.mrb[0].mxu0 %v2220_v37  ;;  %10238 = vrot.lane.b32.xlu1 %v14128_v6, %s11151_s21  ;;  %v2226_v37 = vld [vmem:[%s16502_s3 + $0x30] sm:$0xff] }
 0x1d3   : > { %v9198_v15 = vpack.c.bf16 %v10126_v5, %v10125_v3  ;;  %v9196_v59 = vpack.c.bf16 %v10121_v27, %v10120_v62  ;;  %9167 = vmatpush3.bf16.msra.mxu0 %v14268_v25  ;;  %v2224_v25 = vld [vmem:[%s16502_s3 + $0x20] sm:$0xff]  ;;  %10243 = vrot.lane.b32.xlu0 %v14108_v41, %s11151_s21 }
 0x1d4   : > { %v10129_v45 = vpop.permute.xlu1 %10128  ;;  %v10134_v28 = vpop.permute.xlu0 %10133  ;;  %2470 = vmatmul.mubr.f32.vlgmr.msra.gmra.mrb[0].mxu1 %v2222_v43  ;;  %2369 = vmatprep.mubr.f32.mxu0 %v2225_v16  ;;  %v2229_v43 = vld [vmem:[%s16502_s3 + $0x48] sm:$0xff]  ;;  %v2231_v16 = vld [vmem:[%s16502_s3 + $0x58] sm:$0xff] }
 0x1d5   : > { %v10131_v33 = vunpack.i.h.bf16 %v10129_v45  ;;  %v10130_v47 = vunpack.i.l.bf16 %v10129_v45  ;;  %v10136_v1 = vunpack.i.h.bf16 %v10134_v28  ;;  %v10135_v9 = vunpack.i.l.bf16 %v10134_v28  ;;  %9197 = vmatprep.subr.bf16.mxu1 %v9196_v59  ;;  %2474 = vmatprep.mubr.f32.mxu1 %v2227_v38 }
 0x1d6   : > { %9199 = vmatpush3.bf16.msra.mxu1 %v9198_v15  ;;  %2370 = vmatmul.mubr.f32.gmra.mrb[2].mxu0 %v2224_v25  ;;  %v2228_v15 = vld [vmem:[%s16502_s3 + $0x40] sm:$0xff] }
 0x1d7   : > { %v9168_v27 = vpack.c.bf16 %v10131_v33, %v10130_v47  ;;  %v9200_v62 = vpack.c.bf16 %v10136_v1, %v10135_v9  ;;  %10248 = vrot.lane.b32.xlu1 %v14170_v31, %s11151_s21  ;;  %10253 = vrot.lane.b32.xlu0 %v14198_v17, %s11151_s21  ;;  %v2230_v9 = vld [vmem:[%s16502_s3 + $0x50] sm:$0xff] }
 0x1d8   : > { %v10139_v5 = vpop.permute.xlu1 %10138  ;;  %v10144_v3 = vpop.permute.xlu0 %10143  ;;  %2475 = vmatmul.mubr.f32.gmra.mrb[2].mxu1 %v2226_v37  ;;  %2374 = vmatprep.mubr.f32.mxu0 %v2229_v43 }
 0x1d9   : > { %v10141_v59 = vunpack.i.h.bf16 %v10139_v5  ;;  %v10140_v45 = vunpack.i.l.bf16 %v10139_v5  ;;  %v10146_v28 = vunpack.i.h.bf16 %v10144_v3  ;;  %v10145_v7 = vunpack.i.l.bf16 %v10144_v3  ;;  %9169 = vmatprep.subr.bf16.mxu0 %v9168_v27  ;;  %9201 = vmatprep.subr.bf16.mxu1 %v9200_v62 }
 0x1da   : > { %9171 = vmatpush3.bf16.msra.mxu0 %v14310_v57  ;;  %2479 = vmatprep.mubr.f32.mxu1 %v2231_v16  ;;  %v2233_v57 = vld [vmem:[%s16502_s3 + $0x68] sm:$0xff] }
 0x1db   : > { %v9202_v38 = vpack.c.bf16 %v10141_v59, %v10140_v45  ;;  %v9172_v33 = vpack.c.bf16 %v10146_v28, %v10145_v7  ;;  %2375 = vmatmul.mubr.f32.gmra.mrb[4].mxu0 %v2228_v15  ;;  %10258 = vrot.lane.b32.xlu1 %v14243_v58, %s11151_s21  ;;  %v2235_v7 = vld [vmem:[%s16502_s3 + $0x78] sm:$0xff]  ;;  %v2232_v45 = vld [vmem:[%s16502_s3 + $0x60] sm:$0xff]  ;;  %v2234_v28 = vld [vmem:[%s16502_s3 + $0x70] sm:$0xff] }
 0x1dc   : > { %v10149_v47 = vpop.permute.xlu1 %10148  ;;  %v10154_v1 = vpop.permute.xlu0 %10153  ;;  %10263 = vrot.lane.b32.xlu0 %v14257_v40, %s11151_s21  ;;  %2480 = vmatmul.mubr.f32.gmra.mrb[4].mxu1 %v2230_v9 }
 0x1dd   : > { %v10151_v25 = vunpack.i.h.bf16 %v10149_v47  ;;  %v10150_v37 = vunpack.i.l.bf16 %v10149_v47  ;;  %v10156_v27 = vunpack.i.h.bf16 %v10154_v1  ;;  %v10155_v5 = vunpack.i.l.bf16 %v10154_v1  ;;  %9173 = vmatprep.subr.bf16.mxu0 %v9172_v33  ;;  %9203 = vmatpush3.bf16.msra.mxu1 %v9202_v38  ;;  %v2237_v33 = vld [vmem:[%s16502_s3 + $0x88] sm:$0xff]  ;;  %v2239_v47 = vld [vmem:[%s16502_s3 + $0x98] sm:$0xff] }
 0x1de   : > { %9175 = vmatpush3.bf16.msra.mxu0 %v14338_v56  ;;  %2379 = vmatprep.mubr.f32.mxu0 %v2233_v57 }
 0x1df   : > { %v9206_v62 = vpack.c.bf16 %v10156_v27, %v10155_v5  ;;  %v9204_v3 = vpack.c.bf16 %v10151_v25, %v10150_v37  ;;  %2484 = vmatprep.mubr.f32.mxu1 %v2235_v7  ;;  %10268 = vrot.lane.b32.xlu1 %v14293_v39, %s11151_s21  ;;  %v2236_v27 = vld [vmem:[%s16502_s3 + $0x80] sm:$0xff] }
 0x1e0   : > { %v10159_v43 = vpop.permute.xlu1 %10158  ;;  %v10164_v59 = vpop.permute.xlu0 %10163  ;;  %10273 = vrot.lane.b32.xlu0 %v14312_v0, %s11151_s21  ;;  %2380 = vmatmul.mubr.f32.gmra.mrb[6].mxu0 %v2232_v45 }
 0x1e1   : > { %v10161_v15 = vunpack.i.h.bf16 %v10159_v43  ;;  %v10160_v16 = vunpack.i.l.bf16 %v10159_v43  ;;  %v10166_v56 = vunpack.i.h.bf16 %v10164_v59  ;;  %v10165_v38 = vunpack.i.l.bf16 %v10164_v59  ;;  %9205 = vmatprep.subr.bf16.mxu1 %v9204_v3  ;;  %2485 = vmatmul.mubr.f32.gmra.mrb[6].mxu1 %v2234_v28  ;;  %v2241_v43 = vld [vmem:[%s16502_s3 + $0xa8] sm:$0xff] }
 0x1e2   : > { %9207 = vmatpush3.bf16.msra.mxu1 %v9206_v62  ;;  %2384 = vmatprep.mubr.f32.mxu0 %v2237_v33  ;;  %v2238_v62 = vld [vmem:[%s16502_s3 + $0x90] sm:$0xff] }
 0x1e3   : > { %v9176_v1 = vpack.c.bf16 %v10161_v15, %v10160_v16  ;;  %v9208_v9 = vpack.c.bf16 %v10166_v56, %v10165_v38  ;;  %2489 = vmatprep.mubr.f32.mxu1 %v2239_v47  ;;  %10278 = vrot.lane.b32.xlu1 %v14372_v35, %s11151_s21  ;;  %v2243_v16 = vld [vmem:[%s16502_s3 + $0xb8] sm:$0xff] }
 0x1e4   : > { %v10169_v25 = vpop.permute.xlu1 %10168  ;;  %v10174_v37 = vpop.permute.xlu0 %10173  ;;  %10283 = vrot.lane.b32.xlu0 %v14374_v36, %s11151_s21  ;;  %2385 = vmatmul.mubr.f32.gmra.mrb[8].mxu0 %v2236_v27  ;;  %v2247_v27 = vld [vmem:[%s16502_s3 + $0xd8] sm:$0xff] }
 0x1e5   : > { %v10171_v5 = vunpack.i.h.bf16 %v10169_v25  ;;  %v10170_v57 = vunpack.i.l.bf16 %v10169_v25  ;;  %v10176_v7 = vunpack.i.h.bf16 %v10174_v37  ;;  %v10175_v3 = vunpack.i.l.bf16 %v10174_v37  ;;  %9177 = vmatprep.subr.bf16.mxu0 %v9176_v1  ;;  %9209 = vmatprep.subr.bf16.mxu1 %v9208_v9  ;;  %v2242_v1 = vld [vmem:[%s16502_s3 + $0xb0] sm:$0xff]  ;;  %v2245_v37 = vld [vmem:[%s16502_s3 + $0xc8] sm:$0xff] }
 0x1e6   : > { %9179 = vmatpush3.bf16.msra.mxu0 %v14384_v52  ;;  %2490 = vmatmul.mubr.f32.gmra.mrb[8].mxu1 %v2238_v62  ;;  %v2240_v52 = vld [vmem:[%s16502_s3 + $0xa0] sm:$0xff]  ;;  %v2250_v62 = vld [vmem:[%s16502_s3 + $0xf0] sm:$0xff] }
 0x1e7   : > { %v9210_v59 = vpack.c.bf16 %v10171_v5, %v10170_v57  ;;  %v9180_v45 = vpack.c.bf16 %v10176_v7, %v10175_v3  ;;  %2389 = vmatprep.mubr.f32.mxu0 %v2241_v43  ;;  %10288 = vrot.lane.b32.xlu1 %v14393_v44, %s11151_s21  ;;  %v2246_v5 = vld [vmem:[%s16502_s3 + $0xd0] sm:$0xff]  ;;  %v2249_v57 = vld [vmem:[%s16502_s3 + $0xe8] sm:$0xff]  ;;  %v2251_v7 = vld [vmem:[%s16502_s3 + $0xf8] sm:$0xff] }
 0x1e8   : > { %v10179_v28 = vpop.permute.xlu1 %10178  ;;  %v10184_v15 = vpop.permute.xlu0 %10183  ;;  %10293 = vrot.lane.b32.xlu0 %v14434_v53, %s11151_s21  ;;  %2494 = vmatprep.mubr.f32.mxu1 %v2243_v16  ;;  %v2248_v3 = vld [vmem:[%s16502_s3 + $0xe0] sm:$0xff]  ;;  %v7683_v43 = vld [vmem:[%s16502_s3 + $0x108] sm:$0xff] }
 0x1e9   : > { %v10181_v56 = vunpack.i.h.bf16 %v10179_v28  ;;  %v10180_v38 = vunpack.i.l.bf16 %v10179_v28  ;;  %v10186_v33 = vunpack.i.h.bf16 %v10184_v15  ;;  %v10185_v47 = vunpack.i.l.bf16 %v10184_v15  ;;  %9181 = vmatprep.subr.bf16.mxu0 %v9180_v45  ;;  %9211 = vmatpush3.bf16.msra.mxu1 %v9210_v59  ;;  %v7685_v59 = vld [vmem:[%s16502_s3 + $0x118] sm:$0xff] }
 0x1ea   : > { %9183 = vmatpush3.bf16.msra.mxu0 %v14446_v42  ;;  %2495 = vmatmul.mubr.f32.gmra.mrb[10].mxu1 %v2242_v1  ;;  %v2244_v42 = vld [vmem:[%s16502_s3 + $0xc0] sm:$0xff] }
 0x1eb   : > { %v9214_v9 = vpack.c.bf16 %v10186_v33, %v10185_v47  ;;  %v9212_v25 = vpack.c.bf16 %v10181_v56, %v10180_v38  ;;  %2390 = vmatmul.mubr.f32.gmra.mrb[10].mxu0 %v2240_v52  ;;  %10298 = vrot.lane.b32.xlu1 %v14436_v34, %s11151_s21 }
 0x1ec   : > { %10303 = vrot.lane.b32.xlu0 %v14452_v12, %s11151_s21  ;;  %2394 = vmatprep.mubr.f32.mxu0 %v2245_v37 }
 0x1ed   : > { %9213 = vmatprep.subr.bf16.mxu1 %v9212_v25  ;;  %2499 = vmatprep.mubr.f32.mxu1 %v2247_v27 }
 0x1ee   : > { %9215 = vmatpush3.bf16.msra.mxu1 %v9214_v9 }
 0x1ef   : > { %2395 = vmatmul.mubr.f32.gmra.mrb[12].mxu0 %v2244_v42  ;;  %2500 = vmatmul.mubr.f32.gmra.mrb[12].mxu1 %v2246_v5 }
 0x1f0   : > { %10308 = vrot.lane.b32.xlu1 %v14477_v19, %s11151_s21  ;;  %2399 = vmatprep.mubr.f32.mxu0 %v2249_v57 }
 0x1f1   : > { %10313 = vrot.lane.b32.xlu0 %v14479_v23, %s11151_s21  ;;  %2504 = vmatprep.mubr.f32.mxu1 %v2251_v7 }
 0x1f3   : > { %2400 = vmatmul.mubr.f32.gmra.mrb[14].mxu0 %v2248_v3  ;;  %2505 = vmatmul.mubr.f32.gmra.mrb[14].mxu1 %v2250_v62 }
 0x1f4   : > { %10318 = vrot.lane.b32.xlu1 %v14489_v54, %s11151_s21  ;;  %2759 = vmatprep.mubr.f32.mxu0 %v7683_v43 }
 0x1f5   : > { %10323 = vrot.lane.b32.xlu0 %v14515_v55, %s11151_s21  ;;  %2864 = vmatprep.mubr.f32.mxu1 %v7685_v59  ;;  %v7682_v59 = vld [vmem:[%s16502_s3 + $0x100] sm:$0xff] }
 0x1f8   : > { %10328 = vrot.lane.b32.xlu1 %v14517_v11, %s11151_s21 }
 0x1f9   : > { %10333 = vrot.lane.b32.xlu0 %v14527_v32, %s11151_s21 }
 0x1fa   : > { %v10189_v45 = vpop.permute.xlu1 %10188  ;;  %v10194_v28 = vpop.permute.xlu0 %10193 }
 0x1fb   : > { %v10191_v15 = vunpack.i.h.bf16 %v10189_v45  ;;  %v10190_v16 = vunpack.i.l.bf16 %v10189_v45  ;;  %v10196_v56 = vunpack.i.h.bf16 %v10194_v28  ;;  %v10195_v38 = vunpack.i.l.bf16 %v10194_v28  ;;  %v7687_v28 = vld [vmem:[%s16502_s3 + $0x128] sm:$0xff] }
 0x1fc   : > { %10338 = vrot.lane.b32.xlu1 %v14545_v61, %s11151_s21 }
 0x1fd   : > { %10343 = vrot.lane.b32.xlu0 %v14547_v4, %s11151_s21  ;;  %v9184_v33 = vpack.c.bf16 %v10191_v15, %v10190_v16  ;;  %v9216_v47 = vpack.c.bf16 %v10196_v56, %v10195_v38 }
 0x1ff   : > { %v10199_v52 = vpop.permute.xlu1 %10198  ;;  %9185 = vmatprep.subr.bf16.mxu0 %v9184_v33  ;;  %9217 = vmatprep.subr.bf16.mxu1 %v9216_v47 }
 0x200   : > { %10348 = vrot.lane.b32.xlu1 %v14557_v13, %s11151_s21  ;;  %v10201_v1 = vunpack.i.h.bf16 %v10199_v52  ;;  %v10200_v9 = vunpack.i.l.bf16 %v10199_v52  ;;  %9187 = vmatpush3.bf16.msra.mxu0 %v14485_v63  ;;  %v2257_v63 = vld [vmem:[%s16503_s4 + $0x28] sm:$0xff] }
 0x201   : > { %10353 = vrot.lane.b32.xlu0 %v13902_v10, %s11152_s26 }
 0x202   : > { %v9218_v25 = vpack.c.bf16 %v10201_v1, %v10200_v9  ;;  %v7686_v1 = vld [vmem:[%s16502_s3 + $0x120] sm:$0xff] }
 0x204   : > { %10358 = vrot.lane.b32.xlu1 %v14128_v6, %s11152_s26  ;;  %9219 = vmatpush3.bf16.msra.mxu1 %v9218_v25  ;;  %v7689_v25 = vld [vmem:[%s16502_s3 + $0x138] sm:$0xff] }
 0x205   : > { %10363 = vrot.lane.b32.xlu0 %v14108_v41, %s11152_s26 }
 0x208   : > { %10368 = vrot.lane.b32.xlu1 %v14170_v31, %s11152_s26 }
 0x209   : > { %10373 = vrot.lane.b32.xlu0 %v14198_v17, %s11152_s26  ;;  %v11153_v17 = vmov 0  }
 0x20a   : > { %10472 = vset.pattern.permute.xlu0 %v11153_v17  ;;  %10473 = vset.pattern.permute.xlu1 %v11153_v17 }
 0x20c   : > { %10378 = vrot.lane.b32.xlu1 %v14243_v58, %s11152_s26 }
 0x20d   : > { %10383 = vrot.lane.b32.xlu0 %v14257_v40, %s11152_s26 }
 0x210   : > { %10388 = vrot.lane.b32.xlu1 %v14293_v39, %s11152_s26 }
 0x211   : > { %10393 = vrot.lane.b32.xlu0 %v14312_v0, %s11152_s26 }
 0x214   : > { %10398 = vrot.lane.b32.xlu1 %v14372_v35, %s11152_s26 }
 0x215   : > { %10403 = vrot.lane.b32.xlu0 %v14374_v36, %s11152_s26 }
 0x218   : > { %10408 = vrot.lane.b32.xlu1 %v14393_v44, %s11152_s26 }
 0x219   : > { %10413 = vrot.lane.b32.xlu0 %v14434_v53, %s11152_s26 }
 0x21a   : > { %v10204_v10 = vpop.permute.xlu0 %10203  ;;  %v10209_v31 = vpop.permute.xlu1 %10208 }
 0x21b   : > { %v10206_v41 = vunpack.i.h.bf16 %v10204_v10  ;;  %v10205_v6 = vunpack.i.l.bf16 %v10204_v10  ;;  %v10211_v58 = vunpack.i.h.bf16 %v10209_v31  ;;  %v10210_v40 = vunpack.i.l.bf16 %v10209_v31 }
 0x21c   : > { %10418 = vrot.lane.b32.xlu1 %v14436_v34, %s11152_s26  ;;  %v2252_v34 = vld [vmem:[%s16503_s4] sm:$0xff] }
 0x21d   : > { %10423 = vrot.lane.b32.xlu0 %v14452_v12, %s11152_s26  ;;  %v9188_v39 = vpack.c.bf16 %v10206_v41, %v10205_v6  ;;  %v9220_v35 = vpack.c.bf16 %v10211_v58, %v10210_v40  ;;  %v2253_v12 = vld [vmem:[%s16503_s4 + $0x8] sm:$0xff] }
 0x21e   : > { %v7691_v6 = vld [vmem:[%s16502_s3 + $0x148] sm:$0xff] }
 0x21f   : > { %v10214_v0 = vpop.permute.xlu0 %10213  ;;  %9189 = vmatprep.subr.bf16.mxu0 %v9188_v39  ;;  %9221 = vmatprep.subr.bf16.mxu1 %v9220_v35 }
 0x220   : > { %10428 = vrot.lane.b32.xlu1 %v14477_v19, %s11152_s26  ;;  %v10216_v36 = vunpack.i.h.bf16 %v10214_v0  ;;  %v10215_v44 = vunpack.i.l.bf16 %v10214_v0  ;;  %9191 = vmatpush3.bf16.msra.mxu0 %v14523_v46  ;;  %v2255_v19 = vld [vmem:[%s16503_s4 + $0x18] sm:$0xff]  ;;  %v7690_v0 = vld [vmem:[%s16502_s3 + $0x140] sm:$0xff] }
 0x221   : > { %10433 = vrot.lane.b32.xlu0 %v14479_v23, %s11152_s26  ;;  %v2254_v23 = vld [vmem:[%s16503_s4 + $0x10] sm:$0xff] }
 0x222   : > { %v9222_v53 = vpack.c.bf16 %v10216_v36, %v10215_v44 }
 0x224   : > { %10438 = vrot.lane.b32.xlu1 %v14489_v54, %s11152_s26  ;;  %9223 = vmatpush3.bf16.msra.mxu1 %v9222_v53  ;;  %v2256_v54 = vld [vmem:[%s16503_s4 + $0x20] sm:$0xff]  ;;  %v7693_v53 = vld [vmem:[%s16502_s3 + $0x158] sm:$0xff] }
 0x225   : > { %10443 = vrot.lane.b32.xlu0 %v14515_v55, %s11152_s26  ;;  %v2259_v55 = vld [vmem:[%s16503_s4 + $0x38] sm:$0xff] }
 0x228   : > { %10448 = vrot.lane.b32.xlu1 %v14517_v11, %s11152_s26  ;;  %v2258_v11 = vld [vmem:[%s16503_s4 + $0x30] sm:$0xff] }
 0x229   : > { %10453 = vrot.lane.b32.xlu0 %v14527_v32, %s11152_s26 }
 0x22c   : > { %10458 = vrot.lane.b32.xlu1 %v14545_v61, %s11152_s26 }
 0x22d   : > { %10463 = vrot.lane.b32.xlu0 %v14547_v4, %s11152_s26 }
 0x230   : > { %10468 = vrot.lane.b32.xlu1 %v14557_v13, %s11152_s26 }
 0x231   : > { %2262 = vperm.xlu0 %10472, %v2252_v34   ;;  %v7695_v34 = vld [vmem:[%s16502_s3 + $0x168] sm:$0xff] }
 0x234   : > { %2267 = vperm.xlu1 %10473, %v2253_v12  }
 0x235   : > { %2277 = vperm.xlu0 %10472, %v2255_v19  }
 0x238   : > { %2272 = vperm.xlu1 %10473, %v2254_v23  }
 0x239   : > { %2287 = vperm.xlu0 %10472, %v2257_v63   ;;  %v7692_v63 = vld [vmem:[%s16502_s3 + $0x150] sm:$0xff] }
 0x23b   : > { %v10219_v46 = vpop.permute.xlu1 %10218  ;;  %v10224_v32 = vpop.permute.xlu0 %10223 }
 0x23c   : > { %2282 = vperm.xlu1 %10473, %v2256_v54   ;;  %v10221_v61 = vunpack.i.h.bf16 %v10219_v46  ;;  %v10220_v4 = vunpack.i.l.bf16 %v10219_v46  ;;  %v10226_v13 = vunpack.i.h.bf16 %v10224_v32  ;;  %v10225_v37 = vunpack.i.l.bf16 %v10224_v32  ;;  %v7697_v32 = vld [vmem:[%s16502_s3 + $0x178] sm:$0xff] }
 0x23d   : > { %2297 = vperm.xlu0 %10472, %v2259_v55  }
 0x23e   : > { %v9192_v27 = vpack.c.bf16 %v10221_v61, %v10220_v4  ;;  %v9224_v42 = vpack.c.bf16 %v10226_v13, %v10225_v37  ;;  %v7699_v13 = vld [vmem:[%s16502_s3 + $0x188] sm:$0xff] }
 0x240   : > { %2292 = vperm.xlu1 %10473, %v2258_v11   ;;  %v10229_v5 = vpop.permute.xlu1 %10228  ;;  %9193 = vmatprep.subr.bf16.mxu0 %v9192_v27  ;;  %v7694_v11 = vld [vmem:[%s16502_s3 + $0x160] sm:$0xff] }
 0x241   : > { %v10231_v57 = vunpack.i.h.bf16 %v10229_v5  ;;  %v10230_v7 = vunpack.i.l.bf16 %v10229_v5  ;;  %v10234_v3 = vpop.permute.xlu0 %10233  ;;  %9225 = vmatprep.subr.bf16.mxu1 %v9224_v42  ;;  %9195 = vmatpush3.bf16.msra.mxu0 %v14553_v51  ;;  %v7684_v51 = vld [vmem:[%s16502_s3 + $0x110] sm:$0xff] }
 0x242   : > { %v10236_v62 = vunpack.i.h.bf16 %v10234_v3  ;;  %v10235_v43 = vunpack.i.l.bf16 %v10234_v3  ;;  %v7696_v42 = vld [vmem:[%s16502_s3 + $0x170] sm:$0xff] }
 0x243   : > { %v9226_v45 = vpack.c.bf16 %v10231_v57, %v10230_v7  ;;  %v7698_v7 = vld [vmem:[%s16502_s3 + $0x180] sm:$0xff] }
 0x244   : > { %v10239_v15 = vpop.permute.xlu1 %10238  ;;  %v9228_v16 = vpack.c.bf16 %v10236_v62, %v10235_v43  ;;  %2760 = vmatmul.mubr.f32.vlgmr.msra.gmra.mrb[16].mxu0 %v7682_v59  ;;  %v7701_v62 = vld [vmem:[%s16502_s3 + $0x198] sm:$0xff] }
 0x245   : > { %v10241_v56 = vunpack.i.h.bf16 %v10239_v15  ;;  %v10240_v38 = vunpack.i.l.bf16 %v10239_v15  ;;  %v10244_v33 = vpop.permute.xlu0 %10243  ;;  %9227 = vmatpush3.bf16.msra.mxu1 %v9226_v45  ;;  %2764 = vmatprep.mubr.f32.mxu0 %v7687_v28  ;;  %v7703_v45 = vld [vmem:[%s16502_s3 + $0x1a8] sm:$0xff] }
 0x246   : > { %v10246_v47 = vunpack.i.h.bf16 %v10244_v33  ;;  %v10245_v52 = vunpack.i.l.bf16 %v10244_v33  ;;  %9229 = vmatprep.subr.bf16.mxu0 %v9228_v16  ;;  %v7702_v33 = vld [vmem:[%s16502_s3 + $0x1a0] sm:$0xff] }
 0x247   : > { %9231 = vmatpush3.bf16.msra.mxu0 %v14287_v50  ;;  %v9260_v9 = vpack.c.bf16 %v10241_v56, %v10240_v38  ;;  %v7688_v50 = vld [vmem:[%s16502_s3 + $0x130] sm:$0xff] }
 0x248   : > { %v9262_v10 = vpack.c.bf16 %v10246_v47, %v10245_v52  ;;  %2865 = vmatmul.mubr.f32.vlgmr.msra.gmra.mrb[16].mxu1 %v7684_v51  ;;  %2765 = vmatmul.mubr.f32.gmra.mrb[18].mxu0 %v7686_v1  ;;  %v7705_v1 = vld [vmem:[%s16502_s3 + $0x1b8] sm:$0xff] }
 0x249   : > { %v10249_v41 = vpop.permute.xlu1 %10248  ;;  %v10254_v58 = vpop.permute.xlu0 %10253  ;;  %9261 = vmatprep.subr.bf16.mxu1 %v9260_v9  ;;  %2869 = vmatprep.mubr.f32.mxu1 %v7689_v25  ;;  %v7707_v9 = vld [vmem:[%s16502_s3 + $0x1c8] sm:$0xff] }
 0x24a   : > { %v10251_v31 = vunpack.i.h.bf16 %v10249_v41  ;;  %v10250_v17 = vunpack.i.l.bf16 %v10249_v41  ;;  %v10256_v40 = vunpack.i.h.bf16 %v10254_v58  ;;  %v10255_v39 = vunpack.i.l.bf16 %v10254_v58  ;;  %9263 = vmatpush3.bf16.msra.mxu1 %v9262_v10  ;;  %2769 = vmatprep.mubr.f32.mxu0 %v7691_v6  ;;  %v7704_v6 = vld [vmem:[%s16502_s3 + $0x1b0] sm:$0xff]  ;;  %v7706_v58 = vld [vmem:[%s16502_s3 + $0x1c0] sm:$0xff] }
 0x24c   : > { %v9232_v35 = vpack.c.bf16 %v10251_v31, %v10250_v17  ;;  %2870 = vmatmul.mubr.f32.gmra.mrb[18].mxu1 %v7688_v50  ;;  %v9264_v44 = vpack.c.bf16 %v10256_v40, %v10255_v39  ;;  %2770 = vmatmul.mubr.f32.gmra.mrb[20].mxu0 %v7690_v0  ;;  %v7709_v40 = vld [vmem:[%s16502_s3 + $0x1d8] sm:$0xff] }
 0x24d   : > { %v10259_v36 = vpop.permute.xlu1 %10258  ;;  %2874 = vmatprep.mubr.f32.mxu1 %v7693_v53  ;;  %2774 = vmatprep.mubr.f32.mxu0 %v7695_v34  ;;  %v7708_v53 = vld [vmem:[%s16502_s3 + $0x1d0] sm:$0xff] }
 0x24e   : > { %v10261_v12 = vunpack.i.h.bf16 %v10259_v36  ;;  %v10260_v19 = vunpack.i.l.bf16 %v10259_v36  ;;  %v10264_v23 = vpop.permute.xlu0 %10263  ;;  %9233 = vmatprep.subr.bf16.mxu0 %v9232_v35  ;;  %9265 = vmatprep.subr.bf16.mxu1 %v9264_v44  ;;  %v7711_v35 = vld [vmem:[%s16502_s3 + $0x1e8] sm:$0xff] }
 0x24f   : > { %v10266_v54 = vunpack.i.h.bf16 %v10264_v23  ;;  %v10265_v55 = vunpack.i.l.bf16 %v10264_v23  ;;  %9235 = vmatpush3.bf16.msra.mxu0 %v14329_v26 }
 0x250   : > { %v9266_v46 = vpack.c.bf16 %v10261_v12, %v10260_v19  ;;  %2875 = vmatmul.mubr.f32.gmra.mrb[20].mxu1 %v7692_v63  ;;  %2775 = vmatmul.mubr.f32.gmra.mrb[22].mxu0 %v7694_v11  ;;  %v7710_v19 = vld [vmem:[%s16502_s3 + $0x1e0] sm:$0xff]  ;;  %v7713_v63 = vld [vmem:[%s16502_s3 + $0x1f8] sm:$0xff]  ;;  %v7715_v11 = vld [vmem:[%s16502_s3 + $0x208] sm:$0xff] }
 0x251   : > { %v10269_v61 = vpop.permute.xlu1 %10268  ;;  %v9236_v4 = vpack.c.bf16 %v10266_v54, %v10265_v55  ;;  %2879 = vmatprep.mubr.f32.mxu1 %v7697_v32  ;;  %2779 = vmatprep.mubr.f32.mxu0 %v7699_v13 }
 0x252   : > { %v10271_v37 = vunpack.i.h.bf16 %v10269_v61  ;;  %v10270_v26 = vunpack.i.l.bf16 %v10269_v61  ;;  %v10274_v27 = vpop.permute.xlu0 %10273  ;;  %9267 = vmatpush3.bf16.msra.mxu1 %v9266_v46 }
 0x253   : > { %v10276_v5 = vunpack.i.h.bf16 %v10274_v27  ;;  %v10275_v57 = vunpack.i.l.bf16 %v10274_v27  ;;  %9237 = vmatprep.subr.bf16.mxu0 %v9236_v4 }
 0x254   : > { %9239 = vmatpush3.bf16.msra.mxu0 %v14350_v24  ;;  %v9268_v3 = vpack.c.bf16 %v10271_v37, %v10270_v26  ;;  %2880 = vmatmul.mubr.f32.gmra.mrb[22].mxu1 %v7696_v42  ;;  %v7700_v24 = vld [vmem:[%s16502_s3 + $0x190] sm:$0xff]  ;;  %v7717_v37 = vld [vmem:[%s16502_s3 + $0x218] sm:$0xff] }
 0x255   : > { %v9270_v43 = vpack.c.bf16 %v10276_v5, %v10275_v57  ;;  %v10279_v59 = vpop.permute.xlu1 %10278  ;;  %2780 = vmatmul.mubr.f32.gmra.mrb[24].mxu0 %v7698_v7  ;;  %2884 = vmatprep.mubr.f32.mxu1 %v7701_v62 }
 0x256   : > { %v10281_v28 = vunpack.i.h.bf16 %v10279_v59  ;;  %v10280_v15 = vunpack.i.l.bf16 %v10279_v59  ;;  %v10284_v16 = vpop.permute.xlu0 %10283  ;;  %9269 = vmatprep.subr.bf16.mxu1 %v9268_v3  ;;  %2784 = vmatprep.mubr.f32.mxu0 %v7703_v45 }
 0x257   : > { %v10286_v56 = vunpack.i.h.bf16 %v10284_v16  ;;  %v10285_v38 = vunpack.i.l.bf16 %v10284_v16  ;;  %9271 = vmatpush3.bf16.msra.mxu1 %v9270_v43 }
 0x258   : > { %v9240_v51 = vpack.c.bf16 %v10281_v28, %v10280_v15  ;;  %2885 = vmatmul.mubr.f32.gmra.mrb[24].mxu1 %v7700_v24 }
 0x259   : > { %v10289_v47 = vpop.permute.xlu1 %10288  ;;  %v9272_v52 = vpack.c.bf16 %v10286_v56, %v10285_v38  ;;  %2785 = vmatmul.mubr.f32.gmra.mrb[26].mxu0 %v7702_v33  ;;  %2889 = vmatprep.mubr.f32.mxu1 %v7705_v1 }
 0x25a   : > { %v10291_v25 = vunpack.i.h.bf16 %v10289_v47  ;;  %v10290_v10 = vunpack.i.l.bf16 %v10289_v47  ;;  %v10294_v41 = vpop.permute.xlu0 %10293  ;;  %9241 = vmatprep.subr.bf16.mxu0 %v9240_v51  ;;  %2789 = vmatprep.mubr.f32.mxu0 %v7707_v9 }
 0x25b   : > { %v10296_v31 = vunpack.i.h.bf16 %v10294_v41  ;;  %v10295_v17 = vunpack.i.l.bf16 %v10294_v41  ;;  %9273 = vmatprep.subr.bf16.mxu1 %v9272_v52  ;;  %9243 = vmatpush3.bf16.msra.mxu0 %v14410_v60 }
 0x25c   : > { %v9274_v50 = vpack.c.bf16 %v10291_v25, %v10290_v10  ;;  %2890 = vmatmul.mubr.f32.gmra.mrb[26].mxu1 %v7704_v6 }
 0x25d   : > { %v10299_v39 = vpop.permute.xlu1 %10298  ;;  %v9244_v0 = vpack.c.bf16 %v10296_v31, %v10295_v17  ;;  %2790 = vmatmul.mubr.f32.gmra.mrb[28].mxu0 %v7706_v58  ;;  %2894 = vmatprep.mubr.f32.mxu1 %v7709_v40 }
 0x25e   : > { %v10301_v36 = vunpack.i.h.bf16 %v10299_v39  ;;  %v10300_v60 = vunpack.i.l.bf16 %v10299_v39  ;;  %v10304_v44 = vpop.permute.xlu0 %10303  ;;  %9275 = vmatpush3.bf16.msra.mxu1 %v9274_v50  ;;  %2794 = vmatprep.mubr.f32.mxu0 %v7711_v35  ;;  %v7719_v39 = vld [vmem:[%s16502_s3 + $0x228] sm:$0xff] }
 0x25f   : > { %v10306_v34 = vunpack.i.h.bf16 %v10304_v44  ;;  %v10305_v12 = vunpack.i.l.bf16 %v10304_v44  ;;  %9245 = vmatprep.subr.bf16.mxu0 %v9244_v0 }
 0x260   : > { %9247 = vmatpush3.bf16.msra.mxu0 %v14462_v2  ;;  %v9276_v23 = vpack.c.bf16 %v10301_v36, %v10300_v60  ;;  %2895 = vmatmul.mubr.f32.gmra.mrb[28].mxu1 %v7708_v53  ;;  %v7712_v2 = vld [vmem:[%s16502_s3 + $0x1f0] sm:$0xff] }
 0x261   : > { %v9278_v54 = vpack.c.bf16 %v10306_v34, %v10305_v12  ;;  %2795 = vmatmul.mubr.f32.gmra.mrb[30].mxu0 %v7710_v19  ;;  %2899 = vmatprep.mubr.f32.mxu1 %v7713_v63  ;;  %v7718_v12 = vld [vmem:[%s16502_s3 + $0x220] sm:$0xff] }
 0x262   : > { %v10309_v55 = vpop.permute.xlu1 %10308  ;;  %9277 = vmatprep.subr.bf16.mxu1 %v9276_v23  ;;  %3154 = vmatprep.mubr.f32.mxu0 %v7715_v11  ;;  %v7721_v23 = vld [vmem:[%s16502_s3 + $0x238] sm:$0xff] }
 0x263   : > { %v10311_v46 = vunpack.i.h.bf16 %v10309_v55  ;;  %v10310_v32 = vunpack.i.l.bf16 %v10309_v55  ;;  %v10314_v61 = vpop.permute.xlu0 %10313  ;;  %9279 = vmatpush3.bf16.msra.mxu1 %v9278_v54  ;;  %v7723_v55 = vld [vmem:[%s16502_s3 + $0x248] sm:$0xff] }
 0x264   : > { %v10316_v4 = vunpack.i.h.bf16 %v10314_v61  ;;  %v10315_v13 = vunpack.i.l.bf16 %v10314_v61  ;;  %2900 = vmatmul.mubr.f32.gmra.mrb[30].mxu1 %v7712_v2 }
 0x265   : > { %v9248_v26 = vpack.c.bf16 %v10311_v46, %v10310_v32  ;;  %3259 = vmatprep.mubr.f32.mxu1 %v7717_v37 }
 0x266   : > { %v10319_v27 = vpop.permute.xlu1 %10318  ;;  %v9280_v42 = vpack.c.bf16 %v10316_v4, %v10315_v13  ;;  %v7722_v4 = vld [vmem:[%s16502_s3 + $0x240] sm:$0xff] }
 0x267   : > { %v10321_v5 = vunpack.i.h.bf16 %v10319_v27  ;;  %v10320_v57 = vunpack.i.l.bf16 %v10319_v27  ;;  %v10324_v7 = vpop.permute.xlu0 %10323  ;;  %9249 = vmatprep.subr.bf16.mxu0 %v9248_v26  ;;  %v7725_v27 = vld [vmem:[%s16502_s3 + $0x258] sm:$0xff] }
 0x268   : > { %v10326_v3 = vunpack.i.h.bf16 %v10324_v7  ;;  %v10325_v62 = vunpack.i.l.bf16 %v10324_v7  ;;  %9281 = vmatprep.subr.bf16.mxu1 %v9280_v42  ;;  %9251 = vmatpush3.bf16.msra.mxu0 %v14499_v49  ;;  %v7727_v42 = vld [vmem:[%s16502_s3 + $0x268] sm:$0xff] }
 0x269   : > { %v9282_v43 = vpack.c.bf16 %v10321_v5, %v10320_v57 }
 0x26a   : > { %v10329_v59 = vpop.permute.xlu1 %10328  ;;  %v9252_v45 = vpack.c.bf16 %v10326_v3, %v10325_v62  ;;  %v7724_v3 = vld [vmem:[%s16502_s3 + $0x250] sm:$0xff] }
 0x26b   : > { %v10331_v28 = vunpack.i.h.bf16 %v10329_v59  ;;  %v10330_v15 = vunpack.i.l.bf16 %v10329_v59  ;;  %v10334_v16 = vpop.permute.xlu0 %10333  ;;  %9283 = vmatpush3.bf16.msra.mxu1 %v9282_v43  ;;  %v7726_v59 = vld [vmem:[%s16502_s3 + $0x260] sm:$0xff] }
 0x26c   : > { %v10336_v24 = vunpack.i.h.bf16 %v10334_v16  ;;  %v10335_v56 = vunpack.i.l.bf16 %v10334_v16  ;;  %9253 = vmatprep.subr.bf16.mxu0 %v9252_v45 }
 0x26d   : > { %9255 = vmatpush3.bf16.msra.mxu0 %v14540_v30  ;;  %v9284_v38 = vpack.c.bf16 %v10331_v28, %v10330_v15  ;;  %v7714_v30 = vld [vmem:[%s16502_s3 + $0x200] sm:$0xff]  ;;  %v7729_v28 = vld [vmem:[%s16502_s3 + $0x278] sm:$0xff] }
 0x26e   : > { %v9286_v33 = vpack.c.bf16 %v10336_v24, %v10335_v56  ;;  %v10339_v51 = vpop.permute.xlu1 %10338  ;;  %v7731_v24 = vld [vmem:[%s16502_s3 + $0x288] sm:$0xff] }
 0x26f   : > { %v10341_v47 = vunpack.i.h.bf16 %v10339_v51  ;;  %v10340_v52 = vunpack.i.l.bf16 %v10339_v51  ;;  %v10344_v1 = vpop.permute.xlu0 %10343  ;;  %9285 = vmatprep.subr.bf16.mxu1 %v9284_v38 }
 0x270   : > { %v10346_v49 = vunpack.i.h.bf16 %v10344_v1  ;;  %v10345_v9 = vunpack.i.l.bf16 %v10344_v1  ;;  %9287 = vmatpush3.bf16.msra.mxu1 %v9286_v33  ;;  %v7728_v33 = vld [vmem:[%s16502_s3 + $0x270] sm:$0xff] }
 0x271   : > { %v9256_v25 = vpack.c.bf16 %v10341_v47, %v10340_v52  ;;  %v7730_v52 = vld [vmem:[%s16502_s3 + $0x280] sm:$0xff] }
 0x272   : > { %v10349_v10 = vpop.permute.xlu1 %10348  ;;  %v9288_v41 = vpack.c.bf16 %v10346_v49, %v10345_v9  ;;  %v7733_v49 = vld [vmem:[%s16502_s3 + $0x298] sm:$0xff] }
 0x273   : > { %v10351_v6 = vunpack.i.h.bf16 %v10349_v10  ;;  %v10350_v31 = vunpack.i.l.bf16 %v10349_v10  ;;  %v10354_v17 = vpop.permute.xlu0 %10353  ;;  %9257 = vmatprep.subr.bf16.mxu0 %v9256_v25  ;;  %v7735_v10 = vld [vmem:[%s16502_s3 + $0x2a8] sm:$0xff] }
 0x274   : > { %v10356_v58 = vunpack.i.h.bf16 %v10354_v17  ;;  %v10355_v50 = vunpack.i.l.bf16 %v10354_v17  ;;  %9289 = vmatprep.subr.bf16.mxu1 %v9288_v41  ;;  %9259 = vmatpush3.bf16.msra.mxu0 %v14567_v22  ;;  %v7716_v22 = vld [vmem:[%s16502_s3 + $0x210] sm:$0xff] }
 0x275   : > { %v9290_v40 = vpack.c.bf16 %v10351_v6, %v10350_v31 }
 0x276   : > { %v10359_v0 = vpop.permute.xlu1 %10358  ;;  %v9292_v35 = vpack.c.bf16 %v10356_v58, %v10355_v50  ;;  %v7734_v50 = vld [vmem:[%s16502_s3 + $0x2a0] sm:$0xff] }
 0x277   : > { %v10361_v36 = vunpack.i.h.bf16 %v10359_v0  ;;  %v10360_v60 = vunpack.i.l.bf16 %v10359_v0  ;;  %v10364_v44 = vpop.permute.xlu0 %10363  ;;  %3155 = vmatmul.mubr.f32.vlgmr.msra.gmra.mrb[32].mxu0 %v7714_v30  ;;  %9291 = vmatpush3.bf16.msra.mxu1 %v9290_v40  ;;  %v7737_v0 = vld [vmem:[%s16502_s3 + $0x2b8] sm:$0xff] }
 0x278   : > { %v10366_v53 = vunpack.i.h.bf16 %v10364_v44  ;;  %v10365_v34 = vunpack.i.l.bf16 %v10364_v44  ;;  %9293 = vmatprep.subr.bf16.mxu0 %v9292_v35  ;;  %3159 = vmatprep.mubr.f32.mxu0 %v7719_v39  ;;  %v7739_v35 = vld [vmem:[%s16502_s3 + $0x2c8] sm:$0xff] }
 0x279   : > { %9295 = vmatpush3.bf16.msra.mxu0 %v14285_v48  ;;  %v9324_v19 = vpack.c.bf16 %v10361_v36, %v10360_v60  ;;  %v7720_v48 = vld [vmem:[%s16502_s3 + $0x230] sm:$0xff] }
 0x27a   : > { %v9326_v63 = vpack.c.bf16 %v10366_v53, %v10365_v34  ;;  %v10369_v54 = vpop.permute.xlu1 %10368  ;;  %3260 = vmatmul.mubr.f32.vlgmr.msra.gmra.mrb[32].mxu1 %v7716_v22  ;;  %v7736_v22 = vld [vmem:[%s16502_s3 + $0x2b0] sm:$0xff] }
 0x27b   : > { %v10371_v11 = vunpack.i.h.bf16 %v10369_v54  ;;  %v10370_v46 = vunpack.i.l.bf16 %v10369_v54  ;;  %v10374_v32 = vpop.permute.xlu0 %10373  ;;  %3160 = vmatmul.mubr.f32.gmra.mrb[34].mxu0 %v7718_v12  ;;  %9325 = vmatprep.subr.bf16.mxu1 %v9324_v19  ;;  %v7738_v12 = vld [vmem:[%s16502_s3 + $0x2c0] sm:$0xff] }
 0x27c   : > { %v10376_v61 = vunpack.i.h.bf16 %v10374_v32  ;;  %v10375_v2 = vunpack.i.l.bf16 %v10374_v32  ;;  %9327 = vmatpush3.bf16.msra.mxu1 %v9326_v63  ;;  %3264 = vmatprep.mubr.f32.mxu1 %v7721_v23  ;;  %v7741_v23 = vld [vmem:[%s16502_s3 + $0x2d8] sm:$0xff]  ;;  %v7740_v32 = vld [vmem:[%s16502_s3 + $0x2d0] sm:$0xff] }
 0x27d   : > { %3164 = vmatprep.mubr.f32.mxu0 %v7723_v55  ;;  %v9296_v13 = vpack.c.bf16 %v10371_v11, %v10370_v46  ;;  %v7743_v55 = vld [vmem:[%s16502_s3 + $0x2e8] sm:$0xff] }
 0x27e   : > { %v10379_v37 = vpop.permute.xlu1 %10378  ;;  %3265 = vmatmul.mubr.f32.gmra.mrb[34].mxu1 %v7720_v48  ;;  %v9328_v26 = vpack.c.bf16 %v10376_v61, %v10375_v2  ;;  %v7742_v2 = vld [vmem:[%s16502_s3 + $0x2e0] sm:$0xff] }
 0x27f   : > { %v10381_v5 = vunpack.i.h.bf16 %v10379_v37  ;;  %v10380_v57 = vunpack.i.l.bf16 %v10379_v37  ;;  %v10384_v7 = vpop.permute.xlu0 %10383  ;;  %3165 = vmatmul.mubr.f32.gmra.mrb[36].mxu0 %v7722_v4  ;;  %9297 = vmatprep.subr.bf16.mxu0 %v9296_v13  ;;  %v7745_v13 = vld [vmem:[%s16502_s3 + $0x2f8] sm:$0xff] }
 0x280   : > { %v10386_v62 = vunpack.i.h.bf16 %v10384_v7  ;;  %v10385_v43 = vunpack.i.l.bf16 %v10384_v7  ;;  %9329 = vmatprep.subr.bf16.mxu1 %v9328_v26  ;;  %9299 = vmatpush3.bf16.msra.mxu0 %v14327_v29 }
 0x281   : > { %v9330_v45 = vpack.c.bf16 %v10381_v5, %v10380_v57  ;;  %3269 = vmatprep.mubr.f32.mxu1 %v7725_v27  ;;  %3169 = vmatprep.mubr.f32.mxu0 %v7727_v42  ;;  %v7747_v27 = vld [vmem:[%s16502_s3 + $0x308] sm:$0xff] }
 0x282   : > { %v10389_v15 = vpop.permute.xlu1 %10388  ;;  %3270 = vmatmul.mubr.f32.gmra.mrb[36].mxu1 %v7724_v3  ;;  %v9300_v16 = vpack.c.bf16 %v10386_v62, %v10385_v43  ;;  %v7749_v62 = vld [vmem:[%s16502_s3 + $0x318] sm:$0xff] }
 0x283   : > { %v10391_v56 = vunpack.i.h.bf16 %v10389_v15  ;;  %v10390_v29 = vunpack.i.l.bf16 %v10389_v15  ;;  %v10394_v38 = vpop.permute.xlu0 %10393  ;;  %3170 = vmatmul.mubr.f32.gmra.mrb[38].mxu0 %v7726_v59  ;;  %9331 = vmatpush3.bf16.msra.mxu1 %v9330_v45 }
 0x284   : > { %v10396_v51 = vunpack.i.h.bf16 %v10394_v38  ;;  %v10395_v47 = vunpack.i.l.bf16 %v10394_v38  ;;  %9301 = vmatprep.subr.bf16.mxu0 %v9300_v16  ;;  %3274 = vmatprep.mubr.f32.mxu1 %v7729_v28 }
 0x285   : > { %9303 = vmatpush3.bf16.msra.mxu0 %v14344_v21  ;;  %3174 = vmatprep.mubr.f32.mxu0 %v7731_v24  ;;  %v9332_v1 = vpack.c.bf16 %v10391_v56, %v10390_v29  ;;  %v7732_v21 = vld [vmem:[%s16502_s3 + $0x290] sm:$0xff] }
 0x286   : > { %v9334_v9 = vpack.c.bf16 %v10396_v51, %v10395_v47  ;;  %v10399_v25 = vpop.permute.xlu1 %10398  ;;  %3275 = vmatmul.mubr.f32.gmra.mrb[38].mxu1 %v7728_v33 }
 0x287   : > { %v10401_v41 = vunpack.i.h.bf16 %v10399_v25  ;;  %v10400_v6 = vunpack.i.l.bf16 %v10399_v25  ;;  %v10404_v31 = vpop.permute.xlu0 %10403  ;;  %3175 = vmatmul.mubr.f32.gmra.mrb[40].mxu0 %v7730_v52  ;;  %9333 = vmatprep.subr.bf16.mxu1 %v9332_v1 }
 0x288   : > { %v10406_v17 = vunpack.i.h.bf16 %v10404_v31  ;;  %v10405_v58 = vunpack.i.l.bf16 %v10404_v31  ;;  %9335 = vmatpush3.bf16.msra.mxu1 %v9334_v9  ;;  %3279 = vmatprep.mubr.f32.mxu1 %v7733_v49 }
 0x289   : > { %3179 = vmatprep.mubr.f32.mxu0 %v7735_v10  ;;  %v9304_v30 = vpack.c.bf16 %v10401_v41, %v10400_v6 }
 0x28a   : > { %v10409_v40 = vpop.permute.xlu1 %10408  ;;  %3280 = vmatmul.mubr.f32.gmra.mrb[40].mxu1 %v7732_v21  ;;  %v9336_v39 = vpack.c.bf16 %v10406_v17, %v10405_v58 }
 0x28b   : > { %v10411_v36 = vunpack.i.h.bf16 %v10409_v40  ;;  %v10410_v60 = vunpack.i.l.bf16 %v10409_v40  ;;  %v10414_v44 = vpop.permute.xlu0 %10413  ;;  %3180 = vmatmul.mubr.f32.gmra.mrb[42].mxu0 %v7734_v50  ;;  %9305 = vmatprep.subr.bf16.mxu0 %v9304_v30 }
 0x28c   : > { %v10416_v53 = vunpack.i.h.bf16 %v10414_v44  ;;  %v10415_v34 = vunpack.i.l.bf16 %v10414_v44  ;;  %9337 = vmatprep.subr.bf16.mxu1 %v9336_v39  ;;  %9307 = vmatpush3.bf16.msra.mxu0 %v14386_v14  ;;  %v16693_v39 = vld [vmem:[#allocation8_spill] sm:$0xff] }
 0x28d   : > { %v9338_v19 = vpack.c.bf16 %v10411_v36, %v10410_v60  ;;  %3284 = vmatprep.mubr.f32.mxu1 %v7737_v0  ;;  %3184 = vmatprep.mubr.f32.mxu0 %v7739_v35  ;;  %v7751_v35 = vld [vmem:[%s16502_s3 + $0x328] sm:$0xff] }
 0x28e   : > { %v10419_v63 = vpop.permute.xlu1 %10418  ;;  %3285 = vmatmul.mubr.f32.gmra.mrb[42].mxu1 %v7736_v22  ;;  %v9308_v54 = vpack.c.bf16 %v10416_v53, %v10415_v34  ;;  %v7748_v22 = vld [vmem:[%s16502_s3 + $0x310] sm:$0xff] }
 0x28f   : > { %v10421_v11 = vunpack.i.h.bf16 %v10419_v63  ;;  %v10420_v14 = vunpack.i.l.bf16 %v10419_v63  ;;  %v10424_v46 = vpop.permute.xlu0 %10423  ;;  %3185 = vmatmul.mubr.f32.gmra.mrb[44].mxu0 %v7738_v12  ;;  %9339 = vmatpush3.bf16.msra.mxu1 %v9338_v19  ;;  %v7778_v12 = vld [vmem:[%s16504_s5 + $0x18] sm:$0xff]  ;;  %v7779_v19 = vld [vmem:[%s16504_s5 + $0x20] sm:$0xff] }
 0x290   : > { %v10426_v48 = vunpack.i.h.bf16 %v10424_v46  ;;  %v10425_v61 = vunpack.i.l.bf16 %v10424_v46  ;;  %9309 = vmatprep.subr.bf16.mxu0 %v9308_v54  ;;  %3289 = vmatprep.mubr.f32.mxu1 %v7741_v23  ;;  %v7750_v23 = vld [vmem:[%s16502_s3 + $0x320] sm:$0xff]  ;;  %v7753_v63 = vld [vmem:[%s16502_s3 + $0x338] sm:$0xff] }
 0x291   : > { %9311 = vmatpush3.bf16.msra.mxu0 %v14448_v20  ;;  %3189 = vmatprep.mubr.f32.mxu0 %v7743_v55  ;;  %v9340_v4 = vpack.c.bf16 %v10421_v11, %v10420_v14  ;;  %v7744_v20 = vld [vmem:[%s16502_s3 + $0x2f0] sm:$0xff]  ;;  %v9356_v55 = vpack.c.bf16 %v7779_v19, %v7778_v12  ;;  %v7755_v11 = vld [vmem:[%s16502_s3 + $0x348] sm:$0xff] }
 0x292   : > { %v9342_v37 = vpack.c.bf16 %v10426_v48, %v10425_v61  ;;  %v10429_v26 = vpop.permute.xlu1 %10428  ;;  %3290 = vmatmul.mubr.f32.gmra.mrb[44].mxu1 %v7740_v32  ;;  %v7752_v32 = vld [vmem:[%s16502_s3 + $0x330] sm:$0xff]  ;;  %v7775_v12 = vld [vmem:[%s16502_s3 + $0x3e8] sm:$0xff] }
 0x293   : > { %v10431_v42 = vunpack.i.h.bf16 %v10429_v26  ;;  %v10430_v5 = vunpack.i.l.bf16 %v10429_v26  ;;  %v10434_v57 = vpop.permute.xlu0 %10433  ;;  %3190 = vmatmul.mubr.f32.gmra.mrb[46].mxu0 %v7742_v2  ;;  %9341 = vmatprep.subr.bf16.mxu1 %v9340_v4  ;;  %v7754_v2 = vld [vmem:[%s16502_s3 + $0x340] sm:$0xff]  ;;  %v7757_v4 = vld [vmem:[%s16502_s3 + $0x358] sm:$0xff]  ;;  %v7759_v26 = vld [vmem:[%s16502_s3 + $0x368] sm:$0xff] }
 0x294   : > { %v10436_v7 = vunpack.i.h.bf16 %v10434_v57  ;;  %v10435_v3 = vunpack.i.l.bf16 %v10434_v57  ;;  %9343 = vmatpush3.bf16.msra.mxu1 %v9342_v37  ;;  %3294 = vmatprep.mubr.f32.mxu1 %v7745_v13  ;;  %v7780_v57 = vld [vmem:[%s16504_s5 + $0x28] sm:$0x3f] }
 0x295   : > { %v9312_v43 = vpack.c.bf16 %v10431_v42, %v10430_v5  ;;  %3549 = vmatprep.mubr.f32.mxu0 %v7747_v27  ;;  %v7756_v42 = vld [vmem:[%s16502_s3 + $0x350] sm:$0xff] }
 0x296   : > { %v10439_v59 = vpop.permute.xlu1 %10438  ;;  %3295 = vmatmul.mubr.f32.gmra.mrb[46].mxu1 %v7744_v20  ;;  %v9344_v45 = vpack.c.bf16 %v10436_v7, %v10435_v3  ;;  %v7758_v20 = vld [vmem:[%s16502_s3 + $0x360] sm:$0xff]  ;;  %v7761_v7 = vld [vmem:[%s16502_s3 + $0x378] sm:$0xff] }
 0x297   : > { %v10441_v28 = vunpack.i.h.bf16 %v10439_v59  ;;  %v10440_v15 = vunpack.i.l.bf16 %v10439_v59  ;;  %v10444_v16 = vpop.permute.xlu0 %10443  ;;  %9313 = vmatprep.subr.bf16.mxu0 %v9312_v43  ;;  %3654 = vmatprep.mubr.f32.mxu1 %v7749_v62  ;;  %v7763_v43 = vld [vmem:[%s16502_s3 + $0x388] sm:$0xff] }
 0x298   : > { %v10446_v24 = vunpack.i.h.bf16 %v10444_v16  ;;  %v10445_v56 = vunpack.i.l.bf16 %v10444_v16  ;;  %9345 = vmatprep.subr.bf16.mxu1 %v9344_v45  ;;  %9315 = vmatpush3.bf16.msra.mxu0 %v14487_v8 }
 0x299   : > { %v9346_v29 = vpack.c.bf16 %v10441_v28, %v10440_v15  ;;  %v7760_v15 = vld [vmem:[%s16502_s3 + $0x370] sm:$0xff] }
 0x29a   : > { %v10449_v38 = vpop.permute.xlu1 %10448  ;;  %v9316_v33 = vpack.c.bf16 %v10446_v24, %v10445_v56 }
 0x29b   : > { %v10451_v51 = vunpack.i.h.bf16 %v10449_v38  ;;  %v10450_v47 = vunpack.i.l.bf16 %v10449_v38  ;;  %v10454_v52 = vpop.permute.xlu0 %10453  ;;  %9347 = vmatpush3.bf16.msra.mxu1 %v9346_v29  ;;  %v7762_v29 = vld [vmem:[%s16502_s3 + $0x380] sm:$0xff]  ;;  %v7765_v38 = vld [vmem:[%s16502_s3 + $0x398] sm:$0xff] }
 0x29c   : > { %v10456_v1 = vunpack.i.h.bf16 %v10454_v52  ;;  %v10455_v49 = vunpack.i.l.bf16 %v10454_v52  ;;  %9317 = vmatprep.subr.bf16.mxu0 %v9316_v33 }
 0x29d   : > { %9319 = vmatpush3.bf16.msra.mxu0 %v14525_v18  ;;  %v9348_v9 = vpack.c.bf16 %v10451_v51, %v10450_v47  ;;  %v7746_v18 = vld [vmem:[%s16502_s3 + $0x300] sm:$0xff]  ;;  %v7767_v47 = vld [vmem:[%s16502_s3 + $0x3a8] sm:$0xff] }
 0x29e   : > { %v9350_v25 = vpack.c.bf16 %v10456_v1, %v10455_v49  ;;  %v10459_v10 = vpop.permute.xlu1 %10458 }
 0x29f   : > { %v10461_v41 = vunpack.i.h.bf16 %v10459_v10  ;;  %v10460_v6 = vunpack.i.l.bf16 %v10459_v10  ;;  %v10464_v31 = vpop.permute.xlu0 %10463  ;;  %9349 = vmatprep.subr.bf16.mxu1 %v9348_v9  ;;  %v7764_v10 = vld [vmem:[%s16502_s3 + $0x390] sm:$0xff] }
 0x2a0   : > { %v10466_v8 = vunpack.i.h.bf16 %v10464_v31  ;;  %v10465_v21 = vunpack.i.l.bf16 %v10464_v31  ;;  %9351 = vmatpush3.bf16.msra.mxu1 %v9350_v25 }
 0x2a1   : > { %v9320_v17 = vpack.c.bf16 %v10461_v41, %v10460_v6 }
 0x2a2   : > { %v10469_v58 = vpop.permute.xlu1 %10468  ;;  %v9352_v50 = vpack.c.bf16 %v10466_v8, %v10465_v21  ;;  %v7766_v8 = vld [vmem:[%s16502_s3 + $0x3a0] sm:$0xff]  ;;  %v7769_v21 = vld [vmem:[%s16502_s3 + $0x3b8] sm:$0xff] }
 0x2a3   : > { %v10471_v30 = vunpack.i.h.bf16 %v10469_v58  ;;  %v10470_v40 = vunpack.i.l.bf16 %v10469_v58  ;;  %9321 = vmatprep.subr.bf16.mxu0 %v9320_v17  ;;  %v7771_v58 = vld [vmem:[%s16502_s3 + $0x3c8] sm:$0xff] }
 0x2a4   : > { %9353 = vmatprep.subr.bf16.mxu1 %v9352_v50  ;;  %9323 = vmatpush3.bf16.msra.mxu0 %v16693_v39 }
 0x2a5   : > { %v9354_v0 = vpack.c.bf16 %v10471_v30, %v10470_v40  ;;  %v8024_v36 = vpop.f32.mrb[0].mxu0  ;;  %9357 = vmatprep.subr.bf16.mxu0 %v9356_v55 }
 0x2a6   : > { %v8025_v60 = vpop.f32.mrb[1].mxu0 }
 0x2a7   : > { %v8080_v44 = vpop.f32.mrb[0].mxu1  ;;  %3550 = vmatmul.mubr.f32.vlgmr.msra.gmra.mrb[48].mxu0 %v7746_v18  ;;  %9355 = vmatpush3.bf16.msra.mxu1 %v9354_v0  ;;  %v8026_v53 = vadd.f32 %v8025_v60, %v8024_v36  ;;  %v7768_v0 = vld [vmem:[%s16502_s3 + $0x3b0] sm:$0xff] }
 0x2a8   : > { %v8081_v34 = vpop.f32.mrb[1].mxu1  ;;  %3554 = vmatprep.mubr.f32.mxu0 %v7751_v35  ;;  %9359 = vmatpush3.bf16.msra.mxu0 %v9356_v55 }
 0x2a9   : > { %v8082_v54 = vadd.f32 %v8081_v34, %v8080_v44  ;;  %v8027_v14 = vpop.f32.mrb[2].mxu0  ;;  %8788 = vmatprep.subr.msk.mxu0 %vm3735_vm0, %v7780_v57 }
 0x2aa   : > { %3655 = vmatmul.mubr.f32.vlgmr.msra.gmra.mrb[48].mxu1 %v7748_v22  ;;  %v8028_v48 = vpop.f32.mrb[3].mxu0  ;;  %v7770_v22 = vld [vmem:[%s16502_s3 + $0x3c0] sm:$0xff] }
 0x2ab   : > { %v8083_v46 = vpop.f32.mrb[2].mxu1  ;;  %3555 = vmatmul.mubr.f32.gmra.mrb[50].mxu0 %v7750_v23  ;;  %3659 = vmatprep.mubr.f32.mxu1 %v7753_v63  ;;  %v8029_v13 = vadd.f32 %v8028_v48, %v8027_v14  ;;  %v3703_v63 = vld [vmem:[%s16504_s5] sm:$0xff] }
 0x2ac   : > { %v8084_v61 = vpop.f32.mrb[3].mxu1  ;;  %3559 = vmatprep.mubr.f32.mxu0 %v7755_v11  ;;  %8789 = vmatpush3.msk.msra.mxu0 %vm3735_vm0, %v7780_v57  ;;  %v7776_v57 = vld [vmem:[%s16502_s3 + $0x3f0] sm:$0xff] }
 0x2ad   : > { %v8085_v37 = vadd.f32 %v8084_v61, %v8083_v46  ;;  %v7772_v46 = vld [vmem:[%s16502_s3 + $0x3d0] sm:$0xff] }
 0x2ae   : > { %3660 = vmatmul.mubr.f32.gmra.mrb[50].mxu1 %v7752_v32  ;;  %v8030_v27 = vpop.f32.mrb[4].mxu0 }
 0x2af   : > { %3560 = vmatmul.mubr.f32.gmra.mrb[52].mxu0 %v7754_v2  ;;  %3664 = vmatprep.mubr.f32.mxu1 %v7757_v4  ;;  %v8031_v5 = vpop.f32.mrb[5].mxu0  ;;  %v8086_v45 = vpop.f32.mrb[4].mxu1  ;;  %v7774_v2 = vld [vmem:[%s16502_s3 + $0x3e0] sm:$0xff]  ;;  %v7777_v4 = vld [vmem:[%s16502_s3 + $0x3f8] sm:$0xff] }
 0x2b0   : > { %3564 = vmatprep.mubr.f32.mxu0 %v7759_v26  ;;  %v15052_v3 = vpop.permute.xlu0 %2262  ;;  %v8032_v62 = vadd.f32 %v8031_v5, %v8030_v27  ;;  %v8087_v28 = vpop.f32.mrb[5].mxu1 }
 0x2b1   : > { %v2367_v59 = vadd.f32 %v8026_v53, %v15052_v3  ;;  %v8088_v16 = vadd.f32 %v8087_v28, %v8086_v45  ;;  %v7773_v53 = vld [vmem:[%s16502_s3 + $0x3d8] sm:$0xff] }
 0x2b2   : > { %3665 = vmatmul.mubr.f32.gmra.mrb[52].mxu1 %v7756_v42 }
 0x2b3   : > { %3565 = vmatmul.mubr.f32.gmra.mrb[54].mxu0 %v7758_v20  ;;  %3669 = vmatprep.mubr.f32.mxu1 %v7761_v7  ;;  %v15063_v24 = vpop.permute.xlu1 %2267  ;;  %v15065_v56 = vadd.f32 %v8082_v54, %v2367_v59  ;;  %v8033_v52 = vpop.f32.mrb[6].mxu0  ;;  %v3704_v54 = vld [vmem:[%s16504_s5 + $0x8] sm:$0xff] }
 0x2b4   : > { %3569 = vmatprep.mubr.f32.mxu0 %v7763_v43  ;;  %v2372_v33 = vadd.f32 %v8029_v13, %v15063_v24  ;;  %v15074_v51 = vpop.permute.xlu0 %2277  ;;  %v8089_v1 = vpop.f32.mrb[6].mxu1  ;;  %v15124_v14 = vpack.c.bf16 %v3704_v54, %v3703_v63 }
 0x2b5   : > { %v8034_v49 = vpop.f32.mrb[7].mxu0  ;;  %v8090_v9 = vpop.f32.mrb[7].mxu1 }
 0x2b6   : > { %3670 = vmatmul.mubr.f32.gmra.mrb[54].mxu1 %v7760_v15  ;;  %v15079_v25 = vadd.f32 %v8085_v37, %v2372_v33  ;;  %v8035_v41 = vadd.f32 %v8034_v49, %v8033_v52  ;;  %v8091_v6 = vadd.f32 %v8090_v9, %v8089_v1  ;;  %9361 = vmatprep.subr.bf16.mxu0 %v15124_v14 }
 0x2b7   : > { %3570 = vmatmul.mubr.f32.gmra.mrb[56].mxu0 %v7762_v29  ;;  %3674 = vmatprep.mubr.f32.mxu1 %v7765_v38  ;;  %v15084_v31 = vpop.permute.xlu1 %2272  ;;  %v8036_v50 = vpop.f32.mrb[8].mxu0 }
 0x2b8   : > { %3574 = vmatprep.mubr.f32.mxu0 %v7767_v47  ;;  %v2377_v17 = vadd.f32 %v8032_v62, %v15084_v31  ;;  %v2382_v30 = vadd.f32 %v8035_v41, %v15074_v51  ;;  %v8037_v40 = vpop.f32.mrb[9].mxu0  ;;  %v15116_v23 = vpop.permute.xlu0 %2287 }
 0x2b9   : > { %v8092_v39 = vpop.f32.mrb[8].mxu1  ;;  %v8038_v35 = vadd.f32 %v8037_v40, %v8036_v50 }
 0x2ba   : > { %3675 = vmatmul.mubr.f32.gmra.mrb[56].mxu1 %v7764_v10  ;;  %v15097_v18 = vadd.f32 %v8088_v16, %v2377_v17  ;;  %v8093_v36 = vpop.f32.mrb[9].mxu1  ;;  %v15104_v44 = vadd.f32 %v8091_v6, %v2382_v30 }
 0x2bb   : > { %3575 = vmatmul.mubr.f32.gmra.mrb[58].mxu0 %v7766_v8  ;;  %3679 = vmatprep.mubr.f32.mxu1 %v7769_v21  ;;  %v15102_v60 = vpop.permute.xlu1 %2282  ;;  %v8094_v34 = vadd.f32 %v8093_v36, %v8092_v39 }
 0x2bc   : > { %3579 = vmatprep.mubr.f32.mxu0 %v7771_v58  ;;  %v2387_v19 = vadd.f32 %v8038_v35, %v15102_v60  ;;  %v15146_v45 = vpop.permute.xlu0 %2297 }
 0x2bd   : > { %v8095_v11 = vpop.f32.mrb[10].mxu1 }
 0x2be   : > { %3680 = vmatmul.mubr.f32.gmra.mrb[58].mxu1 %v7768_v0  ;;  %v8039_v55 = vpop.f32.mrb[10].mxu0  ;;  %v8096_v48 = vpop.f32.mrb[11].mxu1  ;;  %v15129_v61 = vadd.f32 %v8094_v34, %v2387_v19 }
 0x2bf   : > { %3580 = vmatmul.mubr.f32.gmra.mrb[60].mxu0 %v7770_v22  ;;  %3684 = vmatprep.mubr.f32.mxu1 %v7773_v53  ;;  %v8040_v32 = vpop.f32.mrb[11].mxu0  ;;  %v8097_v37 = vadd.f32 %v8096_v48, %v8095_v11  ;;  %v15138_v26 = vpop.permute.xlu1 %2292 }
 0x2c0   : > { %3584 = vmatprep.mubr.f32.mxu0 %v7775_v12  ;;  %v8041_v13 = vadd.f32 %v8040_v32, %v8039_v55 }
 0x2c2   : > { %3685 = vmatmul.mubr.f32.gmra.mrb[60].mxu1 %v7772_v46  ;;  %v8042_v27 = vpop.f32.mrb[12].mxu0  ;;  %v8098_v42 = vpop.f32.mrb[12].mxu1  ;;  %v2392_v5 = vadd.f32 %v8041_v13, %v15116_v23  ;;  %v7799_v13 = vld [vmem:[%s16504_s5 + $0x30] sm:$0xff] }
 0x2c3   : > { %3585 = vmatmul.mubr.f32.gmra.mrb[62].mxu0 %v7774_v2  ;;  %3689 = vmatprep.mubr.f32.mxu1 %v7777_v4  ;;  %v8043_v20 = vpop.f32.mrb[13].mxu0  ;;  %v8099_v7 = vpop.f32.mrb[13].mxu1  ;;  %v3705_v4 = vld [vmem:[%s16504_s5 + $0x10] sm:$0x3f] }
 0x2c4   : > { %v8044_v62 = vadd.f32 %v8043_v20, %v8042_v27  ;;  %v8100_v43 = vadd.f32 %v8099_v7, %v8098_v42  ;;  %v15144_v59 = vadd.f32 %v8097_v37, %v2392_v5  ;;  %v7800_v37 = vld [vmem:[%s16504_s5 + $0x38] sm:$0xff] }
 0x2c6   : > { %3690 = vmatmul.mubr.f32.gmra.mrb[62].mxu1 %v7776_v57  ;;  %v8045_v28 = vpop.f32.mrb[14].mxu0  ;;  %v8101_v15 = vpop.f32.mrb[14].mxu1  ;;  %v2397_v16 = vadd.f32 %v8044_v62, %v15138_v26 }
 0x2c7   : > { %v8046_v29 = vpop.f32.mrb[15].mxu0  ;;  %v8102_v38 = vpop.f32.mrb[15].mxu1 }
 0x2c8   : > { %v8047_v33 = vadd.f32 %v8046_v29, %v8045_v28  ;;  %v8103_v47 = vadd.f32 %v8102_v38, %v8101_v15  ;;  %v15149_v52 = vadd.f32 %v8100_v43, %v2397_v16  ;;  %v9364_v28 = vpack.c.bf16 %v7800_v37, %v7799_v13 }
 0x2c9   : > { %v2511_v13 = vmax.f32 %v15079_v25, 0.0  ;;  %v2512_v37 = vmax.f32 %v15097_v18, 0.0  ;;  %v2513_v25 = vmax.f32 %v15104_v44, 0.0 }
 0x2ca   : > { %v2402_v1 = vadd.f32 %v8047_v33, %v15146_v45 }
 0x2cc   : > { %v15152_v49 = vadd.f32 %v8103_v47, %v2402_v1 }
 0x317   : > { %v8136_v9 = vpop.f32.mrb[16].mxu0 }
 0x318   : > { %v8137_v10 = vpop.f32.mrb[17].mxu0 }
 0x319   : > { %v8138_v41 = vadd.f32 %v8137_v10, %v8136_v9 }
 0x31b   : > { %v8192_v6 = vpop.f32.mrb[16].mxu1  ;;  %v2762_v8 = vadd.f32 %v8138_v41, %v15052_v3  ;;  %v8139_v21 = vpop.f32.mrb[18].mxu0 }
 0x31c   : > { %v8193_v17 = vpop.f32.mrb[17].mxu1  ;;  %v8140_v58 = vpop.f32.mrb[19].mxu0 }
 0x31d   : > { %v8194_v50 = vadd.f32 %v8193_v17, %v8192_v6  ;;  %v8141_v30 = vadd.f32 %v8140_v58, %v8139_v21 }
 0x31f   : > { %v2867_v40 = vadd.f32 %v8194_v50, %v2762_v8  ;;  %v8195_v39 = vpop.f32.mrb[18].mxu1  ;;  %v2767_v0 = vadd.f32 %v8141_v30, %v15063_v24  ;;  %v8142_v35 = vpop.f32.mrb[20].mxu0 }
 0x320   : > { %v8196_v36 = vpop.f32.mrb[19].mxu1  ;;  %v8143_v53 = vpop.f32.mrb[21].mxu0 }
 0x321   : > { %v2905_v22 = vmax.f32 %v2867_v40, 0.0  ;;  %v8197_v34 = vadd.f32 %v8196_v36, %v8195_v39  ;;  %v8144_v12 = vadd.f32 %v8143_v53, %v8142_v35 }
 0x323   : > { %v2872_v19 = vadd.f32 %v8197_v34, %v2767_v0  ;;  %v8198_v63 = vpop.f32.mrb[20].mxu1  ;;  %8790 = vmatprep.mubr.msk.f32.mxu0 %vm3710_vm1, %v2905_v22  ;;  %v2772_v54 = vadd.f32 %v8144_v12, %v15084_v31  ;;  %v8145_v55 = vpop.f32.mrb[22].mxu0 }
 0x324   : > { %v8199_v11 = vpop.f32.mrb[21].mxu1  ;;  %v8146_v32 = vpop.f32.mrb[23].mxu0 }
 0x325   : > { %v2906_v46 = vmax.f32 %v2872_v19, 0.0  ;;  %v8200_v48 = vadd.f32 %v8199_v11, %v8198_v63  ;;  %v8147_v2 = vadd.f32 %v8146_v32, %v8145_v55 }
 0x327   : > { %v2877_v27 = vadd.f32 %v8200_v48, %v2772_v54  ;;  %v8201_v42 = vpop.f32.mrb[22].mxu1  ;;  %8791 = vmatmul.mubr.msk.f32.vlgmr.msra.gmra.mrb[64].mxu0 %vm3710_vm1, %v2906_v46  ;;  %v2777_v5 = vadd.f32 %v8147_v2, %v15074_v51 }
 0x328   : > { %v8148_v57 = vpop.f32.mrb[24].mxu0  ;;  %v8202_v20 = vpop.f32.mrb[23].mxu1  ;;  %9363 = vmatpush3.bf16.msra.mxu0 %v15124_v14 }
 0x329   : > { %v2907_v7 = vmax.f32 %v2877_v27, 0.0  ;;  %v8149_v62 = vpop.f32.mrb[25].mxu0  ;;  %v8203_v43 = vadd.f32 %v8202_v20, %v8201_v42  ;;  %8806 = vmatprep.subr.msk.mxu0 %vm3735_vm0, %v3705_v4  ;;  %v7801_v27 = vld [vmem:[%s16504_s5 + $0x40] sm:$0x3f]  ;;  %v7811_v42 = vld [vmem:[%s16504_s5 + $0x48] sm:$0xff]  ;;  %v2515_v20 = vmax.f32 %v15144_v59, 0.0 }
 0x32a   : > { %v8150_v15 = vadd.f32 %v8149_v62, %v8148_v57  ;;  %v2516_v62 = vmax.f32 %v15149_v52, 0.0 }
 0x32b   : > { %v2882_v16 = vadd.f32 %v8203_v43, %v2777_v5  ;;  %v8204_v29 = vpop.f32.mrb[24].mxu1  ;;  %8793 = vmatprep.mubr.msk.f32.mxu0 %vm3710_vm1, %v2907_v7  ;;  %v2514_v5 = vmax.f32 %v15129_v61, 0.0 }
 0x32c   : > { %v2782_v38 = vadd.f32 %v8150_v15, %v15102_v60  ;;  %v8151_v33 = vpop.f32.mrb[26].mxu0  ;;  %v8205_v47 = vpop.f32.mrb[25].mxu1  ;;  %8807 = vmatpush3.msk.msra.mxu0 %vm3735_vm0, %v3705_v4  ;;  %v2510_v4 = vmax.f32 %v15065_v56, 0.0  ;;  %v7812_v56 = vld [vmem:[%s16504_s5 + $0x50] sm:$0xff] }
 0x32d   : > { %v2908_v1 = vmax.f32 %v2882_v16, 0.0  ;;  %v8152_v9 = vpop.f32.mrb[27].mxu0  ;;  %v8206_v14 = vadd.f32 %v8205_v47, %v8204_v29  ;;  %9365 = vmatprep.subr.bf16.mxu0 %v9364_v28  ;;  %v9368_v18 = vpack.c.bf16 %v7812_v56, %v7811_v42  ;;  %v2517_v16 = vmax.f32 %v15152_v49, 0.0 }
 0x32e   : > { %v8153_v10 = vadd.f32 %v8152_v9, %v8151_v33 }
 0x32f   : > { %v2887_v41 = vadd.f32 %v8206_v14, %v2782_v38  ;;  %v8207_v6 = vpop.f32.mrb[26].mxu1  ;;  %8794 = vmatmul.mubr.msk.f32.gmra.mrb[66].mxu0 %vm3710_vm1, %v2908_v1 }
 0x330   : > { %v2787_v8 = vadd.f32 %v8153_v10, %v15116_v23  ;;  %v8154_v21 = vpop.f32.mrb[28].mxu0  ;;  %v8208_v17 = vpop.f32.mrb[27].mxu1 }
 0x331   : > { %v2909_v58 = vmax.f32 %v2887_v41, 0.0  ;;  %v8155_v50 = vpop.f32.mrb[29].mxu0  ;;  %v8209_v30 = vadd.f32 %v8208_v17, %v8207_v6 }
 0x332   : > { %v8156_v40 = vadd.f32 %v8155_v50, %v8154_v21 }
 0x333   : > { %v2892_v39 = vadd.f32 %v8209_v30, %v2787_v8  ;;  %v8210_v0 = vpop.f32.mrb[28].mxu1  ;;  %8796 = vmatprep.mubr.msk.f32.mxu0 %vm3710_vm1, %v2909_v58 }
 0x334   : > { %v2792_v35 = vadd.f32 %v8156_v40, %v15138_v26  ;;  %v8157_v36 = vpop.f32.mrb[30].mxu0  ;;  %v8211_v22 = vpop.f32.mrb[29].mxu1 }
 0x335   : > { %v2910_v53 = vmax.f32 %v2892_v39, 0.0  ;;  %v8158_v34 = vpop.f32.mrb[31].mxu0  ;;  %v8212_v12 = vadd.f32 %v8211_v22, %v8210_v0  ;;  %v7813_v0 = vld [vmem:[%s16504_s5 + $0x58] sm:$0x3f] }
 0x336   : > { %v8159_v19 = vadd.f32 %v8158_v34, %v8157_v36 }
 0x337   : > { %v2897_v63 = vadd.f32 %v8212_v12, %v2792_v35  ;;  %v8213_v54 = vpop.f32.mrb[30].mxu1  ;;  %8797 = vmatmul.mubr.msk.f32.gmra.mrb[68].mxu0 %vm3710_vm1, %v2910_v53 }
 0x338   : > { %v2797_v55 = vadd.f32 %v8159_v19, %v15146_v45  ;;  %v8214_v11 = vpop.f32.mrb[31].mxu1 }
 0x339   : > { %v2911_v46 = vmax.f32 %v2897_v63, 0.0  ;;  %v8215_v32 = vadd.f32 %v8214_v11, %v8213_v54 }
 0x33b   : > { %v2902_v48 = vadd.f32 %v8215_v32, %v2797_v55  ;;  %8799 = vmatprep.mubr.msk.f32.mxu0 %vm3710_vm1, %v2911_v46 }
 0x33d   : > { %v2912_v2 = vmax.f32 %v2902_v48, 0.0 }
 0x33f   : > { %8800 = vmatmul.mubr.msk.f32.gmra.mrb[70].mxu0 %vm3710_vm1, %v2912_v2 }
 0x340   : > { %8808 = vmatprep.mubr.msk.f32.mxu0 %vm3710_vm1, %v2510_v4 }
 0x343   : > { %8809 = vmatmul.mubr.msk.f32.vlgmr.msra.gmra.mrb[64].mxu0 %vm3710_vm1, %v2511_v13 }
 0x344   : > { %8811 = vmatprep.mubr.msk.f32.mxu0 %vm3710_vm1, %v2512_v37  ;;  %9367 = vmatpush3.bf16.msra.mxu0 %v9364_v28 }
 0x345   : > { %8824 = vmatprep.subr.msk.mxu0 %vm3735_vm0, %v7801_v27 }
 0x347   : > { %8812 = vmatmul.mubr.msk.f32.gmra.mrb[66].mxu0 %vm3710_vm1, %v2513_v25 }
 0x348   : > { %8814 = vmatprep.mubr.msk.f32.mxu0 %vm3710_vm1, %v2514_v5  ;;  %8825 = vmatpush3.msk.msra.mxu0 %vm3735_vm0, %v7801_v27 }
 0x349   : > { %9369 = vmatprep.subr.bf16.mxu0 %v9368_v18 }
 0x34a   : > { %v8248_v57 = vpop.f32.mrb[32].mxu0 }
 0x34b   : > { %v8249_v7 = vpop.f32.mrb[33].mxu0  ;;  %8815 = vmatmul.mubr.msk.f32.gmra.mrb[68].mxu0 %vm3710_vm1, %v2515_v20 }
 0x34c   : > { %v8250_v43 = vadd.f32 %v8249_v7, %v8248_v57  ;;  %8817 = vmatprep.mubr.msk.f32.mxu0 %vm3710_vm1, %v2516_v62 }
 0x34d   : > { %v8304_v44 = vpop.f32.mrb[32].mxu1 }
 0x34e   : > { %v3157_v61 = vadd.f32 %v8250_v43, %v15052_v3  ;;  %v8251_v28 = vpop.f32.mrb[34].mxu0  ;;  %v8305_v15 = vpop.f32.mrb[33].mxu1 }
 0x34f   : > { %v8252_v29 = vpop.f32.mrb[35].mxu0  ;;  %v8306_v38 = vadd.f32 %v8305_v15, %v8304_v44  ;;  %8818 = vmatmul.mubr.msk.f32.gmra.mrb[70].mxu0 %vm3710_vm1, %v2517_v16 }
 0x350   : > { %v8253_v33 = vadd.f32 %v8252_v29, %v8251_v28 }
 0x351   : > { %v3262_v59 = vadd.f32 %v8306_v38, %v3157_v61  ;;  %v8307_v47 = vpop.f32.mrb[34].mxu1 }
 0x352   : > { %v3162_v52 = vadd.f32 %v8253_v33, %v15063_v24  ;;  %v8254_v1 = vpop.f32.mrb[36].mxu0  ;;  %v8308_v9 = vpop.f32.mrb[35].mxu1 }
 0x353   : > { %v3300_v14 = vmax.f32 %v3262_v59, 0.0  ;;  %v8255_v10 = vpop.f32.mrb[37].mxu0  ;;  %v8309_v41 = vadd.f32 %v8308_v9, %v8307_v47 }
 0x354   : > { %v8256_v6 = vadd.f32 %v8255_v10, %v8254_v1 }
 0x355   : > { %v3267_v8 = vadd.f32 %v8309_v41, %v3162_v52  ;;  %v8310_v21 = vpop.f32.mrb[36].mxu1  ;;  %8826 = vmatprep.mubr.msk.f32.mxu0 %vm3710_vm1, %v3300_v14 }
 0x356   : > { %v3167_v49 = vadd.f32 %v8256_v6, %v15084_v31  ;;  %v8257_v17 = vpop.f32.mrb[38].mxu0  ;;  %v8311_v58 = vpop.f32.mrb[37].mxu1 }
 0x357   : > { %v3301_v50 = vmax.f32 %v3267_v8, 0.0  ;;  %v8258_v30 = vpop.f32.mrb[39].mxu0  ;;  %v8312_v40 = vadd.f32 %v8311_v58, %v8310_v21 }
 0x358   : > { %v8259_v39 = vadd.f32 %v8258_v30, %v8257_v17 }
 0x359   : > { %v3272_v35 = vadd.f32 %v8312_v40, %v3167_v49  ;;  %v8313_v36 = vpop.f32.mrb[38].mxu1  ;;  %8827 = vmatmul.mubr.msk.f32.vlgmr.msra.gmra.mrb[64].mxu0 %vm3710_vm1, %v3301_v50 }
 0x35a   : > { %v3172_v22 = vadd.f32 %v8259_v39, %v15074_v51  ;;  %v8260_v53 = vpop.f32.mrb[40].mxu0  ;;  %v8314_v34 = vpop.f32.mrb[39].mxu1  ;;  %9371 = vmatpush3.bf16.msra.mxu0 %v9368_v18 }
 0x35b   : > { %v3302_v12 = vmax.f32 %v3272_v35, 0.0  ;;  %v8261_v19 = vpop.f32.mrb[41].mxu0  ;;  %v8315_v63 = vadd.f32 %v8314_v34, %v8313_v36  ;;  %8842 = vmatprep.subr.msk.mxu0 %vm3735_vm0, %v7813_v0 }
 0x35c   : > { %v8262_v54 = vadd.f32 %v8261_v19, %v8260_v53 }
 0x35d   : > { %v3277_v55 = vadd.f32 %v8315_v63, %v3172_v22  ;;  %v8316_v11 = vpop.f32.mrb[40].mxu1  ;;  %8829 = vmatprep.mubr.msk.f32.mxu0 %vm3710_vm1, %v3302_v12 }
 0x35e   : > { %v3177_v46 = vadd.f32 %v8262_v54, %v15102_v60  ;;  %v8263_v32 = vpop.f32.mrb[42].mxu0  ;;  %v8317_v48 = vpop.f32.mrb[41].mxu1  ;;  %8843 = vmatpush3.msk.msra.mxu0 %vm3735_vm0, %v7813_v0 }
 0x35f   : > { %v3303_v2 = vmax.f32 %v3277_v55, 0.0  ;;  %v8318_v4 = vadd.f32 %v8317_v48, %v8316_v11  ;;  %v8264_v13 = vpop.f32.mrb[43].mxu0 }
 0x360   : > { %v8265_v37 = vadd.f32 %v8264_v13, %v8263_v32 }
 0x361   : > { %v3282_v27 = vadd.f32 %v8318_v4, %v3177_v46  ;;  %v8319_v42 = vpop.f32.mrb[42].mxu1  ;;  %8830 = vmatmul.mubr.msk.f32.gmra.mrb[66].mxu0 %vm3710_vm1, %v3303_v2 }
 0x362   : > { %v3182_v56 = vadd.f32 %v8265_v37, %v15116_v23  ;;  %v8266_v25 = vpop.f32.mrb[44].mxu0  ;;  %v8320_v18 = vpop.f32.mrb[43].mxu1 }
 0x363   : > { %v3304_v5 = vmax.f32 %v3282_v27, 0.0  ;;  %v8321_v57 = vadd.f32 %v8320_v18, %v8319_v42  ;;  %v8267_v20 = vpop.f32.mrb[45].mxu0 }
 0x364   : > { %v8268_v7 = vadd.f32 %v8267_v20, %v8266_v25 }
 0x365   : > { %v3287_v62 = vadd.f32 %v8321_v57, %v3182_v56  ;;  %v8322_v43 = vpop.f32.mrb[44].mxu1  ;;  %8832 = vmatprep.mubr.msk.f32.mxu0 %vm3710_vm1, %v3304_v5 }
 0x366   : > { %v3187_v44 = vadd.f32 %v8268_v7, %v15138_v26  ;;  %v8269_v61 = vpop.f32.mrb[46].mxu0  ;;  %v8323_v28 = vpop.f32.mrb[45].mxu1 }
 0x367   : > { %v3305_v15 = vmax.f32 %v3287_v62, 0.0  ;;  %v8324_v16 = vadd.f32 %v8323_v28, %v8322_v43  ;;  %v8270_v29 = vpop.f32.mrb[47].mxu0 }
 0x368   : > { %v8271_v38 = vadd.f32 %v8270_v29, %v8269_v61 }
 0x369   : > { %v3292_v33 = vadd.f32 %v8324_v16, %v3187_v44  ;;  %v8325_v59 = vpop.f32.mrb[46].mxu1  ;;  %8833 = vmatmul.mubr.msk.f32.gmra.mrb[68].mxu0 %vm3710_vm1, %v3305_v15 }
 0x36a   : > { %v3192_v47 = vadd.f32 %v8271_v38, %v15146_v45  ;;  %v8326_v52 = vpop.f32.mrb[47].mxu1 }
 0x36b   : > { %v3306_v1 = vmax.f32 %v3292_v33, 0.0  ;;  %v8327_v9 = vadd.f32 %v8326_v52, %v8325_v59 }
 0x36d   : > { %v3297_v14 = vadd.f32 %v8327_v9, %v3192_v47  ;;  %8835 = vmatprep.mubr.msk.f32.mxu0 %vm3710_vm1, %v3306_v1 }
 0x36f   : > { %v3307_v10 = vmax.f32 %v3297_v14, 0.0 }
 0x371   : > { %8836 = vmatmul.mubr.msk.f32.gmra.mrb[70].mxu0 %vm3710_vm1, %v3307_v10 }
 0x37a   : > { %v8360_v41 = vpop.f32.mrb[48].mxu0 }
 0x37b   : > { %v8361_v6 = vpop.f32.mrb[49].mxu0 }
 0x37c   : > { %v8362_v8 = vadd.f32 %v8361_v6, %v8360_v41 }
 0x37d   : > { %v8416_v21 = vpop.f32.mrb[48].mxu1 }
 0x37e   : > { %v3552_v49 = vadd.f32 %v8362_v8, %v15052_v3  ;;  %v8363_v17 = vpop.f32.mrb[50].mxu0  ;;  %v8417_v58 = vpop.f32.mrb[49].mxu1 }
 0x37f   : > { %v8418_v50 = vadd.f32 %v8417_v58, %v8416_v21  ;;  %v8364_v30 = vpop.f32.mrb[51].mxu0 }
 0x380   : > { %v8365_v40 = vadd.f32 %v8364_v30, %v8363_v17 }
 0x381   : > { %v3657_v39 = vadd.f32 %v8418_v50, %v3552_v49  ;;  %v8419_v0 = vpop.f32.mrb[50].mxu1 }
 0x382   : > { %v3557_v35 = vadd.f32 %v8365_v40, %v15063_v24  ;;  %v8366_v36 = vpop.f32.mrb[52].mxu0  ;;  %v8420_v22 = vpop.f32.mrb[51].mxu1 }
 0x383   : > { %v3695_v53 = vmax.f32 %v3657_v39, 0.0  ;;  %v8421_v34 = vadd.f32 %v8420_v22, %v8419_v0  ;;  %v8367_v12 = vpop.f32.mrb[53].mxu0 }
 0x384   : > { %v8368_v19 = vadd.f32 %v8367_v12, %v8366_v36 }
 0x385   : > { %v3662_v63 = vadd.f32 %v8421_v34, %v3557_v35  ;;  %v8422_v54 = vpop.f32.mrb[52].mxu1  ;;  %8844 = vmatprep.mubr.msk.f32.mxu0 %vm3710_vm1, %v3695_v53 }
 0x386   : > { %v3562_v3 = vadd.f32 %v8368_v19, %v15084_v31  ;;  %v8369_v55 = vpop.f32.mrb[54].mxu0  ;;  %v8423_v11 = vpop.f32.mrb[53].mxu1 }
 0x387   : > { %v3696_v46 = vmax.f32 %v3662_v63, 0.0  ;;  %v8424_v32 = vadd.f32 %v8423_v11, %v8422_v54  ;;  %v8370_v48 = vpop.f32.mrb[55].mxu0 }
 0x388   : > { %v8371_v2 = vadd.f32 %v8370_v48, %v8369_v55 }
 0x389   : > { %v3667_v4 = vadd.f32 %v8424_v32, %v3562_v3  ;;  %v8425_v24 = vpop.f32.mrb[54].mxu1  ;;  %8845 = vmatmul.mubr.msk.f32.vlgmr.msra.gmra.mrb[64].mxu0 %vm3710_vm1, %v3696_v46  ;;  %v4345_v46 = vld [vmem:[%s16505_s6 + $0x8] sm:$0xff] }
 0x38a   : > { %v3567_v13 = vadd.f32 %v8371_v2, %v15074_v51  ;;  %v8372_v37 = vpop.f32.mrb[56].mxu0  ;;  %v8426_v27 = vpop.f32.mrb[55].mxu1  ;;  %4440 = vmatprep.mubr.f32.mxu1 %v4345_v46 }
 0x38b   : > { %v3697_v42 = vmax.f32 %v3667_v4, 0.0  ;;  %v8427_v56 = vadd.f32 %v8426_v27, %v8425_v24  ;;  %v8373_v25 = vpop.f32.mrb[57].mxu0 }
 0x38c   : > { %v8374_v18 = vadd.f32 %v8373_v25, %v8372_v37 }
 0x38d   : > { %v3672_v5 = vadd.f32 %v8427_v56, %v3567_v13  ;;  %v8428_v31 = vpop.f32.mrb[56].mxu1  ;;  %8847 = vmatprep.mubr.msk.f32.mxu0 %vm3710_vm1, %v3697_v42 }
 0x38e   : > { %v3572_v57 = vadd.f32 %v8374_v18, %v15102_v60  ;;  %v8375_v20 = vpop.f32.mrb[58].mxu0  ;;  %v8429_v7 = vpop.f32.mrb[57].mxu1 }
 0x38f   : > { %v3698_v62 = vmax.f32 %v3672_v5, 0.0  ;;  %v8430_v43 = vadd.f32 %v8429_v7, %v8428_v31  ;;  %v8376_v44 = vpop.f32.mrb[59].mxu0 }
 0x390   : > { %v8377_v61 = vadd.f32 %v8376_v44, %v8375_v20 }
 0x391   : > { %v3677_v28 = vadd.f32 %v8430_v43, %v3572_v57  ;;  %v8431_v51 = vpop.f32.mrb[58].mxu1  ;;  %8848 = vmatmul.mubr.msk.f32.gmra.mrb[66].mxu0 %vm3710_vm1, %v3698_v62 }
 0x392   : > { %v3577_v15 = vadd.f32 %v8377_v61, %v15116_v23  ;;  %v8378_v16 = vpop.f32.mrb[60].mxu0  ;;  %v8432_v29 = vpop.f32.mrb[59].mxu1 }
 0x393   : > { %v3699_v38 = vmax.f32 %v3677_v28, 0.0  ;;  %v8433_v33 = vadd.f32 %v8432_v29, %v8431_v51  ;;  %v8379_v59 = vpop.f32.mrb[61].mxu0 }
 0x394   : > { %v8380_v47 = vadd.f32 %v8379_v59, %v8378_v16 }
 0x395   : > { %v3682_v52 = vadd.f32 %v8433_v33, %v3577_v15  ;;  %v8434_v60 = vpop.f32.mrb[60].mxu1  ;;  %8850 = vmatprep.mubr.msk.f32.mxu0 %vm3710_vm1, %v3699_v38 }
 0x396   : > { %v3582_v1 = vadd.f32 %v8380_v47, %v15138_v26  ;;  %v8381_v9 = vpop.f32.mrb[62].mxu0  ;;  %v8435_v14 = vpop.f32.mrb[61].mxu1 }
 0x397   : > { %v3700_v10 = vmax.f32 %v3682_v52, 0.0  ;;  %v8436_v41 = vadd.f32 %v8435_v14, %v8434_v60  ;;  %v8382_v6 = vpop.f32.mrb[63].mxu0 }
 0x398   : > { %v8383_v8 = vadd.f32 %v8382_v6, %v8381_v9 }
 0x399   : > { %v3687_v21 = vadd.f32 %v8436_v41, %v3582_v1  ;;  %v8437_v23 = vpop.f32.mrb[62].mxu1  ;;  %8851 = vmatmul.mubr.msk.f32.gmra.mrb[68].mxu0 %vm3710_vm1, %v3700_v10 }
 0x39a   : > { %v3587_v49 = vadd.f32 %v8383_v8, %v15146_v45  ;;  %v8438_v17 = vpop.f32.mrb[63].mxu1 }
 0x39b   : > { %v3701_v58 = vmax.f32 %v3687_v21, 0.0  ;;  %v8439_v50 = vadd.f32 %v8438_v17, %v8437_v23 }
 0x39d   : > { %v3692_v30 = vadd.f32 %v8439_v50, %v3587_v49  ;;  %8853 = vmatprep.mubr.msk.f32.mxu0 %vm3710_vm1, %v3701_v58 }
 0x39f   : > { %v3702_v40 = vmax.f32 %v3692_v30, 0.0 }
 0x3a1   : > { %8854 = vmatmul.mubr.msk.f32.gmra.mrb[70].mxu0 %vm3710_vm1, %v3702_v40 }
 0x45c   : > { %v8846_v26 = vpop.f32.mrb[64].mxu0 }
 0x45d   : > { %v4217_v39 = vpop.f32.mrb[65].mxu0 }
 0x45e   : > { %v10499_v0 = vpack.i.bf16 %v8846_v26, %v4217_v39  ;;  %v9374_v35 = vpack.c.bf16 %v8846_v26, %v4217_v39  ;;  %v4344_v39 = vld [vmem:[%s16505_s6] sm:$0xff] }
 0x460   : > { %10475 = vrot.lane.b32.xlu1 %v10499_v0, %s11154_s23 }
 0x464   : > { %v8849_v36 = vpop.f32.mrb[66].mxu0 }
 0x465   : > { %v4227_v22 = vpop.f32.mrb[67].mxu0 }
 0x466   : > { %v10509_v53 = vpack.i.bf16 %v8849_v36, %v4227_v22  ;;  %v9378_v45 = vpack.c.bf16 %v8849_v36, %v4227_v22  ;;  %v4349_v36 = vld [vmem:[%s16505_s6 + $0x28] sm:$0xff]  ;;  %v4348_v22 = vld [vmem:[%s16505_s6 + $0x20] sm:$0xff] }
 0x468   : > { %10480 = vrot.lane.b32.xlu0 %v10509_v53, %s11154_s23 }
 0x46c   : > { %v8852_v34 = vpop.f32.mrb[68].mxu0 }
 0x46d   : > { %v4237_v12 = vpop.f32.mrb[69].mxu0 }
 0x46e   : > { %v10519_v19 = vpack.i.bf16 %v8852_v34, %v4237_v12  ;;  %v9382_v63 = vpack.c.bf16 %v8852_v34, %v4237_v12  ;;  %v7824_v34 = vld [vmem:[%s16505_s6 + $0x48] sm:$0xff]  ;;  %v4352_v12 = vld [vmem:[%s16506_s7] sm:$0xff] }
 0x470   : > { %10485 = vrot.lane.b32.xlu1 %v10519_v19, %s11154_s23 }
 0x474   : > { %10495 = vrot.lane.b32.xlu1 %v10499_v0, %s11155_s24  ;;  %v8855_v54 = vpop.f32.mrb[70].mxu0 }
 0x475   : > { %v4247_v3 = vpop.f32.mrb[71].mxu0 }
 0x476   : > { %v10529_v55 = vpack.i.bf16 %v8855_v54, %v4247_v3  ;;  %v9386_v11 = vpack.c.bf16 %v8855_v54, %v4247_v3  ;;  %v4353_v54 = vld [vmem:[%s16506_s7 + $0x8] sm:$0xff]  ;;  %v4355_v3 = vld [vmem:[%s16506_s7 + $0x18] sm:$0xff] }
 0x478   : > { %10505 = vrot.lane.b32.xlu1 %v10509_v53, %s11155_s24  ;;  %10490 = vrot.lane.b32.xlu0 %v10529_v55, %s11154_s23 }
 0x47c   : > { %10515 = vrot.lane.b32.xlu1 %v10519_v19, %s11155_s24  ;;  %10500 = vrot.lane.b32.xlu0 %v10499_v0, %s11150_s20  ;;  %v4347_v0 = vld [vmem:[%s16505_s6 + $0x18] sm:$0xff] }
 0x480   : > { %10525 = vrot.lane.b32.xlu1 %v10529_v55, %s11155_s24  ;;  %10510 = vrot.lane.b32.xlu0 %v10509_v53, %s11150_s20  ;;  %v4351_v53 = vld [vmem:[%s16505_s6 + $0x38] sm:$0xff] }
 0x484   : > { %10520 = vrot.lane.b32.xlu0 %v10519_v19, %s11150_s20  ;;  %v7840_v19 = vld [vmem:[%s16505_s6 + $0xc8] sm:$0xff] }
 0x485   : > { %4950 = vmatprep.mubr.f32.mxu0 %v7840_v19 }
 0x488   : > { %10530 = vrot.lane.b32.xlu0 %v10529_v55, %s11150_s20 }
 0x4d2   : > { %v15261_v32 = vpop.permute.xlu1 %10475 }
 0x4d3   : > { %v10478_v48 = vunpack.i.h.bf16 %v15261_v32  ;;  %v10477_v2 = vunpack.i.l.bf16 %v15261_v32  ;;  %10535 = vrot.lane.b32.xlu1 %v15261_v32, %s11150_s20 }
 0x4d5   : > { %v15265_v4 = vpack.c.bf16 %v10478_v48, %v10477_v2 }
 0x4d7   : > { %9373 = vmatprep.subr.bf16.mxu1 %v15265_v4 }
 0x4d8   : > { %9375 = vmatpush3.bf16.msra.mxu1 %v9374_v35  ;;  %v4346_v35 = vld [vmem:[%s16505_s6 + $0x10] sm:$0xff] }
 0x4da   : > { %v15270_v24 = vpop.permute.xlu0 %10480 }
 0x4db   : > { %v10483_v13 = vunpack.i.h.bf16 %v15270_v24  ;;  %v10482_v37 = vunpack.i.l.bf16 %v15270_v24  ;;  %10540 = vrot.lane.b32.xlu0 %v15270_v24, %s11150_s20 }
 0x4dd   : > { %v15274_v27 = vpack.c.bf16 %v10483_v13, %v10482_v37 }
 0x4df   : > { %9377 = vmatprep.subr.bf16.mxu1 %v15274_v27 }
 0x4e0   : > { %9379 = vmatpush3.bf16.msra.mxu1 %v9378_v45  ;;  %v4350_v45 = vld [vmem:[%s16505_s6 + $0x30] sm:$0xff] }
 0x4e2   : > { %v15279_v42 = vpop.permute.xlu1 %10485 }
 0x4e3   : > { %v10488_v56 = vunpack.i.h.bf16 %v15279_v42  ;;  %v10487_v25 = vunpack.i.l.bf16 %v15279_v42  ;;  %10545 = vrot.lane.b32.xlu1 %v15279_v42, %s11150_s20 }
 0x4e5   : > { %v15283_v18 = vpack.c.bf16 %v10488_v56, %v10487_v25 }
 0x4e6   : > { %v15285_v5 = vpop.permute.xlu1 %10495 }
 0x4e7   : > { %v10498_v31 = vunpack.i.h.bf16 %v15285_v5  ;;  %v10497_v57 = vunpack.i.l.bf16 %v15285_v5  ;;  %9381 = vmatprep.subr.bf16.mxu1 %v15283_v18  ;;  %10555 = vrot.lane.b32.xlu1 %v15285_v5, %s11150_s20 }
 0x4e8   : > { %9383 = vmatpush3.bf16.msra.mxu1 %v9382_v63  ;;  %v4354_v63 = vld [vmem:[%s16506_s7 + $0x10] sm:$0xff] }
 0x4e9   : > { %v15308_v16 = vpack.c.bf16 %v10498_v31, %v10497_v57 }
 0x4ea   : > { %v15292_v20 = vpop.permute.xlu1 %10505  ;;  %v15294_v7 = vpop.permute.xlu0 %10490 }
 0x4eb   : > { %v10508_v62 = vunpack.i.h.bf16 %v15292_v20  ;;  %v10507_v43 = vunpack.i.l.bf16 %v15292_v20  ;;  %v10493_v44 = vunpack.i.h.bf16 %v15294_v7  ;;  %v10492_v61 = vunpack.i.l.bf16 %v15294_v7  ;;  %10565 = vrot.lane.b32.xlu1 %v15292_v20, %s11150_s20  ;;  %10550 = vrot.lane.b32.xlu0 %v15294_v7, %s11150_s20 }
 0x4ed   : > { %v15302_v28 = vpack.c.bf16 %v10493_v44, %v10492_v61  ;;  %v15326_v1 = vpack.c.bf16 %v10508_v62, %v10507_v43 }
 0x4ee   : > { %v15304_v51 = vpop.permute.xlu1 %10515  ;;  %v15306_v15 = vpop.permute.xlu0 %10500 }
 0x4ef   : > { %v10518_v29 = vunpack.i.h.bf16 %v15304_v51  ;;  %v10517_v38 = vunpack.i.l.bf16 %v15304_v51  ;;  %v10503_v33 = vunpack.i.h.bf16 %v15306_v15  ;;  %v10502_v59 = vunpack.i.l.bf16 %v15306_v15  ;;  %9385 = vmatprep.subr.bf16.mxu1 %v15302_v28  ;;  %10575 = vrot.lane.b32.xlu1 %v15304_v51, %s11150_s20 }
 0x4f0   : > { %9387 = vmatpush3.bf16.msra.mxu1 %v9386_v11  ;;  %10560 = vrot.lane.b32.xlu0 %v15306_v15, %s11150_s20 }
 0x4f1   : > { %9389 = vmatprep.subr.bf16.mxu1 %v15308_v16  ;;  %v15320_v47 = vpack.c.bf16 %v10503_v33, %v10502_v59  ;;  %v15342_v49 = vpack.c.bf16 %v10518_v29, %v10517_v38 }
 0x4f2   : > { %v15322_v52 = vpop.permute.xlu1 %10525  ;;  %v15324_v60 = vpop.permute.xlu0 %10510 }
 0x4f3   : > { %v10528_v9 = vunpack.i.h.bf16 %v15322_v52  ;;  %v10527_v14 = vunpack.i.l.bf16 %v15322_v52  ;;  %v10513_v10 = vunpack.i.h.bf16 %v15324_v60  ;;  %v10512_v41 = vunpack.i.l.bf16 %v15324_v60  ;;  %10585 = vrot.lane.b32.xlu1 %v15322_v52, %s11150_s20 }
 0x4f4   : > { %9391 = vmatpush3.bf16.msra.mxu1 %v15320_v47  ;;  %10570 = vrot.lane.b32.xlu0 %v15324_v60, %s11150_s20 }
 0x4f5   : > { %9393 = vmatprep.subr.bf16.mxu1 %v15326_v1  ;;  %v15338_v6 = vpack.c.bf16 %v10513_v10, %v10512_v41  ;;  %v15352_v40 = vpack.c.bf16 %v10528_v9, %v10527_v14 }
 0x4f6   : > { %v10521_v8 = vpop.permute.xlu0 %10520 }
 0x4f7   : > { %v10523_v21 = vunpack.i.h.bf16 %v10521_v8  ;;  %v10522_v23 = vunpack.i.l.bf16 %v10521_v8  ;;  %10595 = vrot.lane.b32.xlu1 %v15261_v32, %s11154_s23 }
 0x4f8   : > { %9395 = vmatpush3.bf16.msra.mxu1 %v15338_v6  ;;  %10580 = vrot.lane.b32.xlu0 %v10521_v8, %s11150_s20 }
 0x4f9   : > { %9397 = vmatprep.subr.bf16.mxu1 %v15342_v49  ;;  %v15348_v17 = vpack.c.bf16 %v10523_v21, %v10522_v23 }
 0x4fa   : > { %v10531_v58 = vpop.permute.xlu0 %10530 }
 0x4fb   : > { %v10533_v50 = vunpack.i.h.bf16 %v10531_v58  ;;  %v10532_v30 = vunpack.i.l.bf16 %v10531_v58  ;;  %10605 = vrot.lane.b32.xlu1 %v15279_v42, %s11154_s23 }
 0x4fc   : > { %9399 = vmatpush3.bf16.msra.mxu1 %v15348_v17  ;;  %10590 = vrot.lane.b32.xlu0 %v10531_v58, %s11150_s20 }
 0x4fd   : > { %9401 = vmatprep.subr.bf16.mxu1 %v15352_v40  ;;  %v15357_v26 = vpack.c.bf16 %v10533_v50, %v10532_v30 }
 0x4ff   : > { %10610 = vrot.lane.b32.xlu1 %v15285_v5, %s11154_s23 }
 0x500   : > { %9403 = vmatpush3.bf16.msra.mxu1 %v15357_v26  ;;  %10600 = vrot.lane.b32.xlu0 %v15270_v24, %s11154_s23 }
 0x503   : > { %4441 = vmatmul.mubr.f32.vlgmr.msra.gmra.mrb[64].mxu1 %v4344_v39  ;;  %10620 = vrot.lane.b32.xlu1 %v15261_v32, %s11155_s24 }
 0x504   : > { %4445 = vmatprep.mubr.f32.mxu1 %v4347_v0  ;;  %10615 = vrot.lane.b32.xlu0 %v15306_v15, %s11154_s23 }
 0x507   : > { %4446 = vmatmul.mubr.f32.gmra.mrb[66].mxu1 %v4346_v35  ;;  %10635 = vrot.lane.b32.xlu1 %v15324_v60, %s11154_s23 }
 0x508   : > { %4450 = vmatprep.mubr.f32.mxu1 %v4349_v36  ;;  %10625 = vrot.lane.b32.xlu0 %v15294_v7, %s11154_s23 }
 0x50b   : > { %4451 = vmatmul.mubr.f32.gmra.mrb[68].mxu1 %v4348_v22  ;;  %10645 = vrot.lane.b32.xlu1 %v15304_v51, %s11154_s23 }
 0x50c   : > { %4455 = vmatprep.mubr.f32.mxu1 %v4351_v53  ;;  %10630 = vrot.lane.b32.xlu0 %v15292_v20, %s11154_s23 }
 0x50f   : > { %4456 = vmatmul.mubr.f32.gmra.mrb[70].mxu1 %v4350_v45  ;;  %10655 = vrot.lane.b32.xlu1 %v15279_v42, %s11155_s24 }
 0x510   : > { %4610 = vmatprep.mubr.f32.mxu1 %v7824_v34  ;;  %10640 = vrot.lane.b32.xlu0 %v15270_v24, %s11155_s24 }
 0x513   : > { %10665 = vrot.lane.b32.xlu1 %v10531_v58, %s11154_s23 }
 0x514   : > { %10650 = vrot.lane.b32.xlu0 %v10521_v8, %s11154_s23 }
 0x517   : > { %10675 = vrot.lane.b32.xlu1 %v15285_v5, %s11155_s24 }
 0x518   : > { %10660 = vrot.lane.b32.xlu0 %v15322_v52, %s11154_s23 }
 0x51b   : > { %10685 = vrot.lane.b32.xlu1 %v15292_v20, %s11155_s24 }
 0x51c   : > { %10670 = vrot.lane.b32.xlu0 %v15294_v7, %s11155_s24 }
 0x51f   : > { %10695 = vrot.lane.b32.xlu1 %v15304_v51, %s11155_s24 }
 0x520   : > { %10680 = vrot.lane.b32.xlu0 %v15306_v15, %s11155_s24 }
 0x523   : > { %10705 = vrot.lane.b32.xlu1 %v15322_v52, %s11155_s24 }
 0x524   : > { %10690 = vrot.lane.b32.xlu0 %v15324_v60, %s11155_s24 }
 0x527   : > { %4358 = vperm.xlu1 %10473, %v4352_v12  }
 0x528   : > { %10700 = vrot.lane.b32.xlu0 %v10521_v8, %s11155_s24 }
 0x52b   : > { %4368 = vperm.xlu1 %10473, %v4354_v63  }
 0x52c   : > { %10710 = vrot.lane.b32.xlu0 %v10531_v58, %s11155_s24  ;;  %s16473_s24 = scalar_lea.vmem %s16697_s0, %s9960_s30 }
 0x530   : > { %4363 = vperm.xlu0 %10472, %v4353_v54  }
 0x534   : > { %4373 = vperm.xlu0 %10472, %v4355_v3  }
 0x545   : > { %v10536_v55 = vpop.permute.xlu1 %10535 }
 0x546   : > { %v10538_v11 = vunpack.i.h.bf16 %v10536_v55  ;;  %v10537_v46 = vunpack.i.l.bf16 %v10536_v55 }
 0x548   : > { %v9404_v32 = vpack.c.bf16 %v10538_v11, %v10537_v46  ;;  %v7823_v11 = vld [vmem:[%s16505_s6 + $0x40] sm:$0xff] }
 0x54a   : > { %9405 = vmatprep.subr.bf16.mxu1 %v9404_v32  ;;  %v7826_v32 = vld [vmem:[%s16505_s6 + $0x58] sm:$0xff] }
 0x54b   : > { %9407 = vmatpush3.bf16.msra.mxu1 %v15320_v47 }
 0x54d   : > { %v10541_v48 = vpop.permute.xlu0 %10540 }
 0x54e   : > { %v10543_v2 = vunpack.i.h.bf16 %v10541_v48  ;;  %v10542_v24 = vunpack.i.l.bf16 %v10541_v48 }
 0x550   : > { %v9408_v13 = vpack.c.bf16 %v10543_v2, %v10542_v24 }
 0x552   : > { %9409 = vmatprep.subr.bf16.mxu1 %v9408_v13 }
 0x553   : > { %9411 = vmatpush3.bf16.msra.mxu1 %v15338_v6 }
 0x555   : > { %v10546_v37 = vpop.permute.xlu1 %10545 }
 0x556   : > { %v10548_v42 = vunpack.i.h.bf16 %v10546_v37  ;;  %v10547_v56 = vunpack.i.l.bf16 %v10546_v37 }
 0x558   : > { %v9412_v25 = vpack.c.bf16 %v10548_v42, %v10547_v56 }
 0x559   : > { %v10556_v5 = vpop.permute.xlu1 %10555 }
 0x55a   : > { %9413 = vmatprep.subr.bf16.mxu1 %v9412_v25  ;;  %v10558_v20 = vunpack.i.h.bf16 %v10556_v5  ;;  %v10557_v7 = vunpack.i.l.bf16 %v10556_v5  ;;  %v7825_v25 = vld [vmem:[%s16505_s6 + $0x50] sm:$0xff] }
 0x55b   : > { %9415 = vmatpush3.bf16.msra.mxu1 %v15348_v17 }
 0x55c   : > { %v9420_v59 = vpack.c.bf16 %v10558_v20, %v10557_v7 }
 0x55d   : > { %v10566_v31 = vpop.permute.xlu1 %10565  ;;  %v10551_v57 = vpop.permute.xlu0 %10550 }
 0x55e   : > { %v10553_v62 = vunpack.i.h.bf16 %v10551_v57  ;;  %v10552_v43 = vunpack.i.l.bf16 %v10551_v57  ;;  %v10568_v51 = vunpack.i.h.bf16 %v10566_v31  ;;  %v10567_v15 = vunpack.i.l.bf16 %v10566_v31  ;;  %v7828_v31 = vld [vmem:[%s16505_s6 + $0x68] sm:$0xff] }
 0x560   : > { %v9416_v61 = vpack.c.bf16 %v10553_v62, %v10552_v43  ;;  %v9424_v9 = vpack.c.bf16 %v10568_v51, %v10567_v15  ;;  %v7830_v51 = vld [vmem:[%s16505_s6 + $0x78] sm:$0xff] }
 0x561   : > { %v10576_v44 = vpop.permute.xlu1 %10575 }
 0x562   : > { %v10561_v29 = vpop.permute.xlu0 %10560  ;;  %9417 = vmatprep.subr.bf16.mxu1 %v9416_v61  ;;  %v10578_v14 = vunpack.i.h.bf16 %v10576_v44  ;;  %v10577_v10 = vunpack.i.l.bf16 %v10576_v44 }
 0x563   : > { %v10563_v38 = vunpack.i.h.bf16 %v10561_v29  ;;  %v10562_v33 = vunpack.i.l.bf16 %v10561_v29  ;;  %9419 = vmatpush3.bf16.msra.mxu1 %v15357_v26 }
 0x564   : > { %9421 = vmatprep.subr.bf16.mxu1 %v9420_v59  ;;  %v9428_v39 = vpack.c.bf16 %v10578_v14, %v10577_v10 }
 0x565   : > { %v9422_v47 = vpack.c.bf16 %v10563_v38, %v10562_v33  ;;  %v10586_v52 = vpop.permute.xlu1 %10585  ;;  %v7832_v33 = vld [vmem:[%s16505_s6 + $0x88] sm:$0xff] }
 0x566   : > { %v10571_v60 = vpop.permute.xlu0 %10570  ;;  %v10588_v23 = vunpack.i.h.bf16 %v10586_v52  ;;  %v10587_v17 = vunpack.i.l.bf16 %v10586_v52 }
 0x567   : > { %v10573_v41 = vunpack.i.h.bf16 %v10571_v60  ;;  %v10572_v6 = vunpack.i.l.bf16 %v10571_v60  ;;  %9423 = vmatpush3.bf16.msra.mxu1 %v9422_v47 }
 0x568   : > { %9425 = vmatprep.subr.bf16.mxu1 %v9424_v9  ;;  %v9432_v36 = vpack.c.bf16 %v10588_v23, %v10587_v17 }
 0x569   : > { %v9426_v8 = vpack.c.bf16 %v10573_v41, %v10572_v6  ;;  %v10596_v21 = vpop.permute.xlu1 %10595 }
 0x56a   : > { %v10581_v58 = vpop.permute.xlu0 %10580  ;;  %v10598_v22 = vunpack.i.h.bf16 %v10596_v21  ;;  %v10597_v53 = vunpack.i.l.bf16 %v10596_v21 }
 0x56b   : > { %v10583_v50 = vunpack.i.h.bf16 %v10581_v58  ;;  %v10582_v30 = vunpack.i.l.bf16 %v10581_v58  ;;  %9427 = vmatpush3.bf16.msra.mxu1 %v9426_v8 }
 0x56c   : > { %9429 = vmatprep.subr.bf16.mxu1 %v9428_v39  ;;  %v9436_v55 = vpack.c.bf16 %v10598_v22, %v10597_v53 }
 0x56d   : > { %v9430_v26 = vpack.c.bf16 %v10583_v50, %v10582_v30  ;;  %v10606_v0 = vpop.permute.xlu1 %10605 }
 0x56e   : > { %v10591_v35 = vpop.permute.xlu0 %10590  ;;  %v10608_v13 = vunpack.i.h.bf16 %v10606_v0  ;;  %v10607_v37 = vunpack.i.l.bf16 %v10606_v0 }
 0x56f   : > { %v10593_v45 = vunpack.i.h.bf16 %v10591_v35  ;;  %v10592_v34 = vunpack.i.l.bf16 %v10591_v35  ;;  %9431 = vmatpush3.bf16.msra.mxu1 %v9430_v26 }
 0x570   : > { %9433 = vmatprep.subr.bf16.mxu1 %v9432_v36  ;;  %v9444_v62 = vpack.c.bf16 %v10608_v13, %v10607_v37 }
 0x571   : > { %v9434_v12 = vpack.c.bf16 %v10593_v45, %v10592_v34  ;;  %v10611_v19 = vpop.permute.xlu1 %10610 }
 0x572   : > { %v10601_v63 = vpop.permute.xlu0 %10600  ;;  %v10613_v43 = vunpack.i.h.bf16 %v10611_v19  ;;  %v10612_v44 = vunpack.i.l.bf16 %v10611_v19 }
 0x573   : > { %v10603_v54 = vunpack.i.h.bf16 %v10601_v63  ;;  %v10602_v3 = vunpack.i.l.bf16 %v10601_v63  ;;  %9435 = vmatpush3.bf16.msra.mxu1 %v9434_v12 }
 0x574   : > { %9437 = vmatprep.subr.bf16.mxu1 %v9436_v55 }
 0x575   : > { %v10621_v46 = vpop.permute.xlu1 %10620  ;;  %v9440_v42 = vpack.c.bf16 %v10603_v54, %v10602_v3 }
 0x576   : > { %v10623_v48 = vunpack.i.h.bf16 %v10621_v46  ;;  %v10622_v2 = vunpack.i.l.bf16 %v10621_v46  ;;  %v10616_v24 = vpop.permute.xlu0 %10615  ;;  %4611 = vmatmul.mubr.f32.vlgmr.msra.gmra.mrb[72].mxu1 %v7823_v11  ;;  %v7848_v11 = vld [vmem:[%s16507_s8 + $0xf8] sm:$0xff]  ;;  %v7851_v46 = vld [vmem:[%s16507_s8 + $0x110] sm:$0xff] }
 0x577   : > { %9439 = vmatpush3.bf16.msra.mxu1 %v15265_v4  ;;  %4615 = vmatprep.mubr.f32.mxu1 %v7826_v32  ;;  %v7827_v4 = vld [vmem:[%s16505_s6 + $0x60] sm:$0xff]  ;;  %v10618_v59 = vunpack.i.h.bf16 %v10616_v24  ;;  %v10617_v47 = vunpack.i.l.bf16 %v10616_v24  ;;  %v9500_v24 = vpack.c.bf16 %v7851_v46, %v7848_v11  ;;  %v7855_v11 = vld [vmem:[%s16507_s8 + $0x130] sm:$0xff]  ;;  %v7858_v46 = vld [vmem:[%s16507_s8 + $0x148] sm:$0xff] }
 0x578   : > { %v9468_v56 = vpack.c.bf16 %v10623_v48, %v10622_v2  ;;  %9441 = vmatprep.subr.bf16.mxu1 %v9440_v42 }
 0x579   : > { %v10636_v5 = vpop.permute.xlu1 %10635  ;;  %v9454_v21 = vpack.c.bf16 %v10618_v59, %v10617_v47 }
 0x57a   : > { %v10626_v57 = vpop.permute.xlu0 %10625  ;;  %9469 = vmatprep.subr.bf16.mxu0 %v9468_v56  ;;  %4616 = vmatmul.mubr.f32.gmra.mrb[74].mxu1 %v7825_v25  ;;  %v10638_v23 = vunpack.i.h.bf16 %v10636_v5  ;;  %v10637_v17 = vunpack.i.l.bf16 %v10636_v5  ;;  %v7847_v25 = vld [vmem:[%s16507_s8 + $0xf0] sm:$0xff]  ;;  %v7850_v5 = vld [vmem:[%s16507_s8 + $0x108] sm:$0xff] }
 0x57b   : > { %v10628_v20 = vunpack.i.h.bf16 %v10626_v57  ;;  %v10627_v7 = vunpack.i.l.bf16 %v10626_v57  ;;  %9471 = vmatpush3.bf16.msra.mxu0 %v15308_v16  ;;  %9443 = vmatpush3.bf16.msra.mxu1 %v15274_v27  ;;  %v7829_v27 = vld [vmem:[%s16505_s6 + $0x70] sm:$0xff]  ;;  %v9452_v16 = vpack.c.bf16 %v10613_v43, %v10612_v44  ;;  %v7831_v43 = vld [vmem:[%s16505_s6 + $0x80] sm:$0xff] }
 0x57c   : > { %4620 = vmatprep.mubr.f32.mxu1 %v7828_v31  ;;  %9445 = vmatprep.subr.bf16.mxu1 %v9444_v62  ;;  %v7854_v62 = vld [vmem:[%s16507_s8 + $0x128] sm:$0xff] }
 0x57d   : > { %v10646_v61 = vpop.permute.xlu1 %10645  ;;  %v9448_v29 = vpack.c.bf16 %v10628_v20, %v10627_v7 }
 0x57e   : > { %v10631_v15 = vpop.permute.xlu0 %10630  ;;  %4621 = vmatmul.mubr.f32.gmra.mrb[76].mxu1 %v7827_v4  ;;  %v10648_v50 = vunpack.i.h.bf16 %v10646_v61  ;;  %v10647_v30 = vunpack.i.l.bf16 %v10646_v61  ;;  %v7857_v4 = vld [vmem:[%s16507_s8 + $0x140] sm:$0xff]  ;;  %v7834_v61 = vld [vmem:[%s16505_s6 + $0x98] sm:$0xff] }
 0x57f   : > { %9447 = vmatpush3.bf16.msra.mxu1 %v15283_v18  ;;  %4625 = vmatprep.mubr.f32.mxu1 %v7830_v51  ;;  %v10633_v52 = vunpack.i.h.bf16 %v10631_v15  ;;  %v10632_v60 = vunpack.i.l.bf16 %v10631_v15  ;;  %v9502_v51 = vpack.c.bf16 %v7850_v5, %v7847_v25  ;;  %v7846_v25 = vld [vmem:[%s16505_s6 + $0xf8] sm:$0xff]  ;;  %v7845_v5 = vld [vmem:[%s16505_s6 + $0xf0] sm:$0xff] }
 0x580   : > { %9449 = vmatprep.subr.bf16.mxu1 %v9448_v29  ;;  %v9460_v53 = vpack.c.bf16 %v10648_v50, %v10647_v30 }
 0x581   : > { %v10656_v38 = vpop.permute.xlu1 %10655  ;;  %v9456_v39 = vpack.c.bf16 %v10633_v52, %v10632_v60  ;;  %v7860_v52 = vld [vmem:[%s16507_s8 + $0x158] sm:$0xff]  ;;  %v7863_v60 = vld [vmem:[%s16507_s8 + $0x170] sm:$0xff] }
 0x582   : > { %v10641_v9 = vpop.permute.xlu0 %10640  ;;  %v10658_v14 = vunpack.i.h.bf16 %v10656_v38  ;;  %v10657_v10 = vunpack.i.l.bf16 %v10656_v38  ;;  %4626 = vmatmul.mubr.f32.gmra.mrb[78].mxu1 %v7829_v27  ;;  %v7856_v38 = vld [vmem:[%s16507_s8 + $0x138] sm:$0xff] }
 0x583   : > { %v10643_v18 = vunpack.i.h.bf16 %v10641_v9  ;;  %v10642_v41 = vunpack.i.l.bf16 %v10641_v9  ;;  %9451 = vmatpush3.bf16.msra.mxu1 %v15302_v28  ;;  %4780 = vmatprep.mubr.f32.mxu1 %v7832_v33  ;;  %v9458_v28 = vpack.c.bf16 %v10638_v23, %v10637_v17  ;;  %v7859_v23 = vld [vmem:[%s16507_s8 + $0x150] sm:$0xff]  ;;  %v7862_v17 = vld [vmem:[%s16507_s8 + $0x168] sm:$0xff] }
 0x584   : > { %9453 = vmatprep.subr.bf16.mxu1 %v9452_v16  ;;  %v9476_v26 = vpack.c.bf16 %v10658_v14, %v10657_v10  ;;  %v9504_v16 = vpack.c.bf16 %v7857_v4, %v7854_v62  ;;  %v7833_v14 = vld [vmem:[%s16505_s6 + $0x90] sm:$0xff]  ;;  %v7872_v62 = vld [vmem:[%s16507_s8 + $0x1b8] sm:$0xff] }
 0x585   : > { %v9472_v6 = vpack.c.bf16 %v10643_v18, %v10642_v41  ;;  %v10666_v8 = vpop.permute.xlu1 %10665  ;;  %v7836_v18 = vld [vmem:[%s16505_s6 + $0xa8] sm:$0xff]  ;;  %v7875_v4 = vld [vmem:[%s16507_s8 + $0x1d0] sm:$0x3f] }
 0x586   : > { %v10651_v58 = vpop.permute.xlu0 %10650  ;;  %v10668_v12 = vunpack.i.h.bf16 %v10666_v8  ;;  %v10667_v63 = vunpack.i.l.bf16 %v10666_v8 }
 0x587   : > { %9473 = vmatprep.subr.bf16.mxu0 %v9472_v6  ;;  %9455 = vmatpush3.bf16.msra.mxu1 %v9454_v21  ;;  %v10653_v35 = vunpack.i.h.bf16 %v10651_v58  ;;  %v10652_v36 = vunpack.i.l.bf16 %v10651_v58  ;;  %v9508_v21 = vpack.c.bf16 %v7863_v60, %v7860_v52  ;;  %v11157_v52 = vmov 0.0  }
 0x588   : > { %9475 = vmatpush3.bf16.msra.mxu0 %v15326_v1  ;;  %9457 = vmatprep.subr.bf16.mxu1 %v9456_v39  ;;  %v9466_v13 = vpack.c.bf16 %v10668_v12, %v10667_v63 }
 0x589   : > { %9477 = vmatprep.subr.bf16.mxu0 %v9476_v26  ;;  %v10676_v0 = vpop.permute.xlu1 %10675  ;;  %v9462_v54 = vpack.c.bf16 %v10653_v35, %v10652_v36  ;;  %v7866_v26 = vld [vmem:[%s16507_s8 + $0x188] sm:$0xff]  ;;  %v7838_v36 = vld [vmem:[%s16505_s6 + $0xb8] sm:$0xff] }
 0x58a   : > { %v10661_v22 = vpop.permute.xlu0 %10660  ;;  %v10678_v3 = vunpack.i.h.bf16 %v10676_v0  ;;  %v10677_v1 = vunpack.i.l.bf16 %v10676_v0  ;;  %v7869_v0 = vld [vmem:[%s16507_s8 + $0x1a0] sm:$0xff] }
 0x58b   : > { %v10663_v45 = vunpack.i.h.bf16 %v10661_v22  ;;  %v10662_v34 = vunpack.i.l.bf16 %v10661_v22  ;;  %9459 = vmatpush3.bf16.msra.mxu1 %v9458_v28  ;;  %v7835_v28 = vld [vmem:[%s16505_s6 + $0xa0] sm:$0xff]  ;;  %v9510_v22 = vpack.c.bf16 %v7862_v17, %v7859_v23  ;;  %v9512_v12 = vpack.c.bf16 %v7869_v0, %v7866_v26 }
 0x58c   : > { %9479 = vmatpush3.bf16.msra.mxu0 %v15342_v49  ;;  %9461 = vmatprep.subr.bf16.mxu1 %v9460_v53  ;;  %v9484_v37 = vpack.c.bf16 %v10678_v3, %v10677_v1  ;;  %v7837_v3 = vld [vmem:[%s16505_s6 + $0xb0] sm:$0xff] }
 0x58d   : > { %v10686_v19 = vpop.permute.xlu1 %10685  ;;  %v9464_v32 = vpack.c.bf16 %v10663_v45, %v10662_v34  ;;  %v7849_v45 = vld [vmem:[%s16507_s8 + $0x100] sm:$0xff]  ;;  %v7852_v34 = vld [vmem:[%s16507_s8 + $0x118] sm:$0xff] }
 0x58e   : > { %v10671_v55 = vpop.permute.xlu0 %10670  ;;  %v10688_v31 = vunpack.i.h.bf16 %v10686_v19  ;;  %v10687_v57 = vunpack.i.l.bf16 %v10686_v19 }
 0x58f   : > { %v10673_v48 = vunpack.i.h.bf16 %v10671_v55  ;;  %v10672_v2 = vunpack.i.l.bf16 %v10671_v55  ;;  %9463 = vmatpush3.bf16.msra.mxu1 %v9462_v54  ;;  %v9522_v55 = vpack.c.bf16 %v7852_v34, %v7849_v45  ;;  %v4985_v45 = vld [vmem:[%s16507_s8 + $0x50] sm:$0xff] }
 0x590   : > { %9465 = vmatprep.subr.bf16.mxu1 %v9464_v32  ;;  %v9488_v33 = vpack.c.bf16 %v10688_v31, %v10687_v57  ;;  %v7839_v32 = vld [vmem:[%s16505_s6 + $0xc0] sm:$0xff]  ;;  %v7868_v57 = vld [vmem:[%s16507_s8 + $0x198] sm:$0xff] }
 0x591   : > { %v9480_v49 = vpack.c.bf16 %v10673_v48, %v10672_v2  ;;  %v10696_v42 = vpop.permute.xlu1 %10695  ;;  %v7842_v48 = vld [vmem:[%s16505_s6 + $0xd8] sm:$0xff]  ;;  %v9526_v2 = vpack.c.bf16 %v7858_v46, %v7855_v11  ;;  %v7865_v31 = vld [vmem:[%s16507_s8 + $0x180] sm:$0xff]  ;;  %v4984_v11 = vld [vmem:[%s16507_s8 + $0x48] sm:$0xff] }
 0x592   : > { %v10681_v56 = vpop.permute.xlu0 %10680  ;;  %v10698_v15 = vunpack.i.h.bf16 %v10696_v42  ;;  %v10697_v29 = vunpack.i.l.bf16 %v10696_v42 }
 0x593   : > { %v10683_v20 = vunpack.i.h.bf16 %v10681_v56  ;;  %v10682_v7 = vunpack.i.l.bf16 %v10681_v56  ;;  %9481 = vmatprep.subr.bf16.mxu0 %v9480_v49  ;;  %9467 = vmatpush3.bf16.msra.mxu1 %v9466_v13  ;;  %v7861_v49 = vld [vmem:[%s16507_s8 + $0x160] sm:$0xff]  ;;  %v7841_v13 = vld [vmem:[%s16505_s6 + $0xd0] sm:$0xff] }
 0x594   : > { %9483 = vmatpush3.bf16.msra.mxu0 %v15352_v40  ;;  %9501 = vmatprep.subr.bf16.mxu1 %v9500_v24  ;;  %v7853_v40 = vld [vmem:[%s16507_s8 + $0x120] sm:$0xff]  ;;  %v9492_v6 = vpack.c.bf16 %v10698_v15, %v10697_v29  ;;  %v7864_v24 = vld [vmem:[%s16507_s8 + $0x178] sm:$0xff]  ;;  %v7874_v15 = vld [vmem:[%s16507_s8 + $0x1c8] sm:$0x3f] }
 0x595   : > { %v9486_v44 = vpack.c.bf16 %v10683_v20, %v10682_v7  ;;  %9485 = vmatprep.subr.bf16.mxu0 %v9484_v37  ;;  %v10706_v9 = vpop.permute.xlu1 %10705  ;;  %v9506_v41 = vpack.c.bf16 %v7856_v38, %v7853_v40  ;;  %v7844_v37 = vld [vmem:[%s16505_s6 + $0xe8] sm:$0xff]  ;;  %v9530_v42 = vpack.c.bf16 %v7864_v24, %v7861_v49  ;;  %v7843_v56 = vld [vmem:[%s16505_s6 + $0xe0] sm:$0xff]  ;;  %v9514_v20 = vpack.c.bf16 %v7868_v57, %v7865_v31  ;;  %v7876_v40 = vld [vmem:[%s16507_s8 + $0x1d8] sm:$0x3f] }
 0x596   : > { %v10691_v27 = vpop.permute.xlu0 %10690  ;;  %4781 = vmatmul.mubr.f32.vlgmr.msra.gmra.mrb[80].mxu1 %v7831_v43  ;;  %v10708_v58 = vunpack.i.h.bf16 %v10706_v9  ;;  %v10707_v50 = vunpack.i.l.bf16 %v10706_v9  ;;  %v7867_v43 = vld [vmem:[%s16507_s8 + $0x190] sm:$0xff]  ;;  %v4976_v38 = vld [vmem:[%s16507_s8 + $0x8] sm:$0xff]  ;;  %v4983_v24 = vld [vmem:[%s16507_s8 + $0x40] sm:$0xff]  ;;  %v11158_v7 = vmov 0.0|0.0  }
 0x597   : > { %v10693_v59 = vunpack.i.h.bf16 %v10691_v27  ;;  %v10692_v47 = vunpack.i.l.bf16 %v10691_v27  ;;  %4785 = vmatprep.mubr.f32.mxu1 %v7834_v61  ;;  %9503 = vmatpush1.bf16.msra.mxu1 %v9502_v51  ;;  %v7870_v61 = vld [vmem:[%s16507_s8 + $0x1a8] sm:$0xff]  ;;  %v7871_v51 = vld [vmem:[%s16507_s8 + $0x1b0] sm:$0xff]  ;;  %v4987_v31 = vld [vmem:[%s16507_s8 + $0x60] sm:$0xff] }
 0x598   : > { %9487 = vmatpush3.bf16.msra.mxu0 %v9486_v44  ;;  %9505 = vmatprep.subr.bf16.mxu1 %v9504_v16  ;;  %v9496_v19 = vpack.c.bf16 %v10708_v58, %v10707_v50  ;;  %v9516_v44 = vpack.c.bf16 %v7875_v4, %v7872_v62  ;;  %v9534_v29 = vpack.c.bf16 %v7870_v61, %v7867_v43  ;;  %v7873_v16 = vld [vmem:[%s16507_s8 + $0x1c0] sm:$0xff]  ;;  %v4990_v57 = vld [vmem:[%s16507_s8 + $0x78] sm:$0xff]  ;;  %v4997_v43 = vld [vmem:[%s16507_s8 + $0xb0] sm:$0xff] }
 0x599   : > { %v9490_v10 = vpack.c.bf16 %v10693_v59, %v10692_v47  ;;  %9489 = vmatprep.subr.bf16.mxu0 %v9488_v33  ;;  %v9519_v27 = vpack.c.bf16 %v7874_v15, %v7871_v51  ;;  %v9538_v33 = vpack.c.bf16 %v7876_v40, %v7873_v16  ;;  %v4979_v59 = vld [vmem:[%s16507_s8 + $0x20] sm:$0xff]  ;;  %v4994_v4 = vld [vmem:[%s16507_s8 + $0x98] sm:$0xff]  ;;  %v4989_v51 = vld [vmem:[%s16507_s8 + $0x70] sm:$0xff] }
 0x59a   : > { %v10701_v8 = vpop.permute.xlu0 %10700  ;;  %4786 = vmatmul.mubr.f32.gmra.mrb[82].mxu1 %v7833_v14  ;;  %v9544_v47 = vpack.c.bf16 %v4979_v59, %v4976_v38  ;;  %v4977_v14 = vld [vmem:[%s16507_s8 + $0x10] sm:$0xff]  ;;  %v4992_v15 = vld [vmem:[%s16507_s8 + $0x88] sm:$0xff]  ;;  %v9556_v38 = vpack.c.bf16 %v4997_v43, %v4994_v4 }
 0x59b   : > { %v10703_v30 = vunpack.i.h.bf16 %v10701_v8  ;;  %v10702_v39 = vunpack.i.l.bf16 %v10701_v8  ;;  %4790 = vmatprep.mubr.f32.mxu1 %v7836_v18  ;;  %9507 = vmatpush1.bf16.msra.mxu1 %v9506_v41  ;;  %v4980_v18 = vld [vmem:[%s16507_s8 + $0x28] sm:$0xff] }
 0x59c   : > { %9491 = vmatpush3.bf16.msra.mxu0 %v9490_v10  ;;  %9509 = vmatprep.subr.bf16.mxu1 %v9508_v21  ;;  %v9566_v41 = vpack.c.bf16 %v4980_v18, %v4977_v14  ;;  %v4996_v59 = vld [vmem:[%s16507_s8 + $0xa8] sm:$0xff]  ;;  %v5003_v14 = vld [vmem:[%s16507_s8 + $0xe0] sm:$0x3f] }
 0x59d   : > { %v9494_v35 = vpack.c.bf16 %v10703_v30, %v10702_v39  ;;  %9493 = vmatprep.subr.bf16.mxu0 %v9492_v6 }
 0x59e   : > { %v10711_v53 = vpop.permute.xlu0 %10710  ;;  %4791 = vmatmul.mubr.f32.gmra.mrb[84].mxu1 %v7835_v28 }
 0x59f   : > { %v10713_v63 = vunpack.i.h.bf16 %v10711_v53  ;;  %v10712_v54 = vunpack.i.l.bf16 %v10711_v53  ;;  %4795 = vmatprep.mubr.f32.mxu1 %v7838_v36  ;;  %9511 = vmatpush1.bf16.msra.mxu1 %v9510_v22  ;;  %v4978_v36 = vld [vmem:[%s16507_s8 + $0x18] sm:$0xff] }
 0x5a0   : > { %9495 = vmatpush3.bf16.msra.mxu0 %v9494_v35  ;;  %9513 = vmatprep.subr.bf16.mxu1 %v9512_v12  ;;  %v4975_v35 = vld [vmem:[%s16507_s8] sm:$0xff]  ;;  %v4982_v53 = vld [vmem:[%s16507_s8 + $0x38] sm:$0xff] }
 0x5a1   : > { %v9498_v1 = vpack.c.bf16 %v10713_v63, %v10712_v54  ;;  %9497 = vmatprep.subr.bf16.mxu0 %v9496_v19  ;;  %v9546_v63 = vpack.c.bf16 %v4978_v36, %v4975_v35  ;;  %v7900_v35 = vld [vmem:[%s16507_s8 + $0x1e8] sm:$0xff]  ;;  %v7903_v36 = vld [vmem:[%s16507_s8 + $0x200] sm:$0xff] }
 0x5a2   : > { %4796 = vmatmul.mubr.f32.gmra.mrb[86].mxu1 %v7837_v3 }
 0x5a3   : > { %9515 = vmatpush1.bf16.msra.mxu1 %v9514_v20  ;;  %5122 = vmatprep.mubr.f32.mxu1 %v11157_v52 }
 0x5a4   : > { %9499 = vmatpush3.bf16.msra.mxu0 %v9498_v1  ;;  %9518 = vmatprep.subr.msk.bf16.mxu1 %vm15587_vm3, %v9516_v44  ;;  %v9548_v1 = vpack.c.bf16 %v4985_v45, %v4982_v53 }
 0x5a5   : > { %9523 = vmatprep.subr.bf16.mxu0 %v9522_v55 }
 0x5a6   : > { %v15650_v22 = vpop.permute.xlu1 %4358 }
 0x5a7   : > { %4951 = vmatmul.mubr.f32.vlgmr.msra.gmra.mrb[72].mxu0 %v7839_v32  ;;  %9521 = vmatpush1.bf16.msk.msra.mxu1 %vm15587_vm3, %v9519_v27  ;;  %v4988_v32 = vld [vmem:[%s16507_s8 + $0x68] sm:$0xff]  ;;  %v9554_v27 = vpack.c.bf16 %v4990_v57, %v4987_v31  ;;  %v7911_v31 = vld [vmem:[%s16507_s8 + $0x240] sm:$0xff]  ;;  %v7914_v57 = vld [vmem:[%s16507_s8 + $0x258] sm:$0xff] }
 0x5a8   : > { %4955 = vmatprep.mubr.f32.mxu0 %v7842_v48  ;;  %9525 = vmatpush3.bf16.msra.mxu0 %v9522_v55  ;;  %v4981_v55 = vld [vmem:[%s16507_s8 + $0x30] sm:$0xff]  ;;  %v4991_v48 = vld [vmem:[%s16507_s8 + $0x80] sm:$0xff] }
 0x5a9   : > { %9527 = vmatprep.subr.bf16.mxu0 %v9526_v2  ;;  %9545 = vmatprep.subr.bf16.mxu1 %v9544_v47 }
 0x5aa   : > { %v15689_v20 = vpop.permute.xlu1 %4368 }
 0x5ab   : > { %4956 = vmatmul.mubr.f32.gmra.mrb[74].mxu0 %v7841_v13  ;;  %v4986_v13 = vld [vmem:[%s16507_s8 + $0x58] sm:$0xff] }
 0x5ac   : > { %4960 = vmatprep.mubr.f32.mxu0 %v7844_v37  ;;  %9529 = vmatpush3.bf16.msra.mxu0 %v9526_v2  ;;  %v9570_v62 = vpack.c.bf16 %v4986_v13, %v4983_v24 }
 0x5ad   : > { %9531 = vmatprep.subr.bf16.mxu0 %v9530_v42 }
 0x5af   : > { %4961 = vmatmul.mubr.f32.gmra.mrb[76].mxu0 %v7843_v56  ;;  %v15665_v46 = vpop.permute.xlu0 %4363 }
 0x5b0   : > { %4965 = vmatprep.mubr.f32.mxu0 %v7846_v25  ;;  %9533 = vmatpush3.bf16.msra.mxu0 %v9530_v42  ;;  %v9550_v42 = vpack.c.bf16 %v4984_v11, %v4981_v55  ;;  %v7904_v55 = vld [vmem:[%s16507_s8 + $0x208] sm:$0xff] }
 0x5b1   : > { %9535 = vmatprep.subr.bf16.mxu0 %v9534_v29 }
 0x5b3   : > { %4966 = vmatmul.mubr.f32.gmra.mrb[78].mxu0 %v7845_v5  ;;  %v9552_v5 = vpack.c.bf16 %v4991_v48, %v4988_v32  ;;  %v15713_v47 = vpop.permute.xlu0 %4373 }
 0x5b4   : > { %9537 = vmatpush3.bf16.msra.mxu0 %v9534_v29 }
 0x5b5   : > { %9540 = vmatprep.subr.msk.bf16.mxu0 %vm15587_vm3, %v9538_v33 }
 0x5b8   : > { %9543 = vmatpush3.bf16.msk.msra.mxu0 %vm15587_vm3, %v9538_v33  ;;  %v4993_v33 = vld [vmem:[%s16507_s8 + $0x90] sm:$0xff] }
 0x5b9   : > { %9567 = vmatprep.subr.bf16.mxu0 %v9566_v41 }
 0x5d6   : > { %v8516_v60 = vpop.f32.mrb[64].mxu1 }
 0x5d7   : > { %v8517_v9 = vpop.f32.mrb[65].mxu1 }
 0x5d8   : > { %v15633_v10 = vadd.f32 %v8517_v9, %v8516_v60  ;;  %v9574_v60 = vpack.c.bf16 %v4992_v15, %v4989_v51  ;;  %v5000_v9 = vld [vmem:[%s16507_s8 + $0xc8] sm:$0xff]  ;;  %v7913_v51 = vld [vmem:[%s16507_s8 + $0x250] sm:$0xff] }
 0x5d9   : > { %v7916_v15 = vld [vmem:[%s16507_s8 + $0x268] sm:$0xff] }
 0x5da   : > { %v8519_v6 = vpop.f32.mrb[66].mxu1  ;;  %v4443_v18 = vadd.f32 %v15633_v10, %v15650_v22  ;;  %v9560_v10 = vpack.c.bf16 %v5003_v14, %v5000_v9  ;;  %v7924_v9 = vld [vmem:[%s16507_s8 + $0x2a8] sm:$0xff]  ;;  %v7927_v14 = vld [vmem:[%s16507_s8 + $0x2c0] sm:$0x3f] }
 0x5db   : > { %v8520_v8 = vpop.f32.mrb[67].mxu1 }
 0x5dc   : > { %v15638_v21 = vadd.f32 %v8520_v8, %v8519_v6  ;;  %v4995_v6 = vld [vmem:[%s16507_s8 + $0xa0] sm:$0xff]  ;;  %v4998_v8 = vld [vmem:[%s16507_s8 + $0xb8] sm:$0xff]  ;;  %v4461_v53 = vmax.f32 %v4443_v18, 0.0 }
 0x5de   : > { %v8522_v23 = vpop.f32.mrb[68].mxu1  ;;  %v4448_v32 = vadd.f32 %v15638_v21, %v15665_v46  ;;  %v7912_v21 = vld [vmem:[%s16507_s8 + $0x248] sm:$0xff] }
 0x5df   : > { %v8523_v17 = vpop.f32.mrb[69].mxu1 }
 0x5e0   : > { %v15640_v58 = vadd.f32 %v8523_v17, %v8522_v23  ;;  %v9558_v23 = vpack.c.bf16 %v4996_v59, %v4993_v33  ;;  %v7917_v33 = vld [vmem:[%s16507_s8 + $0x270] sm:$0xff]  ;;  %v7920_v59 = vld [vmem:[%s16507_s8 + $0x288] sm:$0xff] }
 0x5e2   : > { %v8525_v50 = vpop.f32.mrb[70].mxu1  ;;  %v4453_v24 = vadd.f32 %v15640_v58, %v15689_v20 }
 0x5e3   : > { %v8526_v30 = vpop.f32.mrb[71].mxu1 }
 0x5e4   : > { %v15642_v39 = vadd.f32 %v8526_v30, %v8525_v50  ;;  %v4999_v50 = vld [vmem:[%s16507_s8 + $0xc0] sm:$0xff]  ;;  %v5002_v30 = vld [vmem:[%s16507_s8 + $0xd8] sm:$0x3f] }
 0x5e5   : > { %v9563_v45 = vpack.c.bf16 %v5002_v30, %v4999_v50  ;;  %v9604_v30 = vpack.c.bf16 %v7927_v14, %v7924_v9  ;;  %v7962_v9 = vld [vmem:[%s16507_s8 + $0x380] sm:$0xff] }
 0x649   : > { %v8560_v26 = vpop.f32.mrb[72].mxu1 }
 0x64a   : > { %v8561_v0 = vpop.f32.mrb[73].mxu1 }
 0x64b   : > { %v8562_v28 = vadd.f32 %v8561_v0, %v8560_v26  ;;  %v5001_v26 = vld [vmem:[%s16507_s8 + $0xd0] sm:$0xff]  ;;  %v9578_v0 = vpack.c.bf16 %v4998_v8, %v4995_v6  ;;  %v7919_v6 = vld [vmem:[%s16507_s8 + $0x280] sm:$0xff]  ;;  %v7922_v8 = vld [vmem:[%s16507_s8 + $0x298] sm:$0xff] }
 0x64d   : > { %v4613_v34 = vadd.f32 %v8562_v28, %v15650_v22  ;;  %v8563_v12 = vpop.f32.mrb[74].mxu1  ;;  %v5004_v28 = vld [vmem:[%s16507_s8 + $0xe8] sm:$0x3f] }
 0x64e   : > { %v8564_v19 = vpop.f32.mrb[75].mxu1 }
 0x64f   : > { %v4631_v54 = vmax.f32 %v4613_v34, 0.0  ;;  %v8565_v3 = vadd.f32 %v8564_v19, %v8563_v12  ;;  %v9582_v34 = vpack.c.bf16 %v5004_v28, %v5001_v26  ;;  %v9588_v12 = vpack.c.bf16 %v7903_v36, %v7900_v35  ;;  %v7899_v19 = vld [vmem:[%s16507_s8 + $0x1e0] sm:$0xff]  ;;  %v7941_v35 = vld [vmem:[%s16507_s8 + $0x2d8] sm:$0xff]  ;;  %v7944_v36 = vld [vmem:[%s16507_s8 + $0x2f0] sm:$0xff] }
 0x650   : > { %v7923_v26 = vld [vmem:[%s16507_s8 + $0x2a0] sm:$0xff]  ;;  %v9622_v28 = vpack.c.bf16 %v7922_v8, %v7919_v6 }
 0x651   : > { %v4618_v2 = vadd.f32 %v8565_v3, %v15665_v46  ;;  %v8566_v49 = vpop.f32.mrb[76].mxu1  ;;  %7879 = vmatmul.mubr.msk.f32.vlgmr.msra.gmra.mrb[88].mxu1 %vm5036_vm4, %v4631_v54  ;;  %8876 = vmatprep.mubr.msk.f32.mxu0 %vm5036_vm4, %v4631_v54  ;;  %v7906_v54 = vld [vmem:[%s16507_s8 + $0x218] sm:$0xff]  ;;  %v7909_v3 = vld [vmem:[%s16507_s8 + $0x230] sm:$0xff] }
 0x652   : > { %9547 = vmatpush1.bf16.msra.mxu1 %v9546_v63  ;;  %v8567_v37 = vpop.f32.mrb[77].mxu1  ;;  %5128 = vmatprep.mubr.f32.mxu1 %v11157_v52  ;;  %v7902_v63 = vld [vmem:[%s16507_s8 + $0x1f8] sm:$0xff]  ;;  %v9592_v48 = vpack.c.bf16 %v7909_v3, %v7906_v54  ;;  %v9632_v54 = vpack.c.bf16 %v7944_v36, %v7941_v35  ;;  %v7940_v3 = vld [vmem:[%s16507_s8 + $0x2d0] sm:$0xff]  ;;  %v7963_v36 = vld [vmem:[%s16507_s8 + $0x388] sm:$0xff] }
 0x653   : > { %v4632_v56 = vmax.f32 %v4618_v2, 0.0  ;;  %v8568_v25 = vadd.f32 %v8567_v37, %v8566_v49  ;;  %9549 = vmatprep.subr.bf16.mxu1 %v9548_v1  ;;  %v7901_v1 = vld [vmem:[%s16507_s8 + $0x1f0] sm:$0xff]  ;;  %v9590_v11 = vpack.c.bf16 %v7902_v63, %v7899_v19  ;;  %v7908_v49 = vld [vmem:[%s16507_s8 + $0x228] sm:$0xff]  ;;  %v7915_v37 = vld [vmem:[%s16507_s8 + $0x260] sm:$0xff] }
 0x654   : > { %v7905_v2 = vld [vmem:[%s16507_s8 + $0x210] sm:$0xff]  ;;  %v9610_v13 = vpack.c.bf16 %v7904_v55, %v7901_v1  ;;  %v9596_v4 = vpack.c.bf16 %v7915_v37, %v7912_v21  ;;  %v7943_v1 = vld [vmem:[%s16507_s8 + $0x2e8] sm:$0xff] }
 0x655   : > { %v4623_v44 = vadd.f32 %v8568_v25, %v15689_v20  ;;  %v8569_v61 = vpop.f32.mrb[78].mxu1  ;;  %7880 = vmatmul.mubr.msk.f32.gmra.mrb[90].mxu1 %vm5036_vm4, %v4632_v56  ;;  %8877 = vmatmul.mubr.msk.f32.vlgmr.msra.gmra.mrb[80].mxu0 %vm5036_vm4, %v4632_v56  ;;  %v7910_v56 = vld [vmem:[%s16507_s8 + $0x238] sm:$0xff]  ;;  %v9594_v58 = vpack.c.bf16 %v7908_v49, %v7905_v2  ;;  %v4462_v25 = vmax.f32 %v4448_v32, 0.0  ;;  %v7950_v32 = vld [vmem:[%s16507_s8 + $0x320] sm:$0xff]  ;;  %v7960_v35 = vld [vmem:[%s16507_s8 + $0x370] sm:$0xff] }
 0x656   : > { %9551 = vmatpush1.bf16.msra.mxu1 %v9550_v42  ;;  %9569 = vmatpush3.bf16.msra.mxu0 %v9566_v41  ;;  %v8570_v29 = vpop.f32.mrb[79].mxu1  ;;  %v7907_v42 = vld [vmem:[%s16507_s8 + $0x220] sm:$0xff]  ;;  %v7945_v49 = vld [vmem:[%s16507_s8 + $0x2f8] sm:$0xff] }
 0x657   : > { %v4633_v16 = vmax.f32 %v4623_v44, 0.0  ;;  %v8571_v40 = vadd.f32 %v8570_v29, %v8569_v61  ;;  %5134 = vmatprep.mubr.f32.mxu1 %v11157_v52  ;;  %9553 = vmatprep.subr.bf16.mxu1 %v9552_v5  ;;  %v4458_v5 = vadd.f32 %v15642_v39, %v15713_v47  ;;  %v9614_v43 = vpack.c.bf16 %v7910_v56, %v7907_v42  ;;  %v7918_v44 = vld [vmem:[%s16507_s8 + $0x278] sm:$0xff]  ;;  %v7921_v39 = vld [vmem:[%s16507_s8 + $0x290] sm:$0xff]  ;;  %v7942_v2 = vld [vmem:[%s16507_s8 + $0x2e0] sm:$0xff] }
 0x658   : > { %9571 = vmatprep.subr.bf16.mxu0 %v9570_v62  ;;  %v7946_v56 = vld [vmem:[%s16507_s8 + $0x300] sm:$0xff] }
 0x659   : > { %v4628_v41 = vadd.f32 %v8571_v40, %v15713_v47  ;;  %7881 = vmatmul.mubr.msk.f32.gmra.mrb[92].mxu1 %vm5036_vm4, %v4633_v16  ;;  %8879 = vmatprep.mubr.msk.f32.mxu0 %vm5036_vm4, %v4633_v16  ;;  %v4464_v16 = vmax.f32 %v4458_v5, 0.0 }
 0x65a   : > { %9555 = vmatpush1.bf16.msra.mxu1 %v9554_v27  ;;  %9573 = vmatpush3.bf16.msra.mxu0 %v9570_v62  ;;  %v4463_v62 = vmax.f32 %v4453_v24, 0.0  ;;  %v9598_v27 = vpack.c.bf16 %v7914_v57, %v7911_v31  ;;  %v7953_v57 = vld [vmem:[%s16507_s8 + $0x338] sm:$0xff] }
 0x65b   : > { %v4634_v17 = vmax.f32 %v4628_v41, 0.0  ;;  %5140 = vmatprep.mubr.f32.mxu1 %v11157_v52  ;;  %9557 = vmatprep.subr.bf16.mxu1 %v9556_v38  ;;  %v9600_v38 = vpack.c.bf16 %v7921_v39, %v7918_v44  ;;  %v7948_v44 = vld [vmem:[%s16507_s8 + $0x310] sm:$0xff]  ;;  %v7951_v39 = vld [vmem:[%s16507_s8 + $0x328] sm:$0xff] }
 0x65c   : > { %9575 = vmatprep.subr.bf16.mxu0 %v9574_v60 }
 0x65d   : > { %7882 = vmatmul.mubr.msk.f32.gmra.mrb[94].mxu1 %vm5036_vm4, %v4634_v17  ;;  %8880 = vmatmul.mubr.msk.f32.gmra.mrb[82].mxu0 %vm5036_vm4, %v4634_v17  ;;  %v9602_v17 = vpack.c.bf16 %v7920_v59, %v7917_v33  ;;  %v9658_v59 = vpack.c.bf16 %v7951_v39, %v7948_v44 }
 0x65e   : > { %9559 = vmatpush1.bf16.msra.mxu1 %v9558_v23  ;;  %9577 = vmatpush3.bf16.msra.mxu0 %v9574_v60  ;;  %v9618_v60 = vpack.c.bf16 %v7916_v15, %v7913_v51  ;;  %v7952_v15 = vld [vmem:[%s16507_s8 + $0x330] sm:$0xff] }
 0x65f   : > { %8902 = vmatprep.mubr.msk.f32.mxu0 %vm5036_vm4, %v4461_v53  ;;  %9562 = vmatprep.subr.msk.bf16.mxu1 %vm15587_vm3, %v9560_v10 }
 0x660   : > { %9579 = vmatprep.subr.bf16.mxu0 %v9578_v0  ;;  %5317 = vmatprep.mubr.f32.mxu1 %v11157_v52 }
 0x662   : > { %9565 = vmatpush1.bf16.msk.msra.mxu1 %vm15587_vm3, %v9563_v45  ;;  %9581 = vmatpush3.bf16.msra.mxu0 %v9578_v0  ;;  %v7926_v0 = vld [vmem:[%s16507_s8 + $0x2b8] sm:$0x3f]  ;;  %v7925_v45 = vld [vmem:[%s16507_s8 + $0x2b0] sm:$0xff] }
 0x663   : > { %9584 = vmatprep.subr.msk.bf16.mxu0 %vm15587_vm3, %v9582_v34  ;;  %9589 = vmatprep.subr.bf16.mxu1 %v9588_v12  ;;  %v9607_v19 = vpack.c.bf16 %v7926_v0, %v7923_v26  ;;  %v7968_v26 = vld [vmem:[%s16507_s8 + $0x3b0] sm:$0x3f] }
 0x665   : > { %7890 = vmatmul.mubr.msk.f32.vlgmr.msra.gmra.mrb[88].mxu1 %vm5036_vm4, %v4461_v53 }
 0x666   : > { %9587 = vmatpush3.bf16.msk.msra.mxu0 %vm15587_vm3, %v9582_v34  ;;  %9591 = vmatpush1.bf16.msra.mxu1 %v9590_v11  ;;  %v7928_v34 = vld [vmem:[%s16507_s8 + $0x2c8] sm:$0x3f] }
 0x667   : > { %5323 = vmatprep.mubr.f32.mxu1 %v11157_v52  ;;  %9593 = vmatprep.subr.bf16.mxu1 %v9592_v48  ;;  %v9626_v55 = vpack.c.bf16 %v7928_v34, %v7925_v45  ;;  %v7947_v11 = vld [vmem:[%s16507_s8 + $0x308] sm:$0xff] }
 0x668   : > { %9611 = vmatprep.subr.bf16.mxu0 %v9610_v13  ;;  %v9636_v42 = vpack.c.bf16 %v7950_v32, %v7947_v11 }
 0x669   : > { %7891 = vmatmul.mubr.msk.f32.gmra.mrb[90].mxu1 %vm5036_vm4, %v4462_v25  ;;  %8903 = vmatmul.mubr.msk.f32.vlgmr.msra.gmra.mrb[80].mxu0 %vm5036_vm4, %v4462_v25  ;;  %v8604_v61 = vpop.f32.mrb[80].mxu1  ;;  %v9654_v25 = vpack.c.bf16 %v7945_v49, %v7942_v2 }
 0x66a   : > { %8905 = vmatprep.mubr.msk.f32.mxu0 %vm5036_vm4, %v4463_v62  ;;  %9595 = vmatpush1.bf16.msra.mxu1 %v9594_v58  ;;  %v8605_v29 = vpop.f32.mrb[81].mxu1  ;;  %v7949_v58 = vld [vmem:[%s16507_s8 + $0x318] sm:$0xff] }
 0x66b   : > { %9613 = vmatpush3.bf16.msra.mxu0 %v9610_v13  ;;  %v8606_v40 = vadd.f32 %v8605_v29, %v8604_v61  ;;  %5329 = vmatprep.mubr.f32.mxu1 %v11157_v52  ;;  %v9634_v13 = vpack.c.bf16 %v7943_v1, %v7940_v3  ;;  %v7955_v29 = vld [vmem:[%s16507_s8 + $0x348] sm:$0xff]  ;;  %v7966_v1 = vld [vmem:[%s16507_s8 + $0x3a0] sm:$0xff] }
 0x66c   : > { %9597 = vmatprep.subr.bf16.mxu1 %v9596_v4  ;;  %9615 = vmatprep.subr.bf16.mxu0 %v9614_v43 }
 0x66d   : > { %v4783_v18 = vadd.f32 %v8606_v40, %v15650_v22  ;;  %7892 = vmatmul.mubr.msk.f32.gmra.mrb[92].mxu1 %vm5036_vm4, %v4463_v62  ;;  %8906 = vmatmul.mubr.msk.f32.gmra.mrb[82].mxu0 %vm5036_vm4, %v4464_v16  ;;  %v8607_v41 = vpop.f32.mrb[82].mxu1  ;;  %v7956_v62 = vld [vmem:[%s16507_s8 + $0x350] sm:$0xff] }
 0x66e   : > { %9599 = vmatpush1.bf16.msra.mxu1 %v9598_v27  ;;  %v8608_v23 = vpop.f32.mrb[83].mxu1  ;;  %5335 = vmatprep.mubr.f32.mxu1 %v11157_v52 }
 0x66f   : > { %v4801_v10 = vmax.f32 %v4783_v18, 0.0  ;;  %9617 = vmatpush3.bf16.msra.mxu0 %v9614_v43  ;;  %v8609_v50 = vadd.f32 %v8608_v23, %v8607_v41  ;;  %9601 = vmatprep.subr.bf16.mxu1 %v9600_v38  ;;  %v9638_v43 = vpack.c.bf16 %v7949_v58, %v7946_v56  ;;  %v9642_v18 = vpack.c.bf16 %v7955_v29, %v7952_v15  ;;  %v7957_v41 = vld [vmem:[%s16507_s8 + $0x358] sm:$0xff]  ;;  %v7958_v23 = vld [vmem:[%s16507_s8 + $0x360] sm:$0xff] }
 0x670   : > { %9619 = vmatprep.subr.bf16.mxu0 %v9618_v60 }
 0x671   : > { %7893 = vmatmul.mubr.msk.f32.gmra.mrb[94].mxu1 %vm5036_vm4, %v4464_v16  ;;  %v8610_v53 = vpop.f32.mrb[84].mxu1  ;;  %8928 = vmatprep.mubr.msk.f32.mxu0 %vm5036_vm4, %v4801_v10  ;;  %v4788_v21 = vadd.f32 %v8609_v50, %v15665_v46  ;;  %v9640_v16 = vpack.c.bf16 %v7956_v62, %v7953_v57 }
 0x672   : > { %9603 = vmatpush1.bf16.msra.mxu1 %v9602_v17  ;;  %v8611_v12 = vpop.f32.mrb[85].mxu1  ;;  %5543 = vmatprep.mubr.f32.mxu1 %v11157_v52  ;;  %v7961_v17 = vld [vmem:[%s16507_s8 + $0x378] sm:$0xff] }
 0x673   : > { %9621 = vmatpush3.bf16.msra.mxu0 %v9618_v60  ;;  %v8612_v63 = vadd.f32 %v8611_v12, %v8610_v53  ;;  %9606 = vmatprep.subr.msk.bf16.mxu1 %vm15587_vm3, %v9604_v30  ;;  %v4802_v61 = vmax.f32 %v4788_v21, 0.0  ;;  %v7959_v60 = vld [vmem:[%s16507_s8 + $0x368] sm:$0xff]  ;;  %v7965_v30 = vld [vmem:[%s16507_s8 + $0x398] sm:$0xff]  ;;  %v9646_v45 = vpack.c.bf16 %v7961_v17, %v7958_v23 }
 0x674   : > { %9623 = vmatprep.subr.bf16.mxu0 %v9622_v28  ;;  %v9644_v50 = vpack.c.bf16 %v7962_v9, %v7959_v60  ;;  %v9648_v12 = vpack.c.bf16 %v7968_v26, %v7965_v30 }
 0x675   : > { %v8613_v48 = vpop.f32.mrb[86].mxu1  ;;  %v4793_v5 = vadd.f32 %v8612_v63, %v15689_v20  ;;  %v7967_v63 = vld [vmem:[%s16507_s8 + $0x3a8] sm:$0x3f] }
 0x676   : > { %9609 = vmatpush1.bf16.msk.msra.mxu1 %vm15587_vm3, %v9607_v19  ;;  %v8614_v24 = vpop.f32.mrb[87].mxu1  ;;  %v7964_v19 = vld [vmem:[%s16507_s8 + $0x390] sm:$0xff] }
 0x677   : > { %9625 = vmatpush3.bf16.msra.mxu0 %v9622_v28  ;;  %v8615_v37 = vadd.f32 %v8614_v24, %v8613_v48  ;;  %9633 = vmatprep.subr.bf16.mxu1 %v9632_v54  ;;  %v4803_v40 = vmax.f32 %v4793_v5, 0.0  ;;  %v9666_v54 = vpack.c.bf16 %v7963_v36, %v7960_v35  ;;  %v9651_v32 = vpack.c.bf16 %v7967_v63, %v7964_v19 }
 0x678   : > { %9628 = vmatprep.subr.msk.bf16.mxu0 %vm15587_vm3, %v9626_v55 }
 0x679   : > { %7931 = vmatmul.mubr.msk.f32.vlgmr.msra.gmra.mrb[88].mxu1 %vm5036_vm4, %v4801_v10  ;;  %v4798_v27 = vadd.f32 %v8615_v37, %v15713_v47 }
 0x67a   : > { %v8648_v31 = vpop.f32.mrb[72].mxu0  ;;  %9635 = vmatpush1.bf16.msra.mxu1 %v9634_v13  ;;  %5549 = vmatprep.mubr.f32.mxu1 %v11157_v52 }
 0x67b   : > { %v8649_v4 = vpop.f32.mrb[73].mxu0  ;;  %9631 = vmatpush3.bf16.msk.msra.mxu0 %vm15587_vm3, %v9626_v55  ;;  %9637 = vmatprep.subr.bf16.mxu1 %v9636_v42  ;;  %v4804_v10 = vmax.f32 %v4798_v27, 0.0  ;;  %v7969_v55 = vld [vmem:[%s16507_s8 + $0x3b8] sm:$0x3f] }
 0x67c   : > { %v8650_v51 = vadd.f32 %v8649_v4, %v8648_v31  ;;  %9655 = vmatprep.subr.bf16.mxu0 %v9654_v25  ;;  %v9670_v2 = vpack.c.bf16 %v7969_v55, %v7966_v1 }
 0x67d   : > { %7932 = vmatmul.mubr.msk.f32.gmra.mrb[90].mxu1 %vm5036_vm4, %v4802_v61 }
 0x67e   : > { %v15928_v38 = vadd.f32 %v8650_v51, %v15650_v22  ;;  %v8651_v33 = vpop.f32.mrb[74].mxu0  ;;  %8929 = vmatmul.mubr.msk.f32.vlgmr.msra.gmra.mrb[80].mxu0 %vm5036_vm4, %v4802_v61  ;;  %9639 = vmatpush1.bf16.msra.mxu1 %v9638_v43  ;;  %v7954_v22 = vld [vmem:[%s16507_s8 + $0x340] sm:$0xff] }
 0x67f   : > { %v8652_v14 = vpop.f32.mrb[75].mxu0  ;;  %8931 = vmatprep.mubr.msk.f32.mxu0 %vm5036_vm4, %v4803_v40  ;;  %9657 = vmatpush3.bf16.msra.mxu0 %v9654_v25  ;;  %v9662_v28 = vpack.c.bf16 %v7957_v41, %v7954_v22 }
 0x680   : > { %v4971_v6 = vmax.f32 %v15928_v38, 0.0  ;;  %v8653_v8 = vadd.f32 %v8652_v14, %v8651_v33  ;;  %5555 = vmatprep.mubr.f32.mxu1 %v11157_v52  ;;  %9641 = vmatprep.subr.bf16.mxu1 %v9640_v16 }
 0x681   : > { %7933 = vmatmul.mubr.msk.f32.gmra.mrb[92].mxu1 %vm5036_vm4, %v4803_v40  ;;  %9659 = vmatprep.subr.bf16.mxu0 %v9658_v59 }
 0x682   : > { %v8654_v0 = vpop.f32.mrb[76].mxu0  ;;  %8932 = vmatmul.mubr.msk.f32.gmra.mrb[82].mxu0 %vm5036_vm4, %v4804_v10  ;;  %9643 = vmatpush1.bf16.msra.mxu1 %v9642_v18  ;;  %v4958_v49 = vadd.f32 %v8653_v8, %v15665_v46 }
 0x683   : > { %v8655_v53 = vpop.f32.mrb[77].mxu0  ;;  %9661 = vmatpush3.bf16.msra.mxu0 %v9658_v59  ;;  %8954 = vmatprep.mubr.msk.f32.mxu0 %vm5036_vm4, %v4971_v6 }
 0x684   : > { %v8656_v34 = vadd.f32 %v8655_v53, %v8654_v0  ;;  %5561 = vmatprep.mubr.f32.mxu1 %v11157_v52  ;;  %9645 = vmatprep.subr.bf16.mxu1 %v9644_v50  ;;  %v4972_v13 = vmax.f32 %v4958_v49, 0.0 }
 0x685   : > { %7934 = vmatmul.mubr.msk.f32.gmra.mrb[94].mxu1 %vm5036_vm4, %v4804_v10  ;;  %9663 = vmatprep.subr.bf16.mxu0 %v9662_v28 }
 0x686   : > { %v8657_v3 = vpop.f32.mrb[78].mxu0  ;;  %9647 = vmatpush1.bf16.msra.mxu1 %v9646_v45  ;;  %5781 = vmatprep.mubr.f32.mxu1 %v11157_v52  ;;  %v4963_v24 = vadd.f32 %v8656_v34, %v15689_v20 }
 0x687   : > { %v8658_v11 = vpop.f32.mrb[79].mxu0  ;;  %9665 = vmatpush3.bf16.msra.mxu0 %v9662_v28  ;;  %9650 = vmatprep.subr.msk.bf16.mxu1 %vm15587_vm3, %v9648_v12 }
 0x688   : > { %v8659_v48 = vadd.f32 %v8658_v11, %v8657_v3  ;;  %9667 = vmatprep.subr.bf16.mxu0 %v9666_v54  ;;  %v4973_v37 = vmax.f32 %v4963_v24, 0.0 }
 0x68a   : > { %9653 = vmatpush1.bf16.msk.msra.mxu1 %vm15587_vm3, %v9651_v32  ;;  %v4968_v21 = vadd.f32 %v8659_v48, %v15713_v47 }
 0x68b   : > { %9669 = vmatpush3.bf16.msra.mxu0 %v9666_v54 }
 0x68c   : > { %9672 = vmatprep.subr.msk.bf16.mxu0 %vm15587_vm3, %v9670_v2  ;;  %v4974_v46 = vmax.f32 %v4968_v21, 0.0 }
 0x68d   : > { %7972 = vmatmul.mubr.msk.f32.vlgmr.msra.gmra.mrb[88].mxu1 %vm5036_vm4, %v4971_v6 }
 0x68e   : > { %5787 = vmatprep.mubr.f32.mxu1 %v11157_v52 }
 0x68f   : > { %9675 = vmatpush3.bf16.msk.msra.mxu0 %vm15587_vm3, %v9670_v2 }
 0x690   : > { %9708 = vmatprep.subr.bf16.mxu0 %v11158_v7 }
 0x691   : > { %7973 = vmatmul.mubr.msk.f32.gmra.mrb[90].mxu1 %vm5036_vm4, %v4972_v13 }
 0x692   : > { %8955 = vmatmul.mubr.msk.f32.vlgmr.msra.gmra.mrb[80].mxu0 %vm5036_vm4, %v4972_v13  ;;  %5793 = vmatprep.mubr.f32.mxu1 %v11157_v52 }
 0x693   : > { %8957 = vmatprep.mubr.msk.f32.mxu0 %vm5036_vm4, %v4973_v37 }
 0x695   : > { %7974 = vmatmul.mubr.msk.f32.gmra.mrb[92].mxu1 %vm5036_vm4, %v4973_v37 }
 0x696   : > { %8958 = vmatmul.mubr.msk.f32.gmra.mrb[82].mxu0 %vm5036_vm4, %v4974_v46  ;;  %5799 = vmatprep.mubr.f32.mxu1 %v11157_v52 }
 0x697   : > { %8992 = vmatprep.mubr.msk.f32.mxu0 %vm11161_vm5, %v11157_v52 }
 0x699   : > { %7975 = vmatmul.mubr.msk.f32.gmra.mrb[94].mxu1 %vm5036_vm4, %v4974_v46 }
 0x69a   : > { %6121 = vmatprep.mubr.f32.mxu1 %v11157_v52 }
 0x760   : > { %v5783_v20 = vpop.f32.mrb[88].mxu1 }
 0x761   : > { %v5785_v47 = vpop.f32.mrb[89].mxu1 }
 0x764   : > { %v5789_v42 = vpop.f32.mrb[90].mxu1 }
 0x765   : > { %v10784_v56 = vpack.i.bf16 %v5789_v42, %v5783_v20  ;;  %v9678_v58 = vpack.c.bf16 %v5789_v42, %v5783_v20  ;;  %v8956_v25 = vpop.f32.mrb[80].mxu0  ;;  %v5791_v5 = vpop.f32.mrb[91].mxu1 }
 0x766   : > { %v10774_v31 = vpack.i.bf16 %v8956_v25, %v5791_v5  ;;  %v5872_v57 = vpop.f32.mrb[81].mxu0  ;;  %v9676_v62 = vpack.c.bf16 %v5791_v5, %v5785_v47 }
 0x767   : > { %v9709_v4 = vpack.c.bf16 %v8956_v25, %v5872_v57  ;;  %v10769_v43 = vpack.i.bf16 %v5872_v57, %v5785_v47  ;;  %10715 = vrot.lane.b32.xlu1 %v10784_v56, %s11150_s20 }
 0x768   : > { %10730 = vrot.lane.b32.xlu0 %v10774_v31, %s11150_s20  ;;  %v5795_v44 = vpop.f32.mrb[92].mxu1  ;;  %9677 = vmatprep.subr.bf16.mxu1 %v9676_v62 }
 0x769   : > { %v8959_v39 = vpop.f32.mrb[82].mxu0  ;;  %9710 = vmatpush3.bf16.msra.mxu0 %v9709_v4  ;;  %v5797_v61 = vpop.f32.mrb[93].mxu1  ;;  %9679 = vmatpush1.bf16.msra.mxu1 %v9678_v58 }
 0x76a   : > { %v5882_v51 = vpop.f32.mrb[83].mxu0  ;;  %9711 = vmatprep.subr.bf16.mxu0 %v11158_v7 }
 0x76b   : > { %v9712_v15 = vpack.c.bf16 %v8959_v39, %v5882_v51  ;;  %v10789_v29 = vpack.i.bf16 %v5882_v51, %v5797_v61  ;;  %10720 = vrot.lane.b32.xlu1 %v10784_v56, %s11159_s16 }
 0x76c   : > { %10740 = vrot.lane.b32.xlu0 %v10774_v31, %s11159_s16  ;;  %v5801_v27 = vpop.f32.mrb[94].mxu1 }
 0x76d   : > { %9713 = vmatpush3.bf16.msra.mxu0 %v9712_v15  ;;  %v10799_v16 = vpack.i.bf16 %v5801_v27, %v5795_v44  ;;  %v9682_v40 = vpack.c.bf16 %v5801_v27, %v5795_v44  ;;  %v5803_v38 = vpop.f32.mrb[95].mxu1 }
 0x76e   : > { %v10794_v33 = vpack.i.bf16 %v8959_v39, %v5803_v38  ;;  %v9680_v59 = vpack.c.bf16 %v5803_v38, %v5797_v61  ;;  %9714 = vmatprep.subr.bf16.mxu0 %v11158_v7 }
 0x76f   : > { %10725 = vrot.lane.b32.xlu1 %v10769_v43, %s11150_s20 }
 0x770   : > { %10745 = vrot.lane.b32.xlu0 %v10789_v29, %s11150_s20  ;;  %9681 = vmatprep.subr.bf16.mxu1 %v9680_v59 }
 0x771   : > { %9683 = vmatpush1.bf16.msra.mxu1 %v9682_v40 }
 0x773   : > { %10735 = vrot.lane.b32.xlu1 %v10769_v43, %s11159_s16 }
 0x774   : > { %10750 = vrot.lane.b32.xlu0 %v10789_v29, %s11159_s16 }
 0x777   : > { %10765 = vrot.lane.b32.xlu1 %v10794_v33, %s11150_s20 }
 0x778   : > { %10755 = vrot.lane.b32.xlu0 %v10799_v16, %s11150_s20 }
 0x77b   : > { %10770 = vrot.lane.b32.xlu1 %v10769_v43, %s11160_s17 }
 0x77c   : > { %10760 = vrot.lane.b32.xlu0 %v10799_v16, %s11159_s16 }
 0x77f   : > { %10780 = vrot.lane.b32.xlu1 %v10794_v33, %s11159_s16 }
 0x780   : > { %10775 = vrot.lane.b32.xlu0 %v10774_v31, %s11160_s17 }
 0x783   : > { %10785 = vrot.lane.b32.xlu1 %v10784_v56, %s11160_s17 }
 0x784   : > { %10790 = vrot.lane.b32.xlu0 %v10789_v29, %s11160_s17 }
 0x787   : > { %10795 = vrot.lane.b32.xlu1 %v10794_v33, %s11160_s17 }
 0x788   : > { %10800 = vrot.lane.b32.xlu0 %v10799_v16, %s11160_s17 }
 0x7d9   : > { %v10716_v60 = vpop.permute.xlu1 %10715 }
 0x7da   : > { %v10731_v9 = vpop.permute.xlu0 %10730  ;;  %v10718_v10 = vunpack.i.h.bf16 %v10716_v60  ;;  %v10717_v26 = vunpack.i.l.bf16 %v10716_v60 }
 0x7db   : > { %v10733_v14 = vunpack.i.h.bf16 %v10731_v9  ;;  %v10732_v18 = vunpack.i.l.bf16 %v10731_v9 }
 0x7dd   : > { %v5943_v22 = vsel %vm5939_vm6, %v10732_v18, %v10733_v14  ;;  %v10721_v41 = vpop.permute.xlu1 %10720  ;;  %v5942_v53 = vsel %vm5939_vm6, %v10718_v10, %v10732_v18 }
 0x7de   : > { %v10741_v6 = vpop.permute.xlu0 %10740  ;;  %v16029_v8 = vpack.i.bf16 %v10733_v14, %v5943_v22  ;;  %v10723_v1 = vunpack.i.h.bf16 %v10721_v41  ;;  %v10722_v49 = vunpack.i.l.bf16 %v10721_v41 }
 0x7df   : > { %v10743_v23 = vunpack.i.h.bf16 %v10741_v6  ;;  %v10742_v17 = vunpack.i.l.bf16 %v10741_v6 }
 0x7e0   : > { %10810 = vrot.lane.b32.xlu0 %v16029_v8, %s11150_s20 }
 0x7e1   : > { %v5988_v50 = vsel %vm5984_vm7, %v10742_v17, %v10743_v23  ;;  %v10726_v30 = vpop.permute.xlu1 %10725  ;;  %v5987_v21 = vsel %vm5984_vm7, %v10723_v1, %v10742_v17 }
 0x7e2   : > { %v10728_v0 = vunpack.i.h.bf16 %v10726_v30  ;;  %v10727_v28 = vunpack.i.l.bf16 %v10726_v30  ;;  %v10746_v35 = vpop.permute.xlu0 %10745  ;;  %v16034_v36 = vpack.i.bf16 %v10743_v23, %v5988_v50 }
 0x7e3   : > { %v10748_v48 = vunpack.i.h.bf16 %v10746_v35  ;;  %v10747_v2 = vunpack.i.l.bf16 %v10746_v35 }
 0x7e4   : > { %v5940_v45 = vsel %vm5939_vm6, %v10717_v26, %v10727_v28  ;;  %v5941_v34 = vsel %vm5939_vm6, %v10727_v28, %v10728_v0  ;;  %10825 = vrot.lane.b32.xlu0 %v16034_v36, %s11150_s20  ;;  %v16041_v12 = vpack.c.bf16 %v10733_v14, %v10728_v0 }
 0x7e5   : > { %v10736_v19 = vpop.permute.xlu1 %10735  ;;  %v16043_v63 = vpack.i.bf16 %v10728_v0, %v5941_v34  ;;  %v16045_v54 = vpack.c.bf16 %v5943_v22, %v5941_v34  ;;  %v16047_v3 = vpack.c.bf16 %v5942_v53, %v5940_v45  ;;  %v16055_v13 = vpack.i.bf16 %v5942_v53, %v5940_v45 }
 0x7e6   : > { %v10738_v55 = vunpack.i.h.bf16 %v10736_v19  ;;  %v10737_v11 = vunpack.i.l.bf16 %v10736_v19  ;;  %9716 = vmatpush3.bf16.msra.mxu0 %v16041_v12  ;;  %v10751_v32 = vpop.permute.xlu0 %10750  ;;  %v5945_v5 = vsel %vm5939_vm6, %v10747_v2, %v10748_v48 }
 0x7e7   : > { %10805 = vrot.lane.b32.xlu1 %v16043_v63, %s11150_s20  ;;  %9685 = vmatprep.subr.bf16.mxu1 %v16045_v54  ;;  %v10753_v42 = vunpack.i.h.bf16 %v10751_v32  ;;  %v10752_v56 = vunpack.i.l.bf16 %v10751_v32  ;;  %v16101_v17 = vpack.i.bf16 %v10748_v48, %v5945_v5 }
 0x7e8   : > { %9687 = vmatpush1.bf16.msra.mxu1 %v16047_v3  ;;  %9717 = vmatprep.subr.bf16.mxu0 %v11158_v7  ;;  %v5986_v37 = vsel %vm5984_vm7, %v10737_v11, %v10738_v55  ;;  %v5985_v31 = vsel %vm5984_vm7, %v10722_v49, %v10737_v11  ;;  %v16081_v16 = vpack.c.bf16 %v10743_v23, %v10738_v55 }
 0x7e9   : > { %v10766_v24 = vpop.permute.xlu1 %10765  ;;  %v16072_v39 = vpack.i.bf16 %v10738_v55, %v5986_v37  ;;  %v5990_v40 = vsel %vm5984_vm7, %v10752_v56, %v10753_v42  ;;  %v16087_v33 = vpack.c.bf16 %v5988_v50, %v5986_v37  ;;  %v16089_v59 = vpack.i.bf16 %v5987_v21, %v5985_v31 }
 0x7ea   : > { %v10768_v46 = vunpack.i.h.bf16 %v10766_v24  ;;  %v10767_v20 = vunpack.i.l.bf16 %v10766_v24  ;;  %v10756_v47 = vpop.permute.xlu0 %10755  ;;  %v16098_v22 = vpack.c.bf16 %v5987_v21, %v5985_v31  ;;  %v16115_v53 = vpack.i.bf16 %v10753_v42, %v5990_v40 }
 0x7eb   : > { %v10758_v58 = vunpack.i.h.bf16 %v10756_v47  ;;  %v10757_v25 = vunpack.i.l.bf16 %v10756_v47  ;;  %10815 = vrot.lane.b32.xlu1 %v16055_v13, %s11150_s20 }
 0x7ec   : > { %v5947_v57 = vsel %vm5939_vm6, %v10767_v20, %v10768_v46  ;;  %v16064_v62 = vpack.c.bf16 %v10768_v46, %v10748_v48 }
 0x7ed   : > { %v16067_v4 = vsel %vm5939_vm6, %v10757_v25, %v10747_v2  ;;  %v16070_v43 = vsel %vm5939_vm6, %v10758_v58, %v10767_v20  ;;  %v10771_v44 = vpop.permute.xlu1 %10770  ;;  %v16074_v61 = vpack.c.bf16 %v5947_v57, %v5945_v5  ;;  %v16106_v30 = vpack.i.bf16 %v10768_v46, %v5947_v57 }
 0x7ee   : > { %v10773_v51 = vunpack.i.h.bf16 %v10771_v44  ;;  %v10772_v15 = vunpack.i.l.bf16 %v10771_v44  ;;  %v10761_v29 = vpop.permute.xlu0 %10760  ;;  %9719 = vmatpush3.bf16.msra.mxu0 %v16064_v62  ;;  %v16079_v27 = vpack.c.bf16 %v16070_v43, %v16067_v4 }
 0x7ef   : > { %v10762_v38 = vunpack.i.l.bf16 %v10761_v29  ;;  %10820 = vrot.lane.b32.xlu1 %v16072_v39, %s11150_s20  ;;  %9689 = vmatprep.subr.bf16.mxu1 %v16074_v61  ;;  %v10763_v9 = vunpack.i.h.bf16 %v10761_v29 }
 0x7f0   : > { %v6031_v60 = vsel %vm6029_vm8, %v10772_v15, %v10773_v51  ;;  %9691 = vmatpush1.bf16.msra.mxu1 %v16079_v27  ;;  %9720 = vmatprep.subr.bf16.mxu0 %v11158_v7 }
 0x7f1   : > { %v16095_v14 = vsel %vm5984_vm7, %v10762_v38, %v10752_v56  ;;  %v10781_v18 = vpop.permute.xlu1 %10780  ;;  %9693 = vmatprep.subr.bf16.mxu1 %v16087_v33  ;;  %v16108_v26 = vpack.i.bf16 %v10773_v51, %v6031_v60 }
 0x7f2   : > { %v10783_v41 = vunpack.i.h.bf16 %v10781_v18  ;;  %v10782_v6 = vunpack.i.l.bf16 %v10781_v18  ;;  %v10776_v23 = vpop.permute.xlu0 %10775  ;;  %9722 = vmatpush3.bf16.msra.mxu0 %v16081_v16  ;;  %v11034_v18 = vpack.i.bf16 %v16070_v43, %v16067_v4 }
 0x7f3   : > { %v10778_v10 = vunpack.i.h.bf16 %v10776_v23  ;;  %v10777_v50 = vunpack.i.l.bf16 %v10776_v23  ;;  %10830 = vrot.lane.b32.xlu1 %v16089_v59, %s11150_s20  ;;  %9723 = vmatprep.subr.bf16.mxu0 %v11158_v7 }
 0x7f4   : > { %v5991_v0 = vsel %vm5984_vm7, %v10763_v9, %v10782_v6  ;;  %v5992_v28 = vsel %vm5984_vm7, %v10782_v6, %v10783_v41  ;;  %9695 = vmatpush1.bf16.msra.mxu1 %v16098_v22  ;;  %v16113_v35 = vpack.c.bf16 %v10783_v41, %v10753_v42 }
 0x7f5   : > { %v6033_v45 = vsel %vm6029_vm8, %v10777_v50, %v10778_v10  ;;  %v10786_v34 = vpop.permute.xlu1 %10785  ;;  %v16118_v19 = vpack.c.bf16 %v5992_v28, %v5990_v40  ;;  %v16121_v1 = vpack.c.bf16 %v5991_v0, %v16095_v14  ;;  %v16131_v49 = vpack.c.bf16 %v10778_v10, %v10773_v51 }
 0x7f6   : > { %v10788_v55 = vunpack.i.h.bf16 %v10786_v34  ;;  %v10787_v11 = vunpack.i.l.bf16 %v10786_v34  ;;  %v10791_v32 = vpop.permute.xlu0 %10790  ;;  %9725 = vmatpush3.bf16.msra.mxu0 %v16113_v35  ;;  %v16124_v48 = vpack.i.bf16 %v10778_v10, %v6033_v45  ;;  %v16126_v2 = vpack.c.bf16 %v6033_v45, %v6031_v60  ;;  %v6050_v60 = vld [vmem:[%s16508_s9] sm:$0x7] }
 0x7f7   : > { %10835 = vrot.lane.b32.xlu1 %v16108_v26, %s11150_s20  ;;  %9697 = vmatprep.subr.bf16.mxu1 %v16118_v19  ;;  %v10793_v37 = vunpack.i.h.bf16 %v10791_v32  ;;  %v10792_v46 = vunpack.i.l.bf16 %v10791_v32  ;;  %v11044_v9 = vpack.i.bf16 %v10783_v41, %v5992_v28  ;;  %v11054_v23 = vpack.i.bf16 %v5991_v0, %v16095_v14 }
 0x7f8   : > { %v6032_v24 = vsel %vm6029_vm8, %v10788_v55, %v10777_v50  ;;  %v6030_v21 = vsel %vm6029_vm8, %v10787_v11, %v10772_v15  ;;  %10840 = vrot.lane.b32.xlu0 %v16124_v48, %s11150_s20  ;;  %9699 = vmatpush1.bf16.msra.mxu1 %v16121_v1 }
 0x7f9   : > { %v10796_v20 = vpop.permute.xlu1 %10795  ;;  %9701 = vmatprep.subr.bf16.mxu1 %v16126_v2  ;;  %9726 = vmatprep.subr.bf16.mxu0 %v11158_v7  ;;  %v16140_v47 = vpack.i.bf16 %v6032_v24, %v6030_v21  ;;  %v16142_v42 = vpack.c.bf16 %v6032_v24, %v6030_v21  ;;  %v6035_v57 = vsel %vm6029_vm8, %v10792_v46, %v10793_v37 }
 0x7fa   : > { %v10798_v56 = vunpack.i.h.bf16 %v10796_v20  ;;  %v10797_v58 = vunpack.i.l.bf16 %v10796_v20  ;;  %v10801_v25 = vpop.permute.xlu0 %10800  ;;  %9728 = vmatpush3.bf16.msra.mxu0 %v16131_v49  ;;  %v11059_v10 = vpack.i.bf16 %v10793_v37, %v6035_v57 }
 0x7fb   : > { %v10803_v5 = vunpack.i.h.bf16 %v10801_v25  ;;  %v10802_v31 = vunpack.i.l.bf16 %v10801_v25  ;;  %10845 = vrot.lane.b32.xlu1 %v16140_v47, %s11150_s20  ;;  %9729 = vmatprep.subr.bf16.mxu0 %v11158_v7 }
 0x7fc   : > { %v6037_v44 = vsel %vm6029_vm8, %v10797_v58, %v10798_v56  ;;  %10850 = vrot.lane.b32.xlu0 %v16101_v17, %s11150_s20  ;;  %9703 = vmatpush1.bf16.msra.mxu1 %v16142_v42  ;;  %v16153_v51 = vpack.c.bf16 %v10798_v56, %v10793_v37 }
 0x7fd   : > { %v6034_v15 = vsel %vm6029_vm8, %v10802_v31, %v10792_v46  ;;  %v6036_v29 = vsel %vm6029_vm8, %v10803_v5, %v10797_v58  ;;  %v16157_v40 = vpack.c.bf16 %v6037_v44, %v6035_v57  ;;  %v11064_v6 = vpack.i.bf16 %v10798_v56, %v6037_v44 }
 0x7fe   : > { %9731 = vmatpush3.bf16.msra.mxu0 %v16153_v51  ;;  %v16160_v38 = vpack.c.bf16 %v6036_v29, %v6034_v15  ;;  %v11069_v50 = vpack.i.bf16 %v6036_v29, %v6034_v15 }
 0x7ff   : > { %10865 = vrot.lane.b32.xlu1 %v16106_v30, %s11150_s20  ;;  %9705 = vmatprep.subr.bf16.mxu1 %v16157_v40 }
 0x800   : > { %10855 = vrot.lane.b32.xlu0 %v16115_v53, %s11150_s20  ;;  %9707 = vmatpush1.bf16.msra.mxu1 %v16160_v38 }
 0x801   : > { %8993 = vmatmul.mubr.f32.vlgmr.msra.gmra.mrb[84].mxu0 %v6050_v60  ;;  %9733 = vmatprep.subr.bf16.mxu1 %v16045_v54 }
 0x802   : > { %9764 = vmatprep.subr.bf16.mxu0 %v11158_v7  ;;  %9027 = vmatprep.mubr.msk.f32.mxu0 %vm11161_vm5, %v11157_v52 }
 0x803   : > { %9766 = vmatpush3.bf16.msra.mxu0 %v16041_v12  ;;  %10870 = vrot.lane.b32.xlu1 %v16043_v63, %s11159_s16 }
 0x804   : > { %6122 = vmatmul.mubr.f32.vlgmr.msra.gmra.mrb[96].mxu1 %v6050_v60  ;;  %10860 = vrot.lane.b32.xlu0 %v11059_v10, %s11150_s20 }
 0x805   : > { %9735 = vmatpush1.bf16.msra.mxu1 %v16047_v3  ;;  %9767 = vmatprep.subr.bf16.mxu0 %v11158_v7 }
 0x806   : > { %9737 = vmatprep.subr.bf16.mxu1 %v16074_v61  ;;  %6414 = vmatprep.mubr.f32.mxu1 %v11157_v52 }
 0x807   : > { %9769 = vmatpush3.bf16.msra.mxu0 %v16064_v62  ;;  %10885 = vrot.lane.b32.xlu1 %v11044_v9, %s11150_s20 }
 0x808   : > { %10875 = vrot.lane.b32.xlu0 %v11034_v18, %s11150_s20  ;;  %9770 = vmatprep.subr.bf16.mxu0 %v11158_v7 }
 0x809   : > { %9739 = vmatpush1.bf16.msra.mxu1 %v16079_v27 }
 0x80b   : > { %10890 = vrot.lane.b32.xlu1 %v16055_v13, %s11159_s16 }
 0x80c   : > { %10880 = vrot.lane.b32.xlu0 %v16029_v8, %s11159_s16 }
 0x80f   : > { %10905 = vrot.lane.b32.xlu1 %v11064_v6, %s11150_s20 }
 0x810   : > { %10895 = vrot.lane.b32.xlu0 %v11054_v23, %s11150_s20 }
 0x813   : > { %10910 = vrot.lane.b32.xlu1 %v16072_v39, %s11159_s16 }
 0x814   : > { %10900 = vrot.lane.b32.xlu0 %v16101_v17, %s11159_s16 }
 0x817   : > { %10925 = vrot.lane.b32.xlu1 %v16089_v59, %s11159_s16 }
 0x818   : > { %10915 = vrot.lane.b32.xlu0 %v11069_v50, %s11150_s20 }
 0x81b   : > { %10935 = vrot.lane.b32.xlu1 %v16108_v26, %s11159_s16 }
 0x81c   : > { %10920 = vrot.lane.b32.xlu0 %v16034_v36, %s11159_s16 }
 0x81f   : > { %10945 = vrot.lane.b32.xlu1 %v16106_v30, %s11159_s16 }
 0x820   : > { %10930 = vrot.lane.b32.xlu0 %v16115_v53, %s11159_s16 }
 0x823   : > { %10950 = vrot.lane.b32.xlu1 %v16140_v47, %s11159_s16 }
 0x824   : > { %10940 = vrot.lane.b32.xlu0 %v16124_v48, %s11159_s16 }
 0x827   : > { %10965 = vrot.lane.b32.xlu1 %v11044_v9, %s11159_s16 }
 0x828   : > { %10955 = vrot.lane.b32.xlu0 %v11034_v18, %s11159_s16 }
 0x82b   : > { %10970 = vrot.lane.b32.xlu1 %v16043_v63, %s11160_s17 }
 0x82c   : > { %10960 = vrot.lane.b32.xlu0 %v11059_v10, %s11159_s16 }
 0x82f   : > { %10985 = vrot.lane.b32.xlu1 %v11064_v6, %s11159_s16 }
 0x830   : > { %10975 = vrot.lane.b32.xlu0 %v11054_v23, %s11159_s16 }
 0x833   : > { %10990 = vrot.lane.b32.xlu1 %v16055_v13, %s11160_s17 }
 0x834   : > { %10980 = vrot.lane.b32.xlu0 %v16029_v8, %s11160_s17  ;;  %v6051_v8 = vld [vmem:[%s16509_s10] sm:$0x7] }
 0x837   : > { %11005 = vrot.lane.b32.xlu1 %v16072_v39, %s11160_s17 }
 0x838   : > { %10995 = vrot.lane.b32.xlu0 %v11069_v50, %s11159_s16 }
 0x83b   : > { %11015 = vrot.lane.b32.xlu1 %v16089_v59, %s11160_s17 }
 0x83c   : > { %11000 = vrot.lane.b32.xlu0 %v16101_v17, %s11160_s17 }
 0x83f   : > { %11025 = vrot.lane.b32.xlu1 %v16106_v30, %s11160_s17 }
 0x840   : > { %11010 = vrot.lane.b32.xlu0 %v16034_v36, %s11160_s17 }
 0x843   : > { %11030 = vrot.lane.b32.xlu1 %v16108_v26, %s11160_s17 }
 0x844   : > { %11020 = vrot.lane.b32.xlu0 %v16115_v53, %s11160_s17 }
 0x847   : > { %11045 = vrot.lane.b32.xlu1 %v11044_v9, %s11160_s17 }
 0x848   : > { %11035 = vrot.lane.b32.xlu0 %v11034_v18, %s11160_s17 }
 0x84b   : > { %11050 = vrot.lane.b32.xlu1 %v16140_v47, %s11160_s17 }
 0x84c   : > { %11040 = vrot.lane.b32.xlu0 %v16124_v48, %s11160_s17 }
 0x84f   : > { %11065 = vrot.lane.b32.xlu1 %v11064_v6, %s11160_s17 }
 0x850   : > { %11055 = vrot.lane.b32.xlu0 %v11054_v23, %s11160_s17 }
 0x852   : > { %v10811_v36 = vpop.permute.xlu0 %10810 }
 0x853   : > { %6054 = vperm.xlu1 %10473, %v6051_v8   ;;  %v10813_v12 = vunpack.i.h.bf16 %v10811_v36  ;;  %v10812_v63 = vunpack.i.l.bf16 %v10811_v36 }
 0x854   : > { %11060 = vrot.lane.b32.xlu0 %v11059_v10, %s11160_s17 }
 0x855   : > { %v6293_v43 = vsel %vm5939_vm6, %v10812_v63, %v10813_v12 }
 0x856   : > { %v10826_v0 = vpop.permute.xlu0 %10825 }
 0x857   : > { %v10828_v25 = vunpack.i.h.bf16 %v10826_v0  ;;  %v10827_v44 = vunpack.i.l.bf16 %v10826_v0 }
 0x858   : > { %11070 = vrot.lane.b32.xlu0 %v11069_v50, %s11160_s17 }
 0x859   : > { %v10806_v54 = vpop.permute.xlu1 %10805 }
 0x85a   : > { %v10808_v3 = vunpack.i.h.bf16 %v10806_v54  ;;  %v10807_v13 = vunpack.i.l.bf16 %v10806_v54 }
 0x85c   : > { %v9771_v62 = vpack.c.bf16 %v10813_v12, %v10808_v3  ;;  %v6291_v4 = vsel %vm5939_vm6, %v10807_v13, %v10808_v3 }
 0x85d   : > { %v10816_v39 = vpop.permute.xlu1 %10815  ;;  %v9740_v61 = vpack.c.bf16 %v6293_v43, %v6291_v4 }
 0x85e   : > { %v10818_v27 = vunpack.i.h.bf16 %v10816_v39  ;;  %v10817_v59 = vunpack.i.l.bf16 %v10816_v39  ;;  %9772 = vmatpush3.bf16.msra.mxu0 %v9771_v62  ;;  %v6301_v62 = vsel %vm5939_vm6, %v10827_v44, %v10828_v25 }
 0x85f   : > { %9741 = vmatprep.subr.bf16.mxu1 %v9740_v61  ;;  %9773 = vmatprep.subr.bf16.mxu0 %v11158_v7 }
 0x860   : > { %v6292_v14 = vsel %vm5939_vm6, %v10818_v27, %v10812_v63  ;;  %v6290_v41 = vsel %vm5939_vm6, %v10817_v59, %v10807_v13 }
 0x861   : > { %v9742_v17 = vpack.c.bf16 %v6292_v14, %v6290_v41  ;;  %v10821_v30 = vpop.permute.xlu1 %10820 }
 0x862   : > { %v10823_v37 = vunpack.i.h.bf16 %v10821_v30  ;;  %v10822_v31 = vunpack.i.l.bf16 %v10821_v30 }
 0x863   : > { %9743 = vmatpush1.bf16.msra.mxu1 %v9742_v17 }
 0x864   : > { %v9777_v57 = vpack.c.bf16 %v10828_v25, %v10823_v37  ;;  %v6299_v50 = vsel %vm5939_vm6, %v10822_v31, %v10823_v37 }
 0x865   : > { %v10831_v26 = vpop.permute.xlu1 %10830  ;;  %v9748_v59 = vpack.c.bf16 %v6301_v62, %v6299_v50 }
 0x866   : > { %v10833_v29 = vunpack.i.h.bf16 %v10831_v26  ;;  %v10832_v60 = vunpack.i.l.bf16 %v10831_v26 }
 0x868   : > { %v6300_v4 = vsel %vm5939_vm6, %v10833_v29, %v10827_v44  ;;  %v6298_v43 = vsel %vm5939_vm6, %v10832_v60, %v10822_v31 }
 0x869   : > { %v16260_v28 = vpop.permute.xlu1 %10835  ;;  %v9750_v26 = vpack.c.bf16 %v6300_v4, %v6298_v43 }
 0x86a   : > { %v16262_v53 = vpop.permute.xlu0 %10840  ;;  %v10838_v8 = vunpack.i.h.bf16 %v16260_v28  ;;  %v10837_v14 = vunpack.i.l.bf16 %v16260_v28 }
 0x86b   : > { %v10843_v36 = vunpack.i.h.bf16 %v16262_v53  ;;  %v10842_v41 = vunpack.i.l.bf16 %v16262_v53 }
 0x86d   : > { %v16264_v45 = vpop.permute.xlu1 %10845  ;;  %v9783_v17 = vpack.c.bf16 %v10843_v36, %v10838_v8 }
 0x86e   : > { %v10851_v34 = vpop.permute.xlu0 %10850  ;;  %v10847_v28 = vunpack.i.l.bf16 %v16264_v45 }
 0x86f   : > { %v10853_v55 = vunpack.i.h.bf16 %v10851_v34  ;;  %v10852_v11 = vunpack.i.l.bf16 %v10851_v34  ;;  %v10848_v34 = vunpack.i.h.bf16 %v16264_v45 }
 0x870   : > { %v6306_v60 = vsel %vm5939_vm6, %v10847_v28, %v10837_v14 }
 0x871   : > { %v10866_v32 = vpop.permute.xlu1 %10865  ;;  %v6295_v20 = vsel %vm5939_vm6, %v10852_v11, %v10853_v55  ;;  %v6308_v29 = vsel %vm5939_vm6, %v10848_v34, %v10842_v41 }
 0x872   : > { %v10868_v48 = vunpack.i.h.bf16 %v10866_v32  ;;  %v10867_v24 = vunpack.i.l.bf16 %v10866_v32  ;;  %v16266_v21 = vpop.permute.xlu0 %10855 }
 0x873   : > { %v10858_v9 = vunpack.i.h.bf16 %v16266_v21  ;;  %v10857_v39 = vunpack.i.l.bf16 %v16266_v21 }
 0x874   : > { %v9774_v46 = vpack.c.bf16 %v10868_v48, %v10853_v55  ;;  %v6297_v47 = vsel %vm5939_vm6, %v10867_v24, %v10868_v48 }
 0x875   : > { %v16270_v56 = vpop.permute.xlu1 %10870  ;;  %v9744_v58 = vpack.c.bf16 %v6297_v47, %v6295_v20  ;;  %v6303_v48 = vsel %vm5939_vm6, %v10857_v39, %v10858_v9  ;;  %v6307_v20 = vsel %vm5939_vm6, %v10837_v14, %v10838_v8  ;;  %v6309_v47 = vsel %vm5939_vm6, %v10842_v41, %v10843_v36 }
 0x876   : > { %v16272_v5 = vpop.permute.xlu0 %10860  ;;  %9775 = vmatpush3.bf16.msra.mxu0 %v9774_v46 }
 0x877   : > { %9745 = vmatprep.subr.bf16.mxu1 %v9744_v58  ;;  %9776 = vmatprep.subr.bf16.mxu0 %v11158_v7  ;;  %v10863_v55 = vunpack.i.h.bf16 %v16272_v5  ;;  %v10862_v45 = vunpack.i.l.bf16 %v16272_v5  ;;  %v9758_v5 = vpack.c.bf16 %v6308_v29, %v6306_v60 }
 0x879   : > { %v10886_v15 = vpop.permute.xlu1 %10885 }
 0x87a   : > { %v10888_v18 = vunpack.i.h.bf16 %v10886_v15  ;;  %9778 = vmatpush3.bf16.msra.mxu0 %v9777_v57  ;;  %v10876_v6 = vpop.permute.xlu0 %10875  ;;  %v10887_v63 = vunpack.i.l.bf16 %v10886_v15  ;;  %v7981_v15 = vld [vmem:[%s16508_s9 + $0x4] sm:$0x7] }
 0x87b   : > { %v10878_v23 = vunpack.i.h.bf16 %v10876_v6  ;;  %v10877_v10 = vunpack.i.l.bf16 %v10876_v6  ;;  %9779 = vmatprep.subr.bf16.mxu0 %v11158_v7 }
 0x87c   : > { %v9780_v12 = vpack.c.bf16 %v10888_v18, %v10858_v9  ;;  %v6305_v30 = vsel %vm5939_vm6, %v10887_v63, %v10888_v18  ;;  %v9756_v9 = vpack.c.bf16 %v6309_v47, %v6307_v20 }
 0x87d   : > { %v6296_v54 = vsel %vm5939_vm6, %v10878_v23, %v10867_v24  ;;  %v6294_v3 = vsel %vm5939_vm6, %v10877_v10, %v10852_v11  ;;  %v16282_v13 = vpop.permute.xlu1 %10890  ;;  %v9752_v21 = vpack.c.bf16 %v6305_v30, %v6303_v48  ;;  %v6311_v10 = vsel %vm5939_vm6, %v10862_v45, %v10863_v55 }
 0x87e   : > { %v9746_v61 = vpack.c.bf16 %v6296_v54, %v6294_v3  ;;  %9781 = vmatpush3.bf16.msra.mxu0 %v9780_v12  ;;  %v16288_v27 = vpop.permute.xlu0 %10880  ;;  %v10893_v14 = vunpack.i.h.bf16 %v16282_v13  ;;  %v10892_v41 = vunpack.i.l.bf16 %v16282_v13 }
 0x87f   : > { %9782 = vmatprep.subr.bf16.mxu0 %v11158_v7  ;;  %v10883_v12 = vunpack.i.h.bf16 %v16288_v27 }
 0x880   : > { %9747 = vmatpush1.bf16.msra.mxu1 %v9746_v61  ;;  %v10872_v61 = vunpack.i.l.bf16 %v16270_v56 }
 0x881   : > { %v10906_v0 = vpop.permute.xlu1 %10905  ;;  %9749 = vmatprep.subr.bf16.mxu1 %v9748_v59 }
 0x882   : > { %v10908_v11 = vunpack.i.h.bf16 %v10906_v0  ;;  %9784 = vmatpush3.bf16.msra.mxu0 %v9783_v17  ;;  %v10896_v32 = vpop.permute.xlu0 %10895  ;;  %v10907_v46 = vunpack.i.l.bf16 %v10906_v0  ;;  %v6583_v34 = vsel %vm5984_vm7, %v10892_v41, %v10872_v61 }
 0x883   : > { %v10898_v24 = vunpack.i.h.bf16 %v10896_v32  ;;  %v10897_v53 = vunpack.i.l.bf16 %v10896_v32  ;;  %9785 = vmatprep.subr.bf16.mxu0 %v11158_v7 }
 0x884   : > { %v9786_v37 = vpack.c.bf16 %v10908_v11, %v10863_v55  ;;  %9751 = vmatpush1.bf16.msra.mxu1 %v9750_v26  ;;  %v6313_v18 = vsel %vm5939_vm6, %v10907_v46, %v10908_v11 }
 0x885   : > { %v6304_v58 = vsel %vm5939_vm6, %v10898_v24, %v10887_v63  ;;  %v6302_v25 = vsel %vm5939_vm6, %v10897_v53, %v10857_v39  ;;  %v16303_v31 = vpop.permute.xlu1 %10910  ;;  %9753 = vmatprep.subr.bf16.mxu1 %v9752_v21  ;;  %v9760_v36 = vpack.c.bf16 %v6313_v18, %v6311_v10  ;;  %v10882_v39 = vunpack.i.l.bf16 %v16288_v27 }
 0x886   : > { %v9754_v57 = vpack.c.bf16 %v6304_v58, %v6302_v25  ;;  %9787 = vmatpush3.bf16.msra.mxu0 %v9786_v37  ;;  %v16306_v44 = vpop.permute.xlu0 %10900  ;;  %v10913_v11 = vunpack.i.h.bf16 %v16303_v31  ;;  %v10912_v21 = vunpack.i.l.bf16 %v16303_v31 }
 0x887   : > { %9820 = vmatprep.subr.bf16.mxu0 %v11158_v7  ;;  %v10903_v17 = vunpack.i.h.bf16 %v16306_v44  ;;  %v6585_v55 = vsel %vm5984_vm7, %v10893_v14, %v10882_v39  ;;  %v10902_v32 = vunpack.i.l.bf16 %v16306_v44 }
 0x888   : > { %9755 = vmatpush1.bf16.msra.mxu1 %v9754_v57  ;;  %v9798_v53 = vpack.c.bf16 %v6585_v55, %v6583_v34 }
 0x889   : > { %v16315_v6 = vpop.permute.xlu1 %10925  ;;  %9757 = vmatprep.subr.bf16.mxu1 %v9756_v9  ;;  %9028 = vmatmul.mubr.f32.vlgmr.msra.gmra.mrb[86].mxu0 %v7981_v15  ;;  %v6588_v25 = vsel %vm5984_vm7, %v10902_v32, %v10903_v17 }
 0x88a   : > { %9822 = vmatpush3.bf16.msra.mxu0 %v16081_v16  ;;  %v10916_v23 = vpop.permute.xlu0 %10915  ;;  %9062 = vmatprep.mubr.msk.f32.mxu0 %vm11161_vm5, %v11157_v52  ;;  %v10873_v16 = vunpack.i.h.bf16 %v16270_v56 }
 0x88b   : > { %v10918_v50 = vunpack.i.h.bf16 %v10916_v23  ;;  %v10917_v8 = vunpack.i.l.bf16 %v10916_v23  ;;  %9823 = vmatprep.subr.bf16.mxu0 %v11158_v7 }
 0x88c   : > { %9759 = vmatpush1.bf16.msra.mxu1 %v9758_v5  ;;  %v9827_v43 = vpack.c.bf16 %v10883_v12, %v10873_v16  ;;  %v6584_v0 = vsel %vm5984_vm7, %v10872_v61, %v10873_v16 }
 0x88d   : > { %v6312_v63 = vsel %vm5939_vm6, %v10918_v50, %v10907_v46  ;;  %v6310_v54 = vsel %vm5939_vm6, %v10917_v8, %v10862_v45  ;;  %v16325_v3 = vpop.permute.xlu1 %10935  ;;  %9761 = vmatprep.subr.bf16.mxu1 %v9760_v36  ;;  %v10928_v46 = vunpack.i.h.bf16 %v16315_v6  ;;  %v10927_v45 = vunpack.i.l.bf16 %v16315_v6 }
 0x88e   : > { %v9762_v62 = vpack.c.bf16 %v6312_v63, %v6310_v54  ;;  %9825 = vmatpush3.bf16.msra.mxu0 %v16113_v35  ;;  %v16329_v4 = vpop.permute.xlu0 %10920  ;;  %v6592_v6 = vsel %vm5984_vm7, %v10912_v21, %v10913_v11  ;;  %v10938_v23 = vunpack.i.h.bf16 %v16325_v3 }
 0x88f   : > { %9826 = vmatprep.subr.bf16.mxu0 %v11158_v7  ;;  %v10923_v27 = vunpack.i.h.bf16 %v16329_v4  ;;  %v10922_v24 = vunpack.i.l.bf16 %v16329_v4  ;;  %v6591_v63 = vsel %vm5984_vm7, %v10927_v45, %v10912_v21  ;;  %v10937_v4 = vunpack.i.l.bf16 %v16325_v3 }
 0x890   : > { %9763 = vmatpush1.bf16.msra.mxu1 %v9762_v62 }
 0x891   : > { %v10946_v59 = vpop.permute.xlu1 %10945  ;;  %9789 = vmatprep.subr.bf16.mxu1 %v16087_v33  ;;  %v6586_v33 = vsel %vm5984_vm7, %v10882_v39, %v10883_v12  ;;  %v9833_v28 = vpack.c.bf16 %v10923_v27, %v10913_v11  ;;  %v6594_v60 = vsel %vm5984_vm7, %v10922_v24, %v10923_v27  ;;  %v6593_v10 = vsel %vm5984_vm7, %v10928_v46, %v10922_v24 }
 0x892   : > { %v10948_v35 = vunpack.i.h.bf16 %v10946_v59  ;;  %v16338_v30 = vpop.permute.xlu0 %10930  ;;  %9828 = vmatpush3.bf16.msra.mxu0 %v9827_v43  ;;  %v10947_v26 = vunpack.i.l.bf16 %v10946_v59  ;;  %v9804_v12 = vpack.c.bf16 %v6594_v60, %v6592_v6  ;;  %v9806_v43 = vpack.c.bf16 %v6593_v10, %v6591_v63 }
 0x893   : > { %6415 = vmatmul.mubr.f32.vlgmr.msra.gmra.mrb[98].mxu1 %v7981_v15  ;;  %9829 = vmatprep.subr.bf16.mxu0 %v11158_v7  ;;  %v10933_v20 = vunpack.i.h.bf16 %v16338_v30  ;;  %v10932_v50 = vunpack.i.l.bf16 %v16338_v30 }
 0x894   : > { %v9830_v56 = vpack.c.bf16 %v10948_v35, %v10903_v17  ;;  %9791 = vmatpush1.bf16.msra.mxu1 %v16098_v22  ;;  %6707 = vmatprep.mubr.f32.mxu1 %v11157_v52  ;;  %v9796_v22 = vpack.c.bf16 %v6586_v33, %v6584_v0 }
 0x895   : > { %v16345_v13 = vpop.permute.xlu1 %10950  ;;  %9793 = vmatprep.subr.bf16.mxu1 %v16118_v19  ;;  %v6590_v19 = vsel %vm5984_vm7, %v10947_v26, %v10948_v35  ;;  %v6596_v17 = vsel %vm5984_vm7, %v10932_v50, %v10933_v20 }
 0x896   : > { %v16353_v48 = vpop.permute.xlu0 %10940  ;;  %9831 = vmatpush3.bf16.msra.mxu0 %v9830_v56  ;;  %v9800_v44 = vpack.c.bf16 %v6590_v19, %v6588_v25  ;;  %v10953_v61 = vunpack.i.h.bf16 %v16345_v13  ;;  %v10952_v35 = vunpack.i.l.bf16 %v16345_v13 }
 0x897   : > { %9832 = vmatprep.subr.bf16.mxu0 %v11158_v7  ;;  %v10943_v31 = vunpack.i.h.bf16 %v16353_v48  ;;  %v10942_v16 = vunpack.i.l.bf16 %v16353_v48  ;;  %v6600_v48 = vsel %vm5984_vm7, %v10937_v4, %v10938_v23 }
 0x898   : > { %9795 = vmatpush1.bf16.msra.mxu1 %v16121_v1 }
 0x899   : > { %v10966_v37 = vpop.permute.xlu1 %10965  ;;  %9797 = vmatprep.subr.bf16.mxu1 %v9796_v22  ;;  %v9839_v54 = vpack.c.bf16 %v10943_v31, %v10938_v23  ;;  %v6602_v33 = vsel %vm5984_vm7, %v10942_v16, %v10943_v31  ;;  %v7982_v22 = vld [vmem:[%s16508_s9 + $0x8] sm:$0x7]  ;;  %v6601_v24 = vsel %vm5984_vm7, %v10953_v61, %v10942_v16 }
 0x89a   : > { %v10968_v47 = vunpack.i.h.bf16 %v10966_v37  ;;  %v10956_v58 = vpop.permute.xlu0 %10955  ;;  %9834 = vmatpush3.bf16.msra.mxu0 %v9833_v28  ;;  %v10967_v15 = vunpack.i.l.bf16 %v10966_v37  ;;  %v6599_v28 = vsel %vm5984_vm7, %v10952_v35, %v10937_v4  ;;  %v9812_v19 = vpack.c.bf16 %v6602_v33, %v6600_v48 }
 0x89b   : > { %v10958_v57 = vunpack.i.h.bf16 %v10956_v58  ;;  %v10957_v1 = vunpack.i.l.bf16 %v10956_v58  ;;  %9835 = vmatprep.subr.bf16.mxu0 %v11158_v7  ;;  %v9814_v37 = vpack.c.bf16 %v6601_v24, %v6599_v28 }
 0x89c   : > { %v9836_v29 = vpack.c.bf16 %v10968_v47, %v10933_v20  ;;  %9799 = vmatpush1.bf16.msra.mxu1 %v9798_v53  ;;  %v6598_v62 = vsel %vm5984_vm7, %v10967_v15, %v10968_v47 }
 0x89d   : > { %v6589_v9 = vsel %vm5984_vm7, %v10958_v57, %v10947_v26  ;;  %v6587_v18 = vsel %vm5984_vm7, %v10957_v1, %v10902_v32  ;;  %v16369_v5 = vpop.permute.xlu1 %10970  ;;  %9801 = vmatprep.subr.bf16.mxu1 %v9800_v44  ;;  %v9808_v26 = vpack.c.bf16 %v6598_v62, %v6596_v17 }
 0x89e   : > { %v9802_v8 = vpack.c.bf16 %v6589_v9, %v6587_v18  ;;  %v10961_v36 = vpop.permute.xlu0 %10960  ;;  %9837 = vmatpush3.bf16.msra.mxu0 %v9836_v29  ;;  %v10972_v9 = vunpack.i.l.bf16 %v16369_v5 }
 0x89f   : > { %9838 = vmatprep.subr.bf16.mxu0 %v11158_v7  ;;  %v10963_v59 = vunpack.i.h.bf16 %v10961_v36  ;;  %v10962_v11 = vunpack.i.l.bf16 %v10961_v36 }
 0x8a0   : > { %9803 = vmatpush1.bf16.msra.mxu1 %v9802_v8 }
 0x8a1   : > { %v10986_v39 = vpop.permute.xlu1 %10985  ;;  %9805 = vmatprep.subr.bf16.mxu1 %v9804_v12  ;;  %v6604_v20 = vsel %vm5984_vm7, %v10962_v11, %v10963_v59 }
 0x8a2   : > { %v10988_v14 = vunpack.i.h.bf16 %v10986_v39  ;;  %v10976_v41 = vpop.permute.xlu0 %10975  ;;  %9840 = vmatpush3.bf16.msra.mxu0 %v9839_v54  ;;  %v10987_v56 = vunpack.i.l.bf16 %v10986_v39 }
 0x8a3   : > { %v10978_v30 = vunpack.i.h.bf16 %v10976_v41  ;;  %v10977_v27 = vunpack.i.l.bf16 %v10976_v41  ;;  %9841 = vmatprep.subr.bf16.mxu0 %v11158_v7 }
 0x8a4   : > { %v9842_v3 = vpack.c.bf16 %v10988_v14, %v10963_v59  ;;  %9807 = vmatpush1.bf16.msra.mxu1 %v9806_v43  ;;  %v6606_v53 = vsel %vm5984_vm7, %v10987_v56, %v10988_v14 }
 0x8a5   : > { %v6597_v0 = vsel %vm5984_vm7, %v10978_v30, %v10967_v15  ;;  %v6595_v34 = vsel %vm5984_vm7, %v10977_v27, %v10932_v50  ;;  %v16387_v55 = vpop.permute.xlu1 %10990  ;;  %9809 = vmatprep.subr.bf16.mxu1 %v9808_v26  ;;  %v9816_v25 = vpack.c.bf16 %v6606_v53, %v6604_v20 }
 0x8a6   : > { %v9810_v32 = vpack.c.bf16 %v6597_v0, %v6595_v34  ;;  %v10981_v13 = vpop.permute.xlu0 %10980  ;;  %9843 = vmatpush3.bf16.msra.mxu0 %v9842_v3  ;;  %v10993_v6 = vunpack.i.h.bf16 %v16387_v55  ;;  %v10992_v23 = vunpack.i.l.bf16 %v16387_v55 }
 0x8a7   : > { %9876 = vmatprep.subr.bf16.mxu0 %v11158_v7  ;;  %v10983_v45 = vunpack.i.h.bf16 %v10981_v13  ;;  %v10982_v60 = vunpack.i.l.bf16 %v10981_v13 }
 0x8a8   : > { %9811 = vmatpush1.bf16.msra.mxu1 %v9810_v32  ;;  %v6876_v54 = vsel %vm6029_vm8, %v10992_v23, %v10972_v9 }
 0x8a9   : > { %v16397_v21 = vpop.permute.xlu1 %11005  ;;  %9813 = vmatprep.subr.bf16.mxu1 %v9812_v19  ;;  %9063 = vmatmul.mubr.f32.vlgmr.msra.gmra.mrb[88].mxu0 %v7982_v22  ;;  %v6878_v16 = vsel %vm6029_vm8, %v10993_v6, %v10982_v60 }
 0x8aa   : > { %v10996_v46 = vpop.permute.xlu0 %10995  ;;  %9878 = vmatpush3.bf16.msra.mxu0 %v16131_v49  ;;  %9097 = vmatprep.mubr.msk.f32.mxu0 %vm11161_vm5, %v11157_v52  ;;  %v10973_v49 = vunpack.i.h.bf16 %v16369_v5  ;;  %v6879_v5 = vsel %vm6029_vm8, %v10982_v60, %v10983_v45  ;;  %v11008_v62 = vunpack.i.h.bf16 %v16397_v21  ;;  %v9854_v61 = vpack.c.bf16 %v6878_v16, %v6876_v54 }
 0x8ab   : > { %v10998_v47 = vunpack.i.h.bf16 %v10996_v46  ;;  %v10997_v58 = vunpack.i.l.bf16 %v10996_v46  ;;  %9879 = vmatprep.subr.bf16.mxu0 %v11158_v7  ;;  %v11007_v14 = vunpack.i.l.bf16 %v16397_v21 }
 0x8ac   : > { %9815 = vmatpush1.bf16.msra.mxu1 %v9814_v37  ;;  %v9883_v29 = vpack.c.bf16 %v10983_v45, %v10973_v49  ;;  %v6877_v63 = vsel %vm6029_vm8, %v10972_v9, %v10973_v49 }
 0x8ad   : > { %v6605_v57 = vsel %vm5984_vm7, %v10998_v47, %v10987_v56  ;;  %v6603_v1 = vsel %vm5984_vm7, %v10997_v58, %v10962_v11  ;;  %v16406_v44 = vpop.permute.xlu1 %11015  ;;  %9817 = vmatprep.subr.bf16.mxu1 %v9816_v25  ;;  %v6885_v28 = vsel %vm6029_vm8, %v11007_v14, %v11008_v62 }
 0x8ae   : > { %v9818_v31 = vpack.c.bf16 %v6605_v57, %v6603_v1  ;;  %v11001_v15 = vpop.permute.xlu0 %11000  ;;  %9881 = vmatpush3.bf16.msra.mxu0 %v16153_v51  ;;  %v11018_v0 = vunpack.i.h.bf16 %v16406_v44  ;;  %v11017_v34 = vunpack.i.l.bf16 %v16406_v44 }
 0x8af   : > { %9882 = vmatprep.subr.bf16.mxu0 %v11158_v7  ;;  %v11003_v10 = vunpack.i.h.bf16 %v11001_v15  ;;  %v11002_v4 = vunpack.i.l.bf16 %v11001_v15 }
 0x8b0   : > { %9819 = vmatpush1.bf16.msra.mxu1 %v9818_v31  ;;  %v6884_v20 = vsel %vm6029_vm8, %v11017_v34, %v11007_v14 }
 0x8b1   : > { %v11026_v18 = vpop.permute.xlu1 %11025  ;;  %9845 = vmatprep.subr.bf16.mxu1 %v16126_v2  ;;  %v6881_v30 = vsel %vm6029_vm8, %v11002_v4, %v11003_v10 }
 0x8b2   : > { %v11028_v50 = vunpack.i.h.bf16 %v11026_v18  ;;  %v11011_v8 = vpop.permute.xlu0 %11010  ;;  %9884 = vmatpush3.bf16.msra.mxu0 %v9883_v29  ;;  %v11027_v51 = vunpack.i.l.bf16 %v11026_v18 }
 0x8b3   : > { %6708 = vmatmul.mubr.f32.vlgmr.msra.gmra.mrb[100].mxu1 %v7982_v22  ;;  %9885 = vmatprep.subr.bf16.mxu0 %v11158_v7  ;;  %v11013_v12 = vunpack.i.h.bf16 %v11011_v8  ;;  %v11012_v39 = vunpack.i.l.bf16 %v11011_v8 }
 0x8b4   : > { %v9886_v36 = vpack.c.bf16 %v11028_v50, %v11003_v10  ;;  %9847 = vmatpush1.bf16.msra.mxu1 %v16142_v42  ;;  %7000 = vmatprep.mubr.f32.mxu1 %v11157_v52  ;;  %v9852_v42 = vpack.c.bf16 %v6879_v5, %v6877_v63 }
 0x8b5   : > { %v16419_v2 = vpop.permute.xlu1 %11030  ;;  %9849 = vmatprep.subr.bf16.mxu1 %v16157_v40  ;;  %v9889_v52 = vpack.c.bf16 %v11013_v12, %v11008_v62  ;;  %v6883_v40 = vsel %vm6029_vm8, %v11027_v51, %v11028_v50  ;;  %v6887_v33 = vsel %vm6029_vm8, %v11012_v39, %v11013_v12  ;;  %v6886_v24 = vsel %vm6029_vm8, %v11018_v0, %v11012_v39 }
 0x8b6   : > { %v16426_v43 = vpop.permute.xlu0 %11020  ;;  %9887 = vmatpush3.bf16.msra.mxu0 %v9886_v36  ;;  %v9856_v56 = vpack.c.bf16 %v6883_v40, %v6881_v30  ;;  %v11033_v19 = vunpack.i.h.bf16 %v16419_v2  ;;  %v9860_v21 = vpack.c.bf16 %v6887_v33, %v6885_v28  ;;  %v9862_v58 = vpack.c.bf16 %v6886_v24, %v6884_v20 }
 0x8b7   : > { %9888 = vmatprep.subr.bf16.mxu0 %v11158_v7  ;;  %v11023_v41 = vunpack.i.h.bf16 %v16426_v43  ;;  %v11022_v13 = vunpack.i.l.bf16 %v16426_v43  ;;  %v11032_v25 = vunpack.i.l.bf16 %v16419_v2 }
 0x8b8   : > { %9851 = vmatpush1.bf16.msra.mxu1 %v16160_v38 }
 0x8b9   : > { %v11046_v59 = vpop.permute.xlu1 %11045  ;;  %9853 = vmatprep.subr.bf16.mxu1 %v9852_v42  ;;  %v6889_v44 = vsel %vm6029_vm8, %v11022_v13, %v11023_v41 }
 0x8ba   : > { %v11048_v17 = vunpack.i.h.bf16 %v11046_v59  ;;  %v11036_v35 = vpop.permute.xlu0 %11035  ;;  %9890 = vmatpush3.bf16.msra.mxu0 %v9889_v52  ;;  %v11047_v38 = vunpack.i.l.bf16 %v11046_v59  ;;  %v7983_v52 = vld [vmem:[%s16508_s9 + $0xc] sm:$0x7] }
 0x8bb   : > { %v11038_v27 = vunpack.i.h.bf16 %v11036_v35  ;;  %v11037_v26 = vunpack.i.l.bf16 %v11036_v35  ;;  %9891 = vmatprep.subr.bf16.mxu0 %v11158_v7 }
 0x8bc   : > { %v9892_v3 = vpack.c.bf16 %v11048_v17, %v11023_v41  ;;  %9855 = vmatpush1.bf16.msra.mxu1 %v9854_v61  ;;  %v6891_v46 = vsel %vm6029_vm8, %v11047_v38, %v11048_v17 }
 0x8bd   : > { %v6882_v55 = vsel %vm6029_vm8, %v11038_v27, %v11027_v51  ;;  %v6880_v11 = vsel %vm6029_vm8, %v11037_v26, %v11002_v4  ;;  %v11051_v32 = vpop.permute.xlu1 %11050  ;;  %9857 = vmatprep.subr.bf16.mxu1 %v9856_v56  ;;  %v9864_v29 = vpack.c.bf16 %v6891_v46, %v6889_v44  ;;  %v6893_v51 = vsel %vm6029_vm8, %v11032_v25, %v11033_v19 }
 0x8be   : > { %v9858_v48 = vpack.c.bf16 %v6882_v55, %v6880_v11  ;;  %v11041_v22 = vpop.permute.xlu0 %11040  ;;  %9893 = vmatpush3.bf16.msra.mxu0 %v9892_v3  ;;  %v11052_v45 = vunpack.i.l.bf16 %v11051_v32  ;;  %v11053_v49 = vunpack.i.h.bf16 %v11051_v32 }
 0x8bf   : > { %v11043_v53 = vunpack.i.h.bf16 %v11041_v22  ;;  %9894 = vmatprep.subr.bf16.mxu0 %v11158_v7  ;;  %v11042_v37 = vunpack.i.l.bf16 %v11041_v22 }
 0x8c0   : > { %9859 = vmatpush1.bf16.msra.mxu1 %v9858_v48  ;;  %v6892_v10 = vsel %vm6029_vm8, %v11052_v45, %v11032_v25 }
 0x8c1   : > { %v9895_v47 = vpack.c.bf16 %v11043_v53, %v11033_v19  ;;  %9861 = vmatprep.subr.bf16.mxu1 %v9860_v21  ;;  %v11066_v57 = vpop.permute.xlu1 %11065  ;;  %v6895_v60 = vsel %vm6029_vm8, %v11042_v37, %v11043_v53  ;;  %v6894_v36 = vsel %vm6029_vm8, %v11053_v49, %v11042_v37 }
 0x8c2   : > { %v11056_v1 = vpop.permute.xlu0 %11055  ;;  %v11068_v9 = vunpack.i.h.bf16 %v11066_v57  ;;  %v11067_v18 = vunpack.i.l.bf16 %v11066_v57  ;;  %v9868_v2 = vpack.c.bf16 %v6895_v60, %v6893_v51  ;;  %v9870_v16 = vpack.c.bf16 %v6894_v36, %v6892_v10 }
 0x8c3   : > { %v11058_v31 = vunpack.i.h.bf16 %v11056_v1  ;;  %v11057_v15 = vunpack.i.l.bf16 %v11056_v1  ;;  %9896 = vmatpush3.bf16.msra.mxu0 %v9895_v47 }
 0x8c4   : > { %9863 = vmatpush1.bf16.msra.mxu1 %v9862_v58  ;;  %9897 = vmatprep.subr.bf16.mxu0 %v11158_v7  ;;  %v6899_v54 = vsel %vm6029_vm8, %v11067_v18, %v11068_v9 }
 0x8c5   : > { %v6890_v6 = vsel %vm6029_vm8, %v11058_v31, %v11047_v38  ;;  %v6888_v23 = vsel %vm6029_vm8, %v11057_v15, %v11022_v13  ;;  %9865 = vmatprep.subr.bf16.mxu1 %v9864_v29 }
 0x8c6   : > { %v9866_v50 = vpack.c.bf16 %v6890_v6, %v6888_v23  ;;  %v11061_v8 = vpop.permute.xlu0 %11060 }
 0x8c7   : > { %v11063_v12 = vunpack.i.h.bf16 %v11061_v8  ;;  %v11062_v5 = vunpack.i.l.bf16 %v11061_v8 }
 0x8c8   : > { %9867 = vmatpush1.bf16.msra.mxu1 %v9866_v50 }
 0x8c9   : > { %v9898_v7 = vpack.c.bf16 %v11068_v9, %v11063_v12  ;;  %9869 = vmatprep.subr.bf16.mxu1 %v9868_v2  ;;  %v6897_v63 = vsel %vm6029_vm8, %v11062_v5, %v11063_v12 }
 0x8ca   : > { %v11071_v62 = vpop.permute.xlu0 %11070  ;;  %v9872_v4 = vpack.c.bf16 %v6899_v54, %v6897_v63 }
 0x8cb   : > { %v11073_v43 = vunpack.i.h.bf16 %v11071_v62  ;;  %v11072_v42 = vunpack.i.l.bf16 %v11071_v62  ;;  %9899 = vmatpush3.bf16.msra.mxu0 %v9898_v7 }
 0x8cc   : > { %9871 = vmatpush1.bf16.msra.mxu1 %v9870_v16 }
 0x8cd   : > { %v6898_v39 = vsel %vm6029_vm8, %v11073_v43, %v11067_v18  ;;  %v6896_v40 = vsel %vm6029_vm8, %v11072_v42, %v11062_v5  ;;  %9873 = vmatprep.subr.bf16.mxu1 %v9872_v4 }
 0x8ce   : > { %v9874_v61 = vpack.c.bf16 %v6898_v39, %v6896_v40  ;;  %9098 = vmatmul.mubr.f32.vlgmr.msra.gmra.mrb[90].mxu0 %v7983_v52 }
 0x8d0   : > { %9875 = vmatpush1.bf16.msra.mxu1 %v9874_v61 }
 0x8d2   : > { %v16463_v59 = vpop.permute.xlu1 %6054 }
 0x8d3   : > { %7001 = vmatmul.mubr.f32.vlgmr.msra.gmra.mrb[102].mxu1 %v7983_v52 }
 0x8d4   : > { %v6194_v14 = vpop.f32.mrb[84].mxu0 }
 0x8d5   : > { %v6195_v41 = vadd.f32 %v6194_v14, %v16463_v59  ;;  %v8994_v17 = vpop.f32.mrb[85].mxu0 }
 0x8d7   : > { %v6200_v35 = vsub.f32 0.0, %v6195_v41  ;;  %v6123_v30 = vpop.f32.mrb[96].mxu1 }
 0x8d8   : > { %v6124_v27 = vadd.f32 %v6123_v30, %v16463_v59  ;;  %v6125_v26 = vpop.f32.mrb[97].mxu1 }
 0x8d9   : > { %v6205_v56 = vmul.f32 1.442695, %v6200_v35  ;;  %v6126_v38 = vadd.f32 %v6125_v26, %v16463_v59 }
 0x8da   : > { %v6198_v3 = vsub.f32 0.0, %v6124_v27 }
 0x8db   : > { %11074 = vpow2.f32 %v6205_v56  ;;  %v6199_v33 = vsub.f32 0.0, %v6126_v38 }
 0x8dc   : > { %v6201_v0 = vmul.f32 1.442695, %v6198_v3 }
 0x8dd   : > { %v6203_v34 = vmul.f32 1.442695, %v6199_v33 }
 0x8de   : > { %11076 = vpow2.f32 %v6201_v0 }
 0x8df   : > { %11078 = vpow2.f32 %v6203_v34 }
 0x8e5   : > { %v11075_v55 = vpop.eup %11074 }
 0x8e6   : > { %v6209_v11 = vadd.f32 1.0, %v11075_v55 }
 0x8e8   : > { %v11077_v32 = vpop.eup %11076  ;;  %11080 = vrcp.f32 %v6209_v11 }
 0x8e9   : > { %v11079_v13 = vpop.eup %11078  ;;  %v6207_v48 = vadd.f32 1.0, %v11077_v32 }
 0x8ea   : > { %v6208_v22 = vadd.f32 1.0, %v11079_v13 }
 0x8eb   : > { %11082 = vrcp.f32 %v6207_v48 }
 0x8ec   : > { %11084 = vrcp.f32 %v6208_v22 }
 0x8f2   : > { %v11081_v28 = vpop.eup %11080 }
 0x8f3   : > { %7101 = vst.msk [vmem:[%s16473_s24 + $0x8] sm:$0x7] %vm7100_vm9, %v11081_v28 }
 0x8f5   : > { %v11083_v24 = vpop.eup %11082 }
 0x8f6   : > { %v11085_v19 = vpop.eup %11084 }
 0x8f7   : > { %v7097_v53 = vcombine.low %v11083_v24, %v11085_v19 }
 0x8f9   : > { %7099 = vst [vmem:[%s16473_s24] sm:$0x77] %v7097_v53 }
 0x95c   : > { %v6487_v21 = vpop.f32.mrb[86].mxu0 }
 0x95d   : > { %v6488_v37 = vadd.f32 %v6487_v21, %v16463_v59  ;;  %v9029_v46 = vpop.f32.mrb[87].mxu0 }
 0x95f   : > { %v6493_v20 = vsub.f32 0.0, %v6488_v37 }
 0x961   : > { %v6498_v47 = vmul.f32 1.442695, %v6493_v20 }
 0x963   : > { %11086 = vpow2.f32 %v6498_v47 }
 0x966   : > { %v6416_v58 = vpop.f32.mrb[98].mxu1 }
 0x967   : > { %v6417_v25 = vadd.f32 %v6416_v58, %v16463_v59  ;;  %v6418_v45 = vpop.f32.mrb[99].mxu1 }
 0x968   : > { %v6419_v57 = vadd.f32 %v6418_v45, %v16463_v59 }
 0x969   : > { %v6491_v1 = vsub.f32 0.0, %v6417_v25 }
 0x96a   : > { %v6492_v44 = vsub.f32 0.0, %v6419_v57 }
 0x96b   : > { %v6494_v49 = vmul.f32 1.442695, %v6491_v1 }
 0x96c   : > { %v6496_v31 = vmul.f32 1.442695, %v6492_v44 }
 0x96d   : > { %v11087_v15 = vpop.eup %11086  ;;  %11088 = vpow2.f32 %v6494_v49 }
 0x96e   : > { %v6502_v29 = vadd.f32 1.0, %v11087_v15  ;;  %11090 = vpow2.f32 %v6496_v31 }
 0x970   : > { %11092 = vrcp.f32 %v6502_v29 }
 0x977   : > { %v11089_v60 = vpop.eup %11088 }
 0x978   : > { %v11091_v9 = vpop.eup %11090  ;;  %v6500_v18 = vadd.f32 1.0, %v11089_v60 }
 0x979   : > { %v6501_v6 = vadd.f32 1.0, %v11091_v9 }
 0x97a   : > { %v11093_v23 = vpop.eup %11092  ;;  %11094 = vrcp.f32 %v6500_v18 }
 0x97b   : > { %7985 = vst.msk [vmem:[%s16473_s24 + $0x14] sm:$0x7] %vm7100_vm9, %v11093_v23  ;;  %11096 = vrcp.f32 %v6501_v6 }
 0x97c   : > { %v6780_v10 = vpop.f32.mrb[88].mxu0 }
 0x97d   : > { %v6781_v50 = vadd.f32 %v6780_v10, %v16463_v59  ;;  %v9064_v8 = vpop.f32.mrb[89].mxu0 }
 0x97f   : > { %v6786_v51 = vsub.f32 0.0, %v6781_v50 }
 0x981   : > { %v6791_v36 = vmul.f32 1.442695, %v6786_v51 }
 0x983   : > { %11098 = vpow2.f32 %v6791_v36 }
 0x984   : > { %v11095_v12 = vpop.eup %11094 }
 0x985   : > { %v11097_v5 = vpop.eup %11096 }
 0x986   : > { %v7104_v2 = vcombine.low %v11095_v12, %v11097_v5  ;;  %v6709_v7 = vpop.f32.mrb[100].mxu1 }
 0x987   : > { %v6710_v63 = vadd.f32 %v6709_v7, %v16463_v59  ;;  %v6711_v54 = vpop.f32.mrb[101].mxu1 }
 0x988   : > { %7984 = vst [vmem:[%s16473_s24 + $0xc] sm:$0x77] %v7104_v2  ;;  %v6712_v16 = vadd.f32 %v6711_v54, %v16463_v59 }
 0x989   : > { %v6784_v62 = vsub.f32 0.0, %v6710_v63 }
 0x98a   : > { %v6785_v4 = vsub.f32 0.0, %v6712_v16 }
 0x98b   : > { %v6787_v43 = vmul.f32 1.442695, %v6784_v62 }
 0x98c   : > { %v6789_v42 = vmul.f32 1.442695, %v6785_v4 }
 0x98d   : > { %v11099_v52 = vpop.eup %11098  ;;  %11100 = vpow2.f32 %v6787_v43 }
 0x98e   : > { %v6795_v39 = vadd.f32 1.0, %v11099_v52  ;;  %11102 = vpow2.f32 %v6789_v42 }
 0x990   : > { %11104 = vrcp.f32 %v6795_v39 }
 0x997   : > { %v11101_v40 = vpop.eup %11100 }
 0x998   : > { %v11103_v61 = vpop.eup %11102  ;;  %v6793_v14 = vadd.f32 1.0, %v11101_v40 }
 0x999   : > { %v6794_v41 = vadd.f32 1.0, %v11103_v61 }
 0x99a   : > { %v11105_v17 = vpop.eup %11104  ;;  %11106 = vrcp.f32 %v6793_v14 }
 0x99b   : > { %7987 = vst.msk [vmem:[%s16473_s24 + $0x20] sm:$0x7] %vm7100_vm9, %v11105_v17  ;;  %11108 = vrcp.f32 %v6794_v41 }
 0x9a1   : > { %v7073_v35 = vpop.f32.mrb[90].mxu0 }
 0x9a2   : > { %v7074_v30 = vadd.f32 %v7073_v35, %v16463_v59  ;;  %v9099_v27 = vpop.f32.mrb[91].mxu0 }
 0x9a4   : > { %v11107_v26 = vpop.eup %11106  ;;  %v7079_v56 = vsub.f32 0.0, %v7074_v30 }
 0x9a5   : > { %v11109_v38 = vpop.eup %11108 }
 0x9a6   : > { %v7111_v3 = vcombine.low %v11107_v26, %v11109_v38  ;;  %v7084_v33 = vmul.f32 1.442695, %v7079_v56  ;;  %v7002_v0 = vpop.f32.mrb[102].mxu1 }
 0x9a7   : > { %v7003_v34 = vadd.f32 %v7002_v0, %v16463_v59  ;;  %v7004_v55 = vpop.f32.mrb[103].mxu1 }
 0x9a8   : > { %7986 = vst [vmem:[%s16473_s24 + $0x18] sm:$0x77] %v7111_v3  ;;  %11110 = vpow2.f32 %v7084_v33  ;;  %v7005_v11 = vadd.f32 %v7004_v55, %v16463_v59 }
 0x9a9   : > { %v7077_v32 = vsub.f32 0.0, %v7003_v34 }
 0x9aa   : > { %v7078_v13 = vsub.f32 0.0, %v7005_v11 }
 0x9ab   : > { %v7080_v48 = vmul.f32 1.442695, %v7077_v32 }
 0x9ac   : > { %v7082_v22 = vmul.f32 1.442695, %v7078_v13 }
 0x9ad   : > { %11112 = vpow2.f32 %v7080_v48 }
 0x9ae   : > { %11114 = vpow2.f32 %v7082_v22 }
 0x9b2   : > { %v11111_v28 = vpop.eup %11110 }
 0x9b3   : > { %v7088_v24 = vadd.f32 1.0, %v11111_v28 }
 0x9b5   : > { %11116 = vrcp.f32 %v7088_v24 }
 0x9b7   : > { %v11113_v19 = vpop.eup %11112 }
 0x9b8   : > { %v11115_v53 = vpop.eup %11114  ;;  %v7086_v21 = vadd.f32 1.0, %v11113_v19 }
 0x9b9   : > { %v7087_v37 = vadd.f32 1.0, %v11115_v53 }
 0x9ba   : > { %11118 = vrcp.f32 %v7086_v21 }
 0x9bb   : > { %11120 = vrcp.f32 %v7087_v37 }
 0x9bf   : > { %v11117_v46 = vpop.eup %11116 }
 0x9c0   : > { %7989 = vst.msk [vmem:[%s16473_s24 + $0x2c] sm:$0x7] %vm7100_vm9, %v11117_v46 }
 0x9c4   : > { %v11119_v59 = vpop.eup %11118 }
 0x9c5   : > { %v11121_v20 = vpop.eup %11120 }
 0x9c6   : > { %v7118_v47 = vcombine.low %v11119_v59, %v11121_v20 }
 0x9c8   : > { %7988 = vst [vmem:[%s16473_s24 + $0x24] sm:$0x77] %v7118_v47 }
 0x9c9 PF: > { %s16698_s11 = sld [smem:[#allocation5_spill]] }
 0x9cf   : > { %s22_s17 = sadd.s32 1, %s16698_s11  }
 0x9d0   : > { %p19_p1 = scmp.ge.s32.totalorder %s22_s17, 4  }
 0x9d2   :  { %21 = sbr.rel (!%p19_p1) target bundleno = 4 (0x4), region = 145 }
 0x9d9   :  { %7144 = vsyncpa [#allocation3], 1 }
 0x9da   :  { %7146 = vsyncpa [#allocation3 + $0x1], 1 }

</bundles_post_ra>
